<compile_context>
chip_gen: v5e
topology: v5e:2x2
jax: 0.10.0
libtpu: 0.0.40
codegen_flags: <defaults>
</compile_context>

<pallas_src>
import numpy as np
import jax
import jax.numpy as jnp
from jax import lax
from jax.experimental import pallas as pl
from jax.experimental.pallas import tpu as pltpu

# ----------------------------------------------------------------------------
# Static model geometry (nn.Unflatten(1, (16, 4, 4)) ... ConvTranspose2d(6,1,5))
# ----------------------------------------------------------------------------
NEG_SLOPE = 0.01                 # nn.LeakyReLU default
KSIZE = 5                        # both ConvTranspose2d kernels are 5x5
C0, H0, W0 = 16, 4, 4            # after Unflatten
C1, C2 = 6, 1
H1, W1 = 2 * H0, 2 * W0          # 8   after up1
H1C, W1C = H1 + KSIZE - 1, W1 + KSIZE - 1   # 12  after conv_trans1
H2, W2 = 2 * H1C, 2 * W1C        # 24  after up2
H2C, W2C = H2 + KSIZE - 1, W2 + KSIZE - 1   # 28  after conv_trans2

NB = 32                          # batch tile: all lane widths become k*128
R1 = C0 * H1                     # 128  rows of up1 activation (stack1 block)
R2 = C1 * H2                     # 144  rows of up2 activation (stack2 block)
L1_IN, L1_OUT = W1 * NB, W1C * NB     # 256, 384 lanes around conv_trans1
L2_IN, L2_OUT = W2 * NB, W2C * NB     # 768, 896 lanes around conv_trans2


# ----------------------------------------------------------------------------
# Trace-time numpy constants (weight- and batch-size-independent).
# ----------------------------------------------------------------------------
def _bilinear_matrix(in_size: int, out_size: int) -> np.ndarray:
    """Interp matrix of nn.Upsample(scale_factor=2, mode='bilinear',
    align_corners=False) along one spatial axis."""
    A = np.zeros((out_size, in_size), dtype=np.float32)
    scale = in_size / out_size
    for o in range(out_size):
        src = max((o + 0.5) * scale - 0.5, 0.0)
        i0 = int(np.floor(src))
        lam = src - i0
        i1 = min(i0 + 1, in_size - 1)
        A[o, i0] += 1.0 - lam
        A[o, i1] += lam
    return A


def _band_structure(k: int, h_out: int, h_in: int) -> np.ndarray:
    """S[a, p, q] = 1 iff p == q + a (ConvTranspose2d row-placement band)."""
    S = np.zeros((k, h_out, h_in), dtype=np.float32)
    for a in range(k):
        S[a, np.arange(h_in) + a, np.arange(h_in)] = 1.0
    return S


def _constants():
    a1 = _bilinear_matrix(H0, H1)        # (8, 4)
    a2 = _bilinear_matrix(H1C, H2)       # (24, 12)
    i_nb = np.eye(NB, dtype=np.float32)
    return {
        # height (row) mixing of the two bilinear upsamples, per channel block
        "K1": jnp.asarray(np.kron(np.eye(C0, dtype=np.float32), a1)),  # (128, 64)
        "K2": jnp.asarray(np.kron(np.eye(C1, dtype=np.float32), a2)),  # (144, 72)
        # width (lane) mixing, per width block (batch-minor -> batch independent)
        "M1": jnp.asarray(np.kron(a1.T, i_nb)),                        # (128, 256)
        "M2": jnp.asarray(np.kron(a2.T, i_nb)),                        # (384, 768)
        # banded (oh = h + kh) structure used to expand the conv weights
        "S1": jnp.asarray(_band_structure(KSIZE, H1C, H1)),            # (5, 12, 8)
        "S2": jnp.asarray(_band_structure(KSIZE, H2C, H2)),            # (5, 28, 24)
    }


def _prepare_weights(params, consts):
    """Tiny per-params prep (hoistable): banded weight matrices, concatenated
    along the contraction axis so each conv stage is ONE big-K matmul."""
    w1, b1 = params["w1"], params["b1"]          # (16, 6, 5, 5), (6,)
    w2, b2 = params["w2"], params["b2"]          # (6, 1, 5, 5),  (1,)
    # B[co*OH+oh, kw*CIN*H + ci*H + h] = w[ci, co, oh-h, kw] (0 outside band)
    b1w = jnp.einsum("ioab,aph->opbih", w1, consts["S1"]).reshape(
        C1 * H1C, KSIZE * R1)                                           # (72, 640)
    b2w = jnp.einsum("ioab,aph->opbih", w2, consts["S2"]).reshape(
        C2 * H2C, KSIZE * R2)                                           # (28, 720)
    b1b = jnp.repeat(b1, H1C).reshape(C1 * H1C, 1)                      # (72, 1)
    b2b = jnp.repeat(b2, H2C).reshape(C2 * H2C, 1)                      # (28, 1)
    return b1w, b1b, b2w, b2b


# ----------------------------------------------------------------------------
# The fused kernel (one batch tile of NB images per grid step).
# Layout: rows = (channel, height), lanes = (width, batch-in-tile).
# ----------------------------------------------------------------------------
def _decoder_kernel(x_ref, k1_ref, m1_ref, b1w_ref, b1b_ref,
                    k2_ref, m2_ref, b2w_ref, b2b_ref,
                    o_ref, stack1_ref, stack2_ref):
    dot = lambda a, b: jnp.dot(a, b, preferred_element_type=jnp.float32)
    leaky = lambda v: jnp.where(v >= 0, v, NEG_SLOPE * v)

    x = x_ref[0]                                                   # (64, 128)

    # ---- up1 (2x bilinear) + LeakyReLU ------------------------------------
    a1 = leaky(dot(dot(k1_ref[...], x), m1_ref[...]))              # (128, 256)

    # ---- ConvTranspose2d(16, 6, 5): one big-K matmul ----------------------
    # Stack the 5 kw-shifted copies of a1 along the contraction axis.  Shifts
    # are done on the XLU via pltpu.roll of a zero-right-padded tile; every
    # scratch store is a full-width, aligned row-block write.
    a1p = jnp.concatenate(
        [a1, jnp.zeros((R1, L1_OUT - L1_IN), jnp.float32)], axis=1)  # (128, 384)
    stack1_ref[0:R1, :] = a1p
    for kw in range(1, KSIZE):
        stack1_ref[kw * R1:(kw + 1) * R1, :] = pltpu.roll(a1p, kw * NB, axis=1)
    acc = b1b_ref[...] + dot(b1w_ref[...], stack1_ref[...])         # (72, 384)

    # ---- up2 (2x bilinear) + LeakyReLU ------------------------------------
    a2 = leaky(dot(dot(k2_ref[...], acc), m2_ref[...]))              # (144, 768)

    # ---- ConvTranspose2d(6, 1, 5): one big-K matmul -----------------------
    a2p = jnp.concatenate(
        [a2, jnp.zeros((R2, L2_OUT - L2_IN), jnp.float32)], axis=1)  # (144, 896)
    stack2_ref[0:R2, :] = a2p
    for kw in range(1, KSIZE):
        stack2_ref[kw * R2:(kw + 1) * R2, :] = pltpu.roll(a2p, kw * NB, axis=1)
    o_ref[0] = b2b_ref[...] + dot(b2w_ref[...], stack2_ref[...])     # (28, 896)


# ----------------------------------------------------------------------------
# Wrapper: matches PyTorch LeNet_Decoder.forward, NCHW at the boundary.
# ----------------------------------------------------------------------------
def lenet_decoder_forward(x, params):
    n = x.shape[0]
    t = (n + NB - 1) // NB
    n_pad = t * NB

    consts = _constants()                       # trace-time constants
    b1w, b1b, b2w, b2b = _prepare_weights(params, consts)   # params-only prep

    xp = x.astype(jnp.float32)
    if n_pad != n:
        xp = jnp.pad(xp, ((0, n_pad - n), (0, 0)))
    # Unflatten + relayout: (n_pad, 256) -> (t, rows=(c,h), lanes=(w, m))
    xin = (xp.reshape(t, NB, C0, H0, W0)
             .transpose(0, 2, 3, 4, 1)
             .reshape(t, C0 * H0, W0 * NB))

    grid_spec = pltpu.PrefetchScalarGridSpec(
        num_scalar_prefetch=0,
        grid=(t,),
        in_specs=[
            pl.BlockSpec((1, C0 * H0, W0 * NB), lambda i: (i, 0, 0)),  # x tile
            pl.BlockSpec((C0 * H1, C0 * H0), lambda i: (0, 0)),        # K1
            pl.BlockSpec((W0 * NB, W1 * NB), lambda i: (0, 0)),        # M1
            pl.BlockSpec((C1 * H1C, KSIZE * R1), lambda i: (0, 0)),    # B1 (big-K)
            pl.BlockSpec((C1 * H1C, 1), lambda i: (0, 0)),             # bias1
            pl.BlockSpec((C1 * H2, C1 * H1C), lambda i: (0, 0)),       # K2
            pl.BlockSpec((W1C * NB, W2 * NB), lambda i: (0, 0)),       # M2
            pl.BlockSpec((C2 * H2C, KSIZE * R2), lambda i: (0, 0)),    # B2 (big-K)
            pl.BlockSpec((C2 * H2C, 1), lambda i: (0, 0)),             # bias2
        ],
        out_specs=pl.BlockSpec((1, H2C, W2C * NB), lambda i: (i, 0, 0)),
        scratch_shapes=[
            pltpu.VMEM((KSIZE * R1, L1_OUT), jnp.float32),   # (640, 384)
            pltpu.VMEM((KSIZE * R2, L2_OUT), jnp.float32),   # (720, 896)
        ],
    )

    out = pl.pallas_call(
        _decoder_kernel,
        grid_spec=grid_spec,
        out_shape=jax.ShapeDtypeStruct((t, H2C, W2C * NB), jnp.float32),
        compiler_params=pltpu.CompilerParams(
            dimension_semantics=("parallel",),       # batch tiles -> both TCs on v7x
            vmem_limit_bytes=32 * 1024 * 1024,       # headroom over v5e's 16 MiB default
        ),
    )(xin, consts["K1"], consts["M1"], b1w, b1b,
      consts["K2"], consts["M2"], b2w, b2b)

    # (t, oh, (ow, m)) -> NCHW (n, 1, 28, 28)
    out = (out.reshape(t, H2C, W2C, NB)
              .transpose(0, 3, 1, 2)
              .reshape(n_pad, C2, H2C, W2C))
    return out[:n]


# ----------------------------------------------------------------------------
# Parameter init (PyTorch-style uniform bounds) and a pure-JAX reference used
# only for the in-script numerical self-check.
# ----------------------------------------------------------------------------
def init_params(key):
    k1, k2, k3, k4 = jax.random.split(key, 4)

    def u(k, shape, fan_in):
        bound = 1.0 / np.sqrt(fan_in)
        return jax.random.uniform(k, shape, jnp.float32, -bound, bound)

    return {
        "w1": u(k1, (16, 6, 5, 5), 16 * 25),   # ConvTranspose2d(16, 6, 5).weight
        "b1": u(k2, (6,), 16 * 25),
        "w2": u(k3, (6, 1, 5, 5), 6 * 25),     # ConvTranspose2d(6, 1, 5).weight
        "b2": u(k4, (1,), 6 * 25),
    }


def _upsample2x_ref(x, A):
    # x: (N, C, H, W),  A: (2H, H) bilinear matrix (align_corners=False)
    return jnp.einsum("ph,qw,nchw->ncpq", A, A, x,
                      precision=lax.Precision.HIGHEST)


def _conv_transpose_ref(x, w, bias):
    # x: (N, Ci, H, W); w: (Ci, Co, KH, KW) (PyTorch layout); stride 1, pad 0.
    n, _, h, wd = x.shape
    _, co, kh, kw = w.shape
    out = jnp.zeros((n, co, h + kh - 1, wd + kw - 1), jnp.float32)
    for a in range(kh):
        for c in range(kw):
            out = out.at[:, :, a:a + h, c:c + wd].add(
                jnp.einsum("nihw,id->ndhw", x, w[:, :, a, c],
                           precision=lax.Precision.HIGHEST))
    return out + bias[None, :, None, None]


def lenet_decoder_reference(x, params):
    a1 = jnp.asarray(_bilinear_matrix(H0, H1))
    a2 = jnp.asarray(_bilinear_matrix(H1C, H2))
    leaky = lambda v: jnp.where(v >= 0, v, NEG_SLOPE * v)
    out = x.reshape(x.shape[0], C0, H0, W0)
    out = leaky(_upsample2x_ref(out, a1))
    out = _conv_transpose_ref(out, params["w1"], params["b1"])
    out = leaky(_upsample2x_ref(out, a2))
    out = _conv_transpose_ref(out, params["w2"], params["b2"])
    return out


if __name__ == "__main__":
    key = jax.random.PRNGKey(0)
    kx, kp = jax.random.split(key)
    x = jax.random.normal(kx, (2, 256), jnp.float32)   # (batch, 16*4*4)
    params = init_params(kp)

    fwd = jax.jit(lenet_decoder_forward)
    y = jax.block_until_ready(fwd(x, params))

    assert y.shape == (2, 1, 28, 28), y.shape
    assert bool(jnp.all(jnp.isfinite(y)))

    # Numerical self-check vs a plain-JAX reference (tolerance allows for the
    # MXU's default bf16-pass matmul precision inside the kernel).
    y_ref = lenet_decoder_reference(x, params)
    err = float(jnp.max(jnp.abs(y - y_ref)))
    assert err < 1e-1, f"max abs error vs reference: {err}"
    print("KERNEL_OK")
</pallas_src>

<mosaic_0001>
module attributes {stable_mosaic.version = 11 : i64} {
  func.func @_decoder_kernel(%arg0: i32, %arg1: memref<1x64x128xf32, #tpu.memory_space<vmem>>, %arg2: memref<128x64xf32, #tpu.memory_space<vmem>>, %arg3: memref<128x256xf32, #tpu.memory_space<vmem>>, %arg4: memref<72x640xf32, #tpu.memory_space<vmem>>, %arg5: memref<72x1xf32, #tpu.memory_space<vmem>>, %arg6: memref<144x72xf32, #tpu.memory_space<vmem>>, %arg7: memref<384x768xf32, #tpu.memory_space<vmem>>, %arg8: memref<28x720xf32, #tpu.memory_space<vmem>>, %arg9: memref<28x1xf32, #tpu.memory_space<vmem>>, %arg10: memref<1x28x896xf32, #tpu.memory_space<vmem>>, %arg11: memref<640x384xf32, #tpu.memory_space<vmem>>, %arg12: memref<720x896xf32, #tpu.memory_space<vmem>>) attributes {dimension_semantics = [#tpu.dimension_semantics<parallel>], iteration_bounds = array<i64: 1>, scalar_prefetch = 0 : i64, scratch_operands = 2 : i64, tpu.core_type = #tpu.core_type<tc>, window_params = [{transform_indices = @transform_0, window_bounds = array<i64: 1, 64, 128>}, {pipeline_mode = #tpu.pipeline_mode<synchronous>, transform_indices = @transform_1, window_bounds = array<i64: 128, 64>}, {pipeline_mode = #tpu.pipeline_mode<synchronous>, transform_indices = @transform_2, window_bounds = array<i64: 128, 256>}, {pipeline_mode = #tpu.pipeline_mode<synchronous>, transform_indices = @transform_3, window_bounds = array<i64: 72, 640>}, {pipeline_mode = #tpu.pipeline_mode<synchronous>, transform_indices = @transform_4, window_bounds = array<i64: 72, 1>}, {pipeline_mode = #tpu.pipeline_mode<synchronous>, transform_indices = @transform_5, window_bounds = array<i64: 144, 72>}, {pipeline_mode = #tpu.pipeline_mode<synchronous>, transform_indices = @transform_6, window_bounds = array<i64: 384, 768>}, {pipeline_mode = #tpu.pipeline_mode<synchronous>, transform_indices = @transform_7, window_bounds = array<i64: 28, 720>}, {pipeline_mode = #tpu.pipeline_mode<synchronous>, transform_indices = @transform_8, window_bounds = array<i64: 28, 1>}, {transform_indices = @transform_9, window_bounds = array<i64: 1, 28, 896>}]} {
    %c0 = arith.constant 0 : index
    %c0_0 = arith.constant 0 : index
    %c0_1 = arith.constant 0 : index
    %0 = vector.load %arg1[%c0, %c0_0, %c0_1] : memref<1x64x128xf32, #tpu.memory_space<vmem>>, vector<1x64x128xf32>
    %1 = vector.shape_cast %0 : vector<1x64x128xf32> to vector<64x128xf32>
    %c0_2 = arith.constant 0 : index
    %c0_3 = arith.constant 0 : index
    %2 = vector.load %arg2[%c0_2, %c0_3] : memref<128x64xf32, #tpu.memory_space<vmem>>, vector<128x64xf32>
    %cst = arith.constant dense<0.000000e+00> : vector<128x128xf32>
    %3 = tpu.matmul %2, %1, %cst {dimension_numbers = #tpu.dot_dimension_numbers<[1], [0], [0], [1], [0, 0, 1, 1], [], []>} : vector<128x64xf32>, vector<64x128xf32>, vector<128x128xf32> -> vector<128x128xf32>
    %c0_4 = arith.constant 0 : index
    %c0_5 = arith.constant 0 : index
    %4 = vector.load %arg3[%c0_4, %c0_5] : memref<128x256xf32, #tpu.memory_space<vmem>>, vector<128x256xf32>
    %cst_6 = arith.constant dense<0.000000e+00> : vector<128x256xf32>
    %5 = tpu.matmul %3, %4, %cst_6 {dimension_numbers = #tpu.dot_dimension_numbers<[1], [0], [0], [1], [0, 0, 1, 1], [], []>} : vector<128x128xf32>, vector<128x256xf32>, vector<128x256xf32> -> vector<128x256xf32>
    %cst_7 = arith.constant 0.000000e+00 : f32
    %6 = vector.broadcast %cst_7 : f32 to vector<128x256xf32>
    %7 = arith.cmpf oge, %5, %6 : vector<128x256xf32>
    %cst_8 = arith.constant 0.00999999977 : f32
    %8 = vector.broadcast %cst_8 : f32 to vector<128x256xf32>
    %9 = arith.mulf %8, %5 : vector<128x256xf32>
    %10 = arith.select %7, %5, %9 : vector<128x256xi1>, vector<128x256xf32>
    %cst_9 = arith.constant 0.000000e+00 : f32
    %11 = vector.broadcast %cst_9 : f32 to vector<128x128xf32>
    %12 = tpu.concatenate %10, %11 in 1 : vector<128x256xf32>, vector<128x128xf32> -> vector<128x384xf32>
    %c0_10 = arith.constant 0 : index
    %c0_11 = arith.constant 0 : index
    %13 = vector.load %arg11[%c0_10, %c0_11] : memref<640x384xf32, #tpu.memory_space<vmem>>, vector<128x384xf32>
    tpu.vector_store %arg11[%c0_10, %c0_11], %12 {strides = array<i32>} : memref<640x384xf32, #tpu.memory_space<vmem>>, vector<128x384xf32>,
    %c32_i32 = arith.constant 32 : i32
    %14 = tpu.dynamic_rotate %12 by %c32_i32 dim 1 : vector<128x384xf32>, i32 -> vector<128x384xf32>
    %c128 = arith.constant 128 : index
    %c0_12 = arith.constant 0 : index
    %15 = vector.load %arg11[%c128, %c0_12] : memref<640x384xf32, #tpu.memory_space<vmem>>, vector<128x384xf32>
    tpu.vector_store %arg11[%c128, %c0_12], %14 {strides = array<i32>} : memref<640x384xf32, #tpu.memory_space<vmem>>, vector<128x384xf32>,
    %c64_i32 = arith.constant 64 : i32
    %16 = tpu.dynamic_rotate %12 by %c64_i32 dim 1 : vector<128x384xf32>, i32 -> vector<128x384xf32>
    %c256 = arith.constant 256 : index
    %c0_13 = arith.constant 0 : index
    %17 = vector.load %arg11[%c256, %c0_13] : memref<640x384xf32, #tpu.memory_space<vmem>>, vector<128x384xf32>
    tpu.vector_store %arg11[%c256, %c0_13], %16 {strides = array<i32>} : memref<640x384xf32, #tpu.memory_space<vmem>>, vector<128x384xf32>,
    %c96_i32 = arith.constant 96 : i32
    %18 = tpu.dynamic_rotate %12 by %c96_i32 dim 1 : vector<128x384xf32>, i32 -> vector<128x384xf32>
    %c384 = arith.constant 384 : index
    %c0_14 = arith.constant 0 : index
    %19 = vector.load %arg11[%c384, %c0_14] : memref<640x384xf32, #tpu.memory_space<vmem>>, vector<128x384xf32>
    tpu.vector_store %arg11[%c384, %c0_14], %18 {strides = array<i32>} : memref<640x384xf32, #tpu.memory_space<vmem>>, vector<128x384xf32>,
    %c128_i32 = arith.constant 128 : i32
    %20 = tpu.dynamic_rotate %12 by %c128_i32 dim 1 : vector<128x384xf32>, i32 -> vector<128x384xf32>
    %c512 = arith.constant 512 : index
    %c0_15 = arith.constant 0 : index
    %21 = vector.load %arg11[%c512, %c0_15] : memref<640x384xf32, #tpu.memory_space<vmem>>, vector<128x384xf32>
    tpu.vector_store %arg11[%c512, %c0_15], %20 {strides = array<i32>} : memref<640x384xf32, #tpu.memory_space<vmem>>, vector<128x384xf32>,
    %c0_16 = arith.constant 0 : index
    %c0_17 = arith.constant 0 : index
    %22 = vector.load %arg5[%c0_16, %c0_17] : memref<72x1xf32, #tpu.memory_space<vmem>>, vector<72x1xf32>
    %c0_18 = arith.constant 0 : index
    %c0_19 = arith.constant 0 : index
    %23 = vector.load %arg4[%c0_18, %c0_19] : memref<72x640xf32, #tpu.memory_space<vmem>>, vector<72x640xf32>
    %c0_20 = arith.constant 0 : index
    %c0_21 = arith.constant 0 : index
    %24 = vector.load %arg11[%c0_20, %c0_21] : memref<640x384xf32, #tpu.memory_space<vmem>>, vector<640x384xf32>
    %cst_22 = arith.constant dense<0.000000e+00> : vector<72x384xf32>
    %25 = tpu.matmul %23, %24, %cst_22 {dimension_numbers = #tpu.dot_dimension_numbers<[1], [0], [0], [1], [0, 0, 1, 1], [], []>} : vector<72x640xf32>, vector<640x384xf32>, vector<72x384xf32> -> vector<72x384xf32>
    %26 = vector.broadcast %22 : vector<72x1xf32> to vector<72x384xf32>
    %27 = arith.addf %26, %25 : vector<72x384xf32>
    %c0_23 = arith.constant 0 : index
    %c0_24 = arith.constant 0 : index
    %28 = vector.load %arg6[%c0_23, %c0_24] : memref<144x72xf32, #tpu.memory_space<vmem>>, vector<144x72xf32>
    %cst_25 = arith.constant dense<0.000000e+00> : vector<144x384xf32>
    %29 = tpu.matmul %28, %27, %cst_25 {dimension_numbers = #tpu.dot_dimension_numbers<[1], [0], [0], [1], [0, 0, 1, 1], [], []>} : vector<144x72xf32>, vector<72x384xf32>, vector<144x384xf32> -> vector<144x384xf32>
    %c0_26 = arith.constant 0 : index
    %c0_27 = arith.constant 0 : index
    %30 = vector.load %arg7[%c0_26, %c0_27] : memref<384x768xf32, #tpu.memory_space<vmem>>, vector<384x768xf32>
    %cst_28 = arith.constant dense<0.000000e+00> : vector<144x768xf32>
    %31 = tpu.matmul %29, %30, %cst_28 {dimension_numbers = #tpu.dot_dimension_numbers<[1], [0], [0], [1], [0, 0, 1, 1], [], []>} : vector<144x384xf32>, vector<384x768xf32>, vector<144x768xf32> -> vector<144x768xf32>
    %cst_29 = arith.constant 0.000000e+00 : f32
    %32 = vector.broadcast %cst_29 : f32 to vector<144x768xf32>
    %33 = arith.cmpf oge, %31, %32 : vector<144x768xf32>
    %cst_30 = arith.constant 0.00999999977 : f32
    %34 = vector.broadcast %cst_30 : f32 to vector<144x768xf32>
    %35 = arith.mulf %34, %31 : vector<144x768xf32>
    %36 = arith.select %33, %31, %35 : vector<144x768xi1>, vector<144x768xf32>
    %cst_31 = arith.constant 0.000000e+00 : f32
    %37 = vector.broadcast %cst_31 : f32 to vector<144x128xf32>
    %38 = tpu.concatenate %36, %37 in 1 : vector<144x768xf32>, vector<144x128xf32> -> vector<144x896xf32>
    %c0_32 = arith.constant 0 : index
    %c0_33 = arith.constant 0 : index
    %39 = vector.load %arg12[%c0_32, %c0_33] : memref<720x896xf32, #tpu.memory_space<vmem>>, vector<144x896xf32>
    tpu.vector_store %arg12[%c0_32, %c0_33], %38 {strides = array<i32>} : memref<720x896xf32, #tpu.memory_space<vmem>>, vector<144x896xf32>,
    %c32_i32_34 = arith.constant 32 : i32
    %40 = tpu.dynamic_rotate %38 by %c32_i32_34 dim 1 : vector<144x896xf32>, i32 -> vector<144x896xf32>
    %c144 = arith.constant 144 : index
    %c0_35 = arith.constant 0 : index
    %41 = vector.load %arg12[%c144, %c0_35] : memref<720x896xf32, #tpu.memory_space<vmem>>, vector<144x896xf32>
    tpu.vector_store %arg12[%c144, %c0_35], %40 {strides = array<i32>} : memref<720x896xf32, #tpu.memory_space<vmem>>, vector<144x896xf32>,
    %c64_i32_36 = arith.constant 64 : i32
    %42 = tpu.dynamic_rotate %38 by %c64_i32_36 dim 1 : vector<144x896xf32>, i32 -> vector<144x896xf32>
    %c288 = arith.constant 288 : index
    %c0_37 = arith.constant 0 : index
    %43 = vector.load %arg12[%c288, %c0_37] : memref<720x896xf32, #tpu.memory_space<vmem>>, vector<144x896xf32>
    tpu.vector_store %arg12[%c288, %c0_37], %42 {strides = array<i32>} : memref<720x896xf32, #tpu.memory_space<vmem>>, vector<144x896xf32>,
    %c96_i32_38 = arith.constant 96 : i32
    %44 = tpu.dynamic_rotate %38 by %c96_i32_38 dim 1 : vector<144x896xf32>, i32 -> vector<144x896xf32>
    %c432 = arith.constant 432 : index
    %c0_39 = arith.constant 0 : index
    %45 = vector.load %arg12[%c432, %c0_39] : memref<720x896xf32, #tpu.memory_space<vmem>>, vector<144x896xf32>
    tpu.vector_store %arg12[%c432, %c0_39], %44 {strides = array<i32>} : memref<720x896xf32, #tpu.memory_space<vmem>>, vector<144x896xf32>,
    %c128_i32_40 = arith.constant 128 : i32
    %46 = tpu.dynamic_rotate %38 by %c128_i32_40 dim 1 : vector<144x896xf32>, i32 -> vector<144x896xf32>
    %c576 = arith.constant 576 : index
    %c0_41 = arith.constant 0 : index
    %47 = vector.load %arg12[%c576, %c0_41] : memref<720x896xf32, #tpu.memory_space<vmem>>, vector<144x896xf32>
    tpu.vector_store %arg12[%c576, %c0_41], %46 {strides = array<i32>} : memref<720x896xf32, #tpu.memory_space<vmem>>, vector<144x896xf32>,
    %c0_42 = arith.constant 0 : index
    %c0_43 = arith.constant 0 : index
    %48 = vector.load %arg9[%c0_42, %c0_43] : memref<28x1xf32, #tpu.memory_space<vmem>>, vector<28x1xf32>
    %c0_44 = arith.constant 0 : index
    %c0_45 = arith.constant 0 : index
    %49 = vector.load %arg8[%c0_44, %c0_45] : memref<28x720xf32, #tpu.memory_space<vmem>>, vector<28x720xf32>
    %c0_46 = arith.constant 0 : index
    %c0_47 = arith.constant 0 : index
    %50 = vector.load %arg12[%c0_46, %c0_47] : memref<720x896xf32, #tpu.memory_space<vmem>>, vector<720x896xf32>
    %cst_48 = arith.constant dense<0.000000e+00> : vector<28x896xf32>
    %51 = tpu.matmul %49, %50, %cst_48 {dimension_numbers = #tpu.dot_dimension_numbers<[1], [0], [0], [1], [0, 0, 1, 1], [], []>} : vector<28x720xf32>, vector<720x896xf32>, vector<28x896xf32> -> vector<28x896xf32>
    %52 = vector.broadcast %48 : vector<28x1xf32> to vector<28x896xf32>
    %53 = arith.addf %52, %51 : vector<28x896xf32>
    %c0_49 = arith.constant 0 : index
    %c0_50 = arith.constant 0 : index
    %c0_51 = arith.constant 0 : index
    %54 = vector.load %arg10[%c0_49, %c0_50, %c0_51] : memref<1x28x896xf32, #tpu.memory_space<vmem>>, vector<1x28x896xf32>
    %55 = vector.shape_cast %54 : vector<1x28x896xf32> to vector<28x896xf32>
    %56 = vector.shape_cast %53 : vector<28x896xf32> to vector<1x28x896xf32>
    tpu.vector_store %arg10[%c0_49, %c0_50, %c0_51], %56 {strides = array<i32>} : memref<1x28x896xf32, #tpu.memory_space<vmem>>, vector<1x28x896xf32>,
    return
  }
  func.func @transform_0(%arg0: i32) -> (i32, i32, i32) {
    %c0_i32 = arith.constant 0 : i32
    %c0_i32_0 = arith.constant 0 : i32
    %c0_i32_1 = arith.constant 0 : i32
    return %arg0, %c0_i32, %c0_i32_0 : i32, i32, i32
  }
  func.func @transform_1(%arg0: i32) -> (i32, i32) {
    %c0_i32 = arith.constant 0 : i32
    %c0_i32_0 = arith.constant 0 : i32
    %c0_i32_1 = arith.constant 0 : i32
    return %c0_i32, %c0_i32_0 : i32, i32
  }
  func.func @transform_2(%arg0: i32) -> (i32, i32) {
    %c0_i32 = arith.constant 0 : i32
    %c0_i32_0 = arith.constant 0 : i32
    %c0_i32_1 = arith.constant 0 : i32
    return %c0_i32, %c0_i32_0 : i32, i32
  }
  func.func @transform_3(%arg0: i32) -> (i32, i32) {
    %c0_i32 = arith.constant 0 : i32
    %c0_i32_0 = arith.constant 0 : i32
    %c0_i32_1 = arith.constant 0 : i32
    return %c0_i32, %c0_i32_0 : i32, i32
  }
  func.func @transform_4(%arg0: i32) -> (i32, i32) {
    %c0_i32 = arith.constant 0 : i32
    %c0_i32_0 = arith.constant 0 : i32
    %c0_i32_1 = arith.constant 0 : i32
    return %c0_i32, %c0_i32_0 : i32, i32
  }
  func.func @transform_5(%arg0: i32) -> (i32, i32) {
    %c0_i32 = arith.constant 0 : i32
    %c0_i32_0 = arith.constant 0 : i32
    %c0_i32_1 = arith.constant 0 : i32
    return %c0_i32, %c0_i32_0 : i32, i32
  }
  func.func @transform_6(%arg0: i32) -> (i32, i32) {
    %c0_i32 = arith.constant 0 : i32
    %c0_i32_0 = arith.constant 0 : i32
    %c0_i32_1 = arith.constant 0 : i32
    return %c0_i32, %c0_i32_0 : i32, i32
  }
  func.func @transform_7(%arg0: i32) -> (i32, i32) {
    %c0_i32 = arith.constant 0 : i32
    %c0_i32_0 = arith.constant 0 : i32
    %c0_i32_1 = arith.constant 0 : i32
    return %c0_i32, %c0_i32_0 : i32, i32
  }
  func.func @transform_8(%arg0: i32) -> (i32, i32) {
    %c0_i32 = arith.constant 0 : i32
    %c0_i32_0 = arith.constant 0 : i32
    %c0_i32_1 = arith.constant 0 : i32
    return %c0_i32, %c0_i32_0 : i32, i32
  }
  func.func @transform_9(%arg0: i32) -> (i32, i32, i32) {
    %c0_i32 = arith.constant 0 : i32
    %c0_i32_0 = arith.constant 0 : i32
    %c0_i32_1 = arith.constant 0 : i32
    return %arg0, %c0_i32, %c0_i32_0 : i32, i32, i32
  }
}

</mosaic_0001>

<bundles_post_ra>
// kernel: lenet_decoder_forward.1
= control target key start
LH: loop header
LB: loop body
LE: loop exit
PB: predicated region body
PF: predicated region fallthrough
CT: control target
= control target key end

     0   :  { %vm56_vm0 = vcmask 523264   ;;  %s9096_s10 = smov 64   ;;  %s9097_s11 = smov 96   ;;  %s18254_s0 = inlined_call_operand.vmem [shape: f32[1,64,128], index: 0, kind: input, shape index: {}]   ;;  %s18255_s1 = inlined_call_operand.vmem [shape: f32[128,64], index: 1, kind: input, shape index: {}]   ;;  %s18256_s2 = inlined_call_operand.vmem [shape: f32[128,256], index: 2, kind: input, shape index: {}]   ;;  %s18257_s3 = inlined_call_operand.vmem [shape: f32[72,640], index: 3, kind: input, shape index: {}]   ;;  %s18258_s4 = inlined_call_operand.vmem [shape: f32[72,1], index: 4, kind: input, shape index: {}]   ;;  %s18259_s5 = inlined_call_operand.vmem [shape: f32[144,72], index: 5, kind: input, shape index: {}]   ;;  %s18260_s6 = inlined_call_operand.vmem [shape: f32[384,768], index: 6, kind: input, shape index: {}]   ;;  %s18261_s7 = inlined_call_operand.vmem [shape: f32[28,720], index: 7, kind: input, shape index: {}]   ;;  %s18262_s8 = inlined_call_operand.vmem [shape: f32[28,1], index: 8, kind: input, shape index: {}]   ;;  %s18263_s9 = inlined_call_operand.vmem [shape: f32[1,28,896], index: 9, kind: output, shape index: {}]  }
   0x1   :  { %v39_v0 = vld [vmem:[%s18254_s0 + $0x38] sm:$0xff]  ;;  %v38_v1 = vld [vmem:[%s18254_s0 + $0x30] sm:$0xff]  ;;  %v37_v2 = vld [vmem:[%s18254_s0 + $0x28] sm:$0xff] }
   0x2   :  { %113 = vmatpush.msra.mxu0 %v39_v0  ;;  %v36_v3 = vld [vmem:[%s18254_s0 + $0x20] sm:$0xff]  ;;  %v35_v4 = vld [vmem:[%s18254_s0 + $0x18] sm:$0xff]  ;;  %v34_v5 = vld [vmem:[%s18254_s0 + $0x10] sm:$0xff] }
   0x3   :  { %v33_v6 = vld [vmem:[%s18254_s0 + $0x8] sm:$0xff]  ;;  %v32_v7 = vld [vmem:[%s18254_s0] sm:$0xff]  ;;  %v42_v10 = vld [vmem:[%s18255_s1 + $0x10] sm:$0xff] }
   0x4   :  { %114 = vmatpush.msra.mxu0 %v38_v1  ;;  %v40_v8 = vld [vmem:[%s18255_s1] sm:$0xff]  ;;  %v41_v9 = vld [vmem:[%s18255_s1 + $0x8] sm:$0xff]  ;;  %v43_v11 = vld [vmem:[%s18255_s1 + $0x18] sm:$0xff] }
   0x5   :  { %v44_v12 = vld [vmem:[%s18255_s1 + $0x20] sm:$0xff]  ;;  %v45_v13 = vld [vmem:[%s18255_s1 + $0x28] sm:$0xff]  ;;  %v46_v14 = vld [vmem:[%s18255_s1 + $0x30] sm:$0xff] }
   0x6   :  { %115 = vmatpush.msra.mxu0 %v37_v2  ;;  %v47_v15 = vld [vmem:[%s18255_s1 + $0x38] sm:$0xff]  ;;  %v200_v16 = vld [vmem:[%s18256_s2 + $0xf0] sm:$0xff]  ;;  %v48_v18 = vld [vmem:[%s18255_s1 + $0x40] sm:$0xff] }
   0x7   :  { %v201_v17 = vld [vmem:[%s18256_s2 + $0xf8] sm:$0xff]  ;;  %202 = vmatpush.msra.mxu1 %v200_v16  ;;  %v198_v19 = vld [vmem:[%s18256_s2 + $0xe0] sm:$0xff]  ;;  %v199_v20 = vld [vmem:[%s18256_s2 + $0xe8] sm:$0xff] }
   0x8   :  { %116 = vmatpush.msra.mxu0 %v36_v3  ;;  %267 = vmatpush.msra.mxu2 %v201_v17  ;;  %v196_v21 = vld [vmem:[%s18256_s2 + $0xd0] sm:$0xff]  ;;  %v197_v22 = vld [vmem:[%s18256_s2 + $0xd8] sm:$0xff]  ;;  %v194_v23 = vld [vmem:[%s18256_s2 + $0xc0] sm:$0xff] }
   0x9   :  { %203 = vmatpush.msra.mxu1 %v198_v19  ;;  %v195_v24 = vld [vmem:[%s18256_s2 + $0xc8] sm:$0xff]  ;;  %v192_v25 = vld [vmem:[%s18256_s2 + $0xb0] sm:$0xff]  ;;  %v193_v26 = vld [vmem:[%s18256_s2 + $0xb8] sm:$0xff] }
   0xa   :  { %117 = vmatpush.msra.mxu0 %v35_v4  ;;  %268 = vmatpush.msra.mxu2 %v199_v20  ;;  %v49_v27 = vld [vmem:[%s18255_s1 + $0x48] sm:$0xff]  ;;  %v190_v28 = vld [vmem:[%s18256_s2 + $0xa0] sm:$0xff]  ;;  %v188_v30 = vld [vmem:[%s18256_s2 + $0x90] sm:$0xff] }
   0xb   :  { %204 = vmatpush.msra.mxu1 %v196_v21  ;;  %v191_v29 = vld [vmem:[%s18256_s2 + $0xa8] sm:$0xff]  ;;  %v189_v31 = vld [vmem:[%s18256_s2 + $0x98] sm:$0xff]  ;;  %v186_v32 = vld [vmem:[%s18256_s2 + $0x80] sm:$0xff] }
   0xc   :  { %118 = vmatpush.msra.mxu0 %v34_v5  ;;  %269 = vmatpush.msra.mxu2 %v197_v22  ;;  %v187_v33 = vld [vmem:[%s18256_s2 + $0x88] sm:$0xff]  ;;  %v184_v34 = vld [vmem:[%s18256_s2 + $0x70] sm:$0xff]  ;;  %v185_v35 = vld [vmem:[%s18256_s2 + $0x78] sm:$0xff] }
   0xd   :  { %205 = vmatpush.msra.mxu1 %v194_v23  ;;  %v50_v36 = vld [vmem:[%s18255_s1 + $0x50] sm:$0xff]  ;;  %v182_v37 = vld [vmem:[%s18256_s2 + $0x60] sm:$0xff]  ;;  %v183_v38 = vld [vmem:[%s18256_s2 + $0x68] sm:$0xff] }
   0xe   :  { %119 = vmatpush.msra.mxu0 %v33_v6  ;;  %270 = vmatpush.msra.mxu2 %v195_v24  ;;  %v180_v39 = vld [vmem:[%s18256_s2 + $0x50] sm:$0xff]  ;;  %v181_v40 = vld [vmem:[%s18256_s2 + $0x58] sm:$0xff]  ;;  %v178_v41 = vld [vmem:[%s18256_s2 + $0x40] sm:$0xff] }
   0xf   :  { %206 = vmatpush.msra.mxu1 %v192_v25  ;;  %v179_v42 = vld [vmem:[%s18256_s2 + $0x48] sm:$0xff]  ;;  %v176_v43 = vld [vmem:[%s18256_s2 + $0x30] sm:$0xff]  ;;  %v177_v44 = vld [vmem:[%s18256_s2 + $0x38] sm:$0xff] }
  0x10   :  { %120 = vmatpush.msra.mxu0 %v32_v7  ;;  %271 = vmatpush.msra.mxu2 %v193_v26  ;;  %v51_v45 = vld [vmem:[%s18255_s1 + $0x58] sm:$0xff]  ;;  %v174_v46 = vld [vmem:[%s18256_s2 + $0x20] sm:$0xff]  ;;  %v175_v47 = vld [vmem:[%s18256_s2 + $0x28] sm:$0xff] }
  0x11   :  { %7842 = vmatmul.msk.f32.vlgmr.msra.gmra.mxu0 %vm56_vm0, %v40_v8  ;;  %207 = vmatpush.msra.mxu1 %v190_v28  ;;  %v172_v48 = vld [vmem:[%s18256_s2 + $0x10] sm:$0xff]  ;;  %v173_v49 = vld [vmem:[%s18256_s2 + $0x18] sm:$0xff]  ;;  %v170_v50 = vld [vmem:[%s18256_s2] sm:$0xff] }
  0x12   :  { %272 = vmatpush.msra.mxu2 %v191_v29  ;;  %v171_v51 = vld [vmem:[%s18256_s2 + $0x8] sm:$0xff]  ;;  %v52_v52 = vld [vmem:[%s18255_s1 + $0x60] sm:$0xff]  ;;  %v54_v54 = vld [vmem:[%s18255_s1 + $0x70] sm:$0xff] }
  0x13   :  { %208 = vmatpush.msra.mxu1 %v188_v30  ;;  %v53_v53 = vld [vmem:[%s18255_s1 + $0x68] sm:$0xff]  ;;  %v55_v55 = vld [vmem:[%s18255_s1 + $0x78] sm:$0xff]  ;;  %v18264_v30 = vmov 0.0   ;;  %s9095_s1 = smov 32  }
  0x14   :  { %273 = vmatpush.msra.mxu2 %v189_v31 }
  0x15   :  { %209 = vmatpush.msra.mxu1 %v186_v32 }
  0x16   :  { %274 = vmatpush.msra.mxu2 %v187_v33 }
  0x17   :  { %210 = vmatpush.msra.mxu1 %v184_v34 }
  0x18   :  { %275 = vmatpush.msra.mxu2 %v185_v35 }
  0x19   :  { %7843 = vmatmul.msk.f32.gmra.mxu0 %vm56_vm0, %v41_v9  ;;  %211 = vmatpush.msra.mxu1 %v182_v37 }
  0x1a   :  { %276 = vmatpush.msra.mxu2 %v183_v38 }
  0x1b   :  { %212 = vmatpush.msra.mxu1 %v180_v39 }
  0x1c   :  { %277 = vmatpush.msra.mxu2 %v181_v40 }
  0x1d   :  { %213 = vmatpush.msra.mxu1 %v178_v41 }
  0x1e   :  { %278 = vmatpush.msra.mxu2 %v179_v42 }
  0x1f   :  { %214 = vmatpush.msra.mxu1 %v176_v43 }
  0x20   :  { %279 = vmatpush.msra.mxu2 %v177_v44 }
  0x21   :  { %7844 = vmatmul.msk.f32.gmra.mxu0 %vm56_vm0, %v42_v10  ;;  %215 = vmatpush.msra.mxu1 %v174_v46 }
  0x22   :  { %280 = vmatpush.msra.mxu2 %v175_v47 }
  0x23   :  { %216 = vmatpush.msra.mxu1 %v172_v48 }
  0x24   :  { %281 = vmatpush.msra.mxu2 %v173_v49 }
  0x25   :  { %217 = vmatpush.msra.mxu1 %v170_v50 }
  0x26   :  { %282 = vmatpush.msra.mxu2 %v171_v51 }
  0x28   :  { %1500 = vmatpush.msrb.mxu2 %v18264_v30 }
  0x29   :  { %7845 = vmatmul.msk.f32.gmra.mxu0 %vm56_vm0, %v43_v11 }
  0x31   :  { %7846 = vmatmul.msk.f32.gmra.mxu0 %vm56_vm0, %v44_v12 }
  0x39   :  { %7847 = vmatmul.msk.f32.gmra.mxu0 %vm56_vm0, %v45_v13 }
  0x41   :  { %7848 = vmatmul.msk.f32.gmra.mxu0 %vm56_vm0, %v46_v14 }
  0x49   :  { %7849 = vmatmul.msk.f32.gmra.mxu0 %vm56_vm0, %v47_v15 }
  0x51   :  { %7850 = vmatmul.msk.f32.gmra.mxu0 %vm56_vm0, %v48_v18 }
  0x59   :  { %7851 = vmatmul.msk.f32.gmra.mxu0 %vm56_vm0, %v49_v27 }
  0x61   :  { %7852 = vmatmul.msk.f32.gmra.mxu0 %vm56_vm0, %v50_v36 }
  0x69   :  { %7853 = vmatmul.msk.f32.gmra.mxu0 %vm56_vm0, %v51_v45 }
  0x71   :  { %7854 = vmatmul.msk.f32.gmra.mxu0 %vm56_vm0, %v52_v52 }
  0x79   :  { %7855 = vmatmul.msk.f32.gmra.mxu0 %vm56_vm0, %v53_v53 }
  0x81   :  { %7856 = vmatmul.msk.f32.gmra.mxu0 %vm56_vm0, %v54_v54 }
  0x89   :  { %7857 = vmatmul.msk.f32.gmra.mxu0 %vm56_vm0, %v55_v55 }
  0x8e   :  { %v122_v56 = vpop.f32.mrf.mxu0 }
  0x8f   :  { %218 = vmatmul.f32.vlgmr.msra.gmra.mxu1 %v122_v56  ;;  %283 = vmatmul.f32.vlgmr.msra.gmra.mxu2 %v122_v56 }
  0x96   :  { %v125_v57 = vpop.f32.mrf.mxu0 }
  0x97   :  { %221 = vmatmul.f32.gmra.mxu1 %v125_v57  ;;  %286 = vmatmul.f32.gmra.mxu2 %v125_v57 }
  0x9e   :  { %v128_v58 = vpop.f32.mrf.mxu0 }
  0x9f   :  { %224 = vmatmul.f32.gmra.mxu1 %v128_v58  ;;  %289 = vmatmul.f32.gmra.mxu2 %v128_v58 }
  0xa6   :  { %v131_v59 = vpop.f32.mrf.mxu0 }
  0xa7   :  { %227 = vmatmul.f32.gmra.mxu1 %v131_v59  ;;  %292 = vmatmul.f32.gmra.mxu2 %v131_v59 }
  0xae   :  { %v134_v60 = vpop.f32.mrf.mxu0 }
  0xaf   :  { %230 = vmatmul.f32.gmra.mxu1 %v134_v60  ;;  %295 = vmatmul.f32.gmra.mxu2 %v134_v60 }
  0xb6   :  { %v137_v61 = vpop.f32.mrf.mxu0 }
  0xb7   :  { %233 = vmatmul.f32.gmra.mxu1 %v137_v61  ;;  %298 = vmatmul.f32.gmra.mxu2 %v137_v61 }
  0xbe   :  { %v140_v62 = vpop.f32.mrf.mxu0 }
  0xbf   :  { %236 = vmatmul.f32.gmra.mxu1 %v140_v62  ;;  %301 = vmatmul.f32.gmra.mxu2 %v140_v62 }
  0xc6   :  { %v143_v63 = vpop.f32.mrf.mxu0 }
  0xc7   :  { %239 = vmatmul.f32.gmra.mxu1 %v143_v63  ;;  %304 = vmatmul.f32.gmra.mxu2 %v143_v63 }
  0xce   :  { %v146_v0 = vpop.f32.mrf.mxu0 }
  0xcf   :  { %242 = vmatmul.f32.gmra.mxu1 %v146_v0  ;;  %307 = vmatmul.f32.gmra.mxu2 %v146_v0 }
  0xd6   :  { %v149_v1 = vpop.f32.mrf.mxu0 }
  0xd7   :  { %245 = vmatmul.f32.gmra.mxu1 %v149_v1  ;;  %310 = vmatmul.f32.gmra.mxu2 %v149_v1 }
  0xde   :  { %v152_v2 = vpop.f32.mrf.mxu0 }
  0xdf   :  { %248 = vmatmul.f32.gmra.mxu1 %v152_v2  ;;  %313 = vmatmul.f32.gmra.mxu2 %v152_v2 }
  0xe6   :  { %v155_v3 = vpop.f32.mrf.mxu0 }
  0xe7   :  { %251 = vmatmul.f32.gmra.mxu1 %v155_v3  ;;  %316 = vmatmul.f32.gmra.mxu2 %v155_v3 }
  0xee   :  { %v158_v4 = vpop.f32.mrf.mxu0 }
  0xef   :  { %254 = vmatmul.f32.gmra.mxu1 %v158_v4  ;;  %319 = vmatmul.f32.gmra.mxu2 %v158_v4 }
  0xf6   :  { %v161_v5 = vpop.f32.mrf.mxu0 }
  0xf7   :  { %257 = vmatmul.f32.gmra.mxu1 %v161_v5  ;;  %322 = vmatmul.f32.gmra.mxu2 %v161_v5 }
  0xfe   :  { %v164_v6 = vpop.f32.mrf.mxu0 }
  0xff   :  { %260 = vmatmul.f32.gmra.mxu1 %v164_v6  ;;  %325 = vmatmul.f32.gmra.mxu2 %v164_v6 }
 0x106   :  { %v167_v7 = vpop.f32.mrf.mxu0 }
 0x107   :  { %263 = vmatmul.f32.gmra.mxu1 %v167_v7  ;;  %328 = vmatmul.f32.gmra.mxu2 %v167_v7 }
 0x10c   :  { %v9333_v8 = vpop.f32.mrf.mxu1 }
 0x10d   :  { %vm332_vm14 = vcmp.ge.f32.partialorder %v9333_v8, 0.0 }
 0x112   :  { %v9335_v9 = vpop.f32.mrf.mxu2 }
 0x114   :  { %v9337_v10 = vpop.f32.mrf.mxu1 }
 0x115   :  { %v366_v0 = vmul.f32 0.01, %v9337_v10  ;;  %vm334_vm12 = vcmp.ge.f32.partialorder %v9337_v10, 0.0 }
 0x117   :  { %v9445_v4 = vsel %vm334_vm12, %v9337_v10, %v366_v0 }
 0x11a   :  { %v9339_v11 = vpop.f32.mrf.mxu2 }
 0x11c   :  { %v9341_v12 = vpop.f32.mrf.mxu1 }
 0x11d   :  { %v368_v61 = vmul.f32 0.01, %v9341_v12  ;;  %vm336_vm10 = vcmp.ge.f32.partialorder %v9341_v12, 0.0 }
 0x11f   :  { %v9438_v2 = vsel %vm336_vm10, %v9341_v12, %v368_v61  ;;  %v364_v12 = vmul.f32 0.01, %v9333_v8  ;;  %vm335_vm10 = vcmp.ge.f32.partialorder %v9339_v11, 0.0 }
 0x120   :  { %v9453_v6 = vpack.i.bf16 %v9445_v4, %v9438_v2 }
 0x122   :  { %v9343_v13 = vpop.f32.mrf.mxu2 }
 0x124   :  { %v9345_v14 = vpop.f32.mrf.mxu1 }
 0x12a   :  { %v9347_v15 = vpop.f32.mrf.mxu2 }
 0x12c   :  { %v9349_v16 = vpop.f32.mrf.mxu1 }
 0x12d   :  { %vm340_vm15 = vcmp.ge.f32.partialorder %v9349_v16, 0.0 }
 0x132   :  { %v9351_v17 = vpop.f32.mrf.mxu2 }
 0x134   :  { %v234_v18 = vpop.f32.mrf.mxu1 }
 0x135   :  { %v374_v53 = vmul.f32 0.01, %v234_v18  ;;  %vm342_vm8 = vcmp.ge.f32.partialorder %v234_v18, 0.0 }
 0x137   :  { %v9408_v57 = vsel %vm342_vm8, %v234_v18, %v374_v53  ;;  %v372_v18 = vmul.f32 0.01, %v9349_v16  ;;  %vm337_vm8 = vcmp.ge.f32.partialorder %v9343_v13, 0.0 }
 0x13a   :  { %v9353_v19 = vpop.f32.mrf.mxu2 }
 0x13c   :  { %v237_v20 = vpop.f32.mrf.mxu1 }
 0x13d   :  { %v376_v52 = vmul.f32 0.01, %v237_v20  ;;  %vm344_vm7 = vcmp.ge.f32.partialorder %v237_v20, 0.0 }
 0x13f   :  { %v9406_v55 = vsel %vm344_vm7, %v237_v20, %v376_v52 }
 0x140   :  { %v9415_v59 = vpack.i.bf16 %v9408_v57, %v9406_v55 }
 0x142   :  { %v9355_v21 = vpop.f32.mrf.mxu2 }
 0x143   :  { %vm345_vm12 = vcmp.ge.f32.partialorder %v9355_v21, 0.0 }
 0x144   :  { %v240_v22 = vpop.f32.mrf.mxu1 }
 0x145   :  { %v378_v41 = vmul.f32 0.01, %v240_v22  ;;  %vm346_vm4 = vcmp.ge.f32.partialorder %v240_v22, 0.0 }
 0x147   :  { %v9386_v46 = vsel %vm346_vm4, %v240_v22, %v378_v41  ;;  %v9477_v22 = vsel %vm332_vm14, %v9333_v8, %v364_v12  ;;  %v377_v12 = vmul.f32 0.01, %v9355_v21  ;;  %vm341_vm14 = vcmp.ge.f32.partialorder %v9351_v17, 0.0 }
 0x14a   :  { %v9357_v24 = vpop.f32.mrf.mxu2 }
 0x14c   :  { %v243_v23 = vpop.f32.mrf.mxu1 }
 0x14d   :  { %v380_v40 = vmul.f32 0.01, %v243_v23  ;;  %vm348_vm3 = vcmp.ge.f32.partialorder %v243_v23, 0.0 }
 0x14f   :  { %v9384_v44 = vsel %vm348_vm3, %v243_v23, %v380_v40  ;;  %v370_v23 = vmul.f32 0.01, %v9345_v14 }
 0x150   :  { %v9396_v50 = vpack.i.bf16 %v9386_v46, %v9384_v44 }
 0x152   :  { %v9361_v26 = vpop.f32.mrf.mxu2 }
 0x153   :  { %vm349_vm3 = vcmp.ge.f32.partialorder %v9361_v26, 0.0 }
 0x154   :  { %v9359_v25 = vpop.f32.mrf.mxu1 }
 0x155   :  { %v382_v1 = vmul.f32 0.01, %v9359_v25  ;;  %vm350_vm13 = vcmp.ge.f32.partialorder %v9359_v25, 0.0 }
 0x157   :  { %v9448_v5 = vsel %vm350_vm13, %v9359_v25, %v382_v1  ;;  %vm343_vm13 = vcmp.ge.f32.partialorder %v9353_v19, 0.0 }
 0x15a   :  { %v9365_v28 = vpop.f32.mrf.mxu2 }
 0x15b   :  { %v383_v25 = vmul.f32 0.01, %v9365_v28 }
 0x15c   :  { %v9363_v27 = vpop.f32.mrf.mxu1 }
 0x15d   :  { %v384_v62 = vmul.f32 0.01, %v9363_v27  ;;  %vm352_vm11 = vcmp.ge.f32.partialorder %v9363_v27, 0.0 }
 0x15f   :  { %v9441_v3 = vsel %vm352_vm11, %v9363_v27, %v384_v62  ;;  %v9497_v27 = vsel %vm340_vm15, %v9349_v16, %v372_v18  ;;  %vm339_vm15 = vcmp.ge.f32.partialorder %v9347_v15, 0.0 }
 0x160   :  { %v9457_v7 = vpack.i.bf16 %v9448_v5, %v9441_v3 }
 0x162   :  { %v9368_v32 = vpop.f32.mrf.mxu2 }
 0x163   :  { %v385_v20 = vmul.f32 0.01, %v9368_v32  ;;  %vm353_vm0 = vcmp.ge.f32.partialorder %v9368_v32, 0.0 }
 0x164   :  { %v252_v29 = vpop.f32.mrf.mxu1 }
 0x165   :  { %v386_v31 = vmul.f32 0.01, %v252_v29  ;;  %vm354_vm1 = vcmp.ge.f32.partialorder %v252_v29, 0.0  ;;  %v9493_v8 = vsel %vm353_vm0, %v9368_v32, %v385_v20  ;;  %v373_v20 = vmul.f32 0.01, %v9351_v17 }
 0x166   :  { %18966 = vst [vmem:[#allocation4_spill] sm:$0xff] %v9493_v8  ;;  %vm333_vm0 = vcmp.ge.f32.partialorder %v9335_v9, 0.0 }
 0x167   :  { %v9370_v35 = vsel %vm354_vm1, %v252_v29, %v386_v31  ;;  %vm338_vm1 = vcmp.ge.f32.partialorder %v9345_v14, 0.0 }
 0x16a   :  { %v9380_v39 = vpop.f32.mrf.mxu2 }
 0x16b   :  { %vm355_vm7 = vcmp.ge.f32.partialorder %v9380_v39, 0.0 }
 0x16c   :  { %v255_v33 = vpop.f32.mrf.mxu1 }
 0x16d   :  { %vm356_vm2 = vcmp.ge.f32.partialorder %v255_v33, 0.0  ;;  %v388_v34 = vmul.f32 0.01, %v255_v33 }
 0x16f   :  { %v9372_v36 = vsel %vm356_vm2, %v255_v33, %v388_v34  ;;  %vm351_vm2 = vcmp.ge.f32.partialorder %v9365_v28, 0.0  ;;  %v9504_v33 = vsel %vm338_vm1, %v9345_v14, %v370_v23  ;;  %v379_v14 = vmul.f32 0.01, %v9357_v24  ;;  %v1034_v23 = vld [vmem:[%s18257_s3 + $0x50] sm:$0xff] }
 0x170   :  { %v9376_v37 = vpack.i.bf16 %v9370_v35, %v9372_v36  ;;  %v9500_v31 = vsel %vm351_vm2, %v9365_v28, %v383_v25  ;;  %v8036_v32 = vpack.i.bf16 %v9504_v33, %v9497_v27  ;;  %v9634_v25 = vsel %vm341_vm14, %v9351_v17, %v373_v20 }
 0x171   :  { %18967 = vst [vmem:[#allocation5_spill] sm:$0xff] %v9500_v31  ;;  %v9508_v34 = vpack.i.bf16 %v9500_v31, %v9493_v8 }
 0x172   :  { %7972 = vrot.lane.b32.xlu2 %v9376_v37, %s9095_s1  ;;  %v9392_v49 = vpop.f32.mrf.mxu2  ;;  %18979 = vst [vmem:[#allocation17_spill] sm:$0xff] %v9634_v25 }
 0x174   :  { %v258_v38 = vpop.f32.mrf.mxu1 }
 0x175   :  { %v390_v42 = vmul.f32 0.01, %v258_v38  ;;  %vm358_vm5 = vcmp.ge.f32.partialorder %v258_v38, 0.0 }
 0x177   :  { %v9388_v47 = vsel %vm358_vm5, %v258_v38, %v390_v42  ;;  %v381_v38 = vmul.f32 0.01, %v9361_v26  ;;  %vm347_vm5 = vcmp.ge.f32.partialorder %v9357_v24, 0.0 }
 0x178   :  { %v9530_v41 = vsel %vm347_vm5, %v9357_v24, %v379_v14  ;;  %v387_v24 = vmul.f32 0.01, %v9380_v39  ;;  %v1044_v14 = vld [vmem:[%s18257_s3 + $0xa0] sm:$0xff] }
 0x179   :  { %v9524_v28 = vsel %vm349_vm3, %v9361_v26, %v381_v38  ;;  %18970 = vst [vmem:[#allocation8_spill] sm:$0xff] %v9530_v41  ;;  %v389_v26 = vmul.f32 0.01, %v9392_v49 }
 0x17a   :  { %7977 = vrot.lane.b32.xlu2 %v9376_v37, %s9096_s10  ;;  %v9424_v63 = vpop.f32.mrf.mxu2  ;;  %18968 = vst [vmem:[#allocation6_spill] sm:$0xff] %v9524_v28  ;;  %v9535_v42 = vpack.i.bf16 %v9530_v41, %v9524_v28  ;;  %v9554_v52 = vsel %vm355_vm7, %v9380_v39, %v387_v24 }
 0x17b   :  { %18972 = vst [vmem:[#allocation10_spill] sm:$0xff] %v9554_v52  ;;  %v391_v39 = vmul.f32 0.01, %v9424_v63  ;;  %vm359_vm11 = vcmp.ge.f32.partialorder %v9424_v63, 0.0 }
 0x17c   :  { %v261_v43 = vpop.f32.mrf.mxu1 }
 0x17d   :  { %vm360_vm6 = vcmp.ge.f32.partialorder %v261_v43, 0.0  ;;  %v392_v45 = vmul.f32 0.01, %v261_v43  ;;  %v9581_v1 = vsel %vm359_vm11, %v9424_v63, %v391_v39  ;;  %v9599_v63 = vsel %vm345_vm12, %v9355_v21, %v377_v12  ;;  %v1029_v21 = vld [vmem:[%s18257_s3 + $0x28] sm:$0xff]  ;;  %v1059_v39 = vld [vmem:[%s18257_s3 + $0x118] sm:$0xff] }
 0x17e   :  { %18976 = vst [vmem:[#allocation14_spill] sm:$0xff] %v9581_v1 }
 0x17f   :  { %v9390_v48 = vsel %vm360_vm6, %v261_v43, %v392_v45  ;;  %vm357_vm6 = vcmp.ge.f32.partialorder %v9392_v49, 0.0  ;;  %18977 = vst [vmem:[#allocation15_spill] sm:$0xff] %v9599_v63 }
 0x180   :  { %v9400_v51 = vpack.i.bf16 %v9388_v47, %v9390_v48  ;;  %v9551_v45 = vsel %vm357_vm6, %v9392_v49, %v389_v26  ;;  %v367_v49 = vmul.f32 0.01, %v9339_v11  ;;  %v1049_v26 = vld [vmem:[%s18257_s3 + $0xc8] sm:$0xff] }
 0x181   :  { %18971 = vst [vmem:[#allocation9_spill] sm:$0xff] %v9551_v45  ;;  %v8061_v53 = vpack.i.bf16 %v9554_v52, %v9551_v45 }
 0x182   :  { %8012 = vrot.lane.b32.xlu2 %v9396_v50, %s9095_s1  ;;  %7982 = vrot.lane.b32.xlu1 %v9400_v51, %s9095_s1  ;;  %v9467_v10 = vpop.f32.mrf.mxu2  ;;  %v9578_v0 = vsel %vm335_vm10, %v9339_v11, %v367_v49  ;;  %v375_v11 = vmul.f32 0.01, %v9353_v19 }
 0x183   :  { %18975 = vst [vmem:[#allocation13_spill] sm:$0xff] %v9578_v0 }
 0x184   :  { %v264_v54 = vpop.f32.mrf.mxu1  ;;  %v9608_v18 = vsel %vm343_vm13, %v9353_v19, %v375_v11  ;;  %v371_v19 = vmul.f32 0.01, %v9347_v15 }
 0x185   :  { %vm362_vm9 = vcmp.ge.f32.partialorder %v264_v54, 0.0  ;;  %v394_v56 = vmul.f32 0.01, %v264_v54  ;;  %18978 = vst [vmem:[#allocation16_spill] sm:$0xff] %v9608_v18 }
 0x187   :  { %v9410_v58 = vsel %vm362_vm9, %v264_v54, %v394_v56  ;;  %v369_v54 = vmul.f32 0.01, %v9343_v13  ;;  %v393_v56 = vmul.f32 0.01, %v9467_v10  ;;  %vm361_vm9 = vcmp.ge.f32.partialorder %v9467_v10, 0.0 }
 0x188   :  { %1309 = vmatpush.msra.mxu3 %v9410_v58  ;;  %v9418_v60 = vpack.i.bf16 0.0, %v9410_v58 }
 0x189   :  { %v9571_v61 = vsel %vm337_vm8, %v9343_v13, %v369_v54  ;;  %v9575_v62 = vsel %vm361_vm9, %v9467_v10, %v393_v56  ;;  %v9604_v10 = vld [vmem:[%s18257_s3] sm:$0xff]  ;;  %v1054_v54 = vld [vmem:[%s18257_s3 + $0xf0] sm:$0xff]  ;;  %v542_v56 = vlaneseq }
 0x18a   :  { %8027 = vrot.lane.b32.xlu2 %v9415_v59, %s9096_s10  ;;  %7987 = vrot.lane.b32.xlu1 %v9400_v51, %s9096_s10  ;;  %v329_v29 = vpop.f32.mrf.mxu2  ;;  %18973 = vst [vmem:[#allocation11_spill] sm:$0xff] %v9571_v61  ;;  %v8056_v13 = vpack.i.bf16 %v9581_v1, %v9575_v62 }
 0x18b   :  { %7992 = vrot.lane.b32.xlu0 %v9418_v60, %s9095_s1  ;;  %1310 = vmatpush.msra.mxu3 %v9390_v48  ;;  %v395_v16 = vmul.f32 0.01, %v329_v29  ;;  %vm363_vm4 = vcmp.ge.f32.partialorder %v329_v29, 0.0  ;;  %18974 = vst [vmem:[#allocation12_spill] sm:$0xff] %v9575_v62  ;;  %v9699_v49 = vand.u32 127, %v542_v56 }
 0x18d   :  { %1311 = vmatpush.msra.mxu3 %v9388_v47  ;;  %v9526_v40 = vsel %vm363_vm4, %v329_v29, %v395_v16  ;;  %v8141_v16 = vpack.i.bf16 %v9551_v45, %v9581_v1  ;;  %18983 = vst [vmem:[#allocation21_spill] sm:$0xff] %v9699_v49  ;;  %vm544_vm1 = vcmp.lt.s32.totalorder %v9699_v49, 32  ;;  %vm707_vm2 = vcmp.lt.s32.totalorder %v9699_v49, 64 }
 0x18e   :  { %18969 = vst [vmem:[#allocation7_spill] sm:$0xff] %v9526_v40  ;;  %v9539_v43 = vpack.i.bf16 %v9526_v40, %v9477_v22  ;;  %vm870_vm3 = vcmp.lt.s32.totalorder %v9699_v49, 96  ;;  %vm2059_vm4 = vcmask 588800  }
 0x18f   :  { %1312 = vmatpush.msra.mxu3 %v9372_v36 }
 0x191   :  { %1313 = vmatpush.msra.mxu3 %v9370_v35 }
 0x192   :  { %8042 = vrot.lane.b32.xlu2 %v9453_v6, %s9095_s1  ;;  %8007 = vrot.lane.b32.xlu1 %v9457_v7, %s9096_s10 }
 0x193   :  { %7997 = vrot.lane.b32.xlu0 %v9418_v60, %s9096_s10  ;;  %1314 = vmatpush.msra.mxu3 %v9441_v3 }
 0x195   :  { %1315 = vmatpush.msra.mxu3 %v9448_v5 }
 0x197   :  { %1316 = vmatpush.msra.mxu3 %v9384_v44 }
 0x199   :  { %1317 = vmatpush.msra.mxu3 %v9386_v46 }
 0x19a   :  { %641 = vrot.lane.b32.xlu2 %v9477_v22, %s9096_s10  ;;  %8022 = vrot.lane.b32.xlu1 %v9415_v59, %s9095_s1 }
 0x19b   :  { %8002 = vrot.lane.b32.xlu0 %v9457_v7, %s9095_s1  ;;  %1318 = vmatpush.msra.mxu3 %v9406_v55 }
 0x19d   :  { %1319 = vmatpush.msra.mxu3 %v9408_v57 }
 0x19f   :  { %1320 = vmatpush.msra.mxu3 %v9497_v27 }
 0x1a1   :  { %1321 = vmatpush.msra.mxu3 %v9504_v33 }
 0x1a2   :  { %8067 = vrot.lane.b32.xlu2 %v9508_v34, %s9095_s1  ;;  %8037 = vrot.lane.b32.xlu1 %v8036_v32, %s9096_s10 }
 0x1a3   :  { %8017 = vrot.lane.b32.xlu0 %v9396_v50, %s9096_s10  ;;  %1322 = vmatpush.msra.mxu3 %v9438_v2 }
 0x1a5   :  { %1323 = vmatpush.msra.mxu3 %v9445_v4 }
 0x1a7   :  { %1324 = vmatpush.msra.mxu3 %v9477_v22 }
 0x1a8   :  { %1325 = vmatmul.f32.vlgmr.msra.gmra.mxu3 %v9604_v10 }
 0x1aa   :  { %8082 = vrot.lane.b32.xlu2 %v9535_v42, %s9095_s1  ;;  %8052 = vrot.lane.b32.xlu1 %v9539_v43, %s9095_s1 }
 0x1ab   :  { %8032 = vrot.lane.b32.xlu0 %v8036_v32, %s9095_s1 }
 0x1b0   :  { %1328 = vmatmul.f32.gmra.mxu3 %v1029_v21 }
 0x1b2   :  { %8097 = vrot.lane.b32.xlu2 %v9457_v7, %s9097_s11  ;;  %8062 = vrot.lane.b32.xlu1 %v8061_v53, %s9095_s1  ;;  %v9585_v7 = vpack.i.bf16 %v9578_v0, %v9571_v61 }
 0x1b3   :  { %8047 = vrot.lane.b32.xlu0 %v9453_v6, %s9096_s10 }
 0x1b8   :  { %1331 = vmatmul.f32.gmra.mxu3 %v1034_v23  ;;  %v1064_v23 = vld [vmem:[%s18257_s3 + $0x140] sm:$0xff] }
 0x1ba   :  { %8112 = vrot.lane.b32.xlu2 %v9585_v7, %s9095_s1  ;;  %8077 = vrot.lane.b32.xlu1 %v9400_v51, %s9097_s11  ;;  %v8091_v51 = vpack.i.bf16 %v9608_v18, %v9599_v63 }
 0x1bb   :  { %8057 = vrot.lane.b32.xlu0 %v8056_v13, %s9095_s1 }
 0x1c2   :  { %8122 = vrot.lane.b32.xlu2 %v8036_v32, %s9097_s11  ;;  %8092 = vrot.lane.b32.xlu1 %v8091_v51, %s9095_s1 }
 0x1c3   :  { %8072 = vrot.lane.b32.xlu0 %v9418_v60, %s9097_s11  ;;  %v365_v60 = vmul.f32 0.01, %v9335_v9 }
 0x1c5   :  { %v9642_v29 = vsel %vm333_vm0, %v9335_v9, %v365_v60  ;;  %v8166_v9 = vpack.i.bf16 %v9524_v28, %v9500_v31  ;;  %v8186_v60 = vpack.i.bf16 %v9634_v25, %v9608_v18 }
 0x1c6   :  { %18981 = vst [vmem:[#allocation19_spill] sm:$0xff] %v9642_v29 }
 0x1ca   :  { %8147 = vrot.lane.b32.xlu2 %v8061_v53, %s9097_s11  ;;  %8107 = vrot.lane.b32.xlu1 %v9396_v50, %s9097_s11  ;;  %v9637_v50 = vsel %vm339_vm15, %v9347_v15, %v371_v19  ;;  %v1039_v15 = vld [vmem:[%s18257_s3 + $0x78] sm:$0xff]  ;;  %v8151_v53 = vpack.i.bf16 %v9493_v8, %v9554_v52  ;;  %v8206_v19 = vpack.i.bf16 %v9642_v29, %v9578_v0 }
 0x1cb   :  { %8087 = vrot.lane.b32.xlu0 %v9376_v37, %s9097_s11  ;;  %18980 = vst [vmem:[#allocation18_spill] sm:$0xff] %v9637_v50  ;;  %v8161_v37 = vpack.i.bf16 %v9575_v62, %v9526_v40  ;;  %v8101_v32 = vpack.i.bf16 %v9637_v50, %v9634_v25  ;;  %1334 = vmatmul.f32.gmra.mxu3 %v1039_v15 }
 0x1cc   :  { %v9649_v17 = vpop.permute.xlu2 %7972 }
 0x1cd   :  { %v18275_v15 = vunpack.i.l.bf16 %v9649_v17 }
 0x1d2   :  { %8162 = vrot.lane.b32.xlu2 %v8161_v37, %s9096_s10  ;;  %508 = vrot.lane.b32.xlu1 %v9642_v29, %s9095_s1 }
 0x1d3   :  { %8102 = vrot.lane.b32.xlu0 %v8101_v32, %s9095_s1  ;;  %1337 = vmatmul.f32.gmra.mxu3 %v1044_v14 }
 0x1d4   :  { %v9662_v38 = vpop.permute.xlu2 %7977 }
 0x1da   :  { %8167 = vrot.lane.b32.xlu2 %v8166_v9, %s9096_s10  ;;  %8132 = vrot.lane.b32.xlu1 %v9539_v43, %s9097_s11 }
 0x1db   :  { %8117 = vrot.lane.b32.xlu0 %v9415_v59, %s9097_s11  ;;  %v8196_v59 = vpack.i.bf16 %v9571_v61, %v9637_v50  ;;  %1340 = vmatmul.f32.gmra.mxu3 %v1049_v26  ;;  %v18274_v26 = vunpack.i.h.bf16 %v9649_v17 }
 0x1dc   :  { %v9673_v43 = vpop.permute.xlu2 %8012 }
 0x1e2   :  { %8182 = vrot.lane.b32.xlu2 %v8091_v51, %s9097_s11  ;;  %8142 = vrot.lane.b32.xlu1 %v8141_v16, %s9096_s10 }
 0x1e3   :  { %8127 = vrot.lane.b32.xlu0 %v9453_v6, %s9097_s11  ;;  %v8176_v6 = vpack.i.bf16 %v9599_v63, %v9530_v41  ;;  %1343 = vmatmul.f32.gmra.mxu3 %v1054_v54 }
 0x1e4   :  { %v9686_v24 = vpop.permute.xlu2 %8027 }
 0x1e5   :  { %18982 = vst [vmem:[#allocation20_spill] sm:$0xff] %v9686_v24 }
 0x1ea   :  { %8197 = vrot.lane.b32.xlu2 %v8196_v59, %s9096_s10  ;;  %8157 = vrot.lane.b32.xlu1 %v9508_v34, %s9097_s11 }
 0x1eb   :  { %8137 = vrot.lane.b32.xlu0 %v8056_v13, %s9097_s11  ;;  %1346 = vmatmul.f32.gmra.mxu3 %v1059_v39 }
 0x1ec   :  { %v9705_v12 = vpop.permute.xlu2 %8042 }
 0x1f2   :  { %836 = vrot.lane.b32.xlu2 %v9642_v29, %s9097_s11  ;;  %8177 = vrot.lane.b32.xlu1 %v8176_v6, %s9096_s10 }
 0x1f3   :  { %8152 = vrot.lane.b32.xlu0 %v8151_v53, %s9096_s10  ;;  %1349 = vmatmul.f32.gmra.mxu3 %v1064_v23  ;;  %v18269_v23 = vunpack.i.l.bf16 %v9662_v38 }
 0x1f4   :  { %v9697_v34 = vpop.permute.xlu1 %7982  ;;  %v9747_v14 = vpop.permute.xlu2 %641 }
 0x1f5   :  { %v18283_v20 = vunpack.i.l.bf16 %v9697_v34  ;;  %v18278_v37 = vunpack.i.h.bf16 %v9697_v34 }
 0x1fa   :  { %8192 = vrot.lane.b32.xlu1 %v8101_v32, %s9097_s11 }
 0x1fb   :  { %8172 = vrot.lane.b32.xlu0 %v9535_v42, %s9097_s11 }
 0x1fc   :  { %v9709_v13 = vpop.permute.xlu1 %7987 }
 0x1fd   :  { %v9711_v11 = vpop.permute.xlu0 %7992  ;;  %v18266_v56 = vunpack.i.l.bf16 %v9709_v13 }
 0x1fe   :  { %v9715_v51 = vunpack.i.h.bf16 %v9711_v11  ;;  %v18286_v21 = vunpack.i.l.bf16 %v9711_v11 }
 0x200   :  { %18984 = vst [vmem:[#allocation22_spill] sm:$0xff] %v9715_v51  ;;  %v592_v42 = vsel %vm544_vm1, %v9715_v51, %v18286_v21  ;;  %v591_v32 = vsel %vm544_vm1, %v9715_v51, %v18283_v20  ;;  %v590_v16 = vsel %vm544_vm1, %v9715_v51, %v18278_v37  ;;  %v589_v54 = vsel %vm544_vm1, %v9715_v51, %v18275_v15 }
 0x201   :  { %1353 = vmatpush.msrb.mxu3 %v592_v42  ;;  %v588_v39 = vsel %vm544_vm1, %v9715_v51, %v18274_v26  ;;  %v18285_v37 = vunpack.i.l.bf16 %v9686_v24  ;;  %v18294_v21 = vunpack.i.l.bf16 %v9705_v12 }
 0x202   :  { %8207 = vrot.lane.b32.xlu1 %v8206_v19, %s9096_s10  ;;  %v18267_v19 = vunpack.i.h.bf16 %v9709_v13 }
 0x203   :  { %8187 = vrot.lane.b32.xlu0 %v8186_v60, %s9096_s10  ;;  %1354 = vmatpush.msrb.mxu3 %v591_v32 }
 0x204   :  { %v9740_v9 = vpop.permute.xlu1 %8007 }
 0x205   :  { %v9749_v59 = vpop.permute.xlu0 %7997  ;;  %1355 = vmatpush.msrb.mxu3 %v590_v16 }
 0x206   :  { %v9754_v6 = vunpack.i.h.bf16 %v9749_v59  ;;  %v18268_v53 = vunpack.i.l.bf16 %v9749_v59 }
 0x207   :  { %1356 = vmatpush.msrb.mxu3 %v589_v54  ;;  %v18271_v54 = vunpack.i.h.bf16 %v9662_v38 }
 0x208   :  { %18985 = vst [vmem:[#allocation23_spill] sm:$0xff] %v9754_v6  ;;  %v755_v42 = vsel %vm707_vm2, %v9754_v6, %v18268_v53  ;;  %v754_v60 = vsel %vm707_vm2, %v9754_v6, %v18266_v56  ;;  %v753_v16 = vsel %vm707_vm2, %v9754_v6, %v18267_v19  ;;  %v752_v30 = vsel %vm707_vm2, %v9754_v6, %v18269_v23  ;;  %v9800_v56 = vpop.permute.xlu2 %8067 }
 0x209   :  { %1357 = vmatpush.msrb.mxu3 %v588_v39  ;;  %1397 = vmatpush.msrb.mxu0 %v755_v42  ;;  %v18273_v42 = vunpack.i.l.bf16 %v9740_v9  ;;  %v18277_v19 = vunpack.i.h.bf16 %v9740_v9  ;;  %v751_v53 = vsel %vm707_vm2, %v9754_v6, %v18271_v54  ;;  %v18276_v23 = vunpack.i.l.bf16 %v9673_v43 }
 0x20a   :  { %v18282_v54 = vunpack.i.h.bf16 %v9673_v43 }
 0x20b   :  { %8202 = vrot.lane.b32.xlu0 %v9585_v7, %s9097_s11  ;;  %1398 = vmatpush.msrb.mxu0 %v754_v60 }
 0x20c   :  { %v9782_v32 = vpop.permute.xlu1 %8022 }
 0x20d   :  { %v9790_v39 = vpop.permute.xlu0 %8002  ;;  %1399 = vmatpush.msrb.mxu0 %v753_v16 }
 0x20e   :  { %v18272_v7 = vunpack.i.h.bf16 %v9790_v39  ;;  %v18270_v60 = vunpack.i.l.bf16 %v9790_v39 }
 0x20f   :  { %1400 = vmatpush.msrb.mxu0 %v752_v30 }
 0x210   :  { %v587_v16 = vsel %vm544_vm1, %v9715_v51, %v18270_v60  ;;  %v586_v30 = vsel %vm544_vm1, %v9715_v51, %v18272_v7  ;;  %v750_v60 = vsel %vm707_vm2, %v9754_v6, %v18273_v42  ;;  %v585_v7 = vsel %vm544_vm1, %v9715_v51, %v18276_v23 }
 0x211   :  { %1358 = vmatpush.msrb.mxu3 %v587_v16  ;;  %1401 = vmatpush.msrb.mxu0 %v751_v53  ;;  %v18279_v53 = vunpack.i.l.bf16 %v9782_v32  ;;  %v749_v42 = vsel %vm707_vm2, %v9754_v6, %v18277_v19  ;;  %v584_v23 = vsel %vm544_vm1, %v9715_v51, %v18282_v54  ;;  %v9858_v19 = vpop.permute.xlu2 %8082 }
 0x213   :  { %1359 = vmatpush.msrb.mxu3 %v586_v30  ;;  %1402 = vmatpush.msrb.mxu0 %v750_v60  ;;  %v18281_v60 = vunpack.i.h.bf16 %v9782_v32 }
 0x214   :  { %v9826_v16 = vpop.permute.xlu1 %8037 }
 0x215   :  { %18986 = vst [vmem:[#allocation24_spill] sm:$0xff] %v9826_v16  ;;  %v9838_v30 = vpop.permute.xlu0 %8017  ;;  %1360 = vmatpush.msrb.mxu3 %v585_v7  ;;  %1403 = vmatpush.msrb.mxu0 %v749_v42  ;;  %v583_v7 = vsel %vm544_vm1, %v9715_v51, %v18279_v53  ;;  %v18293_v20 = vunpack.i.h.bf16 %v9826_v16 }
 0x216   :  { %v18284_v26 = vunpack.i.h.bf16 %v9838_v30  ;;  %v18280_v15 = vunpack.i.l.bf16 %v9838_v30 }
 0x217   :  { %1361 = vmatpush.msrb.mxu3 %v584_v23  ;;  %v582_v23 = vsel %vm544_vm1, %v9715_v51, %v18281_v60  ;;  %v746_v60 = vsel %vm707_vm2, %v9754_v6, %v18285_v37 }
 0x218   :  { %v748_v42 = vsel %vm707_vm2, %v9754_v6, %v18280_v15  ;;  %v747_v53 = vsel %vm707_vm2, %v9754_v6, %v18284_v26  ;;  %v18287_v15 = vunpack.i.h.bf16 %v9686_v24 }
 0x219   :  { %1362 = vmatpush.msrb.mxu3 %v583_v7  ;;  %1404 = vmatpush.msrb.mxu0 %v748_v42  ;;  %v18289_v7 = vunpack.i.l.bf16 %v9826_v16 }
 0x21a   :  { %v745_v26 = vsel %vm707_vm2, %v9754_v6, %v18287_v15  ;;  %v743_v15 = vsel %vm707_vm2, %v9754_v6, %v18293_v20 }
 0x21b   :  { %1363 = vmatpush.msrb.mxu3 %v582_v23  ;;  %1405 = vmatpush.msrb.mxu0 %v747_v53 }
 0x21c   :  { %v9873_v42 = vpop.permute.xlu1 %8052 }
 0x21d   :  { %v9880_v54 = vpop.permute.xlu0 %8032  ;;  %1406 = vmatpush.msrb.mxu0 %v746_v60  ;;  %v744_v60 = vsel %vm707_vm2, %v9754_v6, %v18289_v7 }
 0x21e   :  { %v18290_v23 = vunpack.i.h.bf16 %v9880_v54  ;;  %v18288_v53 = vunpack.i.l.bf16 %v9880_v54 }
 0x21f   :  { %1407 = vmatpush.msrb.mxu0 %v745_v26 }
 0x220   :  { %v581_v37 = vsel %vm544_vm1, %v9715_v51, %v18288_v53  ;;  %v580_v26 = vsel %vm544_vm1, %v9715_v51, %v18290_v23  ;;  %v9911_v53 = vpop.permute.xlu2 %8097  ;;  %v579_v23 = vsel %vm544_vm1, %v9715_v51, %v18294_v21  ;;  %v18987_v21 = vunpack.i.l.bf16 %v9873_v42 }
 0x221   :  { %1364 = vmatpush.msrb.mxu3 %v581_v37  ;;  %1408 = vmatpush.msrb.mxu0 %v744_v60  ;;  %v18295_v37 = vunpack.i.h.bf16 %v9705_v12  ;;  %v9934_v60 = vld [vmem:[%s18257_s3 + $0x8] sm:$0xff] }
 0x223   :  { %1365 = vmatpush.msrb.mxu3 %v580_v26  ;;  %1409 = vmatpush.msrb.mxu0 %v743_v15  ;;  %v578_v15 = vsel %vm544_vm1, %v9715_v51, %v18295_v37 }
 0x224   :  { %v9915_v7 = vpop.permute.xlu1 %8062 }
 0x225   :  { %v9922_v16 = vpop.permute.xlu0 %8047  ;;  %1366 = vmatpush.msrb.mxu3 %v579_v23  ;;  %v577_v23 = vsel %vm544_vm1, %v9715_v51, %v18987_v21  ;;  %v9957_v21 = vld [vmem:[%s18257_s3 + $0x10] sm:$0xff]  ;;  %v18991_v51 = vunpack.i.l.bf16 %v9711_v11 }
 0x226   :  { %v18298_v26 = vunpack.i.l.bf16 %v9922_v16  ;;  %v18988_v37 = vunpack.i.h.bf16 %v9922_v16  ;;  %18989 = vst [vmem:[#allocation25_spill] sm:$0xff] %v9957_v21 }
 0x227   :  { %1367 = vmatpush.msrb.mxu3 %v578_v15 }
 0x228   :  { %v742_v20 = vsel %vm707_vm2, %v9754_v6, %v18298_v26  ;;  %v741_v24 = vsel %vm707_vm2, %v9754_v6, %v18988_v37  ;;  %v9965_v26 = vpop.permute.xlu2 %8112 }
 0x229   :  { %1368 = vmatpush.msrb.mxu3 %v577_v23  ;;  %1410 = vmatpush.msrb.mxu0 %v742_v20  ;;  %v740_v20 = vsel %vm707_vm2, %v9754_v6, %v9747_v14 }
 0x22a   :  { %1369 = vmatmul.f32.vlgmr.msrb.gmra.mxu3 %v9934_v60 }
 0x22b   :  { %1529 = vmatpush.msra.mxu3 %v9526_v40  ;;  %1411 = vmatpush.msrb.mxu0 %v741_v24  ;;  %v18990_v40 = vunpack.i.h.bf16 %v9873_v42 }
 0x22c   :  { %v9959_v23 = vpop.permute.xlu1 %8077 }
 0x22d   :  { %1530 = vmatpush.msra.mxu3 %v9575_v62  ;;  %v9968_v37 = vpop.permute.xlu0 %8057  ;;  %1412 = vmatpush.msrb.mxu0 %v740_v20  ;;  %v576_v6 = vsel %vm544_vm1, %v18991_v51, %v18990_v40  ;;  %v9983_v20 = vld [vmem:[%s18257_s3 + $0x30] sm:$0xff]  ;;  %v18992_v62 = vunpack.i.l.bf16 %v9697_v34  ;;  %v18996_v40 = vunpack.i.l.bf16 %v9649_v17 }
 0x22e   :  { %v18305_v15 = vunpack.i.l.bf16 %v9968_v37  ;;  %1413 = vmatmul.f32.vlgmr.msrb.gmra.mxu0 %v9957_v21  ;;  %v18993_v51 = vunpack.i.h.bf16 %v9968_v37 }
 0x22f   :  { %1531 = vmatpush.msra.mxu3 %v9581_v1  ;;  %1573 = vmatpush.msra.mxu0 %v576_v6  ;;  %v18994_v6 = vunpack.i.h.bf16 %v9697_v34  ;;  %v18995_v34 = vunpack.i.l.bf16 %v9915_v7 }
 0x230   :  { %v575_v11 = vsel %vm544_vm1, %v18992_v62, %v18305_v15  ;;  %v10005_v62 = vld [vmem:[%s18257_s3 + $0x38] sm:$0xff]  ;;  %v10037_v1 = vpop.permute.xlu2 %8122 }
 0x231   :  { %1532 = vmatpush.msra.mxu3 %v9551_v45  ;;  %1574 = vmatpush.msra.mxu0 %v575_v11  ;;  %v574_v24 = vsel %vm544_vm1, %v18994_v6, %v18993_v51  ;;  %v10010_v11 = vld [vmem:[%s18257_s3 + $0x20] sm:$0xff]  ;;  %v573_v51 = vsel %vm544_vm1, %v18996_v40, %v18995_v34  ;;  %v18998_v45 = vunpack.i.h.bf16 %v9915_v7  ;;  %v18999_v40 = vunpack.i.h.bf16 %v9649_v17 }
 0x232   :  { %1372 = vmatmul.f32.gmra.mxu3 %v9983_v20  ;;  %1501 = vmatmul.f32.vlgmr.msrb.gmra.mxu2 %v10010_v11  ;;  %v18313_v17 = vunpack.i.h.bf16 %v9800_v56 }
 0x233   :  { %1533 = vmatpush.msra.mxu3 %v9554_v52  ;;  %1575 = vmatpush.msra.mxu0 %v574_v24  ;;  %v572_v34 = vsel %vm544_vm1, %v18999_v40, %v18998_v45 }
 0x234   :  { %v10012_v15 = vpop.permute.xlu1 %8092 }
 0x235   :  { %1534 = vmatpush.msra.mxu3 %v9493_v8  ;;  %v10022_v24 = vpop.permute.xlu0 %8072  ;;  %1576 = vmatpush.msra.mxu0 %v573_v51  ;;  %v18312_v8 = vunpack.i.l.bf16 %v9800_v56  ;;  %v10043_v51 = vld [vmem:[%s18257_s3 + $0x58] sm:$0xff] }
 0x236   :  { %v10026_v6 = vunpack.i.h.bf16 %v10022_v24  ;;  %1416 = vmatmul.f32.gmra.mxu0 %v10005_v62  ;;  %v19000_v21 = vunpack.i.l.bf16 %v10022_v24 }
 0x237   :  { %1535 = vmatpush.msra.mxu3 %v9500_v31  ;;  %1577 = vmatpush.msra.mxu0 %v572_v34  ;;  %v19001_v34 = vunpack.i.l.bf16 %v9790_v39 }
 0x238   :  { %18997 = vst [vmem:[#allocation26_spill] sm:$0xff] %v10026_v6  ;;  %v918_v45 = vsel %vm870_vm3, %v10026_v6, %v19000_v21  ;;  %v19002_v21 = vunpack.i.l.bf16 %v9959_v23 }
 0x239   :  { %1536 = vmatpush.msra.mxu3 %v9524_v28  ;;  %1441 = vmatpush.msrb.mxu1 %v918_v45  ;;  %v571_v52 = vsel %vm544_vm1, %v19001_v34, %v18312_v8  ;;  %v19003_v34 = vunpack.i.h.bf16 %v9790_v39  ;;  %v10078_v8 = vld [vmem:[%s18257_s3 + $0x48] sm:$0xff]  ;;  %v10090_v39 = vld [vmem:[%s18257_s3 + $0x60] sm:$0xff]  ;;  %v19007_v45 = vunpack.i.l.bf16 %v9673_v43 }
 0x23a   :  { %1578 = vmatpush.msra.mxu0 %v571_v52  ;;  %1375 = vmatmul.f32.gmra.mxu3 %v10043_v51  ;;  %v917_v40 = vsel %vm870_vm3, %v10026_v6, %v19002_v21  ;;  %19004 = vst [vmem:[#allocation27_spill] sm:$0xff] %v10078_v8  ;;  %v19005_v21 = vunpack.i.h.bf16 %v9959_v23  ;;  %v10120_v28 = vld [vmem:[%s18257_s3 + $0x80] sm:$0xff] }
 0x23b   :  { %1537 = vmatpush.msra.mxu3 %v9530_v41  ;;  %1442 = vmatpush.msrb.mxu1 %v917_v40  ;;  %v570_v52 = vsel %vm544_vm1, %v19003_v34, %v18313_v17  ;;  %v19006_v17 = vunpack.i.l.bf16 %v9858_v19  ;;  %v1023_v41 = vld [vmem:[%s18258_s4 + $0x40] sm:$0xff] }
 0x23c   :  { %1579 = vmatpush.msra.mxu0 %v570_v52  ;;  %v10080_v31 = vpop.permute.xlu1 %8107  ;;  %v916_v40 = vsel %vm870_vm3, %v10026_v6, %v19005_v21  ;;  %1504 = vmatmul.f32.gmra.mxu2 %v10078_v8  ;;  %v19008_v8 = vunpack.i.h.bf16 %v9858_v19 }
 0x23d   :  { %1538 = vmatpush.msra.mxu3 %v9599_v63  ;;  %v10095_v52 = vpop.permute.xlu0 %8087  ;;  %1443 = vmatpush.msrb.mxu1 %v916_v40  ;;  %v569_v21 = vsel %vm544_vm1, %v19007_v45, %v19006_v17  ;;  %v9098_v63 = vmov 0   ;;  %v19009_v17 = vunpack.i.h.bf16 %v9673_v43  ;;  %v10127_v40 = vpop.permute.xlu2 %8147  ;;  %v19011_v43 = vunpack.i.l.bf16 %v9782_v32 }
 0x23e   :  { %v18318_v34 = vunpack.i.l.bf16 %v10095_v52  ;;  %1580 = vmatpush.msra.mxu0 %v569_v21  ;;  %8211 = vset.pattern.permute.xlu0 %v9098_v63 }
 0x23f   :  { %1419 = vmatmul.f32.gmra.mxu0 %v10090_v39  ;;  %1539 = vmatpush.msra.mxu3 %v9608_v18  ;;  %v568_v45 = vsel %vm544_vm1, %v19009_v17, %v19008_v8  ;;  %v19010_v8 = vunpack.i.l.bf16 %v10012_v15  ;;  %v10196_v18 = vld [vmem:[%s18257_s3 + $0xa8] sm:$0xff] }
 0x240   :  { %1581 = vmatpush.msra.mxu0 %v568_v45  ;;  %v915_v21 = vsel %vm870_vm3, %v10026_v6, %v18318_v34  ;;  %2011 = vperm.xlu0 %8211, %v1023_v41   ;;  %v18320_v45 = vunpack.i.l.bf16 %v9911_v53  ;;  %v19012_v34 = vunpack.i.h.bf16 %v10095_v52 }
 0x241   :  { %1540 = vmatpush.msra.mxu3 %v9634_v25  ;;  %1444 = vmatpush.msrb.mxu1 %v915_v21  ;;  %v567_v17 = vsel %vm544_vm1, %v19011_v43, %v19010_v8  ;;  %v19013_v21 = vunpack.i.h.bf16 %v10012_v15  ;;  %v19014_v25 = vunpack.i.h.bf16 %v9782_v32  ;;  %v10153_v43 = vld [vmem:[%s18257_s3 + $0x70] sm:$0xff]  ;;  %v10165_v32 = vld [vmem:[%s18257_s3 + $0x88] sm:$0xff] }
 0x242   :  { %1582 = vmatpush.msra.mxu0 %v567_v17  ;;  %1378 = vmatmul.f32.gmra.mxu3 %v10120_v28  ;;  %v914_v41 = vsel %vm870_vm3, %v10026_v6, %v19012_v34  ;;  %v913_v34 = vsel %vm870_vm3, %v10026_v6, %v18320_v45 }
 0x243   :  { %1541 = vmatpush.msra.mxu3 %v9637_v50  ;;  %1445 = vmatpush.msrb.mxu1 %v914_v41  ;;  %v566_v8 = vsel %vm544_vm1, %v19014_v25, %v19013_v21  ;;  %v18323_v25 = vunpack.i.h.bf16 %v9911_v53  ;;  %v1018_v50 = vld [vmem:[%s18258_s4 + $0x18] sm:$0xff]  ;;  %v19015_v41 = vunpack.i.l.bf16 %v9880_v54 }
 0x244   :  { %1583 = vmatpush.msra.mxu0 %v566_v8  ;;  %v10155_v17 = vpop.permute.xlu1 %508  ;;  %1507 = vmatmul.f32.gmra.mxu2 %v10153_v43 }
 0x245   :  { %1542 = vmatpush.msra.mxu3 %v9571_v61  ;;  %v10171_v21 = vpop.permute.xlu0 %8102  ;;  %1446 = vmatpush.msrb.mxu1 %v913_v34  ;;  %v912_v34 = vsel %vm870_vm3, %v10026_v6, %v18323_v25  ;;  %v19016_v25 = vunpack.i.l.bf16 %v10080_v31 }
 0x246   :  { %v18324_v45 = vunpack.i.l.bf16 %v10171_v21  ;;  %8212 = vset.pattern.permute.xlu1 %v9098_v63  ;;  %8213 = vset.pattern.permute.xlu2 %v9098_v63 }
 0x247   :  { %1422 = vmatmul.f32.gmra.mxu0 %v10165_v32  ;;  %1543 = vmatpush.msra.mxu3 %v9578_v0  ;;  %v19019_v0 = vunpack.i.h.bf16 %v10080_v31 }
 0x248   :  { %1447 = vmatpush.msrb.mxu1 %v912_v34  ;;  %v565_v63 = vsel %vm544_vm1, %v19015_v41, %v18324_v45  ;;  %1986 = vperm.xlu0 %8211, %v1018_v50   ;;  %v911_v34 = vsel %vm870_vm3, %v10026_v6, %v19016_v25  ;;  %v19017_v41 = vunpack.i.h.bf16 %v10171_v21  ;;  %v19018_v45 = vunpack.i.h.bf16 %v9880_v54 }
 0x249   :  { %1544 = vmatpush.msra.mxu3 %v9642_v29  ;;  %1584 = vmatpush.msra.mxu0 %v565_v63  ;;  %v18328_v50 = vunpack.i.h.bf16 %v9965_v26  ;;  %v10212_v29 = vpop.permute.xlu2 %8162  ;;  %v910_v25 = vsel %vm870_vm3, %v10026_v6, %v19019_v0  ;;  %v19021_v63 = vunpack.i.l.bf16 %v9705_v12  ;;  %v10237_v0 = vld [vmem:[%s18257_s3 + $0xb0] sm:$0xff] }
 0x24a   :  { %1448 = vmatpush.msrb.mxu1 %v911_v34  ;;  %v564_v8 = vsel %vm544_vm1, %v19018_v45, %v19017_v41  ;;  %1381 = vmatmul.f32.gmra.mxu3 %v10196_v18  ;;  %v19020_v45 = vunpack.i.l.bf16 %v9965_v26 }
 0x24b   :  { %1705 = vmatpush.msrb.mxu3 %v9410_v58  ;;  %1585 = vmatpush.msra.mxu0 %v564_v8  ;;  %v10223_v58 = vld [vmem:[%s18257_s3 + $0x98] sm:$0xff] }
 0x24c   :  { %1449 = vmatpush.msrb.mxu1 %v910_v25  ;;  %v10226_v54 = vpop.permute.xlu1 %8132  ;;  %v563_v34 = vsel %vm544_vm1, %v19021_v63, %v19020_v45  ;;  %v1022_v8 = vld [vmem:[%s18258_s4 + $0x38] sm:$0xff]  ;;  %1510 = vmatmul.f32.gmra.mxu2 %v10223_v58  ;;  %v19024_v25 = vunpack.i.l.bf16 %v10022_v24 }
 0x24d   :  { %1706 = vmatpush.msrb.mxu3 %v9390_v48  ;;  %v10243_v41 = vpop.permute.xlu0 %8117  ;;  %1586 = vmatpush.msra.mxu0 %v563_v34  ;;  %v19022_v48 = vunpack.i.h.bf16 %v9705_v12  ;;  %v19023_v61 = vunpack.i.h.bf16 %v10226_v54 }
 0x24e   :  { %2006 = vperm.xlu1 %8212, %v1022_v8   ;;  %v18330_v63 = vunpack.i.h.bf16 %v10243_v41  ;;  %v19025_v8 = vunpack.i.l.bf16 %v10243_v41 }
 0x24f   :  { %1707 = vmatpush.msrb.mxu3 %v9388_v47  ;;  %1425 = vmatmul.f32.gmra.mxu0 %v10237_v0  ;;  %v562_v34 = vsel %vm544_vm1, %v19022_v48, %v18328_v50  ;;  %v902_v45 = vsel %vm870_vm3, %v19024_v25, %v19023_v61  ;;  %v18329_v47 = vunpack.i.h.bf16 %v10212_v29  ;;  %v10273_v48 = vld [vmem:[%s18257_s3 + $0xd0] sm:$0xff]  ;;  %v19026_v61 = vunpack.i.l.bf16 %v9873_v42 }
 0x250   :  { %1587 = vmatpush.msra.mxu0 %v562_v34  ;;  %v909_v12 = vsel %vm870_vm3, %v10026_v6, %v19025_v8  ;;  %1661 = vmatpush.msra.mxu2 %v902_v45  ;;  %v19028_v25 = vunpack.i.l.bf16 %v9749_v59  ;;  %v1015_v8 = vld [vmem:[%s18258_s4] sm:$0xff]  ;;  %v10297_v45 = vpop.f32.mrf.mxu3  ;;  %v19030_v59 = vunpack.i.l.bf16 %v9709_v13 }
 0x251   :  { %1708 = vmatpush.msrb.mxu3 %v9372_v36  ;;  %1450 = vmatpush.msrb.mxu1 %v909_v12  ;;  %v561_v24 = vsel %vm544_vm1, %v19026_v61, %v10155_v17  ;;  %v19027_v36 = vunpack.i.l.bf16 %v10212_v29  ;;  %v18331_v12 = vunpack.i.l.bf16 %v10037_v1  ;;  %19029 = vst [vmem:[#allocation28_spill] sm:$0xff] %v10297_v45  ;;  %v19031_v45 = vunpack.i.h.bf16 %v10037_v1 }
 0x252   :  { %1588 = vmatpush.msra.mxu0 %v561_v24  ;;  %1384 = vmatmul.f32.gmra.mxu3 %v10273_v48  ;;  %v738_v61 = vsel %vm707_vm2, %v19030_v59, %v18329_v47 }
 0x253   :  { %1709 = vmatpush.msrb.mxu3 %v9370_v35  ;;  %v739_v34 = vsel %vm707_vm2, %v19028_v25, %v19027_v36  ;;  %v908_v35 = vsel %vm870_vm3, %v10026_v6, %v18330_v63  ;;  %v10311_v36 = vld [vmem:[%s18257_s3 + $0xd8] sm:$0xff]  ;;  %v10316_v25 = vld [vmem:[%s18257_s3 + $0xc0] sm:$0xff]  ;;  %v907_v59 = vsel %vm870_vm3, %v10026_v6, %v18331_v12  ;;  %1971 = vperm.xlu0 %8211, %v1015_v8  }
 0x254   :  { %1617 = vmatpush.msrb.mxu0 %v739_v34  ;;  %1451 = vmatpush.msrb.mxu1 %v908_v35  ;;  %v10306_v24 = vpop.permute.xlu1 %8142  ;;  %v1020_v35 = vld [vmem:[%s18258_s4 + $0x28] sm:$0xff]  ;;  %v906_v8 = vsel %vm870_vm3, %v10026_v6, %v19031_v45  ;;  %v10356_v45 = vld [vmem:[%s18257_s3 + $0xf8] sm:$0xff] }
 0x255   :  { %1710 = vmatpush.msrb.mxu3 %v9441_v3  ;;  %v10320_v50 = vpop.permute.xlu0 %8127  ;;  %v18332_v47 = vunpack.i.h.bf16 %v10306_v24  ;;  %v19032_v12 = vunpack.i.l.bf16 %v10306_v24  ;;  %1513 = vmatmul.f32.gmra.mxu2 %v10316_v25 }
 0x256   :  { %1618 = vmatpush.msrb.mxu0 %v738_v61  ;;  %v18333_v63 = vunpack.i.l.bf16 %v10320_v50  ;;  %1452 = vmatpush.msrb.mxu1 %v907_v59  ;;  %v19033_v59 = vunpack.i.h.bf16 %v9709_v13  ;;  %v18334_v13 = vunpack.i.l.bf16 %v10226_v54 }
 0x257   :  { %1711 = vmatpush.msrb.mxu3 %v9448_v5  ;;  %1428 = vmatmul.f32.gmra.mxu0 %v10311_v36 }
 0x258   :  { %v737_v5 = vsel %vm707_vm2, %v19033_v59, %v19032_v12  ;;  %1453 = vmatpush.msrb.mxu1 %v906_v8  ;;  %v905_v3 = vsel %vm870_vm3, %v10026_v6, %v18333_v63  ;;  %1996 = vperm.xlu1 %8212, %v1020_v35   ;;  %v19035_v8 = vunpack.i.h.bf16 %v10320_v50  ;;  %v10383_v35 = vld [vmem:[%s18257_s3 + $0x18] sm:$0xff]  ;;  %v1021_v63 = vld [vmem:[%s18258_s4 + $0x30] sm:$0xff] }
 0x259   :  { %1712 = vmatpush.msrb.mxu3 %v9384_v44  ;;  %1619 = vmatpush.msrb.mxu0 %v737_v5  ;;  %v19034_v44 = vunpack.i.l.bf16 %v9662_v38 }
 0x25a   :  { %1454 = vmatpush.msrb.mxu1 %v905_v3  ;;  %1387 = vmatmul.f32.gmra.mxu3 %v10356_v45  ;;  %v904_v59 = vsel %vm870_vm3, %v10026_v6, %v19035_v8  ;;  %v10378_v3 = vld [vmem:[%s18257_s3 + $0x100] sm:$0xff]  ;;  %v10392_v8 = vpop.f32.mrf.mxu3 }
 0x25b   :  { %1713 = vmatpush.msrb.mxu3 %v9386_v46  ;;  %v736_v12 = vsel %vm707_vm2, %v19034_v44, %v18332_v47  ;;  %19036 = vst [vmem:[#allocation29_spill] sm:$0xff] %v10392_v8  ;;  %2001 = vperm.xlu2 %8213, %v1021_v63   ;;  %v19039_v8 = vunpack.i.h.bf16 %v9959_v23  ;;  %v10438_v63 = vld [vmem:[%s18257_s3 + $0x128] sm:$0xff] }
 0x25c   :  { %1620 = vmatpush.msrb.mxu0 %v736_v12  ;;  %1455 = vmatpush.msrb.mxu1 %v904_v59  ;;  %v10373_v46 = vpop.permute.xlu1 %8157  ;;  %v10414_v59 = vpop.permute.xlu2 %8167 }
 0x25d   :  { %1714 = vmatpush.msrb.mxu3 %v9406_v55  ;;  %v10385_v44 = vpop.permute.xlu0 %8137  ;;  %v903_v55 = vsel %vm870_vm3, %v10026_v6, %v18334_v13  ;;  %v19037_v13 = vunpack.i.l.bf16 %v9959_v23 }
 0x25e   :  { %v18335_v47 = vunpack.i.l.bf16 %v10385_v44  ;;  %1456 = vmatpush.msrb.mxu1 %v903_v55 }
 0x25f   :  { %1715 = vmatpush.msrb.mxu3 %v9408_v57  ;;  %1431 = vmatmul.f32.gmra.mxu0 %v10378_v3  ;;  %v10412_v57 = vld [vmem:[%s18257_s3 + $0x120] sm:$0xff] }
 0x260   :  { %1457 = vmatmul.f32.vlgmr.msrb.gmra.mxu1 %v10383_v35  ;;  %v901_v55 = vsel %vm870_vm3, %v19037_v13, %v18335_v47  ;;  %v1017_v47 = vld [vmem:[%s18258_s4 + $0x10] sm:$0xff] }
 0x261   :  { %7940 = vmatpush.msra.mxu1 %v739_v34  ;;  %1716 = vmatpush.msrb.mxu3 %v9497_v27  ;;  %v18336_v34 = vunpack.i.l.bf16 %v10127_v40  ;;  %v19038_v27 = vunpack.i.h.bf16 %v10385_v44 }
 0x262   :  { %1662 = vmatpush.msra.mxu2 %v901_v55  ;;  %1390 = vmatmul.f32.gmra.mxu3 %v10412_v57 }
 0x263   :  { %7941 = vmatpush.msra.mxu1 %v738_v61  ;;  %1717 = vmatpush.msrb.mxu3 %v9504_v33  ;;  %v900_v13 = vsel %vm870_vm3, %v19039_v8, %v19038_v27  ;;  %v19040_v33 = vunpack.i.l.bf16 %v10095_v52  ;;  %v10443_v61 = vld [vmem:[%s18257_s3 + $0x40] sm:$0xff] }
 0x264   :  { %1663 = vmatpush.msra.mxu2 %v900_v13  ;;  %1981 = vperm.xlu1 %8212, %v1017_v47   ;;  %v10449_v55 = vpop.permute.xlu1 %8177 }
 0x265   :  { %7942 = vmatpush.msra.mxu1 %v737_v5  ;;  %1718 = vmatpush.msrb.mxu3 %v9438_v2  ;;  %v899_v23 = vsel %vm870_vm3, %v19040_v33, %v18336_v34  ;;  %v18338_v5 = vunpack.i.h.bf16 %v10127_v40  ;;  %v18340_v2 = vunpack.i.l.bf16 %v10373_v46  ;;  %v10447_v8 = vpop.permute.xlu0 %8152  ;;  %v1019_v34 = vld [vmem:[%s18258_s4 + $0x20] sm:$0xff]  ;;  %v19043_v33 = vunpack.i.h.bf16 %v9662_v38 }
 0x266   :  { %1664 = vmatpush.msra.mxu2 %v899_v23  ;;  %v18339_v27 = vunpack.i.h.bf16 %v10447_v8  ;;  %v18337_v13 = vunpack.i.l.bf16 %v10447_v8  ;;  %v19041_v23 = vunpack.i.h.bf16 %v10095_v52  ;;  %v19045_v38 = vunpack.i.l.bf16 %v9740_v9  ;;  %1991 = vperm.xlu2 %8213, %v1019_v34  }
 0x267   :  { %7943 = vmatpush.msra.mxu1 %v736_v12  ;;  %1719 = vmatpush.msrb.mxu3 %v9445_v4  ;;  %v10463_v12 = vpop.f32.mrf.mxu3  ;;  %v18341_v4 = vunpack.i.l.bf16 %v10414_v59  ;;  %v19049_v34 = vunpack.i.h.bf16 %v9740_v9  ;;  %v19053_v9 = vunpack.i.l.bf16 %v10449_v55 }
 0x268   :  { %1434 = vmatmul.f32.gmra.mxu0 %v10438_v63  ;;  %1460 = vmatmul.f32.gmra.mxu1 %v10443_v61  ;;  %v898_v47 = vsel %vm870_vm3, %v19041_v23, %v18338_v5  ;;  %19042 = vst [vmem:[#allocation30_spill] sm:$0xff] %v10463_v12  ;;  %v735_v52 = vsel %vm707_vm2, %v19043_v33, %v18337_v13  ;;  %v10479_v23 = vld [vmem:[%s18257_s3 + $0x148] sm:$0xff]  ;;  %v10499_v5 = vpop.permute.xlu2 %8182  ;;  %v19054_v12 = vunpack.i.h.bf16 %v9838_v30 }
 0x269   :  { %1665 = vmatpush.msra.mxu2 %v898_v47  ;;  %1720 = vmatpush.msrb.mxu3 %v9477_v22  ;;  %v19044_v47 = vunpack.i.l.bf16 %v9911_v53  ;;  %v734_v33 = vsel %vm707_vm2, %v19045_v38, %v18339_v27  ;;  %v10496_v13 = vld [vmem:[%s18257_s3 + $0xe8] sm:$0xff]  ;;  %v733_v27 = vsel %vm707_vm2, %v19049_v34, %v18341_v4  ;;  %v19051_v34 = vunpack.i.l.bf16 %v9838_v30 }
 0x26a   :  { %1621 = vmatpush.msrb.mxu0 %v735_v52  ;;  %7944 = vmatpush.msra.mxu1 %v735_v52  ;;  %19046 = vst [vmem:[#allocation31_spill] sm:$0xff] %v10496_v13  ;;  %v18344_v52 = vunpack.i.h.bf16 %v10414_v59  ;;  %v19058_v30 = vunpack.i.h.bf16 %v10226_v54 }
 0x26b   :  { %v897_v22 = vsel %vm870_vm3, %v19044_v47, %v18340_v2  ;;  %1393 = vmatmul.f32.gmra.mxu3 %v10479_v23  ;;  %v19047_v47 = vunpack.i.h.bf16 %v10373_v46  ;;  %v10517_v2 = vld [vmem:[%s18257_s3 + $0x150] sm:$0xff]  ;;  %1516 = vmatmul.f32.gmra.mxu2 %v10496_v13  ;;  %v731_v13 = vsel %vm707_vm2, %v19054_v12, %v19053_v9  ;;  %v19059_v9 = vunpack.i.h.bf16 %v10449_v55 }
 0x26c   :  { %1666 = vmatpush.msra.mxu2 %v897_v22  ;;  %1622 = vmatpush.msrb.mxu0 %v734_v33  ;;  %v19048_v22 = vunpack.i.h.bf16 %v9911_v53  ;;  %19050 = vst [vmem:[#allocation32_spill] sm:$0xff] %v10517_v2  ;;  %v10522_v53 = vld [vmem:[%s18257_s3 + $0x68] sm:$0xff]  ;;  %v732_v4 = vsel %vm707_vm2, %v19051_v34, %v18344_v52  ;;  %v18348_v52 = vunpack.i.l.bf16 %v10499_v5  ;;  %v886_v12 = vsel %vm870_vm3, %v19058_v30, %v10026_v6 }
 0x26d   :  { %7945 = vmatpush.msra.mxu1 %v734_v33  ;;  %v10539_v33 = vpop.permute.xlu1 %8192 }
 0x26e   :  { %v896_v38 = vsel %vm870_vm3, %v19048_v22, %v19047_v47  ;;  %v10525_v47 = vpop.permute.xlu0 %8172  ;;  %1623 = vmatpush.msrb.mxu0 %v733_v27  ;;  %v18351_v30 = vunpack.i.h.bf16 %v10539_v33 }
 0x26f   :  { %1667 = vmatpush.msra.mxu2 %v896_v38  ;;  %v18347_v22 = vunpack.i.l.bf16 %v10525_v47  ;;  %7946 = vmatpush.msra.mxu1 %v733_v27  ;;  %v19052_v27 = vunpack.i.l.bf16 %v10080_v31  ;;  %v10553_v34 = vpop.f32.mrf.mxu3 }
 0x270   :  { %1437 = vmatmul.f32.gmra.mxu0 %v10517_v2  ;;  %1463 = vmatmul.f32.gmra.mxu1 %v10522_v53  ;;  %19055 = vst [vmem:[#allocation33_spill] sm:$0xff] %v10553_v34  ;;  %v19057_v2 = vunpack.i.h.bf16 %v10080_v31  ;;  %v10577_v31 = vld [vmem:[%s18257_s3 + $0x110] sm:$0xff] }
 0x271   :  { %1624 = vmatpush.msrb.mxu0 %v732_v4  ;;  %7947 = vmatpush.msra.mxu1 %v732_v4  ;;  %v895_v38 = vsel %vm870_vm3, %v19052_v27, %v18347_v22  ;;  %v19056_v4 = vunpack.i.h.bf16 %v10525_v47 }
 0x272   :  { %1668 = vmatpush.msra.mxu2 %v895_v38  ;;  %v19060_v38 = vld [vmem:[#allocation20_spill] sm:$0xff] }
 0x273   :  { %1625 = vmatpush.msrb.mxu0 %v731_v13  ;;  %7948 = vmatpush.msra.mxu1 %v731_v13  ;;  %v894_v27 = vsel %vm870_vm3, %v19057_v2, %v19056_v4  ;;  %v19061_v22 = vunpack.i.l.bf16 %v19060_v38  ;;  %v10588_v4 = vld [vmem:[%s18257_s3 + $0x90] sm:$0xff] }
 0x274   :  { %1545 = vmatmul.f32.vlgmr.msra.gmra.mxu3 %v9604_v10  ;;  %1669 = vmatpush.msra.mxu2 %v894_v27  ;;  %v19062_v10 = vunpack.i.l.bf16 %v10243_v41  ;;  %v10591_v27 = vpop.permute.xlu2 %8197 }
 0x275   :  { %v730_v13 = vsel %vm707_vm2, %v19061_v22, %v19059_v9  ;;  %1881 = vmatpush.msra.mxu3 %v886_v12  ;;  %v18349_v22 = vunpack.i.h.bf16 %v10499_v5  ;;  %v19063_v12 = vunpack.i.l.bf16 %v10385_v44  ;;  %1519 = vmatmul.f32.gmra.mxu2 %v10577_v31 }
 0x276   :  { %1626 = vmatpush.msrb.mxu0 %v730_v13  ;;  %v893_v2 = vsel %vm870_vm3, %v19062_v10, %v18348_v52  ;;  %7949 = vmatpush.msra.mxu1 %v730_v13  ;;  %v10599_v34 = vpop.permute.xlu0 %8187  ;;  %v19064_v13 = vunpack.i.h.bf16 %v10385_v44  ;;  %v10648_v10 = vld [vmem:[%s18257_s3 + $0x28] sm:$0xff] }
 0x277   :  { %v885_v9 = vsel %vm870_vm3, %v19063_v12, %v10026_v6  ;;  %1670 = vmatpush.msra.mxu2 %v893_v2  ;;  %v18350_v52 = vunpack.i.l.bf16 %v10599_v34  ;;  %v19065_v2 = vunpack.i.h.bf16 %v10243_v41 }
 0x278   :  { %1882 = vmatpush.msra.mxu3 %v885_v9  ;;  %1466 = vmatmul.f32.gmra.mxu1 %v10588_v4  ;;  %v884_v12 = vsel %vm870_vm3, %v19064_v13, %v10026_v6  ;;  %v19067_v13 = vunpack.i.l.bf16 %v10127_v40 }
 0x279   :  { %1589 = vmatmul.f32.vlgmr.msra.gmra.mxu0 %v9934_v60  ;;  %v892_v9 = vsel %vm870_vm3, %v19065_v2, %v18349_v22  ;;  %v19066_v60 = vunpack.i.h.bf16 %v19060_v38  ;;  %v19068_v2 = vunpack.i.l.bf16 %v10539_v33  ;;  %v10636_v22 = vpop.permute.xlu1 %8207  ;;  %v19070_v38 = vunpack.i.h.bf16 %v10599_v34 }
 0x27a   :  { %1883 = vmatpush.msra.mxu3 %v884_v12  ;;  %1671 = vmatpush.msra.mxu2 %v892_v9  ;;  %v883_v41 = vsel %vm870_vm3, %v19067_v13, %v10026_v6  ;;  %v19069_v12 = vunpack.i.l.bf16 %v10037_v1 }
 0x27b   :  { %v729_v44 = vsel %vm707_vm2, %v19066_v60, %v18350_v52  ;;  %v19071_v60 = vld [vmem:[#allocation24_spill] sm:$0xff] }
 0x27c   :  { %1627 = vmatpush.msrb.mxu0 %v729_v44  ;;  %7950 = vmatpush.msra.mxu1 %v729_v44  ;;  %v891_v9 = vsel %vm870_vm3, %v19069_v12, %v19068_v2  ;;  %v19072_v52 = vunpack.i.l.bf16 %v19071_v60  ;;  %v10656_v12 = vpop.f32.mrf.mxu3  ;;  %v19076_v44 = vunpack.i.h.bf16 %v19071_v60 }
 0x27d   :  { %1884 = vmatpush.msra.mxu3 %v883_v41  ;;  %1672 = vmatpush.msra.mxu2 %v891_v9  ;;  %v19073_v41 = vunpack.i.h.bf16 %v10127_v40 }
 0x27e   :  { %v728_v13 = vsel %vm707_vm2, %v19072_v52, %v19070_v38  ;;  %1548 = vmatmul.f32.gmra.mxu3 %v10648_v10  ;;  %v19074_v52 = vunpack.i.h.bf16 %v10037_v1  ;;  %v19075_v38 = vunpack.i.l.bf16 %v10591_v27  ;;  %v19077_v1 = vunpack.i.l.bf16 %v10373_v46 }
 0x27f   :  { %v882_v2 = vsel %vm870_vm3, %v19073_v41, %v10026_v6  ;;  %1628 = vmatpush.msrb.mxu0 %v728_v13  ;;  %7951 = vmatpush.msra.mxu1 %v728_v13  ;;  %v10673_v41 = vld [vmem:[%s18257_s3 + $0xb8] sm:$0xff]  ;;  %v8209_v13 = vunpack.i.l.bf16 %v10636_v22 }
 0x280   :  { %1885 = vmatpush.msra.mxu3 %v882_v2  ;;  %v890_v9 = vsel %vm870_vm3, %v19074_v52, %v18351_v30  ;;  %v727_v40 = vsel %vm707_vm2, %v19076_v44, %v19075_v38  ;;  %v881_v2 = vsel %vm870_vm3, %v19077_v1, %v10026_v6  ;;  %v10681_v52 = vpop.permute.xlu0 %8202  ;;  %1469 = vmatmul.f32.gmra.mxu1 %v10673_v41  ;;  %v19079_v1 = vunpack.i.h.bf16 %v10591_v27 }
 0x281   :  { %1673 = vmatpush.msra.mxu2 %v890_v9  ;;  %1629 = vmatpush.msrb.mxu0 %v727_v40  ;;  %v8204_v60 = vunpack.i.l.bf16 %v10681_v52  ;;  %v19078_v9 = vunpack.i.h.bf16 %v10373_v46  ;;  %v19080_v30 = vunpack.i.l.bf16 %v9922_v16 }
 0x282   :  { %1886 = vmatpush.msra.mxu3 %v881_v2  ;;  %7952 = vmatpush.msra.mxu1 %v727_v40  ;;  %v8205_v40 = vunpack.i.h.bf16 %v10681_v52 }
 0x283   :  { %1592 = vmatmul.f32.gmra.mxu0 %v9983_v20  ;;  %v880_v38 = vsel %vm870_vm3, %v19078_v9, %v10026_v6  ;;  %v726_v2 = vsel %vm707_vm2, %v19080_v30, %v19079_v1  ;;  %v19081_v20 = vunpack.i.l.bf16 %v10320_v50  ;;  %v19082_v9 = vunpack.i.l.bf16 %v10525_v47  ;;  %v10719_v1 = vld [vmem:[%s18257_s3 + $0x50] sm:$0xff] }
 0x284   :  { %1887 = vmatpush.msra.mxu3 %v880_v38  ;;  %1630 = vmatpush.msrb.mxu0 %v726_v2  ;;  %v19083_v30 = vunpack.i.h.bf16 %v9922_v16 }
 0x285   :  { %v889_v46 = vsel %vm870_vm3, %v19081_v20, %v8204_v60  ;;  %7953 = vmatpush.msra.mxu1 %v726_v2  ;;  %v879_v44 = vsel %vm870_vm3, %v19082_v9, %v10026_v6  ;;  %v19084_v2 = vunpack.i.h.bf16 %v10525_v47  ;;  %v19085_v20 = vunpack.i.h.bf16 %v10636_v22  ;;  %v10741_v47 = vld [vmem:[%s18257_s3 + $0xe0] sm:$0xff] }
 0x286   :  { %v725_v38 = vsel %vm707_vm2, %v19083_v30, %v8209_v13  ;;  %1674 = vmatpush.msra.mxu2 %v889_v46  ;;  %1888 = vmatpush.msra.mxu3 %v879_v44  ;;  %v19086_v46 = vunpack.i.h.bf16 %v10320_v50  ;;  %v837_v30 = vpop.permute.xlu2 %836  ;;  %v19089_v50 = vunpack.i.l.bf16 %v10499_v5 }
 0x287   :  { %1631 = vmatpush.msrb.mxu0 %v725_v38  ;;  %7954 = vmatpush.msra.mxu1 %v725_v38  ;;  %v878_v16 = vsel %vm870_vm3, %v19084_v2, %v10026_v6  ;;  %v724_v44 = vsel %vm707_vm2, %v9747_v14, %v19085_v20  ;;  %v19087_v38 = vld [vmem:[#allocation22_spill] sm:$0xff]  ;;  %v19088_v14 = vunpack.i.h.bf16 %v9873_v42  ;;  %v10753_v20 = vpop.f32.mrf.mxu3  ;;  %v19091_v42 = vunpack.i.l.bf16 %v9968_v37 }
 0x288   :  { %1551 = vmatmul.f32.gmra.mxu3 %v10719_v1  ;;  %v888_v9 = vsel %vm870_vm3, %v19086_v46, %v8205_v40  ;;  %v19090_v46 = vunpack.i.l.bf16 %v10226_v54  ;;  %1472 = vmatmul.f32.gmra.mxu1 %v10741_v47  ;;  %v19092_v54 = vld [vmem:[#allocation23_spill] sm:$0xff]  ;;  %v871_v52 = vsel %vm870_vm3, %v837_v30, %v10026_v6 }
 0x289   :  { %1889 = vmatpush.msra.mxu3 %v878_v16  ;;  %1632 = vmatpush.msrb.mxu0 %v724_v44  ;;  %v560_v2 = vsel %vm544_vm1, %v19088_v14, %v19087_v38  ;;  %v877_v16 = vsel %vm870_vm3, %v19089_v50, %v10026_v6  ;;  %v10768_v14 = vld [vmem:[%s18257_s3 + $0x138] sm:$0xff] }
 0x28a   :  { %7955 = vmatpush.msra.mxu1 %v724_v44  ;;  %1675 = vmatpush.msra.mxu2 %v888_v9  ;;  %v887_v44 = vsel %vm870_vm3, %v19090_v46, %v837_v30  ;;  %v559_v9 = vsel %vm544_vm1, %v19091_v42, %v19087_v38  ;;  %v19096_v42 = vunpack.i.h.bf16 %v10212_v29  ;;  %v19109_v30 = vunpack.i.l.bf16 %v10414_v59 }
 0x28b   :  { %1890 = vmatpush.msra.mxu3 %v877_v16  ;;  %1595 = vmatmul.f32.gmra.mxu0 %v10043_v51  ;;  %v19094_v16 = vunpack.i.h.bf16 %v10499_v5  ;;  %v19097_v5 = vunpack.i.l.bf16 %v10539_v33 }
 0x28c   :  { %1793 = vmatpush.msrb.mxu1 %v560_v2  ;;  %1676 = vmatpush.msra.mxu2 %v887_v44  ;;  %v19093_v2 = vunpack.i.l.bf16 %v10212_v29  ;;  %v19095_v44 = vunpack.i.h.bf16 %v9968_v37  ;;  %v19098_v37 = vunpack.i.l.bf16 %v9915_v7  ;;  %v1016_v29 = vld [vmem:[%s18258_s4 + $0x8] sm:$0xff] }
 0x28d   :  { %v876_v46 = vsel %vm870_vm3, %v19094_v16, %v10026_v6  ;;  %1522 = vmatmul.f32.gmra.mxu2 %v10768_v14  ;;  %v10808_v16 = vld [vmem:[%s18257_s3 + $0x78] sm:$0xff]  ;;  %1976 = vperm.xlu2 %8213, %v1016_v29   ;;  %v19104_v29 = vunpack.i.l.bf16 %v10447_v8 }
 0x28e   :  { %1794 = vmatpush.msrb.mxu1 %v559_v9  ;;  %v723_v50 = vsel %vm707_vm2, %v19093_v2, %v19092_v54  ;;  %1891 = vmatpush.msra.mxu3 %v876_v46  ;;  %v558_v51 = vsel %vm544_vm1, %v19095_v44, %v19087_v38  ;;  %v722_v9 = vsel %vm707_vm2, %v19096_v42, %v19092_v54  ;;  %v19099_v46 = vunpack.i.l.bf16 %v10306_v24 }
 0x28f   :  { %1837 = vmatpush.msrb.mxu2 %v723_v50  ;;  %v875_v2 = vsel %vm870_vm3, %v19097_v5, %v10026_v6  ;;  %v557_v50 = vsel %vm544_vm1, %v19098_v37, %v19087_v38 }
 0x290   :  { %1795 = vmatpush.msrb.mxu1 %v558_v51  ;;  %1892 = vmatpush.msra.mxu3 %v875_v2  ;;  %v721_v44 = vsel %vm707_vm2, %v19099_v46, %v19092_v54  ;;  %v19100_v51 = vunpack.i.h.bf16 %v10539_v33  ;;  %v10829_v2 = vld [vmem:[%s18257_s3 + $0x108] sm:$0xff]  ;;  %v19102_v33 = vunpack.i.h.bf16 %v10306_v24  ;;  %v10846_v46 = vpop.f32.mrf.mxu3  ;;  %v19103_v24 = vunpack.i.l.bf16 %v9800_v56 }
 0x291   :  { %1838 = vmatpush.msrb.mxu2 %v722_v9  ;;  %1554 = vmatmul.f32.gmra.mxu3 %v10808_v16  ;;  %v19101_v9 = vunpack.i.h.bf16 %v9915_v7  ;;  %v873_v7 = vsel %vm870_vm3, %v8204_v60, %v10026_v6 }
 0x292   :  { %1796 = vmatpush.msrb.mxu1 %v557_v50  ;;  %v874_v42 = vsel %vm870_vm3, %v19100_v51, %v10026_v6  ;;  %v720_v37 = vsel %vm707_vm2, %v19102_v33, %v19092_v54  ;;  %v10844_v50 = vld [vmem:[%s18257_s3 + $0x160] sm:$0xff]  ;;  %v555_v60 = vsel %vm544_vm1, %v19103_v24, %v19087_v38  ;;  %v872_v51 = vsel %vm870_vm3, %v8205_v40, %v10026_v6  ;;  %v10899_v24 = vld [vmem:[%s18257_s3 + $0x130] sm:$0xff] }
 0x293   :  { %1839 = vmatpush.msrb.mxu2 %v721_v44  ;;  %1893 = vmatpush.msra.mxu3 %v874_v42  ;;  %v556_v5 = vsel %vm544_vm1, %v19101_v9, %v19087_v38  ;;  %v719_v44 = vsel %vm707_vm2, %v19104_v29, %v19092_v54  ;;  %v19105_v42 = vunpack.i.h.bf16 %v9800_v56  ;;  %v19107_v56 = vunpack.i.l.bf16 %v9858_v19 }
 0x294   :  { %1797 = vmatpush.msrb.mxu1 %v556_v5  ;;  %1598 = vmatmul.f32.gmra.mxu0 %v10120_v28  ;;  %v19106_v5 = vunpack.i.h.bf16 %v10447_v8  ;;  %v10888_v8 = vld [vmem:[%s18257_s3 + $0xa0] sm:$0xff] }
 0x295   :  { %1840 = vmatpush.msrb.mxu2 %v720_v37  ;;  %1894 = vmatpush.msra.mxu3 %v873_v7  ;;  %v554_v9 = vsel %vm544_vm1, %v19105_v42, %v19087_v38  ;;  %v553_v40 = vsel %vm544_vm1, %v19107_v56, %v19087_v38  ;;  %v19108_v37 = vmov 0.0   ;;  %v717_v7 = vsel %vm707_vm2, %v19109_v30, %v19092_v54 }
 0x296   :  { %1475 = vmatmul.f32.gmra.mxu1 %v10829_v2  ;;  %v718_v33 = vsel %vm707_vm2, %v19106_v5, %v19092_v54  ;;  %1525 = vmatmul.f32.gmra.mxu2 %v10844_v50  ;;  %v19112_v42 = vunpack.i.l.bf16 %v10012_v15  ;;  %v19115_v56 = vunpack.i.h.bf16 %v10449_v55  ;;  %v19116_v30 = vunpack.i.l.bf16 %v10171_v21 }
 0x297   :  { %1798 = vmatpush.msrb.mxu1 %v555_v60  ;;  %1841 = vmatpush.msrb.mxu2 %v719_v44  ;;  %v19110_v60 = vunpack.i.h.bf16 %v9858_v19  ;;  %v19111_v44 = vunpack.i.h.bf16 %v10414_v59  ;;  %v19113_v19 = vunpack.i.l.bf16 %v10449_v55  ;;  %v19117_v55 = vunpack.i.l.bf16 %v10599_v34 }
 0x298   :  { %1895 = vmatpush.msra.mxu3 %v872_v51  ;;  %1764 = vmatpush.msra.mxu0 %v19108_v37  ;;  %v10923_v5 = vpop.f32.mrf.mxu3 }
 0x299   :  { %1799 = vmatpush.msrb.mxu1 %v554_v9  ;;  %1842 = vmatpush.msrb.mxu2 %v718_v33  ;;  %v552_v29 = vsel %vm544_vm1, %v19110_v60, %v19087_v38  ;;  %v716_v51 = vsel %vm707_vm2, %v19111_v44, %v19092_v54  ;;  %v551_v9 = vsel %vm544_vm1, %v19112_v42, %v19087_v38  ;;  %v19114_v33 = vunpack.i.h.bf16 %v10012_v15  ;;  %v10944_v15 = vld [vmem:[%s18257_s3 + $0xc8] sm:$0xff] }
 0x29a   :  { %1896 = vmatpush.msra.mxu3 %v871_v52  ;;  %v715_v59 = vsel %vm707_vm2, %v19113_v19, %v19092_v54  ;;  %v713_v60 = vsel %vm707_vm2, %v19117_v55, %v19092_v54  ;;  %v19118_v44 = vunpack.i.h.bf16 %v10171_v21  ;;  %v19119_v42 = vunpack.i.h.bf16 %v10599_v34 }
 0x29b   :  { %1557 = vmatmul.f32.gmra.mxu3 %v10888_v8  ;;  %1800 = vmatpush.msrb.mxu1 %v553_v40  ;;  %v550_v52 = vsel %vm544_vm1, %v19114_v33, %v19087_v38  ;;  %v714_v40 = vsel %vm707_vm2, %v19115_v56, %v19092_v54  ;;  %v19120_v19 = vunpack.i.l.bf16 %v9965_v26  ;;  %v19121_v21 = vunpack.i.l.bf16 %v10591_v27 }
 0x29c   :  { %1843 = vmatpush.msrb.mxu2 %v717_v7  ;;  %1601 = vmatmul.f32.gmra.mxu0 %v10196_v18  ;;  %v549_v7 = vsel %vm544_vm1, %v19116_v30, %v19087_v38  ;;  %v19122_v33 = vunpack.i.h.bf16 %v9965_v26  ;;  %v19123_v56 = vunpack.i.h.bf16 %v10591_v27  ;;  %v545_v26 = vsel %vm544_vm1, %v10155_v17, %v19087_v38 }
 0x29d   :  { %1801 = vmatpush.msrb.mxu1 %v552_v29  ;;  %v10955_v29 = vld [vmem:[%s18257_s3 + $0x158] sm:$0xff]  ;;  %v711_v34 = vsel %vm707_vm2, %v19121_v21, %v19092_v54  ;;  %v709_v27 = vsel %vm707_vm2, %v8209_v13, %v19092_v54  ;;  %v19124_v55 = vunpack.i.h.bf16 %v10636_v22  ;;  %v19127_v21 = vld [vmem:[#allocation12_spill] sm:$0xff] }
 0x29e   :  { %1844 = vmatpush.msrb.mxu2 %v716_v51  ;;  %1478 = vmatmul.f32.gmra.mxu1 %v10899_v24  ;;  %v548_v51 = vsel %vm544_vm1, %v19118_v44, %v19087_v38  ;;  %v11020_v13 = vld [vmem:[%s18257_s3 + $0x118] sm:$0xff]  ;;  %v11031_v44 = vld [vmem:[%s18257_s3 + $0x140] sm:$0xff] }
 0x29f   :  { %1802 = vmatpush.msrb.mxu1 %v551_v9  ;;  %1677 = vmatmul.f32.vlgmr.msra.gmra.mxu2 %v10383_v35  ;;  %v712_v9 = vsel %vm707_vm2, %v19119_v42, %v19092_v54  ;;  %v708_v17 = vsel %vm707_vm2, %v19124_v55, %v19092_v54  ;;  %v19132_v55 = vld [vmem:[#allocation4_spill] sm:$0xff] }
 0x2a0   :  { %1845 = vmatpush.msrb.mxu2 %v715_v59  ;;  %v547_v59 = vsel %vm544_vm1, %v19120_v19, %v19087_v38  ;;  %v10990_v30 = vpop.f32.mrf.mxu3  ;;  %v19125_v19 = vld [vmem:[#allocation25_spill] sm:$0xff] }
 0x2a1   :  { %1803 = vmatpush.msrb.mxu1 %v550_v52  ;;  %v546_v52 = vsel %vm544_vm1, %v19122_v33, %v19087_v38  ;;  %v19128_v33 = vld [vmem:[#allocation27_spill] sm:$0xff] }
 0x2a2   :  { %1846 = vmatpush.msrb.mxu2 %v714_v40  ;;  %v710_v40 = vsel %vm707_vm2, %v19123_v56, %v19092_v54  ;;  %v19129_v56 = vld [vmem:[#allocation14_spill] sm:$0xff] }
 0x2a3   :  { %1560 = vmatmul.f32.gmra.mxu3 %v10944_v15  ;;  %1804 = vmatpush.msrb.mxu1 %v549_v7  ;;  %v10999_v7 = vld [vmem:[%s18257_s3 + $0xf0] sm:$0xff] }
 0x2a4   :  { %1847 = vmatpush.msrb.mxu2 %v713_v60  ;;  %1604 = vmatmul.f32.gmra.mxu0 %v10273_v48 }
 0x2a5   :  { %1805 = vmatpush.msrb.mxu1 %v548_v51 }
 0x2a6   :  { %1848 = vmatpush.msrb.mxu2 %v712_v9  ;;  %1481 = vmatmul.f32.gmra.mxu1 %v10955_v29 }
 0x2a7   :  { %1806 = vmatpush.msrb.mxu1 %v547_v59  ;;  %1680 = vmatmul.f32.gmra.mxu2 %v10443_v61  ;;  %v19126_v59 = vld [vmem:[#allocation7_spill] sm:$0xff] }
 0x2a8   :  { %1849 = vmatpush.msrb.mxu2 %v711_v34 }
 0x2a9   :  { %1807 = vmatpush.msrb.mxu1 %v546_v52 }
 0x2aa   :  { %1850 = vmatpush.msrb.mxu2 %v710_v40  ;;  %v19130_v40 = vld [vmem:[#allocation9_spill] sm:$0xff] }
 0x2ab   :  { %1563 = vmatmul.f32.gmra.mxu3 %v10999_v7  ;;  %1808 = vmatpush.msrb.mxu1 %v545_v26  ;;  %v11015_v60 = vpop.f32.mrf.mxu0  ;;  %v9032_v26 = vld [vmem:[%s18257_s3] sm:$0xff] }
 0x2ac   :  { %1851 = vmatpush.msrb.mxu2 %v709_v27  ;;  %1607 = vmatmul.f32.gmra.mxu0 %v10356_v45  ;;  %v19131_v27 = vld [vmem:[#allocation10_spill] sm:$0xff] }
 0x2ad   :  { %v11023_v22 = vpop.f32.mrf.mxu3 }
 0x2ae   :  { %1852 = vmatpush.msrb.mxu2 %v708_v17  ;;  %1636 = vmatmul.f32.vlgmr.msra.gmra.mxu1 %v10005_v62 }
 0x2af   :  { %1683 = vmatmul.f32.gmra.mxu2 %v10522_v53 }
 0x2b3   :  { %1566 = vmatmul.f32.gmra.mxu3 %v11020_v13  ;;  %v1417_v62 = vpop.f32.mrf.mxu0 }
 0x2b4   :  { %1610 = vmatmul.f32.gmra.mxu0 %v10412_v57 }
 0x2b5   :  { %v1373_v51 = vpop.f32.mrf.mxu3 }
 0x2b6   :  { %1639 = vmatmul.f32.gmra.mxu1 %v10090_v39 }
 0x2b7   :  { %1686 = vmatmul.f32.gmra.mxu2 %v10588_v4 }
 0x2bb   :  { %1569 = vmatmul.f32.gmra.mxu3 %v11031_v44 }
 0x2bc   :  { %1613 = vmatmul.f32.gmra.mxu0 %v10479_v23  ;;  %v11037_v42 = vpop.f32.mrf.mxu0 }
 0x2bd   :  { %v11040_v9 = vpop.f32.mrf.mxu3 }
 0x2be   :  { %1642 = vmatmul.f32.gmra.mxu1 %v10165_v32 }
 0x2bf   :  { %1689 = vmatmul.f32.gmra.mxu2 %v10673_v41 }
 0x2c0   :  { %v11170_v38 = vpop.permute.xlu1 %2006 }
 0x2c3   :  { %1721 = vmatmul.f32.vlgmr.msrb.gmra.mxu3 %v10010_v11  ;;  %v11053_v11 = vpop.f32.mrf.mxu2 }
 0x2c4   :  { %1633 = vmatmul.f32.vlgmr.msrb.gmra.mxu0 %v19125_v19  ;;  %v11047_v34 = vpop.f32.mrf.mxu0  ;;  %v19133_v19 = vld [vmem:[#allocation5_spill] sm:$0xff] }
 0x2c5   :  { %1925 = vmatpush.msrb.mxu0 %v19126_v59  ;;  %v11050_v52 = vpop.f32.mrf.mxu3 }
 0x2c6   :  { %1645 = vmatmul.f32.gmra.mxu1 %v10237_v0 }
 0x2c7   :  { %1692 = vmatmul.f32.gmra.mxu2 %v10741_v47  ;;  %1926 = vmatpush.msrb.mxu0 %v19127_v21 }
 0x2c9   :  { %1927 = vmatpush.msrb.mxu0 %v19129_v56 }
 0x2cb   :  { %1724 = vmatmul.f32.gmra.mxu3 %v19128_v33  ;;  %1928 = vmatpush.msrb.mxu0 %v19130_v40  ;;  %v19134_v33 = vld [vmem:[#allocation6_spill] sm:$0xff]  ;;  %v1505_v56 = vpop.f32.mrf.mxu2 }
 0x2cc   :  { %1765 = vmatmul.f32.vlgmr.msra.gmra.mxu0 %v9032_v26  ;;  %v1426_v17 = vpop.f32.mrf.mxu0  ;;  %v19135_v26 = vld [vmem:[#allocation8_spill] sm:$0xff] }
 0x2cd   :  { %1929 = vmatpush.msrb.mxu0 %v19131_v27  ;;  %v1382_v59 = vpop.f32.mrf.mxu3  ;;  %v19136_v27 = vld [vmem:[#allocation15_spill] sm:$0xff] }
 0x2ce   :  { %1648 = vmatmul.f32.gmra.mxu1 %v10311_v36  ;;  %v1383_v21 = vadd.f32 %v1382_v59, %v10656_v12  ;;  %v19138_v59 = vld [vmem:[#allocation17_spill] sm:$0xff] }
 0x2cf   :  { %1695 = vmatmul.f32.gmra.mxu2 %v10829_v2  ;;  %1930 = vmatpush.msrb.mxu0 %v19132_v55  ;;  %v19137_v55 = vld [vmem:[#allocation16_spill] sm:$0xff] }
 0x2d0   :  { %v11069_v40 = vadd.f32 %v1426_v17, %v1383_v21  ;;  %v19139_v17 = vld [vmem:[#allocation18_spill] sm:$0xff] }
 0x2d1   :  { %1931 = vmatpush.msrb.mxu0 %v19133_v19 }
 0x2d3   :  { %1727 = vmatmul.f32.gmra.mxu3 %v10153_v43  ;;  %1932 = vmatpush.msrb.mxu0 %v19134_v33  ;;  %v11084_v21 = vpop.f32.mrf.mxu2 }
 0x2d4   :  { %1768 = vmatmul.f32.gmra.mxu0 %v10648_v10  ;;  %v1429_v43 = vpop.f32.mrf.mxu0 }
 0x2d5   :  { %1933 = vmatpush.msrb.mxu0 %v19135_v26  ;;  %v1385_v12 = vpop.f32.mrf.mxu3 }
 0x2d6   :  { %1651 = vmatmul.f32.gmra.mxu1 %v10378_v3  ;;  %v1386_v19 = vadd.f32 %v1385_v12, %v10753_v20  ;;  %v19141_v20 = vld [vmem:[#allocation13_spill] sm:$0xff]  ;;  %v19144_v12 = vld [vmem:[#allocation32_spill] sm:$0xff] }
 0x2d7   :  { %1698 = vmatmul.f32.gmra.mxu2 %v10899_v24  ;;  %1934 = vmatpush.msrb.mxu0 %v19136_v27 }
 0x2d8   :  { %v11080_v10 = vadd.f32 %v1429_v43, %v1386_v19 }
 0x2d9   :  { %1935 = vmatpush.msrb.mxu0 %v19137_v55  ;;  %v19143_v55 = vld [vmem:[#allocation19_spill] sm:$0xff] }
 0x2db   :  { %1730 = vmatmul.f32.gmra.mxu3 %v10223_v58  ;;  %1936 = vmatpush.msrb.mxu0 %v19138_v59  ;;  %v19140_v58 = vld [vmem:[#allocation11_spill] sm:$0xff]  ;;  %v9033_v59 = vld [vmem:[%s18257_s3 + $0x10] sm:$0xff] }
 0x2dc   :  { %1771 = vmatmul.f32.gmra.mxu0 %v10719_v1  ;;  %v11087_v33 = vpop.f32.mrf.mxu0  ;;  %v19142_v1 = vld [vmem:[#allocation29_spill] sm:$0xff] }
 0x2dd   :  { %1937 = vmatpush.msrb.mxu0 %v19139_v17  ;;  %v11089_v26 = vpop.f32.mrf.mxu1  ;;  %v11093_v27 = vpop.f32.mrf.mxu3  ;;  %v1374_v43 = vadd.f32 %v1373_v51, %v19142_v1 }
 0x2de   :  { %1654 = vmatmul.f32.gmra.mxu1 %v10438_v63  ;;  %v11105_v51 = vpop.f32.mrf.mxu2 }
 0x2df   :  { %1701 = vmatmul.f32.gmra.mxu2 %v10955_v29  ;;  %1938 = vmatpush.msrb.mxu0 %v19140_v58  ;;  %v1418_v19 = vadd.f32 %v1417_v62, %v1374_v43  ;;  %v19145_v58 = vld [vmem:[#allocation31_spill] sm:$0xff] }
 0x2e0   :  { %v9035_v62 = vld [vmem:[%s18257_s3 + $0x38] sm:$0xff] }
 0x2e1   :  { %1939 = vmatpush.msrb.mxu0 %v19141_v20 }
 0x2e3   :  { %1733 = vmatmul.f32.gmra.mxu3 %v10316_v25  ;;  %1940 = vmatpush.msrb.mxu0 %v19143_v55 }
 0x2e4   :  { %1774 = vmatmul.f32.gmra.mxu0 %v10808_v16  ;;  %v9034_v16 = vld [vmem:[%s18257_s3 + $0x8] sm:$0xff] }
 0x2e5   :  { %v11102_v17 = vpop.f32.mrf.mxu0  ;;  %v1461_v25 = vpop.f32.mrf.mxu1 }
 0x2e6   :  { %1657 = vmatmul.f32.gmra.mxu1 %v19144_v12  ;;  %v1462_v20 = vadd.f32 %v1461_v25, %v1418_v19  ;;  %v1391_v37 = vpop.f32.mrf.mxu3 }
 0x2e7   :  { %1853 = vmatmul.f32.vlgmr.msrb.gmra.mxu2 %v9033_v59  ;;  %v11122_v59 = vpop.f32.mrf.mxu2 }
 0x2e8   :  { %v11107_v1 = vadd.f32 %v1505_v56, %v1462_v20  ;;  %v9036_v56 = vld [vmem:[%s18257_s3 + $0x30] sm:$0xff] }
 0x2eb   :  { %1736 = vmatmul.f32.gmra.mxu3 %v19145_v58 }
 0x2ec   :  { %1777 = vmatmul.f32.gmra.mxu0 %v10888_v8 }
 0x2ed   :  { %v1438_v43 = vpop.f32.mrf.mxu0  ;;  %v11116_v55 = vpop.f32.mrf.mxu1 }
 0x2ee   :  { %1809 = vmatmul.f32.vlgmr.msrb.gmra.mxu1 %v9034_v16  ;;  %v1394_v19 = vpop.f32.mrf.mxu3  ;;  %v9037_v16 = vld [vmem:[%s18257_s3 + $0x58] sm:$0xff] }
 0x2ef   :  { %1856 = vmatmul.f32.gmra.mxu2 %v9035_v62  ;;  %v11137_v62 = vpop.f32.mrf.mxu2  ;;  %v1395_v49 = vadd.f32 %v1394_v19, %v10990_v30  ;;  %v19150_v19 = vld [vmem:[#allocation33_spill] sm:$0xff] }
 0x2f3   :  { %1739 = vmatmul.f32.gmra.mxu3 %v10577_v31 }
 0x2f4   :  { %1780 = vmatmul.f32.gmra.mxu0 %v10944_v15 }
 0x2f5   :  { %v11126_v8 = vpop.f32.mrf.mxu1 }
 0x2f6   :  { %1812 = vmatmul.f32.gmra.mxu1 %v9036_v56  ;;  %v11128_v25 = vpop.f32.mrf.mxu0 }
 0x2f7   :  { %1859 = vmatmul.f32.gmra.mxu2 %v10090_v39  ;;  %19146 = vst [vmem:[#allocation20_spill] sm:$0xff] %v11128_v25  ;;  %v11131_v20 = vpop.f32.mrf.mxu3 }
 0x2f8   :  { %19147 = vst [vmem:[#allocation24_spill] sm:$0xff] %v11131_v20  ;;  %v1520_v54 = vpop.f32.mrf.mxu2 }
 0x2fb   :  { %1742 = vmatmul.f32.gmra.mxu3 %v10768_v14 }
 0x2fc   :  { %1783 = vmatmul.f32.gmra.mxu0 %v10999_v7 }
 0x2fd   :  { %v1470_v39 = vpop.f32.mrf.mxu1 }
 0x2fe   :  { %1815 = vmatmul.f32.gmra.mxu1 %v9037_v16 }
 0x2ff   :  { %1862 = vmatmul.f32.gmra.mxu2 %v10165_v32 }
 0x300   :  { %v11140_v15 = vpop.f32.mrf.mxu0 }
 0x301   :  { %19148 = vst [vmem:[#allocation25_spill] sm:$0xff] %v11140_v15  ;;  %v11143_v56 = vpop.f32.mrf.mxu3 }
 0x302   :  { %19149 = vst [vmem:[#allocation7_spill] sm:$0xff] %v11143_v56 }
 0x303   :  { %1745 = vmatmul.f32.gmra.mxu3 %v10844_v50 }
 0x304   :  { %1786 = vmatmul.f32.gmra.mxu0 %v11020_v13 }
 0x305   :  { %v1473_v16 = vpop.f32.mrf.mxu1 }
 0x306   :  { %1818 = vmatmul.f32.gmra.mxu1 %v10120_v28 }
 0x307   :  { %1865 = vmatmul.f32.gmra.mxu2 %v10237_v0 }
 0x308   :  { %v11149_v7 = vpop.f32.mrf.mxu0 }
 0x30b   :  { %1897 = vmatmul.f32.vlgmr.msra.gmra.mxu3 %v10383_v35  ;;  %v11151_v32 = vpop.f32.mrf.mxu3  ;;  %v9038_v35 = vld [vmem:[%s18257_s3 + $0x20] sm:$0xff] }
 0x30c   :  { %1789 = vmatmul.f32.gmra.mxu0 %v11031_v44 }
 0x30e   :  { %1821 = vmatmul.f32.gmra.mxu1 %v10196_v18 }
 0x30f   :  { %1868 = vmatmul.f32.gmra.mxu2 %v10311_v36  ;;  %v1392_v36 = vadd.f32 %v1391_v37, %v10923_v5  ;;  %v11184_v5 = vpop.permute.xlu0 %2011 }
 0x310   :  { %v1523_v0 = vpop.f32.mrf.mxu2 }
 0x311   :  { %v11157_v13 = vpop.f32.mrf.mxu0  ;;  %v1436_v37 = vadd.f32 %v11102_v17, %v1392_v36  ;;  %v19151_v17 = vld [vmem:[#allocation30_spill] sm:$0xff] }
 0x312   :  { %v1377_v36 = vadd.f32 %v11040_v9, %v19151_v17 }
 0x313   :  { %1900 = vmatmul.f32.gmra.mxu3 %v10443_v61  ;;  %v1476_v28 = vpop.f32.mrf.mxu1 }
 0x314   :  { %v11159_v6 = vpop.f32.mrf.mxu3  ;;  %1941 = vmatmul.f32.vlgmr.msrb.gmra.mxu0 %v9038_v35  ;;  %v1380_v35 = vadd.f32 %v11050_v52, %v19150_v19  ;;  %v9040_v52 = vld [vmem:[%s18257_s3 + $0x70] sm:$0xff] }
 0x316   :  { %1824 = vmatmul.f32.gmra.mxu1 %v10273_v48  ;;  %v1389_v48 = vadd.f32 %v11093_v27, %v10846_v46  ;;  %v1439_v27 = vadd.f32 %v1438_v43, %v1395_v49  ;;  %v1424_v43 = vadd.f32 %v11047_v34, %v1380_v35 }
 0x317   :  { %1871 = vmatmul.f32.gmra.mxu2 %v10378_v3  ;;  %v11178_v3 = vpop.permute.xlu2 %2001 }
 0x318   :  { %v1433_v46 = vadd.f32 %v11087_v33, %v1389_v48 }
 0x319   :  { %v11168_v61 = vpop.f32.mrf.mxu0  ;;  %v1526_v44 = vpop.f32.mrf.mxu2 }
 0x31a   :  { %v1477_v56 = vadd.f32 %v1476_v28, %v1433_v46  ;;  %v1471_v28 = vadd.f32 %v1470_v39, %v11069_v40  ;;  %v11218_v40 = vpop.permute.xlu0 %1986 }
 0x31b   :  { %1903 = vmatmul.f32.gmra.mxu3 %v10522_v53  ;;  %v1479_v18 = vpop.f32.mrf.mxu1  ;;  %v9039_v53 = vld [vmem:[%s18257_s3 + $0x48] sm:$0xff] }
 0x31c   :  { %1944 = vmatmul.f32.gmra.mxu0 %v9039_v53  ;;  %v1480_v30 = vadd.f32 %v1479_v18, %v1436_v37  ;;  %v1521_v9 = vadd.f32 %v1520_v54, %v1477_v56  ;;  %v1515_v39 = vadd.f32 %v11122_v59, %v1471_v28 }
 0x31e   :  { %v11175_v15 = vpop.f32.mrf.mxu3  ;;  %1827 = vmatmul.f32.gmra.mxu1 %v10356_v45  ;;  %v1524_v33 = vadd.f32 %v1523_v0, %v1480_v30 }
 0x31f   :  { %1874 = vmatmul.f32.gmra.mxu2 %v10438_v63  ;;  %v1474_v63 = vadd.f32 %v1473_v16, %v11080_v10  ;;  %v19152_v16 = vld [vmem:[#allocation28_spill] sm:$0xff]  ;;  %v11211_v0 = vpop.permute.xlu2 %1991 }
 0x320   :  { %v2035_v34 = vadd.f32 %v11170_v38, %v1524_v33 }
 0x321   :  { %v11191_v20 = vpop.f32.mrf.mxu0  ;;  %v1518_v48 = vadd.f32 %v11137_v62, %v1474_v63  ;;  %v11269_v63 = vld [vmem:[%s18259_s5] sm:$0xff] }
 0x322   :  { %v11193_v53 = vpop.f32.mrf.mxu2 }
 0x323   :  { %1906 = vmatmul.f32.gmra.mxu3 %v10588_v4  ;;  %v1482_v45 = vpop.f32.mrf.mxu1  ;;  %v11201_v4 = vpop.permute.xlu1 %1996 }
 0x324   :  { %v1483_v25 = vadd.f32 %v1482_v45, %v1439_v27  ;;  %1947 = vmatmul.f32.gmra.mxu0 %v9040_v52  ;;  %v11280_v52 = vld [vmem:[%s18259_s5 + $0x8] sm:$0xff] }
 0x326   :  { %v1527_v18 = vadd.f32 %v1526_v44, %v1483_v25  ;;  %v11198_v49 = vpop.f32.mrf.mxu3  ;;  %1830 = vmatmul.f32.gmra.mxu1 %v10412_v57  ;;  %v1371_v25 = vadd.f32 %v11023_v22, %v19152_v16  ;;  %v1421_v57 = vadd.f32 %v11037_v42, %v1377_v36  ;;  %v1468_v44 = vadd.f32 %v11126_v8, %v1424_v43 }
 0x327   :  { %1877 = vmatmul.f32.gmra.mxu2 %v19144_v12  ;;  %v2032_v42 = vadd.f32 %v11178_v3, %v1521_v9  ;;  %v11245_v27 = vpop.permute.xlu2 %1976 }
 0x328   :  { %v2038_v10 = vadd.f32 %v11184_v5, %v1527_v18  ;;  %v1465_v22 = vadd.f32 %v11116_v55, %v1421_v57  ;;  %v1415_v62 = vadd.f32 %v11015_v60, %v1371_v25  ;;  %v1512_v56 = vadd.f32 %v11105_v51, %v1468_v44  ;;  %v9041_v55 = vld [vmem:[%s18257_s3 + $0x98] sm:$0xff] }
 0x329   :  { %v11225_v12 = vpop.f32.mrf.mxu0  ;;  %v2026_v60 = vadd.f32 %v11211_v0, %v1515_v39  ;;  %v2017_v17 = vadd.f32 %v11245_v27, %v11107_v1 }
 0x32a   :  { %2121 = vmatpush.msra.mxu1 %v2038_v10  ;;  %v11228_v8 = vpop.f32.mrf.mxu2  ;;  %v1459_v59 = vadd.f32 %v11089_v26, %v1415_v62  ;;  %v1509_v46 = vadd.f32 %v11084_v21, %v1465_v22  ;;  %v2023_v30 = vadd.f32 %v11218_v40, %v1512_v56  ;;  %v11254_v26 = vpop.permute.xlu0 %1971  ;;  %v11339_v62 = vld [vmem:[%s18259_s5 + $0x28] sm:$0xff] }
 0x32b   :  { %1909 = vmatmul.f32.gmra.mxu3 %v10673_v41  ;;  %v11221_v54 = vpop.f32.mrf.mxu1  ;;  %v2029_v41 = vadd.f32 %v11201_v4, %v1518_v48  ;;  %v11242_v51 = vpop.permute.xlu1 %1981  ;;  %19156 = vst [vmem:[#allocation9_spill] sm:$0xff] %v11339_v62 }
 0x32c   :  { %2122 = vmatpush.msra.mxu1 %v2035_v34  ;;  %1950 = vmatmul.f32.gmra.mxu0 %v9041_v55  ;;  %v2020_v21 = vadd.f32 %v11242_v51, %v1509_v46  ;;  %v11350_v55 = vld [vmem:[%s18259_s5 + $0x30] sm:$0xff] }
 0x32d   :  { %19158 = vst [vmem:[#allocation4_spill] sm:$0xff] %v11350_v55 }
 0x32e   :  { %v11232_v37 = vpop.f32.mrf.mxu3  ;;  %2123 = vmatpush.msra.mxu1 %v2032_v42 }
 0x32f   :  { %1833 = vmatmul.f32.gmra.mxu1 %v10479_v23  ;;  %v1503_v23 = vadd.f32 %v11053_v11, %v1459_v59 }
 0x330   :  { %2124 = vmatpush.msra.mxu1 %v2029_v41 }
 0x331   :  { %v11251_v19 = vpop.f32.mrf.mxu0  ;;  %v2014_v11 = vadd.f32 %v11254_v26, %v1503_v23  ;;  %v11363_v23 = vld [vmem:[%s18259_s5 + $0x38] sm:$0xff] }
 0x332   :  { %2125 = vmatpush.msra.mxu1 %v2026_v60  ;;  %v11260_v36 = vpop.f32.mrf.mxu2  ;;  %19161 = vst [vmem:[#allocation8_spill] sm:$0xff] %v11363_v23 }
 0x333   :  { %1912 = vmatmul.f32.gmra.mxu3 %v10741_v47  ;;  %v11248_v45 = vpop.f32.mrf.mxu1  ;;  %v9042_v47 = vld [vmem:[%s18257_s3 + $0xc0] sm:$0xff] }
 0x334   :  { %2126 = vmatpush.msra.mxu1 %v2023_v30  ;;  %1953 = vmatmul.f32.gmra.mxu0 %v9042_v47 }
 0x336   :  { %v11256_v35 = vpop.f32.mrf.mxu3  ;;  %2127 = vmatpush.msra.mxu1 %v2020_v21 }
 0x338   :  { %2128 = vmatpush.msra.mxu1 %v2017_v17 }
 0x339   :  { %v1614_v33 = vpop.f32.mrf.mxu0 }
 0x33a   :  { %2129 = vmatpush.msra.mxu1 %v2014_v11  ;;  %v11282_v43 = vpop.f32.mrf.mxu2 }
 0x33b   :  { %1915 = vmatmul.f32.gmra.mxu3 %v10829_v2  ;;  %v11272_v1 = vpop.f32.mrf.mxu1  ;;  %7858 = vmatmul.msk.f32.vlgmr.msra.gmra.mxu1 %vm2059_vm4, %v11269_v63 }
 0x33c   :  { %1956 = vmatmul.f32.gmra.mxu0 %v19145_v58  ;;  %v11297_v58 = vld [vmem:[%s18259_s5 + $0x10] sm:$0xff] }
 0x33e   :  { %v1570_v18 = vpop.f32.mrf.mxu3 }
 0x341   :  { %v11289_v2 = vpop.f32.mrf.mxu0 }
 0x342   :  { %v11299_v10 = vpop.f32.mrf.mxu2 }
 0x343   :  { %1918 = vmatmul.f32.gmra.mxu3 %v10899_v24  ;;  %v11285_v28 = vpop.f32.mrf.mxu1  ;;  %7859 = vmatmul.msk.f32.gmra.mxu1 %vm2059_vm4, %v11280_v52 }
 0x344   :  { %1959 = vmatmul.f32.gmra.mxu0 %v10577_v31  ;;  %v11314_v31 = vld [vmem:[%s18259_s5 + $0x18] sm:$0xff] }
 0x346   :  { %v11291_v9 = vpop.f32.mrf.mxu3 }
 0x349   :  { %v11306_v16 = vpop.f32.mrf.mxu0 }
 0x34a   :  { %19153 = vst [vmem:[#allocation12_spill] sm:$0xff] %v11306_v16  ;;  %v11320_v44 = vpop.f32.mrf.mxu2 }
 0x34b   :  { %1921 = vmatmul.f32.gmra.mxu3 %v10955_v29  ;;  %v11302_v24 = vpop.f32.mrf.mxu1  ;;  %7860 = vmatmul.msk.f32.gmra.mxu1 %vm2059_vm4, %v11297_v58 }
 0x34c   :  { %1962 = vmatmul.f32.gmra.mxu0 %v10768_v14  ;;  %v11328_v14 = vld [vmem:[%s18259_s5 + $0x20] sm:$0xff] }
 0x34e   :  { %v11308_v25 = vpop.f32.mrf.mxu3 }
 0x351   :  { %v11318_v29 = vpop.f32.mrf.mxu0 }
 0x352   :  { %19154 = vst [vmem:[#allocation27_spill] sm:$0xff] %v11318_v29  ;;  %v1696_v42 = vpop.f32.mrf.mxu2  ;;  %v2417_v29 = vld [vmem:[%s18260_s6 + $0x2d0] sm:$0xff] }
 0x353   :  { %v1652_v57 = vpop.f32.mrf.mxu1  ;;  %7861 = vmatmul.msk.f32.gmra.mxu1 %vm2059_vm4, %v11314_v31  ;;  %2615 = vmatpush.msra.mxu0 %v2417_v29  ;;  %v2399_v29 = vld [vmem:[%s18260_s6 + $0x240] sm:$0xff] }
 0x354   :  { %1965 = vmatmul.f32.gmra.mxu0 %v10844_v50 }
 0x356   :  { %v11322_v48 = vpop.f32.mrf.mxu3 }
 0x359   :  { %v11332_v22 = vpop.f32.mrf.mxu0 }
 0x35a   :  { %19155 = vst [vmem:[#allocation14_spill] sm:$0xff] %v11332_v22  ;;  %v1699_v59 = vpop.f32.mrf.mxu2 }
 0x35b   :  { %v1655_v34 = vpop.f32.mrf.mxu1  ;;  %7862 = vmatmul.msk.f32.gmra.mxu1 %vm2059_vm4, %v11328_v14 }
 0x35e   :  { %v11334_v39 = vpop.f32.mrf.mxu3 }
 0x361   :  { %v11343_v56 = vpop.f32.mrf.mxu0 }
 0x362   :  { %19157 = vst [vmem:[#allocation10_spill] sm:$0xff] %v11343_v56  ;;  %v1702_v21 = vpop.f32.mrf.mxu2 }
 0x363   :  { %v1658_v50 = vpop.f32.mrf.mxu1  ;;  %7863 = vmatmul.msk.f32.gmra.mxu1 %vm2059_vm4, %v11339_v62 }
 0x366   :  { %v11345_v41 = vpop.f32.mrf.mxu3 }
 0x369   :  { %v11356_v60 = vpop.f32.mrf.mxu0 }
 0x36a   :  { %19160 = vst [vmem:[#allocation6_spill] sm:$0xff] %v11356_v60  ;;  %v1615_v60 = vadd.f32 %v1614_v33, %v1570_v18  ;;  %v1606_v33 = vadd.f32 %v11191_v20, %v11198_v49  ;;  %v2387_v20 = vld [vmem:[%s18260_s6 + $0x1e0] sm:$0xff]  ;;  %v1600_v49 = vadd.f32 %v11157_v13, %v11159_v6  ;;  %v1597_v6 = vadd.f32 %v11149_v7, %v11151_v32  ;;  %v11438_v13 = vld [vmem:[%s18259_s5 + $0x50] sm:$0xff]  ;;  %v19170_v32 = vld [vmem:[#allocation7_spill] sm:$0xff] }
 0x36b   :  { %7864 = vmatmul.msk.f32.gmra.mxu1 %vm2059_vm4, %v11350_v55  ;;  %v11354_v46 = vpop.f32.mrf.mxu1 }
 0x36c   :  { %19159 = vst [vmem:[#allocation5_spill] sm:$0xff] %v11354_v46  ;;  %v11374_v46 = vld [vmem:[%s18259_s5 + $0x40] sm:$0xff] }
 0x36d   :  { %19164 = vst [vmem:[#allocation17_spill] sm:$0xff] %v11374_v46 }
 0x36e   :  { %v11358_v30 = vpop.f32.mrf.mxu3 }
 0x371   :  { %v11369_v47 = vpop.f32.mrf.mxu0 }
 0x372   :  { %19163 = vst [vmem:[#allocation16_spill] sm:$0xff] %v11369_v47 }
 0x373   :  { %7865 = vmatmul.msk.f32.gmra.mxu1 %vm2059_vm4, %v11363_v23  ;;  %v11367_v17 = vpop.f32.mrf.mxu1  ;;  %v2411_v23 = vld [vmem:[%s18260_s6 + $0x2a0] sm:$0xff] }
 0x374   :  { %19162 = vst [vmem:[#allocation15_spill] sm:$0xff] %v11367_v17  ;;  %v11385_v17 = vpop.f32.mrf.mxu2  ;;  %2616 = vmatpush.msra.mxu0 %v2411_v23  ;;  %v1609_v23 = vadd.f32 %v11225_v12, %v11232_v37  ;;  %v1603_v12 = vadd.f32 %v11168_v61, %v11175_v15  ;;  %v1650_v37 = vadd.f32 %v11302_v24, %v1606_v33  ;;  %v2381_v61 = vld [vmem:[%s18260_s6 + $0x1b0] sm:$0xff]  ;;  %v2375_v24 = vld [vmem:[%s18260_s6 + $0x180] sm:$0xff] }
 0x375   :  { %19167 = vst [vmem:[#allocation13_spill] sm:$0xff] %v11385_v17  ;;  %v11401_v17 = vld [vmem:[%s18259_s5 + $0x48] sm:$0xff] }
 0x376   :  { %v1740_v11 = vpop.f32.mrf.mxu3  ;;  %v1653_v18 = vadd.f32 %v1652_v57, %v1609_v23 }
 0x379   :  { %v11383_v22 = vpop.f32.mrf.mxu0 }
 0x37a   :  { %19166 = vst [vmem:[#allocation11_spill] sm:$0xff] %v11383_v22 }
 0x37b   :  { %7866 = vmatmul.msk.f32.gmra.mxu1 %vm2059_vm4, %v11374_v46  ;;  %v11378_v16 = vpop.f32.mrf.mxu1  ;;  %v1612_v46 = vadd.f32 %v11251_v19, %v11256_v35  ;;  %v1659_v19 = vadd.f32 %v1658_v50, %v1615_v60  ;;  %v2393_v35 = vld [vmem:[%s18260_s6 + $0x210] sm:$0xff]  ;;  %v1697_v60 = vadd.f32 %v1696_v42, %v1653_v18  ;;  %v1694_v42 = vadd.f32 %v11320_v44, %v1650_v37 }
 0x37c   :  { %19165 = vst [vmem:[#allocation18_spill] sm:$0xff] %v11378_v16  ;;  %v2405_v16 = vld [vmem:[%s18260_s6 + $0x270] sm:$0xff]  ;;  %v1641_v18 = vadd.f32 %v11248_v45, %v1597_v6 }
 0x37d   :  { %2617 = vmatpush.msra.mxu0 %v2405_v16  ;;  %v1656_v47 = vadd.f32 %v1655_v34, %v1612_v46  ;;  %v1703_v50 = vadd.f32 %v1702_v21, %v1659_v19  ;;  %v1647_v46 = vadd.f32 %v11285_v28, %v1603_v12  ;;  %v1644_v28 = vadd.f32 %v11272_v1, %v1600_v49  ;;  %v2369_v21 = vld [vmem:[%s18260_s6 + $0x150] sm:$0xff]  ;;  %v19169_v19 = vld [vmem:[#allocation20_spill] sm:$0xff] }
 0x37e   :  { %v1743_v56 = vpop.f32.mrf.mxu3  ;;  %v1738_v44 = vadd.f32 %v11358_v30, %v1694_v42 }
 0x37f   :  { %2618 = vmatpush.msra.mxu0 %v2399_v29  ;;  %v1700_v34 = vadd.f32 %v1699_v59, %v1656_v47  ;;  %v11425_v29 = vpop.f32.mrf.mxu2  ;;  %v19168_v47 = vld [vmem:[#allocation24_spill] sm:$0xff]  ;;  %v1691_v1 = vadd.f32 %v11299_v10, %v1647_v46  ;;  %v1688_v45 = vadd.f32 %v11282_v43, %v1644_v28  ;;  %v11482_v46 = vld [vmem:[%s18259_s5 + $0x58] sm:$0xff] }
 0x380   :  { %v1591_v7 = vadd.f32 %v19169_v19, %v19168_v47  ;;  %v2030_v43 = vadd.f32 %v11201_v4, %v1738_v44 }
 0x381   :  { %v11414_v16 = vpop.f32.mrf.mxu0  ;;  %2619 = vmatpush.msra.mxu0 %v2393_v35  ;;  %v1744_v23 = vadd.f32 %v1743_v56, %v1700_v34  ;;  %v1741_v56 = vadd.f32 %v1740_v11, %v1697_v60  ;;  %v19171_v35 = vld [vmem:[#allocation25_spill] sm:$0xff]  ;;  %v1735_v10 = vadd.f32 %v11345_v41, %v1691_v1  ;;  %v2351_v41 = vld [vmem:[%s18260_s6 + $0xc0] sm:$0xff] }
 0x382   :  { %v1594_v33 = vadd.f32 %v19171_v35, %v19170_v32 }
 0x383   :  { %7867 = vmatmul.msk.f32.gmra.mxu1 %vm2059_vm4, %v11401_v17  ;;  %v11412_v22 = vpop.f32.mrf.mxu1  ;;  %2620 = vmatpush.msra.mxu0 %v2387_v20  ;;  %v2036_v11 = vadd.f32 %v11170_v38, %v1744_v23  ;;  %v2033_v30 = vadd.f32 %v11178_v3, %v1741_v56  ;;  %v2363_v20 = vld [vmem:[%s18260_s6 + $0x120] sm:$0xff]  ;;  %v2027_v23 = vadd.f32 %v11211_v0, %v1735_v10 }
 0x384   :  { %v1638_v37 = vadd.f32 %v11221_v54, %v1594_v33  ;;  %v1685_v54 = vadd.f32 %v11260_v36, %v1641_v18  ;;  %v11534_v33 = vld [vmem:[%s18259_s5 + $0x68] sm:$0xff] }
 0x385   :  { %2621 = vmatpush.msra.mxu0 %v2381_v61  ;;  %v2345_v61 = vld [vmem:[%s18260_s6 + $0x90] sm:$0xff] }
 0x386   :  { %v1746_v57 = vpop.f32.mrf.mxu3  ;;  %v1682_v36 = vadd.f32 %v11228_v8, %v1638_v37  ;;  %v1729_v60 = vadd.f32 %v11322_v48, %v1685_v54  ;;  %v11549_v37 = vld [vmem:[%s18259_s5 + $0x70] sm:$0xff] }
 0x387   :  { %v1747_v15 = vadd.f32 %v1746_v57, %v1703_v50  ;;  %2622 = vmatpush.msra.mxu0 %v2375_v24  ;;  %v1635_v50 = vadd.f32 %v11289_v2, %v1591_v7  ;;  %v1732_v57 = vadd.f32 %v11334_v39, %v1688_v45  ;;  %v2357_v2 = vld [vmem:[%s18260_s6 + $0xf0] sm:$0xff]  ;;  %19172 = vst [vmem:[#allocation29_spill] sm:$0xff] %v11549_v37 }
 0x388   :  { %v1726_v24 = vadd.f32 %v11308_v25, %v1682_v36  ;;  %v2021_v28 = vadd.f32 %v11242_v51, %v1729_v60  ;;  %v2339_v25 = vld [vmem:[%s18260_s6 + $0x60] sm:$0xff]  ;;  %v2513_v36 = vld [vmem:[%s18260_s6 + $0x5d0] sm:$0xff] }
 0x389   :  { %v2039_v59 = vadd.f32 %v11184_v5, %v1747_v15  ;;  %v11459_v34 = vpop.f32.mrf.mxu0  ;;  %2623 = vmatpush.msra.mxu0 %v2369_v21  ;;  %v1679_v39 = vadd.f32 %v11193_v53, %v1635_v50  ;;  %v11488_v15 = vpop.f32.mrf.mxu2  ;;  %v2024_v6 = vadd.f32 %v11218_v40, %v1732_v57  ;;  %v2327_v21 = vld [vmem:[%s18260_s6] sm:$0xff]  ;;  %2686 = vmatpush.msrb.mxu1 %v2513_v36 }
 0x38a   :  { %v2018_v56 = vadd.f32 %v11245_v27, %v1726_v24 }
 0x38b   :  { %2192 = vmatpush.msra.mxu2 %v2039_v59  ;;  %7868 = vmatmul.msk.f32.gmra.mxu1 %vm2059_vm4, %v11438_v13  ;;  %v11456_v12 = vpop.f32.mrf.mxu1  ;;  %v1723_v48 = vadd.f32 %v11291_v9, %v1679_v39  ;;  %v2333_v59 = vld [vmem:[%s18260_s6 + $0x30] sm:$0xff]  ;;  %v11515_v9 = vld [vmem:[%s18259_s5 + $0x60] sm:$0xff] }
 0x38c   :  { %2624 = vmatpush.msra.mxu0 %v2363_v20  ;;  %v11562_v20 = vld [vmem:[%s18259_s5 + $0x78] sm:$0xff] }
 0x38d   :  { %2193 = vmatpush.msra.mxu2 %v2036_v11  ;;  %v2015_v47 = vadd.f32 %v11254_v26, %v1723_v48  ;;  %19173 = vst [vmem:[#allocation19_spill] sm:$0xff] %v11562_v20  ;;  %v2507_v48 = vld [vmem:[%s18260_s6 + $0x5a0] sm:$0xff] }
 0x38e   :  { %v11468_v49 = vpop.f32.mrf.mxu3  ;;  %2625 = vmatpush.msra.mxu0 %v2357_v2  ;;  %v11575_v2 = vld [vmem:[%s18259_s5 + $0x80] sm:$0xff]  ;;  %2687 = vmatpush.msrb.mxu1 %v2507_v48  ;;  %v19179_v48 = vld [vmem:[#allocation11_spill] sm:$0xff] }
 0x38f   :  { %2194 = vmatpush.msra.mxu2 %v2033_v30  ;;  %19175 = vst [vmem:[#allocation31_spill] sm:$0xff] %v11575_v2 }
 0x390   :  { %2626 = vmatpush.msra.mxu0 %v2351_v41 }
 0x391   :  { %2195 = vmatpush.msra.mxu2 %v2030_v43  ;;  %v11499_v8 = vpop.f32.mrf.mxu0  ;;  %v11521_v19 = vpop.f32.mrf.mxu2 }
 0x392   :  { %2627 = vmatpush.msra.mxu0 %v2345_v61  ;;  %v11590_v61 = vld [vmem:[%s18259_s5 + $0x88] sm:$0xff] }
 0x393   :  { %2196 = vmatpush.msra.mxu2 %v2027_v23  ;;  %7869 = vmatmul.msk.f32.gmra.mxu1 %vm2059_vm4, %v11482_v46  ;;  %v11497_v53 = vpop.f32.mrf.mxu1  ;;  %19177 = vst [vmem:[#allocation30_spill] sm:$0xff] %v11590_v61 }
 0x394   :  { %2628 = vmatpush.msra.mxu0 %v2339_v25 }
 0x395   :  { %2197 = vmatpush.msra.mxu2 %v2024_v6 }
 0x396   :  { %v11506_v42 = vpop.f32.mrf.mxu3  ;;  %2629 = vmatpush.msra.mxu0 %v2333_v59  ;;  %v2501_v59 = vld [vmem:[%s18260_s6 + $0x570] sm:$0xff] }
 0x397   :  { %2198 = vmatpush.msra.mxu2 %v2021_v28  ;;  %2688 = vmatpush.msrb.mxu1 %v2501_v59 }
 0x398   :  { %2630 = vmatpush.msra.mxu0 %v2327_v21 }
 0x399   :  { %2199 = vmatpush.msra.mxu2 %v2018_v56  ;;  %v11525_v7 = vpop.f32.mrf.mxu0  ;;  %v11542_v1 = vpop.f32.mrf.mxu2 }
 0x39b   :  { %2200 = vmatpush.msra.mxu2 %v2015_v47  ;;  %7870 = vmatmul.msk.f32.gmra.mxu1 %vm2059_vm4, %v11515_v9  ;;  %v1828_v32 = vpop.f32.mrf.mxu1 }
 0x39c   :  { %7876 = vmatmul.msk.f32.vlgmr.msra.gmra.mxu2 %vm2059_vm4, %v11269_v63 }
 0x39e   :  { %v11529_v35 = vpop.f32.mrf.mxu3 }
 0x3a1   :  { %v11538_v18 = vpop.f32.mrf.mxu0  ;;  %v1869_v10 = vpop.f32.mrf.mxu2 }
 0x3a3   :  { %7871 = vmatmul.msk.f32.gmra.mxu1 %vm2059_vm4, %v11534_v33  ;;  %v1831_v11 = vpop.f32.mrf.mxu1 }
 0x3a4   :  { %7877 = vmatmul.msk.f32.gmra.mxu2 %vm2059_vm4, %v11280_v52  ;;  %v1832_v21 = vadd.f32 %v1831_v11, %v11414_v16 }
 0x3a6   :  { %v11544_v44 = vpop.f32.mrf.mxu3 }
 0x3a9   :  { %v11553_v45 = vpop.f32.mrf.mxu0  ;;  %v1872_v41 = vpop.f32.mrf.mxu2 }
 0x3ab   :  { %7872 = vmatmul.msk.f32.gmra.mxu1 %vm2059_vm4, %v11549_v37 }
 0x3ac   :  { %7878 = vmatmul.msk.f32.gmra.mxu2 %vm2059_vm4, %v11297_v58  ;;  %v1834_v30 = vpop.f32.mrf.mxu1 }
 0x3ad   :  { %v1835_v47 = vadd.f32 %v1834_v30, %v11459_v34  ;;  %v19183_v30 = vld [vmem:[#allocation10_spill] sm:$0xff] }
 0x3ae   :  { %v11557_v50 = vpop.f32.mrf.mxu3  ;;  %v1820_v59 = vadd.f32 %v11412_v22, %v19183_v30 }
 0x3b0   :  { %v1864_v30 = vadd.f32 %v11521_v19, %v1820_v59 }
 0x3b1   :  { %v11566_v54 = vpop.f32.mrf.mxu0  ;;  %v1875_v24 = vpop.f32.mrf.mxu2 }
 0x3b3   :  { %7873 = vmatmul.msk.f32.gmra.mxu1 %vm2059_vm4, %v11562_v20  ;;  %v1876_v20 = vadd.f32 %v1875_v24, %v1832_v21 }
 0x3b4   :  { %7879 = vmatmul.msk.f32.gmra.mxu2 %vm2059_vm4, %v11314_v31 }
 0x3b6   :  { %v1913_v57 = vpop.f32.mrf.mxu3 }
 0x3b8   :  { %v11570_v43 = vpop.f32.mrf.mxu1 }
 0x3b9   :  { %19174 = vst [vmem:[#allocation32_spill] sm:$0xff] %v11570_v43  ;;  %2631 = vmatmul.f32.vlgmr.msra.gmra.mxu0 %v11570_v43  ;;  %v1957_v39 = vpop.f32.mrf.mxu0  ;;  %v1878_v36 = vpop.f32.mrf.mxu2 }
 0x3bb   :  { %7874 = vmatmul.msk.f32.gmra.mxu1 %vm2059_vm4, %v11575_v2 }
 0x3bc   :  { %7880 = vmatmul.msk.f32.gmra.mxu2 %vm2059_vm4, %v11328_v14 }
 0x3be   :  { %v1916_v60 = vpop.f32.mrf.mxu3 }
 0x3c0   :  { %v11585_v23 = vpop.f32.mrf.mxu1 }
 0x3c1   :  { %19176 = vst [vmem:[#allocation33_spill] sm:$0xff] %v11585_v23  ;;  %2634 = vmatmul.f32.gmra.mxu0 %v11585_v23  ;;  %v1960_v6 = vpop.f32.mrf.mxu0  ;;  %v1829_v23 = vadd.f32 %v1828_v32, %v19179_v48  ;;  %v19184_v48 = vld [vmem:[#allocation8_spill] sm:$0xff] }
 0x3c3   :  { %7875 = vmatmul.msk.f32.gmra.mxu1 %vm2059_vm4, %v11590_v61  ;;  %v1873_v16 = vadd.f32 %v1872_v41, %v1829_v23  ;;  %v19187_v23 = vld [vmem:[#allocation27_spill] sm:$0xff] }
 0x3c4   :  { %7881 = vmatmul.msk.f32.gmra.mxu2 %vm2059_vm4, %v11339_v62  ;;  %v19182_v62 = vld [vmem:[#allocation6_spill] sm:$0xff] }
 0x3c5   :  { %v1823_v37 = vadd.f32 %v11456_v12, %v19182_v62  ;;  %v19185_v62 = vld [vmem:[#allocation14_spill] sm:$0xff] }
 0x3c6   :  { %v1919_v28 = vpop.f32.mrf.mxu3  ;;  %v19186_v12 = vld [vmem:[#allocation18_spill] sm:$0xff] }
 0x3c7   :  { %v1920_v11 = vadd.f32 %v1919_v28, %v1876_v20  ;;  %v1817_v20 = vadd.f32 %v19186_v12, %v19185_v62  ;;  %v19188_v28 = vld [vmem:[#allocation15_spill] sm:$0xff] }
 0x3c8   :  { %v11600_v25 = vpop.f32.mrf.mxu1  ;;  %v2514_v12 = vld [vmem:[%s18260_s6 + $0x5d8] sm:$0xff] }
 0x3c9   :  { %19178 = vst [vmem:[#allocation28_spill] sm:$0xff] %v11600_v25  ;;  %2637 = vmatmul.f32.gmra.mxu0 %v11600_v25  ;;  %v1963_v56 = vpop.f32.mrf.mxu0  ;;  %v19181_v25 = vld [vmem:[#allocation16_spill] sm:$0xff] }
 0x3ca   :  { %v1826_v2 = vadd.f32 %v11497_v53, %v19181_v25  ;;  %v2495_v53 = vld [vmem:[%s18260_s6 + $0x540] sm:$0xff]  ;;  %v1917_v25 = vadd.f32 %v1916_v60, %v1873_v16  ;;  %v1964_v21 = vadd.f32 %v1963_v56, %v1920_v11  ;;  %2899 = vmatpush.msrb.mxu0 %v2514_v12 }
 0x3cb   :  { %2689 = vmatpush.msrb.mxu1 %v2495_v53  ;;  %v2447_v53 = vld [vmem:[%s18260_s6 + $0x3c0] sm:$0xff] }
 0x3cc   :  { %7882 = vmatmul.msk.f32.gmra.mxu2 %vm2059_vm4, %v11350_v55  ;;  %v1879_v55 = vadd.f32 %v1878_v36, %v1835_v47  ;;  %v1870_v24 = vadd.f32 %v1869_v10, %v1826_v2  ;;  %v1961_v22 = vadd.f32 %v1960_v6, %v1917_v25  ;;  %v1814_v36 = vadd.f32 %v19188_v28, %v19187_v23  ;;  %v2435_v25 = vld [vmem:[%s18260_s6 + $0x360] sm:$0xff]  ;;  %v2484_v23 = vld [vmem:[%s18260_s6 + $0x4e8] sm:$0xff]  ;;  %v19203_v28 = vld [vmem:[#allocation19_spill] sm:$0xff] }
 0x3cd   :  { %v2037_v60 = vadd.f32 %v11170_v38, %v1964_v21  ;;  %v1908_v6 = vadd.f32 %v11544_v44, %v1864_v30  ;;  %v2489_v38 = vld [vmem:[%s18260_s6 + $0x510] sm:$0xff] }
 0x3ce   :  { %v1922_v43 = vpop.f32.mrf.mxu3  ;;  %v2034_v19 = vadd.f32 %v11178_v3, %v1961_v22  ;;  %2690 = vmatpush.msrb.mxu1 %v2489_v38  ;;  %v2429_v21 = vld [vmem:[%s18260_s6 + $0x330] sm:$0xff]  ;;  %v19202_v22 = vld [vmem:[#allocation9_spill] sm:$0xff]  ;;  %v2442_v38 = vld [vmem:[%s18260_s6 + $0x398] sm:$0xff] }
 0x3cf   :  { %v1923_v34 = vadd.f32 %v1922_v43, %v1879_v55  ;;  %v1867_v55 = vadd.f32 %v11542_v1, %v1823_v37  ;;  %v1914_v43 = vadd.f32 %v1913_v57, %v1870_v24  ;;  %v19190_v1 = vld [vmem:[#allocation12_spill] sm:$0xff]  ;;  %v19191_v37 = vld [vmem:[#allocation5_spill] sm:$0xff] }
 0x3d0   :  { %v11611_v61 = vpop.f32.mrf.mxu1  ;;  %v1811_v57 = vadd.f32 %v19191_v37, %v19190_v1  ;;  %v2466_v1 = vld [vmem:[%s18260_s6 + $0x458] sm:$0xff]  ;;  %v2460_v37 = vld [vmem:[%s18260_s6 + $0x428] sm:$0xff] }
 0x3d1   :  { %19180 = vst [vmem:[#allocation24_spill] sm:$0xff] %v11611_v61  ;;  %2640 = vmatmul.f32.gmra.mxu0 %v11611_v61  ;;  %v1966_v32 = vpop.f32.mrf.mxu0  ;;  %v1911_v10 = vadd.f32 %v11557_v50, %v1867_v55  ;;  %v1958_v2 = vadd.f32 %v1957_v39, %v1914_v43  ;;  %v1858_v50 = vadd.f32 %v11425_v29, %v1814_v36  ;;  %v19192_v39 = vld [vmem:[#allocation17_spill] sm:$0xff]  ;;  %v2502_v55 = vld [vmem:[%s18260_s6 + $0x578] sm:$0xff] }
 0x3d2   :  { %v1967_v47 = vadd.f32 %v1966_v32, %v1923_v34  ;;  %v2478_v36 = vld [vmem:[%s18260_s6 + $0x4b8] sm:$0xff] }
 0x3d3   :  { %v1955_v56 = vadd.f32 %v11566_v54, %v1911_v10  ;;  %v2031_v44 = vadd.f32 %v11201_v4, %v1958_v2  ;;  %v19193_v54 = vld [vmem:[#allocation13_spill] sm:$0xff]  ;;  %v1902_v11 = vadd.f32 %v11506_v42, %v1858_v50  ;;  %v2609_v10 = vld [vmem:[%s18260_s6 + $0x8d0] sm:$0xff]  ;;  %v2603_v50 = vld [vmem:[%s18260_s6 + $0x8a0] sm:$0xff] }
 0x3d4   :  { %7883 = vmatmul.msk.f32.gmra.mxu2 %vm2059_vm4, %v19184_v48  ;;  %v2040_v41 = vadd.f32 %v11184_v5, %v1967_v47  ;;  %v1861_v5 = vadd.f32 %v11488_v15, %v1817_v20  ;;  %v1952_v15 = vadd.f32 %v11553_v45, %v1908_v6  ;;  %v1855_v3 = vadd.f32 %v19193_v54, %v1811_v57  ;;  %v2423_v47 = vld [vmem:[%s18260_s6 + $0x300] sm:$0xff]  ;;  %v2508_v20 = vld [vmem:[%s18260_s6 + $0x5a8] sm:$0xff]  ;;  %v19206_v57 = vld [vmem:[#allocation31_spill] sm:$0xff] }
 0x3d5   :  { %v2028_v34 = vadd.f32 %v11211_v0, %v1955_v56  ;;  %v2483_v0 = vld [vmem:[%s18260_s6 + $0x4e0] sm:$0xff]  ;;  %2900 = vmatpush.msrb.mxu0 %v2508_v20  ;;  %v2472_v2 = vld [vmem:[%s18260_s6 + $0x488] sm:$0xff]  ;;  %2757 = vmatpush.msrb.mxu2 %v2609_v10  ;;  %v2454_v6 = vld [vmem:[%s18260_s6 + $0x3f8] sm:$0xff] }
 0x3d6   :  { %2263 = vmatpush.msrb.mxu3 %v2040_v41  ;;  %v1905_v16 = vadd.f32 %v11529_v35, %v1861_v5  ;;  %v1899_v32 = vadd.f32 %v11468_v49, %v1855_v3  ;;  %v1946_v35 = vadd.f32 %v11525_v7, %v1902_v11  ;;  %v2025_v45 = vadd.f32 %v11218_v40, %v1952_v15  ;;  %v2490_v41 = vld [vmem:[%s18260_s6 + $0x518] sm:$0xff]  ;;  %v19208_v15 = vld [vmem:[#allocation30_spill] sm:$0xff]  ;;  %v2424_v3 = vld [vmem:[%s18260_s6 + $0x308] sm:$0xff] }
 0x3d7   :  { %2691 = vmatpush.msrb.mxu1 %v2483_v0  ;;  %2901 = vmatpush.msrb.mxu0 %v2502_v55  ;;  %v2597_v11 = vld [vmem:[%s18260_s6 + $0x870] sm:$0xff]  ;;  %v2412_v0 = vld [vmem:[%s18260_s6 + $0x2a8] sm:$0xff]  ;;  %v2382_v55 = vld [vmem:[%s18260_s6 + $0x1b8] sm:$0xff] }
 0x3d8   :  { %v11632_v61 = vpop.f32.mrf.mxu1  ;;  %2264 = vmatpush.msrb.mxu3 %v2037_v60  ;;  %v1949_v29 = vadd.f32 %v11538_v18, %v1905_v16  ;;  %v1943_v4 = vadd.f32 %v11499_v8, %v1899_v32  ;;  %v2019_v49 = vadd.f32 %v11245_v27, %v1946_v35  ;;  %v2471_v27 = vld [vmem:[%s18260_s6 + $0x480] sm:$0xff]  ;;  %v2465_v8 = vld [vmem:[%s18260_s6 + $0x450] sm:$0xff]  ;;  %2758 = vmatpush.msrb.mxu2 %v2603_v50  ;;  %v2436_v16 = vld [vmem:[%s18260_s6 + $0x368] sm:$0xff] }
 0x3d9   :  { %19189 = vst [vmem:[#allocation20_spill] sm:$0xff] %v11632_v61  ;;  %2643 = vmatmul.f32.gmra.mxu0 %v11632_v61  ;;  %v2453_v18 = vld [vmem:[%s18260_s6 + $0x3f0] sm:$0xff]  ;;  %v19205_v60 = vld [vmem:[#allocation4_spill] sm:$0xff]  ;;  %v2418_v32 = vld [vmem:[%s18260_s6 + $0x2d8] sm:$0xff] }
 0x3da   :  { %2265 = vmatpush.msrb.mxu3 %v2034_v19  ;;  %v2022_v42 = vadd.f32 %v11242_v51, %v1949_v29  ;;  %v2016_v40 = vadd.f32 %v11254_v26, %v1943_v4  ;;  %v2477_v51 = vld [vmem:[%s18260_s6 + $0x4b0] sm:$0xff]  ;;  %v2448_v19 = vld [vmem:[%s18260_s6 + $0x3c8] sm:$0xff]  ;;  %2759 = vmatpush.msrb.mxu2 %v2597_v11 }
 0x3db   :  { %2692 = vmatpush.msrb.mxu1 %v2477_v51  ;;  %v2585_v4 = vld [vmem:[%s18260_s6 + $0x810] sm:$0xff]  ;;  %v2364_v10 = vld [vmem:[%s18260_s6 + $0x128] sm:$0xff] }
 0x3dc   :  { %7884 = vmatmul.msk.f32.gmra.mxu2 %vm2059_vm4, %v19192_v39  ;;  %2266 = vmatpush.msrb.mxu3 %v2031_v44  ;;  %v2430_v44 = vld [vmem:[%s18260_s6 + $0x338] sm:$0xff]  ;;  %v2537_v20 = vld [vmem:[%s18260_s6 + $0x690] sm:$0xff]  ;;  %v2340_v50 = vld [vmem:[%s18260_s6 + $0x68] sm:$0xff] }
 0x3dd   :  { %2693 = vmatpush.msrb.mxu1 %v2471_v27 }
 0x3de   :  { %2267 = vmatpush.msrb.mxu3 %v2028_v34 }
 0x3df   :  { %2694 = vmatpush.msrb.mxu1 %v2465_v8  ;;  %v2406_v8 = vld [vmem:[%s18260_s6 + $0x278] sm:$0xff] }
 0x3e0   :  { %v11656_v59 = vpop.f32.mrf.mxu1  ;;  %2268 = vmatpush.msrb.mxu3 %v2025_v45 }
 0x3e1   :  { %19194 = vst [vmem:[#allocation7_spill] sm:$0xff] %v11656_v59  ;;  %2646 = vmatmul.f32.gmra.mxu0 %v11656_v59 }
 0x3e2   :  { %2269 = vmatpush.msrb.mxu3 %v2022_v42 }
 0x3e4   :  { %7885 = vmatmul.msk.f32.gmra.mxu2 %vm2059_vm4, %v11401_v17  ;;  %2270 = vmatpush.msrb.mxu3 %v2019_v49  ;;  %v2573_v49 = vld [vmem:[%s18260_s6 + $0x7b0] sm:$0xff] }
 0x3e6   :  { %2271 = vmatpush.msrb.mxu3 %v2016_v40  ;;  %v2567_v40 = vld [vmem:[%s18260_s6 + $0x780] sm:$0xff] }
 0x3e7   :  { %7894 = vmatmul.msk.f32.vlgmr.msrb.gmra.mxu3 %vm2059_vm4, %v11269_v63  ;;  %v2459_v63 = vld [vmem:[%s18260_s6 + $0x420] sm:$0xff] }
 0x3e8   :  { %v11671_v7 = vpop.f32.mrf.mxu1  ;;  %2695 = vmatpush.msrb.mxu1 %v2459_v63  ;;  %2828 = vmatpush.msra.mxu3 %v2418_v32 }
 0x3e9   :  { %19195 = vst [vmem:[#allocation25_spill] sm:$0xff] %v11671_v7  ;;  %2649 = vmatmul.f32.gmra.mxu0 %v11671_v7 }
 0x3ea   :  { %2696 = vmatpush.msrb.mxu1 %v2453_v18  ;;  %2829 = vmatpush.msra.mxu3 %v2412_v0  ;;  %v2555_v18 = vld [vmem:[%s18260_s6 + $0x720] sm:$0xff] }
 0x3ec   :  { %7886 = vmatmul.msk.f32.gmra.mxu2 %vm2059_vm4, %v11438_v13  ;;  %2697 = vmatpush.msrb.mxu1 %v2447_v53  ;;  %v2400_v53 = vld [vmem:[%s18260_s6 + $0x248] sm:$0xff] }
 0x3ed   :  { %2830 = vmatpush.msra.mxu3 %v2406_v8  ;;  %v2580_v8 = vld [vmem:[%s18260_s6 + $0x7e8] sm:$0xff] }
 0x3ef   :  { %7895 = vmatmul.msk.f32.gmra.mxu3 %vm2059_vm4, %v11280_v52  ;;  %v2441_v52 = vld [vmem:[%s18260_s6 + $0x390] sm:$0xff] }
 0x3f0   :  { %v11684_v26 = vpop.f32.mrf.mxu1  ;;  %2698 = vmatpush.msrb.mxu1 %v2441_v52  ;;  %v2549_v52 = vld [vmem:[%s18260_s6 + $0x6f0] sm:$0xff]  ;;  %2831 = vmatpush.msra.mxu3 %v2400_v53  ;;  %v2574_v53 = vld [vmem:[%s18260_s6 + $0x7b8] sm:$0xff] }
 0x3f1   :  { %19196 = vst [vmem:[#allocation11_spill] sm:$0xff] %v11684_v26  ;;  %2652 = vmatmul.f32.gmra.mxu0 %v11684_v26 }
 0x3f2   :  { %2699 = vmatpush.msrb.mxu1 %v2435_v25  ;;  %v2394_v25 = vld [vmem:[%s18260_s6 + $0x218] sm:$0xff] }
 0x3f3   :  { %2832 = vmatpush.msra.mxu3 %v2394_v25 }
 0x3f4   :  { %7887 = vmatmul.msk.f32.gmra.mxu2 %vm2059_vm4, %v11482_v46  ;;  %2700 = vmatpush.msrb.mxu1 %v2429_v21  ;;  %v2543_v21 = vld [vmem:[%s18260_s6 + $0x6c0] sm:$0xff] }
 0x3f6   :  { %2701 = vmatpush.msrb.mxu1 %v2423_v47  ;;  %v2388_v47 = vld [vmem:[%s18260_s6 + $0x1e8] sm:$0xff] }
 0x3f7   :  { %7896 = vmatmul.msk.f32.gmra.mxu3 %vm2059_vm4, %v11297_v58 }
 0x3f8   :  { %v11703_v24 = vpop.f32.mrf.mxu1  ;;  %2833 = vmatpush.msra.mxu3 %v2388_v47  ;;  %v2562_v47 = vld [vmem:[%s18260_s6 + $0x758] sm:$0xff] }
 0x3f9   :  { %19197 = vst [vmem:[#allocation16_spill] sm:$0xff] %v11703_v24  ;;  %2655 = vmatmul.f32.gmra.mxu0 %v11703_v24 }
 0x3fa   :  { %2834 = vmatpush.msra.mxu3 %v2382_v55  ;;  %v2556_v55 = vld [vmem:[%s18260_s6 + $0x728] sm:$0xff] }
 0x3fc   :  { %7888 = vmatmul.msk.f32.gmra.mxu2 %vm2059_vm4, %v11515_v9 }
 0x3ff   :  { %7897 = vmatmul.msk.f32.gmra.mxu3 %vm2059_vm4, %v11314_v31  ;;  %v19200_v31 = vld [vmem:[#allocation29_spill] sm:$0xff] }
 0x400   :  { %v11722_v62 = vpop.f32.mrf.mxu1 }
 0x401   :  { %19198 = vst [vmem:[#allocation6_spill] sm:$0xff] %v11722_v62  ;;  %2658 = vmatmul.f32.gmra.mxu0 %v11722_v62 }
 0x404   :  { %7889 = vmatmul.msk.f32.gmra.mxu2 %vm2059_vm4, %v11534_v33 }
 0x407   :  { %7898 = vmatmul.msk.f32.gmra.mxu3 %vm2059_vm4, %v11328_v14  ;;  %v2496_v14 = vld [vmem:[%s18260_s6 + $0x548] sm:$0xff] }
 0x408   :  { %v11729_v58 = vpop.f32.mrf.mxu1  ;;  %2902 = vmatpush.msrb.mxu0 %v2496_v14  ;;  %v2531_v14 = vld [vmem:[%s18260_s6 + $0x660] sm:$0xff] }
 0x409   :  { %19199 = vst [vmem:[#allocation10_spill] sm:$0xff] %v11729_v58  ;;  %2661 = vmatmul.f32.gmra.mxu0 %v11729_v58 }
 0x40a   :  { %2903 = vmatpush.msrb.mxu0 %v2490_v41  ;;  %v2525_v41 = vld [vmem:[%s18260_s6 + $0x630] sm:$0xff] }
 0x40c   :  { %7890 = vmatmul.msk.f32.gmra.mxu2 %vm2059_vm4, %v19200_v31  ;;  %2904 = vmatpush.msrb.mxu0 %v2484_v23  ;;  %v2370_v23 = vld [vmem:[%s18260_s6 + $0x158] sm:$0xff] }
 0x40e   :  { %2905 = vmatpush.msrb.mxu0 %v2478_v36  ;;  %v2610_v36 = vld [vmem:[%s18260_s6 + $0x8d8] sm:$0xff] }
 0x40f   :  { %7899 = vmatmul.msk.f32.gmra.mxu3 %vm2059_vm4, %v19202_v22  ;;  %v2376_v22 = vld [vmem:[%s18260_s6 + $0x188] sm:$0xff]  ;;  %2970 = vmatpush.msra.mxu1 %v2610_v36 }
 0x410   :  { %v11745_v43 = vpop.f32.mrf.mxu1  ;;  %2906 = vmatpush.msrb.mxu0 %v2472_v2  ;;  %2835 = vmatpush.msra.mxu3 %v2376_v22  ;;  %v2550_v22 = vld [vmem:[%s18260_s6 + $0x6f8] sm:$0xff]  ;;  %v2544_v36 = vld [vmem:[%s18260_s6 + $0x6c8] sm:$0xff] }
 0x411   :  { %19201 = vst [vmem:[#allocation8_spill] sm:$0xff] %v11745_v43  ;;  %2664 = vmatmul.f32.gmra.mxu0 %v11745_v43 }
 0x412   :  { %2907 = vmatpush.msrb.mxu0 %v2466_v1  ;;  %2836 = vmatpush.msra.mxu3 %v2370_v23  ;;  %v2358_v1 = vld [vmem:[%s18260_s6 + $0xf8] sm:$0xff] }
 0x414   :  { %7891 = vmatmul.msk.f32.gmra.mxu2 %vm2059_vm4, %v19203_v28  ;;  %2908 = vmatpush.msrb.mxu0 %v2460_v37  ;;  %v2352_v37 = vld [vmem:[%s18260_s6 + $0xc8] sm:$0xff] }
 0x415   :  { %2837 = vmatpush.msra.mxu3 %v2364_v10  ;;  %v19233_v10 = vld [vmem:[#allocation28_spill] sm:$0xff] }
 0x416   :  { %2909 = vmatpush.msrb.mxu0 %v2454_v6  ;;  %v2346_v6 = vld [vmem:[%s18260_s6 + $0x98] sm:$0xff] }
 0x417   :  { %7900 = vmatmul.msk.f32.gmra.mxu3 %vm2059_vm4, %v19205_v60 }
 0x418   :  { %v11764_v30 = vpop.f32.mrf.mxu1  ;;  %2910 = vmatpush.msrb.mxu0 %v2448_v19  ;;  %2838 = vmatpush.msra.mxu3 %v2358_v1  ;;  %v2604_v19 = vld [vmem:[%s18260_s6 + $0x8a8] sm:$0xff] }
 0x419   :  { %19204 = vst [vmem:[#allocation14_spill] sm:$0xff] %v11764_v30  ;;  %2667 = vmatmul.f32.gmra.mxu0 %v11764_v30  ;;  %2971 = vmatpush.msra.mxu1 %v2604_v19  ;;  %v2532_v1 = vld [vmem:[%s18260_s6 + $0x668] sm:$0xff] }
 0x41a   :  { %2911 = vmatpush.msrb.mxu0 %v2442_v38  ;;  %2839 = vmatpush.msra.mxu3 %v2352_v37 }
 0x41c   :  { %7892 = vmatmul.msk.f32.gmra.mxu2 %vm2059_vm4, %v19206_v57  ;;  %2912 = vmatpush.msrb.mxu0 %v2436_v16 }
 0x41d   :  { %2840 = vmatpush.msra.mxu3 %v2346_v6  ;;  %v2526_v6 = vld [vmem:[%s18260_s6 + $0x638] sm:$0xff] }
 0x41e   :  { %2913 = vmatpush.msrb.mxu0 %v2430_v44  ;;  %v2328_v44 = vld [vmem:[%s18260_s6 + $0x8] sm:$0xff] }
 0x41f   :  { %v11783_v5 = vpop.f32.mrf.mxu2  ;;  %7901 = vmatmul.msk.f32.gmra.mxu3 %vm2059_vm4, %v19184_v48 }
 0x420   :  { %2702 = vmatmul.f32.vlgmr.msrb.gmra.mxu1 %v11783_v5  ;;  %v11789_v56 = vpop.f32.mrf.mxu1  ;;  %2914 = vmatpush.msrb.mxu0 %v2424_v3  ;;  %v2598_v3 = vld [vmem:[%s18260_s6 + $0x878] sm:$0xff] }
 0x421   :  { %19207 = vst [vmem:[#allocation18_spill] sm:$0xff] %v11789_v56  ;;  %2670 = vmatmul.f32.gmra.mxu0 %v11789_v56  ;;  %2841 = vmatpush.msra.mxu3 %v2340_v50  ;;  %v2520_v50 = vld [vmem:[%s18260_s6 + $0x608] sm:$0xff] }
 0x422   :  { %2972 = vmatpush.msra.mxu1 %v2598_v3 }
 0x424   :  { %7893 = vmatmul.msk.f32.gmra.mxu2 %vm2059_vm4, %v19208_v15 }
 0x427   :  { %v11808_v48 = vpop.f32.mrf.mxu2  ;;  %7902 = vmatmul.msk.f32.gmra.mxu3 %vm2059_vm4, %v19192_v39  ;;  %v2591_v39 = vld [vmem:[%s18260_s6 + $0x840] sm:$0xff] }
 0x428   :  { %19209 = vst [vmem:[#allocation27_spill] sm:$0xff] %v11808_v48  ;;  %2705 = vmatmul.f32.gmra.mxu1 %v11808_v48  ;;  %v11814_v54 = vpop.f32.mrf.mxu1  ;;  %2760 = vmatpush.msrb.mxu2 %v2591_v39 }
 0x429   :  { %19210 = vst [vmem:[#allocation15_spill] sm:$0xff] %v11814_v54  ;;  %2673 = vmatmul.f32.gmra.mxu0 %v11814_v54 }
 0x42a   :  { %2761 = vmatpush.msrb.mxu2 %v2585_v4 }
 0x42f   :  { %v11825_v29 = vpop.f32.mrf.mxu2  ;;  %7903 = vmatmul.msk.f32.gmra.mxu3 %vm2059_vm4, %v11401_v17  ;;  %v2579_v17 = vld [vmem:[%s18260_s6 + $0x7e0] sm:$0xff] }
 0x430   :  { %19211 = vst [vmem:[#allocation12_spill] sm:$0xff] %v11825_v29  ;;  %2708 = vmatmul.f32.gmra.mxu1 %v11825_v29  ;;  %v11828_v34 = vpop.f32.mrf.mxu1  ;;  %2762 = vmatpush.msrb.mxu2 %v2579_v17 }
 0x431   :  { %19212 = vst [vmem:[#allocation5_spill] sm:$0xff] %v11828_v34  ;;  %2676 = vmatmul.f32.gmra.mxu0 %v11828_v34 }
 0x432   :  { %2763 = vmatpush.msrb.mxu2 %v2573_v49  ;;  %v2586_v49 = vld [vmem:[%s18260_s6 + $0x818] sm:$0xff] }
 0x434   :  { %2764 = vmatpush.msrb.mxu2 %v2567_v40 }
 0x436   :  { %v11839_v35 = vpop.f32.mrf.mxu0 }
 0x437   :  { %v11841_v45 = vpop.f32.mrf.mxu2  ;;  %7904 = vmatmul.msk.f32.gmra.mxu3 %vm2059_vm4, %v11438_v13  ;;  %v2561_v13 = vld [vmem:[%s18260_s6 + $0x750] sm:$0xff] }
 0x438   :  { %19213 = vst [vmem:[#allocation17_spill] sm:$0xff] %v11841_v45  ;;  %2711 = vmatmul.f32.gmra.mxu1 %v11841_v45  ;;  %v11847_v42 = vpop.f32.mrf.mxu1  ;;  %2765 = vmatpush.msrb.mxu2 %v2561_v13 }
 0x439   :  { %19214 = vst [vmem:[#allocation13_spill] sm:$0xff] %v11847_v42  ;;  %2679 = vmatmul.f32.gmra.mxu0 %v11847_v42 }
 0x43a   :  { %2766 = vmatpush.msrb.mxu2 %v2555_v18  ;;  %v19226_v18 = vld [vmem:[#allocation32_spill] sm:$0xff] }
 0x43c   :  { %2767 = vmatpush.msrb.mxu2 %v2549_v52 }
 0x43e   :  { %v11864_v51 = vpop.f32.mrf.mxu0  ;;  %2768 = vmatpush.msrb.mxu2 %v2543_v21  ;;  %v2568_v21 = vld [vmem:[%s18260_s6 + $0x788] sm:$0xff] }
 0x43f   :  { %v11866_v27 = vpop.f32.mrf.mxu2  ;;  %7905 = vmatmul.msk.f32.gmra.mxu3 %vm2059_vm4, %v11482_v46 }
 0x440   :  { %19215 = vst [vmem:[#allocation29_spill] sm:$0xff] %v11866_v27  ;;  %2714 = vmatmul.f32.gmra.mxu1 %v11866_v27  ;;  %v11875_v63 = vpop.f32.mrf.mxu1  ;;  %2769 = vmatpush.msrb.mxu2 %v2537_v20  ;;  %v19229_v20 = vld [vmem:[#allocation33_spill] sm:$0xff] }
 0x441   :  { %19216 = vst [vmem:[#allocation9_spill] sm:$0xff] %v11875_v63  ;;  %2682 = vmatmul.f32.gmra.mxu0 %v11875_v63 }
 0x442   :  { %2770 = vmatpush.msrb.mxu2 %v2531_v14 }
 0x444   :  { %2771 = vmatpush.msrb.mxu2 %v2525_v41 }
 0x446   :  { %v11898_v46 = vpop.f32.mrf.mxu0 }
 0x447   :  { %v11900_v12 = vpop.f32.mrf.mxu2  ;;  %7906 = vmatmul.msk.f32.gmra.mxu3 %vm2059_vm4, %v11515_v9  ;;  %v2519_v9 = vld [vmem:[%s18260_s6 + $0x600] sm:$0xff] }
 0x448   :  { %19217 = vst [vmem:[#allocation19_spill] sm:$0xff] %v11900_v12  ;;  %2717 = vmatmul.f32.gmra.mxu1 %v11900_v12  ;;  %2772 = vmatpush.msrb.mxu2 %v2519_v9  ;;  %v2538_v9 = vld [vmem:[%s18260_s6 + $0x698] sm:$0xff] }
 0x449   :  { %2915 = vmatmul.f32.vlgmr.msrb.gmra.mxu0 %v11783_v5 }
 0x44e   :  { %v11933_v2 = vpop.f32.mrf.mxu0 }
 0x44f   :  { %v11935_v60 = vpop.f32.mrf.mxu2  ;;  %7907 = vmatmul.msk.f32.gmra.mxu3 %vm2059_vm4, %v11534_v33  ;;  %v2334_v33 = vld [vmem:[%s18260_s6 + $0x38] sm:$0xff] }
 0x450   :  { %19218 = vst [vmem:[#allocation4_spill] sm:$0xff] %v11935_v60  ;;  %2720 = vmatmul.f32.gmra.mxu1 %v11935_v60  ;;  %2842 = vmatpush.msra.mxu3 %v2334_v33 }
 0x451   :  { %2918 = vmatmul.f32.gmra.mxu0 %v11808_v48 }
 0x452   :  { %2843 = vmatpush.msra.mxu3 %v2328_v44  ;;  %v19237_v44 = vld [vmem:[#allocation24_spill] sm:$0xff] }
 0x456   :  { %v11956_v38 = vpop.f32.mrf.mxu0 }
 0x457   :  { %v11958_v16 = vpop.f32.mrf.mxu2  ;;  %7908 = vmatmul.msk.f32.gmra.mxu3 %vm2059_vm4, %v19200_v31  ;;  %v2592_v31 = vld [vmem:[%s18260_s6 + $0x848] sm:$0xff] }
 0x458   :  { %19219 = vst [vmem:[#allocation31_spill] sm:$0xff] %v11958_v16  ;;  %2723 = vmatmul.f32.gmra.mxu1 %v11958_v16 }
 0x459   :  { %2921 = vmatmul.f32.gmra.mxu0 %v11825_v29  ;;  %2973 = vmatpush.msra.mxu1 %v2592_v31 }
 0x45b   :  { %2974 = vmatpush.msra.mxu1 %v2586_v49 }
 0x45d   :  { %2975 = vmatpush.msra.mxu1 %v2580_v8  ;;  %v2611_v8 = vld [vmem:[%s18260_s6 + $0x8e0] sm:$0xff] }
 0x45e   :  { %v11973_v11 = vpop.f32.mrf.mxu0  ;;  %3183 = vmatpush.msra.mxu0 %v2611_v8  ;;  %v2581_v8 = vld [vmem:[%s18260_s6 + $0x7f0] sm:$0xff] }
 0x45f   :  { %v11975_v32 = vpop.f32.mrf.mxu2  ;;  %7909 = vmatmul.msk.f32.gmra.mxu3 %vm2059_vm4, %v19203_v28  ;;  %2976 = vmatpush.msra.mxu1 %v2574_v53 }
 0x460   :  { %19220 = vst [vmem:[#allocation30_spill] sm:$0xff] %v11975_v32  ;;  %2726 = vmatmul.f32.gmra.mxu1 %v11975_v32 }
 0x461   :  { %2924 = vmatmul.f32.gmra.mxu0 %v11841_v45  ;;  %2977 = vmatpush.msra.mxu1 %v2568_v21 }
 0x463   :  { %2978 = vmatpush.msra.mxu1 %v2562_v47  ;;  %v2605_v47 = vld [vmem:[%s18260_s6 + $0x8b0] sm:$0xff] }
 0x464   :  { %3184 = vmatpush.msra.mxu0 %v2605_v47 }
 0x465   :  { %2979 = vmatpush.msra.mxu1 %v2556_v55 }
 0x466   :  { %v11981_v39 = vpop.f32.mrf.mxu0 }
 0x467   :  { %v11986_v4 = vpop.f32.mrf.mxu2  ;;  %7910 = vmatmul.msk.f32.gmra.mxu3 %vm2059_vm4, %v19206_v57  ;;  %2980 = vmatpush.msra.mxu1 %v2550_v22  ;;  %v2599_v22 = vld [vmem:[%s18260_s6 + $0x880] sm:$0xff] }
 0x468   :  { %19221 = vst [vmem:[#allocation34_spill] sm:$0xff] %v11986_v4  ;;  %2729 = vmatmul.f32.gmra.mxu1 %v11986_v4  ;;  %3185 = vmatpush.msra.mxu0 %v2599_v22  ;;  %v2575_v22 = vld [vmem:[%s18260_s6 + $0x7c0] sm:$0xff] }
 0x469   :  { %2927 = vmatmul.f32.gmra.mxu0 %v11866_v27  ;;  %2981 = vmatpush.msra.mxu1 %v2544_v36 }
 0x46a   :  { %v11992_v17 = vpop.f32.mrf.mxu3 }
 0x46b   :  { %19222 = vst [vmem:[#allocation35_spill] sm:$0xff] %v11992_v17  ;;  %2773 = vmatmul.f32.vlgmr.msrb.gmra.mxu2 %v11992_v17  ;;  %2982 = vmatpush.msra.mxu1 %v2538_v9  ;;  %v2593_v9 = vld [vmem:[%s18260_s6 + $0x850] sm:$0xff] }
 0x46c   :  { %3186 = vmatpush.msra.mxu0 %v2593_v9 }
 0x46d   :  { %2983 = vmatpush.msra.mxu1 %v2532_v1  ;;  %v2587_v1 = vld [vmem:[%s18260_s6 + $0x820] sm:$0xff] }
 0x46e   :  { %v11995_v28 = vpop.f32.mrf.mxu0  ;;  %3187 = vmatpush.msra.mxu0 %v2587_v1  ;;  %v2419_v1 = vld [vmem:[%s18260_s6 + $0x2e0] sm:$0xff] }
 0x46f   :  { %v11997_v0 = vpop.f32.mrf.mxu2  ;;  %7911 = vmatmul.msk.f32.gmra.mxu3 %vm2059_vm4, %v19208_v15  ;;  %2984 = vmatpush.msra.mxu1 %v2526_v6 }
 0x470   :  { %19223 = vst [vmem:[#allocation36_spill] sm:$0xff] %v11997_v0  ;;  %2732 = vmatmul.f32.gmra.mxu1 %v11997_v0  ;;  %3188 = vmatpush.msra.mxu0 %v2581_v8  ;;  %v2563_v8 = vld [vmem:[%s18260_s6 + $0x760] sm:$0xff] }
 0x471   :  { %2930 = vmatmul.f32.gmra.mxu0 %v11900_v12  ;;  %2985 = vmatpush.msra.mxu1 %v2520_v50 }
 0x472   :  { %v12006_v57 = vpop.f32.mrf.mxu3  ;;  %3189 = vmatpush.msra.mxu0 %v2575_v22  ;;  %3041 = vmatpush.msra.mxu2 %v2419_v1  ;;  %v2545_v1 = vld [vmem:[%s18260_s6 + $0x6d0] sm:$0xff] }
 0x473   :  { %19224 = vst [vmem:[#allocation37_spill] sm:$0xff] %v12006_v57  ;;  %2776 = vmatmul.f32.gmra.mxu2 %v12006_v57 }
 0x476   :  { %v12009_v40 = vpop.f32.mrf.mxu0 }
 0x477   :  { %v12011_v13 = vpop.f32.mrf.mxu2  ;;  %2844 = vmatmul.f32.vlgmr.msra.gmra.mxu3 %v19226_v18 }
 0x478   :  { %19225 = vst [vmem:[#allocation38_spill] sm:$0xff] %v12011_v13  ;;  %2735 = vmatmul.f32.gmra.mxu1 %v12011_v13 }
 0x479   :  { %2933 = vmatmul.f32.gmra.mxu0 %v11935_v60 }
 0x47a   :  { %v12019_v15 = vpop.f32.mrf.mxu3 }
 0x47b   :  { %19227 = vst [vmem:[#allocation39_spill] sm:$0xff] %v12019_v15  ;;  %2779 = vmatmul.f32.gmra.mxu2 %v12019_v15 }
 0x47e   :  { %v12025_v52 = vpop.f32.mrf.mxu0 }
 0x47f   :  { %v12027_v25 = vpop.f32.mrf.mxu2  ;;  %2847 = vmatmul.f32.gmra.mxu3 %v19229_v20 }
 0x480   :  { %19228 = vst [vmem:[#allocation40_spill] sm:$0xff] %v12027_v25  ;;  %2738 = vmatmul.f32.gmra.mxu1 %v12027_v25 }
 0x481   :  { %2936 = vmatmul.f32.gmra.mxu0 %v11958_v16 }
 0x482   :  { %v12041_v14 = vpop.f32.mrf.mxu3 }
 0x483   :  { %19230 = vst [vmem:[#allocation41_spill] sm:$0xff] %v12041_v14  ;;  %2782 = vmatmul.f32.gmra.mxu2 %v12041_v14 }
 0x486   :  { %v12047_v41 = vpop.f32.mrf.mxu0 }
 0x487   :  { %19231 = vst [vmem:[#allocation42_spill] sm:$0xff] %v12047_v41  ;;  %v12049_v23 = vpop.f32.mrf.mxu2  ;;  %2850 = vmatmul.f32.gmra.mxu3 %v19233_v10  ;;  %v2461_v41 = vld [vmem:[%s18260_s6 + $0x430] sm:$0xff] }
 0x488   :  { %19232 = vst [vmem:[#allocation43_spill] sm:$0xff] %v12049_v23  ;;  %2741 = vmatmul.f32.gmra.mxu1 %v12049_v23 }
 0x489   :  { %2939 = vmatmul.f32.gmra.mxu0 %v11975_v32 }
 0x48a   :  { %v12063_v37 = vpop.f32.mrf.mxu3 }
 0x48b   :  { %19234 = vst [vmem:[#allocation44_spill] sm:$0xff] %v12063_v37  ;;  %2785 = vmatmul.f32.gmra.mxu2 %v12063_v37 }
 0x48e   :  { %v12069_v19 = vpop.f32.mrf.mxu0 }
 0x48f   :  { %19235 = vst [vmem:[#allocation45_spill] sm:$0xff] %v12069_v19  ;;  %v12074_v33 = vpop.f32.mrf.mxu2  ;;  %2853 = vmatmul.f32.gmra.mxu3 %v19237_v44  ;;  %v2497_v19 = vld [vmem:[%s18260_s6 + $0x550] sm:$0xff] }
 0x490   :  { %19236 = vst [vmem:[#allocation46_spill] sm:$0xff] %v12074_v33  ;;  %2744 = vmatmul.f32.gmra.mxu1 %v12074_v33 }
 0x491   :  { %2942 = vmatmul.f32.gmra.mxu0 %v11986_v4  ;;  %v2383_v4 = vld [vmem:[%s18260_s6 + $0x1c0] sm:$0xff] }
 0x492   :  { %v12079_v3 = vpop.f32.mrf.mxu3 }
 0x493   :  { %19238 = vst [vmem:[#allocation47_spill] sm:$0xff] %v12079_v3  ;;  %2788 = vmatmul.f32.gmra.mxu2 %v12079_v3 }
 0x496   :  { %v12082_v31 = vpop.f32.mrf.mxu0 }
 0x497   :  { %19239 = vst [vmem:[#allocation48_spill] sm:$0xff] %v12082_v31  ;;  %v12084_v49 = vpop.f32.mrf.mxu2  ;;  %2856 = vmatmul.f32.gmra.mxu3 %v11632_v61 }
 0x498   :  { %19240 = vst [vmem:[#allocation49_spill] sm:$0xff] %v12084_v49  ;;  %2747 = vmatmul.f32.gmra.mxu1 %v12084_v49 }
 0x499   :  { %2945 = vmatmul.f32.gmra.mxu0 %v11997_v0  ;;  %v2557_v0 = vld [vmem:[%s18260_s6 + $0x730] sm:$0xff] }
 0x49a   :  { %v12092_v53 = vpop.f32.mrf.mxu3 }
 0x49b   :  { %19241 = vst [vmem:[#allocation50_spill] sm:$0xff] %v12092_v53  ;;  %2791 = vmatmul.f32.gmra.mxu2 %v12092_v53 }
 0x49d   :  { %v12094_v21 = vpop.f32.mrf.mxu1 }
 0x49e   :  { %v12100_v55 = vpop.f32.mrf.mxu0 }
 0x49f   :  { %19242 = vst [vmem:[#allocation51_spill] sm:$0xff] %v12100_v55  ;;  %v12105_v36 = vpop.f32.mrf.mxu2  ;;  %2859 = vmatmul.f32.gmra.mxu3 %v11656_v59  ;;  %v2527_v55 = vld [vmem:[%s18260_s6 + $0x640] sm:$0xff] }
 0x4a0   :  { %19243 = vst [vmem:[#allocation52_spill] sm:$0xff] %v12105_v36  ;;  %2750 = vmatmul.f32.gmra.mxu1 %v12105_v36 }
 0x4a1   :  { %2948 = vmatmul.f32.gmra.mxu0 %v12011_v13  ;;  %v2569_v13 = vld [vmem:[%s18260_s6 + $0x790] sm:$0xff] }
 0x4a2   :  { %v12116_v6 = vpop.f32.mrf.mxu3  ;;  %3190 = vmatpush.msra.mxu0 %v2569_v13  ;;  %v2551_v13 = vld [vmem:[%s18260_s6 + $0x700] sm:$0xff] }
 0x4a3   :  { %19244 = vst [vmem:[#allocation53_spill] sm:$0xff] %v12116_v6  ;;  %2794 = vmatmul.f32.gmra.mxu2 %v12116_v6 }
 0x4a4   :  { %3191 = vmatpush.msra.mxu0 %v2563_v8  ;;  %v2539_v8 = vld [vmem:[%s18260_s6 + $0x6a0] sm:$0xff] }
 0x4a5   :  { %v12118_v50 = vpop.f32.mrf.mxu1 }
 0x4a6   :  { %v12124_v47 = vpop.f32.mrf.mxu0  ;;  %3192 = vmatpush.msra.mxu0 %v2557_v0  ;;  %v2413_v0 = vld [vmem:[%s18260_s6 + $0x2b0] sm:$0xff] }
 0x4a7   :  { %19245 = vst [vmem:[#allocation54_spill] sm:$0xff] %v12124_v47  ;;  %v12129_v9 = vpop.f32.mrf.mxu2  ;;  %2862 = vmatmul.f32.gmra.mxu3 %v11671_v7  ;;  %3042 = vmatpush.msra.mxu2 %v2413_v0  ;;  %v2521_v0 = vld [vmem:[%s18260_s6 + $0x610] sm:$0xff] }
 0x4a8   :  { %19246 = vst [vmem:[#allocation55_spill] sm:$0xff] %v12129_v9  ;;  %2753 = vmatmul.f32.gmra.mxu1 %v12129_v9  ;;  %3193 = vmatpush.msra.mxu0 %v2551_v13 }
 0x4a9   :  { %2951 = vmatmul.f32.gmra.mxu0 %v12027_v25 }
 0x4aa   :  { %v12143_v22 = vpop.f32.mrf.mxu3  ;;  %3194 = vmatpush.msra.mxu0 %v2545_v1 }
 0x4ab   :  { %19247 = vst [vmem:[#allocation56_spill] sm:$0xff] %v12143_v22  ;;  %2797 = vmatmul.f32.gmra.mxu2 %v12143_v22 }
 0x4ac   :  { %3195 = vmatpush.msra.mxu0 %v2539_v8 }
 0x4ad   :  { %v12145_v47 = vpop.f32.mrf.mxu1 }
 0x4ae   :  { %v12151_v25 = vpop.f32.mrf.mxu0 }
 0x4af   :  { %19248 = vst [vmem:[#allocation57_spill] sm:$0xff] %v12151_v25  ;;  %2865 = vmatmul.f32.gmra.mxu3 %v11684_v26 }
 0x4b0   :  { %2986 = vmatmul.f32.vlgmr.msra.gmra.mxu1 %v11992_v17 }
 0x4b1   :  { %2954 = vmatmul.f32.gmra.mxu0 %v12049_v23  ;;  %v2533_v23 = vld [vmem:[%s18260_s6 + $0x670] sm:$0xff] }
 0x4b2   :  { %v12168_v13 = vpop.f32.mrf.mxu3  ;;  %3196 = vmatpush.msra.mxu0 %v2533_v23  ;;  %v2407_v23 = vld [vmem:[%s18260_s6 + $0x280] sm:$0xff] }
 0x4b3   :  { %19249 = vst [vmem:[#allocation58_spill] sm:$0xff] %v12168_v13  ;;  %2800 = vmatmul.f32.gmra.mxu2 %v12168_v13 }
 0x4b4   :  { %3197 = vmatpush.msra.mxu0 %v2527_v55  ;;  %3043 = vmatpush.msra.mxu2 %v2407_v23 }
 0x4b5   :  { %v12170_v25 = vpop.f32.mrf.mxu1 }
 0x4b6   :  { %v12176_v1 = vpop.f32.mrf.mxu0  ;;  %3198 = vmatpush.msra.mxu0 %v2521_v0  ;;  %v2401_v0 = vld [vmem:[%s18260_s6 + $0x250] sm:$0xff] }
 0x4b7   :  { %19250 = vst [vmem:[#allocation59_spill] sm:$0xff] %v12176_v1  ;;  %2868 = vmatmul.f32.gmra.mxu3 %v11703_v24  ;;  %3044 = vmatpush.msra.mxu2 %v2401_v0  ;;  %v2509_v0 = vld [vmem:[%s18260_s6 + $0x5b0] sm:$0xff] }
 0x4b8   :  { %2989 = vmatmul.f32.gmra.mxu1 %v12006_v57 }
 0x4b9   :  { %2957 = vmatmul.f32.gmra.mxu0 %v12074_v33  ;;  %v2515_v33 = vld [vmem:[%s18260_s6 + $0x5e0] sm:$0xff] }
 0x4ba   :  { %v12190_v8 = vpop.f32.mrf.mxu3  ;;  %3112 = vmatpush.msrb.mxu3 %v2515_v33  ;;  %v2389_v33 = vld [vmem:[%s18260_s6 + $0x1f0] sm:$0xff] }
 0x4bb   :  { %19251 = vst [vmem:[#allocation60_spill] sm:$0xff] %v12190_v8  ;;  %2803 = vmatmul.f32.gmra.mxu2 %v12190_v8 }
 0x4bc   :  { %3113 = vmatpush.msrb.mxu3 %v2509_v0  ;;  %v2365_v0 = vld [vmem:[%s18260_s6 + $0x130] sm:$0xff] }
 0x4bd   :  { %v12192_v1 = vpop.f32.mrf.mxu1 }
 0x4be   :  { %v12195_v55 = vpop.f32.mrf.mxu0 }
 0x4bf   :  { %19252 = vst [vmem:[#allocation61_spill] sm:$0xff] %v12195_v55  ;;  %2871 = vmatmul.f32.gmra.mxu3 %v11722_v62  ;;  %v2347_v62 = vld [vmem:[%s18260_s6 + $0xa0] sm:$0xff] }
 0x4c0   :  { %2992 = vmatmul.f32.gmra.mxu1 %v12019_v15 }
 0x4c1   :  { %2960 = vmatmul.f32.gmra.mxu0 %v12084_v49  ;;  %v2395_v49 = vld [vmem:[%s18260_s6 + $0x220] sm:$0xff] }
 0x4c2   :  { %v12206_v23 = vpop.f32.mrf.mxu3  ;;  %3045 = vmatpush.msra.mxu2 %v2395_v49 }
 0x4c3   :  { %19253 = vst [vmem:[#allocation62_spill] sm:$0xff] %v12206_v23  ;;  %2806 = vmatmul.f32.gmra.mxu2 %v12206_v23 }
 0x4c4   :  { %3046 = vmatpush.msra.mxu2 %v2389_v33  ;;  %v2377_v33 = vld [vmem:[%s18260_s6 + $0x190] sm:$0xff] }
 0x4c5   :  { %v12208_v31 = vpop.f32.mrf.mxu1 }
 0x4c6   :  { %v12211_v55 = vpop.f32.mrf.mxu0  ;;  %3047 = vmatpush.msra.mxu2 %v2383_v4  ;;  %v2503_v4 = vld [vmem:[%s18260_s6 + $0x580] sm:$0xff] }
 0x4c7   :  { %2874 = vmatmul.f32.gmra.mxu3 %v11729_v58  ;;  %v2371_v58 = vld [vmem:[%s18260_s6 + $0x160] sm:$0xff] }
 0x4c8   :  { %2995 = vmatmul.f32.gmra.mxu1 %v12041_v14  ;;  %3048 = vmatpush.msra.mxu2 %v2377_v33  ;;  %v2359_v33 = vld [vmem:[%s18260_s6 + $0x100] sm:$0xff] }
 0x4c9   :  { %2963 = vmatmul.f32.gmra.mxu0 %v12105_v36  ;;  %3114 = vmatpush.msrb.mxu3 %v2503_v4 }
 0x4ca   :  { %v12228_v49 = vpop.f32.mrf.mxu3  ;;  %3049 = vmatpush.msra.mxu2 %v2371_v58  ;;  %v2491_v58 = vld [vmem:[%s18260_s6 + $0x520] sm:$0xff] }
 0x4cb   :  { %19254 = vst [vmem:[#allocation63_spill] sm:$0xff] %v12228_v49  ;;  %2809 = vmatmul.f32.gmra.mxu2 %v12228_v49  ;;  %3115 = vmatpush.msrb.mxu3 %v2497_v19  ;;  %v2485_v19 = vld [vmem:[%s18260_s6 + $0x4f0] sm:$0xff] }
 0x4cc   :  { %3050 = vmatpush.msra.mxu2 %v2365_v0 }
 0x4cd   :  { %v12230_v32 = vpop.f32.mrf.mxu1  ;;  %3116 = vmatpush.msrb.mxu3 %v2491_v58  ;;  %v2341_v58 = vld [vmem:[%s18260_s6 + $0x70] sm:$0xff] }
 0x4ce   :  { %v12236_v36 = vpop.f32.mrf.mxu0  ;;  %3051 = vmatpush.msra.mxu2 %v2359_v33  ;;  %v2479_v33 = vld [vmem:[%s18260_s6 + $0x4c0] sm:$0xff] }
 0x4cf   :  { %2877 = vmatmul.f32.gmra.mxu3 %v11745_v43  ;;  %v2353_v43 = vld [vmem:[%s18260_s6 + $0xd0] sm:$0xff] }
 0x4d0   :  { %2998 = vmatmul.f32.gmra.mxu1 %v12063_v37  ;;  %3052 = vmatpush.msra.mxu2 %v2353_v43  ;;  %v2473_v43 = vld [vmem:[%s18260_s6 + $0x490] sm:$0xff] }
 0x4d1   :  { %2966 = vmatmul.f32.gmra.mxu0 %v12129_v9  ;;  %3117 = vmatpush.msrb.mxu3 %v2485_v19  ;;  %v2335_v19 = vld [vmem:[%s18260_s6 + $0x40] sm:$0xff] }
 0x4d2   :  { %v12259_v4 = vpop.f32.mrf.mxu3  ;;  %3053 = vmatpush.msra.mxu2 %v2347_v62  ;;  %v2467_v62 = vld [vmem:[%s18260_s6 + $0x460] sm:$0xff] }
 0x4d3   :  { %19255 = vst [vmem:[#allocation64_spill] sm:$0xff] %v12259_v4  ;;  %2812 = vmatmul.f32.gmra.mxu2 %v12259_v4  ;;  %3118 = vmatpush.msrb.mxu3 %v2479_v33 }
 0x4d4   :  { %3054 = vmatpush.msra.mxu2 %v2341_v58  ;;  %v2420_v58 = vld [vmem:[%s18260_s6 + $0x2e8] sm:$0xff] }
 0x4d5   :  { %v12261_v9 = vpop.f32.mrf.mxu1  ;;  %3119 = vmatpush.msrb.mxu3 %v2473_v43  ;;  %3254 = vmatpush.msrb.mxu1 %v2420_v58  ;;  %v2455_v43 = vld [vmem:[%s18260_s6 + $0x400] sm:$0xff] }
 0x4d6   :  { %v12270_v0 = vpop.f32.mrf.mxu0  ;;  %3055 = vmatpush.msra.mxu2 %v2335_v19  ;;  %v2449_v19 = vld [vmem:[%s18260_s6 + $0x3d0] sm:$0xff] }
 0x4d7   :  { %19256 = vst [vmem:[#allocation65_spill] sm:$0xff] %v12270_v0  ;;  %2880 = vmatmul.f32.gmra.mxu3 %v11764_v30  ;;  %v2329_v30 = vld [vmem:[%s18260_s6 + $0x10] sm:$0xff] }
 0x4d8   :  { %3001 = vmatmul.f32.gmra.mxu1 %v12079_v3  ;;  %3120 = vmatpush.msrb.mxu3 %v2467_v62  ;;  %v2443_v62 = vld [vmem:[%s18260_s6 + $0x3a0] sm:$0xff] }
 0x4d9   :  { %3199 = vmatmul.f32.vlgmr.msra.gmra.mxu0 %v11992_v17  ;;  %3056 = vmatpush.msra.mxu2 %v2329_v30 }
 0x4da   :  { %v12293_v17 = vpop.f32.mrf.mxu3  ;;  %3121 = vmatpush.msrb.mxu3 %v2461_v41  ;;  %v2414_v41 = vld [vmem:[%s18260_s6 + $0x2b8] sm:$0xff] }
 0x4db   :  { %19257 = vst [vmem:[#allocation66_spill] sm:$0xff] %v12293_v17  ;;  %2815 = vmatmul.f32.gmra.mxu2 %v12293_v17  ;;  %3255 = vmatpush.msrb.mxu1 %v2414_v41 }
 0x4dc   :  { %3122 = vmatpush.msrb.mxu3 %v2455_v43  ;;  %v2437_v43 = vld [vmem:[%s18260_s6 + $0x370] sm:$0xff] }
 0x4dd   :  { %v12295_v0 = vpop.f32.mrf.mxu1 }
 0x4de   :  { %v12301_v33 = vpop.f32.mrf.mxu0  ;;  %3123 = vmatpush.msrb.mxu3 %v2449_v19  ;;  %v2431_v19 = vld [vmem:[%s18260_s6 + $0x340] sm:$0xff] }
 0x4df   :  { %19258 = vst [vmem:[#allocation67_spill] sm:$0xff] %v12301_v33  ;;  %2883 = vmatmul.f32.gmra.mxu3 %v11789_v56  ;;  %v2425_v56 = vld [vmem:[%s18260_s6 + $0x310] sm:$0xff] }
 0x4e0   :  { %3004 = vmatmul.f32.gmra.mxu1 %v12092_v53  ;;  %3124 = vmatpush.msrb.mxu3 %v2443_v62 }
 0x4e1   :  { %3202 = vmatmul.f32.gmra.mxu0 %v12006_v57 }
 0x4e2   :  { %v12321_v58 = vpop.f32.mrf.mxu3  ;;  %3125 = vmatpush.msrb.mxu3 %v2437_v43  ;;  %v2408_v43 = vld [vmem:[%s18260_s6 + $0x288] sm:$0xff] }
 0x4e3   :  { %19259 = vst [vmem:[#allocation68_spill] sm:$0xff] %v12321_v58  ;;  %2818 = vmatmul.f32.gmra.mxu2 %v12321_v58  ;;  %3256 = vmatpush.msrb.mxu1 %v2408_v43  ;;  %v2402_v43 = vld [vmem:[%s18260_s6 + $0x258] sm:$0xff] }
 0x4e4   :  { %3126 = vmatpush.msrb.mxu3 %v2431_v19  ;;  %v2704_v19 = vadd.f32 %v12094_v21, %v11839_v35 }
 0x4e5   :  { %v12323_v30 = vpop.f32.mrf.mxu1  ;;  %3257 = vmatpush.msrb.mxu1 %v2402_v43 }
 0x4e6   :  { %v12326_v57 = vpop.f32.mrf.mxu0  ;;  %3127 = vmatpush.msrb.mxu3 %v2425_v56 }
 0x4e7   :  { %19260 = vst [vmem:[#allocation69_spill] sm:$0xff] %v12326_v57  ;;  %2886 = vmatmul.f32.gmra.mxu3 %v11814_v54 }
 0x4e8   :  { %3007 = vmatmul.f32.gmra.mxu1 %v12116_v6 }
 0x4e9   :  { %3205 = vmatmul.f32.gmra.mxu0 %v12019_v15 }
 0x4ea   :  { %v12343_v57 = vpop.f32.mrf.mxu3 }
 0x4eb   :  { %19261 = vst [vmem:[#allocation70_spill] sm:$0xff] %v12343_v57  ;;  %2821 = vmatmul.f32.gmra.mxu2 %v12343_v57 }
 0x4ed   :  { %v12345_v62 = vpop.f32.mrf.mxu1 }
 0x4ee   :  { %19262 = vst [vmem:[#allocation71_spill] sm:$0xff] %v12345_v62  ;;  %v12348_v41 = vpop.f32.mrf.mxu0  ;;  %v2774_v15 = vpop.f32.mrf.mxu2 }
 0x4ef   :  { %19263 = vst [vmem:[#allocation72_spill] sm:$0xff] %v12348_v41  ;;  %2889 = vmatmul.f32.gmra.mxu3 %v11828_v34  ;;  %v2775_v41 = vadd.f32 %v2774_v15, %v2704_v19 }
 0x4f0   :  { %3010 = vmatmul.f32.gmra.mxu1 %v12143_v22 }
 0x4f1   :  { %3208 = vmatmul.f32.gmra.mxu0 %v12041_v14  ;;  %v2707_v14 = vadd.f32 %v12118_v50, %v11864_v51  ;;  %v4001_v21 = vmul.f32 0.01, %v2775_v41  ;;  %vm3893_vm5 = vcmp.ge.f32.partialorder %v2775_v41, 0.0 }
 0x4f2   :  { %v12358_v56 = vpop.f32.mrf.mxu3 }
 0x4f3   :  { %19264 = vst [vmem:[#allocation73_spill] sm:$0xff] %v12358_v56  ;;  %2824 = vmatmul.f32.gmra.mxu2 %v12358_v56  ;;  %v12377_v43 = vsel %vm3893_vm5, %v2775_v41, %v4001_v21 }
 0x4f4   :  { %19266 = vst [vmem:[#allocation75_spill] sm:$0xff] %v12377_v43 }
 0x4f5   :  { %v12360_v54 = vpop.f32.mrf.mxu1 }
 0x4f6   :  { %19265 = vst [vmem:[#allocation74_spill] sm:$0xff] %v12360_v54  ;;  %v12363_v33 = vpop.f32.mrf.mxu0  ;;  %v2777_v35 = vpop.f32.mrf.mxu2 }
 0x4f7   :  { %v2778_v34 = vadd.f32 %v2777_v35, %v2707_v14  ;;  %2892 = vmatmul.f32.gmra.mxu3 %v11847_v42  ;;  %v2396_v14 = vld [vmem:[%s18260_s6 + $0x228] sm:$0xff] }
 0x4f8   :  { %3013 = vmatmul.f32.gmra.mxu1 %v12168_v13 }
 0x4f9   :  { %3211 = vmatmul.f32.gmra.mxu0 %v12063_v37  ;;  %vm3899_vm6 = vcmp.ge.f32.partialorder %v2778_v34, 0.0  ;;  %v4007_v15 = vmul.f32 0.01, %v2778_v34  ;;  %3258 = vmatpush.msrb.mxu1 %v2396_v14 }
 0x4fa   :  { %v12375_v54 = vpop.f32.mrf.mxu3 }
 0x4fb   :  { %v12379_v62 = vsel %vm3899_vm6, %v2778_v34, %v4007_v15  ;;  %3057 = vmatmul.f32.vlgmr.msra.gmra.mxu2 %v19226_v18  ;;  %v2710_v34 = vadd.f32 %v12145_v47, %v11898_v46 }
 0x4fc   :  { %19267 = vst [vmem:[#allocation76_spill] sm:$0xff] %v12379_v62  ;;  %v8224_v50 = vpack.i.bf16 %v12377_v43, %v12379_v62  ;;  %v8214_v35 = vpack.i.bf16 %v12379_v62, %v12377_v43 }
 0x4fd   :  { %v12373_v19 = vpop.f32.mrf.mxu1 }
 0x4fe   :  { %v12382_v51 = vpop.f32.mrf.mxu0  ;;  %v2780_v41 = vpop.f32.mrf.mxu2  ;;  %8225 = vrot.lane.b32.xlu0 %v8224_v50, %s9097_s11  ;;  %8215 = vrot.lane.b32.xlu1 %v8214_v35, %s9095_s1  ;;  %v2713_v50 = vadd.f32 %v12170_v25, %v11933_v2 }
 0x4ff   :  { %2895 = vmatmul.f32.gmra.mxu3 %v11875_v63  ;;  %v2781_v37 = vadd.f32 %v2780_v41, %v2710_v34  ;;  %v2384_v34 = vld [vmem:[%s18260_s6 + $0x1c8] sm:$0xff] }
 0x500   :  { %3016 = vmatmul.f32.gmra.mxu1 %v12190_v8 }
 0x501   :  { %3214 = vmatmul.f32.gmra.mxu0 %v12079_v3  ;;  %v2390_v3 = vld [vmem:[%s18260_s6 + $0x1f8] sm:$0xff]  ;;  %v4013_v46 = vmul.f32 0.01, %v2781_v37  ;;  %vm3905_vm7 = vcmp.ge.f32.partialorder %v2781_v37, 0.0 }
 0x502   :  { %v12400_v15 = vpop.f32.mrf.mxu3  ;;  %3259 = vmatpush.msrb.mxu1 %v2390_v3 }
 0x503   :  { %3060 = vmatmul.f32.gmra.mxu2 %v19229_v20  ;;  %v12421_v62 = vsel %vm3905_vm7, %v2781_v37, %v4013_v46  ;;  %v2372_v37 = vld [vmem:[%s18260_s6 + $0x168] sm:$0xff]  ;;  %v2366_v46 = vld [vmem:[%s18260_s6 + $0x138] sm:$0xff] }
 0x504   :  { %19268 = vst [vmem:[#allocation77_spill] sm:$0xff] %v12421_v62  ;;  %3260 = vmatpush.msrb.mxu1 %v2384_v34 }
 0x505   :  { %v12398_v21 = vpop.f32.mrf.mxu1 }
 0x506   :  { %v12403_v14 = vpop.f32.mrf.mxu0  ;;  %v2783_v43 = vpop.f32.mrf.mxu2  ;;  %8220 = vrot.lane.b32.xlu1 %v8214_v35, %s9096_s10 }
 0x507   :  { %v2784_v47 = vadd.f32 %v2783_v43, %v2713_v50  ;;  %3128 = vmatmul.f32.vlgmr.msrb.gmra.mxu3 %v11783_v5  ;;  %v2378_v50 = vld [vmem:[%s18260_s6 + $0x198] sm:$0xff] }
 0x508   :  { %3019 = vmatmul.f32.gmra.mxu1 %v12206_v23 }
 0x509   :  { %3217 = vmatmul.f32.gmra.mxu0 %v12092_v53  ;;  %vm3911_vm8 = vcmp.ge.f32.partialorder %v2784_v47, 0.0  ;;  %v4019_v41 = vmul.f32 0.01, %v2784_v47  ;;  %3261 = vmatpush.msrb.mxu1 %v2378_v50  ;;  %v2360_v50 = vld [vmem:[%s18260_s6 + $0x108] sm:$0xff] }
 0x50a   :  { %v12416_v25 = vpop.f32.mrf.mxu3 }
 0x50b   :  { %v12423_v3 = vsel %vm3911_vm8, %v2784_v47, %v4019_v41  ;;  %3063 = vmatmul.f32.gmra.mxu2 %v19233_v10  ;;  %3262 = vmatpush.msrb.mxu1 %v2372_v37  ;;  %v2716_v47 = vadd.f32 %v12192_v1, %v11956_v38  ;;  %v2719_v38 = vadd.f32 %v12208_v31, %v11973_v11  ;;  %v2342_v11 = vld [vmem:[%s18260_s6 + $0x78] sm:$0xff] }
 0x50c   :  { %19269 = vst [vmem:[#allocation78_spill] sm:$0xff] %v12423_v3  ;;  %v8229_v35 = vpack.i.bf16 %v12423_v3, %v12421_v62 }
 0x50d   :  { %v12414_v2 = vpop.f32.mrf.mxu1  ;;  %3263 = vmatpush.msrb.mxu1 %v2366_v46 }
 0x50e   :  { %v12426_v43 = vpop.f32.mrf.mxu0  ;;  %v2786_v53 = vpop.f32.mrf.mxu2  ;;  %8230 = vrot.lane.b32.xlu2 %v8229_v35, %s9095_s1 }
 0x50f   :  { %3131 = vmatmul.f32.gmra.mxu3 %v11808_v48  ;;  %v2787_v48 = vadd.f32 %v2786_v53, %v2716_v47  ;;  %3264 = vmatpush.msrb.mxu1 %v2360_v50  ;;  %v2348_v53 = vld [vmem:[%s18260_s6 + $0xa8] sm:$0xff] }
 0x510   :  { %3022 = vmatmul.f32.gmra.mxu1 %v12228_v49  ;;  %v2336_v50 = vld [vmem:[%s18260_s6 + $0x48] sm:$0xff] }
 0x511   :  { %3220 = vmatmul.f32.gmra.mxu0 %v12116_v6  ;;  %v2354_v6 = vld [vmem:[%s18260_s6 + $0xd8] sm:$0xff]  ;;  %v4025_v46 = vmul.f32 0.01, %v2787_v48  ;;  %vm3917_vm9 = vcmp.ge.f32.partialorder %v2787_v48, 0.0 }
 0x512   :  { %v12447_v34 = vpop.f32.mrf.mxu3  ;;  %3265 = vmatpush.msrb.mxu1 %v2354_v6 }
 0x513   :  { %3066 = vmatmul.f32.gmra.mxu2 %v19237_v44 }
 0x514   :  { %3266 = vmatpush.msrb.mxu1 %v2348_v53 }
 0x515   :  { %v12445_v41 = vpop.f32.mrf.mxu1 }
 0x516   :  { %v12453_v37 = vpop.f32.mrf.mxu0  ;;  %v2789_v1 = vpop.f32.mrf.mxu2  ;;  %8235 = vrot.lane.b32.xlu2 %v8229_v35, %s9096_s10  ;;  %3267 = vmatpush.msrb.mxu1 %v2342_v11 }
 0x517   :  { %v2790_v47 = vadd.f32 %v2789_v1, %v2719_v38  ;;  %3134 = vmatmul.f32.gmra.mxu3 %v11825_v29  ;;  %v12477_v38 = vsel %vm3917_vm9, %v2787_v48, %v4025_v46  ;;  %v2330_v48 = vld [vmem:[%s18260_s6 + $0x18] sm:$0xff] }
 0x518   :  { %3025 = vmatmul.f32.gmra.mxu1 %v12259_v4  ;;  %19270 = vst [vmem:[#allocation79_spill] sm:$0xff] %v12477_v38 }
 0x519   :  { %3223 = vmatmul.f32.gmra.mxu0 %v12143_v22  ;;  %vm3923_vm10 = vcmp.ge.f32.partialorder %v2790_v47, 0.0  ;;  %v4031_v31 = vmul.f32 0.01, %v2790_v47  ;;  %v8239_v22 = vpack.i.bf16 %v12421_v62, %v12423_v3  ;;  %3268 = vmatpush.msrb.mxu1 %v2336_v50 }
 0x51a   :  { %v12472_v6 = vpop.f32.mrf.mxu3 }
 0x51b   :  { %v12479_v1 = vsel %vm3923_vm10, %v2790_v47, %v4031_v31  ;;  %3069 = vmatmul.f32.gmra.mxu2 %v11632_v61  ;;  %3269 = vmatpush.msrb.mxu1 %v2330_v48  ;;  %v2722_v47 = vadd.f32 %v12230_v32, %v11981_v39  ;;  %v2421_v32 = vld [vmem:[%s18260_s6 + $0x2f0] sm:$0xff] }
 0x51c   :  { %19271 = vst [vmem:[#allocation80_spill] sm:$0xff] %v12479_v1  ;;  %v8244_v29 = vpack.i.bf16 %v12479_v1, %v12477_v38  ;;  %v8254_v11 = vpack.i.bf16 %v12477_v38, %v12479_v1  ;;  %3467 = vmatpush.msrb.mxu0 %v2421_v32 }
 0x51d   :  { %v12470_v35 = vpop.f32.mrf.mxu1 }
 0x51e   :  { %v12482_v53 = vpop.f32.mrf.mxu0  ;;  %v2792_v46 = vpop.f32.mrf.mxu2  ;;  %8240 = vrot.lane.b32.xlu2 %v8239_v22, %s9097_s11  ;;  %8245 = vrot.lane.b32.xlu0 %v8244_v29, %s9095_s1 }
 0x51f   :  { %8255 = vrot.lane.b32.xlu1 %v8254_v11, %s9097_s11  ;;  %3137 = vmatmul.f32.gmra.mxu3 %v11841_v45  ;;  %v2793_v62 = vadd.f32 %v2792_v46, %v2722_v47  ;;  %v2725_v11 = vadd.f32 %v12261_v9, %v11995_v28 }
 0x520   :  { %3028 = vmatmul.f32.gmra.mxu1 %v12293_v17 }
 0x521   :  { %3226 = vmatmul.f32.gmra.mxu0 %v12168_v13  ;;  %v4037_v48 = vmul.f32 0.01, %v2793_v62  ;;  %vm3929_vm11 = vcmp.ge.f32.partialorder %v2793_v62, 0.0 }
 0x522   :  { %v12503_v50 = vpop.f32.mrf.mxu3 }
 0x523   :  { %3072 = vmatmul.f32.gmra.mxu2 %v11656_v59  ;;  %v12520_v46 = vsel %vm3929_vm11, %v2793_v62, %v4037_v48  ;;  %v2409_v62 = vld [vmem:[%s18260_s6 + $0x290] sm:$0xff]  ;;  %v2403_v48 = vld [vmem:[%s18260_s6 + $0x260] sm:$0xff] }
 0x524   :  { %19272 = vst [vmem:[#allocation81_spill] sm:$0xff] %v12520_v46 }
 0x525   :  { %v12501_v31 = vpop.f32.mrf.mxu1 }
 0x526   :  { %v12506_v22 = vpop.f32.mrf.mxu0  ;;  %v2795_v3 = vpop.f32.mrf.mxu2  ;;  %8250 = vrot.lane.b32.xlu0 %v8244_v29, %s9096_s10  ;;  %v2415_v29 = vld [vmem:[%s18260_s6 + $0x2c0] sm:$0xff] }
 0x527   :  { %v2796_v13 = vadd.f32 %v2795_v3, %v2725_v11  ;;  %3140 = vmatmul.f32.gmra.mxu3 %v11866_v27  ;;  %3468 = vmatpush.msrb.mxu0 %v2415_v29  ;;  %v2397_v29 = vld [vmem:[%s18260_s6 + $0x230] sm:$0xff] }
 0x528   :  { %3031 = vmatmul.f32.gmra.mxu1 %v12321_v58 }
 0x529   :  { %3229 = vmatmul.f32.gmra.mxu0 %v12190_v8  ;;  %vm3935_vm12 = vcmp.ge.f32.partialorder %v2796_v13, 0.0  ;;  %v4043_v39 = vmul.f32 0.01, %v2796_v13 }
 0x52a   :  { %v2863_v28 = vpop.f32.mrf.mxu3  ;;  %3469 = vmatpush.msrb.mxu0 %v2409_v62  ;;  %v2920_v62 = vadd.f32 %v12236_v36, %v12400_v15  ;;  %v2498_v36 = vld [vmem:[%s18260_s6 + $0x558] sm:$0xff]  ;;  %v2731_v15 = vadd.f32 %v12323_v30, %v12025_v52 }
 0x52b   :  { %v12522_v3 = vsel %vm3935_vm12, %v2796_v13, %v4043_v39  ;;  %v12525_v47 = vadd.f32 %v12363_v33, %v2863_v28  ;;  %3075 = vmatmul.f32.gmra.mxu2 %v11671_v7  ;;  %v2516_v13 = vld [vmem:[%s18260_s6 + $0x5e8] sm:$0xff]  ;;  %v2510_v39 = vld [vmem:[%s18260_s6 + $0x5b8] sm:$0xff]  ;;  %v2917_v28 = vadd.f32 %v12211_v55, %v12375_v54 }
 0x52c   :  { %19273 = vst [vmem:[#allocation82_spill] sm:$0xff] %v12522_v3  ;;  %v8269_v32 = vpack.i.bf16 %v12520_v46, %v12522_v3  ;;  %v8259_v8 = vpack.i.bf16 %v12522_v3, %v12520_v46  ;;  %3325 = vmatpush.msrb.mxu2 %v2516_v13  ;;  %3470 = vmatpush.msrb.mxu0 %v2403_v48  ;;  %v2504_v13 = vld [vmem:[%s18260_s6 + $0x588] sm:$0xff] }
 0x52d   :  { %v2987_v9 = vpop.f32.mrf.mxu1 }
 0x52e   :  { %v12528_v11 = vpop.f32.mrf.mxu0  ;;  %v2798_v33 = vpop.f32.mrf.mxu2  ;;  %8270 = vrot.lane.b32.xlu0 %v8269_v32, %s9097_s11  ;;  %8260 = vrot.lane.b32.xlu1 %v8259_v8, %s9095_s1  ;;  %v2728_v32 = vadd.f32 %v12295_v0, %v12009_v40  ;;  %v2385_v0 = vld [vmem:[%s18260_s6 + $0x1d0] sm:$0xff] }
 0x52f   :  { %3143 = vmatmul.f32.gmra.mxu3 %v11900_v12  ;;  %3326 = vmatpush.msrb.mxu2 %v2510_v39  ;;  %v2988_v12 = vadd.f32 %v2987_v9, %v2917_v28  ;;  %v2379_v28 = vld [vmem:[%s18260_s6 + $0x1a0] sm:$0xff] }
 0x530   :  { %3034 = vmatmul.f32.gmra.mxu1 %v12343_v57  ;;  %v2799_v27 = vadd.f32 %v2798_v33, %v2728_v32  ;;  %3471 = vmatpush.msrb.mxu0 %v2397_v29  ;;  %v2492_v33 = vld [vmem:[%s18260_s6 + $0x528] sm:$0xff] }
 0x531   :  { %3232 = vmatmul.f32.gmra.mxu0 %v12206_v23  ;;  %v2391_v23 = vld [vmem:[%s18260_s6 + $0x200] sm:$0xff]  ;;  %3327 = vmatpush.msrb.mxu2 %v2504_v13  ;;  %v4002_v48 = vmul.f32 0.01, %v2988_v12  ;;  %vm3894_vm14 = vcmp.ge.f32.partialorder %v2988_v12, 0.0 }
 0x532   :  { %v12563_v54 = vpop.f32.mrf.mxu3  ;;  %3472 = vmatpush.msrb.mxu0 %v2391_v23  ;;  %v4049_v52 = vmul.f32 0.01, %v2799_v27  ;;  %v2486_v23 = vld [vmem:[%s18260_s6 + $0x4f8] sm:$0xff]  ;;  %vm3941_vm15 = vcmp.ge.f32.partialorder %v2799_v27, 0.0 }
 0x533   :  { %3078 = vmatmul.f32.gmra.mxu2 %v11684_v26  ;;  %v12600_v13 = vsel %vm3894_vm14, %v2988_v12, %v4002_v48 }
 0x534   :  { %3328 = vmatpush.msrb.mxu2 %v2498_v36  ;;  %3473 = vmatpush.msrb.mxu0 %v2385_v0  ;;  %19275 = vst [vmem:[#allocation84_spill] sm:$0xff] %v12600_v13  ;;  %v2367_v0 = vld [vmem:[%s18260_s6 + $0x140] sm:$0xff] }
 0x535   :  { %v2990_v55 = vpop.f32.mrf.mxu1 }
 0x536   :  { %v2991_v45 = vadd.f32 %v2990_v55, %v2920_v62  ;;  %v12569_v40 = vpop.f32.mrf.mxu0  ;;  %v2801_v39 = vpop.f32.mrf.mxu2  ;;  %8265 = vrot.lane.b32.xlu1 %v8259_v8, %s9096_s10  ;;  %3329 = vmatpush.msrb.mxu2 %v2492_v33  ;;  %v2373_v8 = vld [vmem:[%s18260_s6 + $0x170] sm:$0xff]  ;;  %v2480_v62 = vld [vmem:[%s18260_s6 + $0x4c8] sm:$0xff] }
 0x537   :  { %v2802_v30 = vadd.f32 %v2801_v39, %v2731_v15  ;;  %3146 = vmatmul.f32.gmra.mxu3 %v11935_v60  ;;  %3474 = vmatpush.msrb.mxu0 %v2379_v28  ;;  %v12605_v15 = vsel %vm3941_vm15, %v2799_v27, %v4049_v52  ;;  %v2474_v27 = vld [vmem:[%s18260_s6 + $0x498] sm:$0xff]  ;;  %v2361_v39 = vld [vmem:[%s18260_s6 + $0x110] sm:$0xff]  ;;  %v2468_v28 = vld [vmem:[%s18260_s6 + $0x468] sm:$0xff] }
 0x538   :  { %v4008_v9 = vmul.f32 0.01, %v2991_v45  ;;  %3037 = vmatmul.f32.gmra.mxu1 %v12358_v56  ;;  %vm3900_vm13 = vcmp.ge.f32.partialorder %v2991_v45, 0.0  ;;  %3330 = vmatpush.msrb.mxu2 %v2486_v23  ;;  %19276 = vst [vmem:[#allocation85_spill] sm:$0xff] %v12605_v15  ;;  %v2355_v52 = vld [vmem:[%s18260_s6 + $0xe0] sm:$0xff]  ;;  %v19279_v23 = vld [vmem:[#allocation71_spill] sm:$0xff] }
 0x539   :  { %3235 = vmatmul.f32.gmra.mxu0 %v12228_v49  ;;  %vm3947_vm0 = vcmp.ge.f32.partialorder %v2802_v30, 0.0  ;;  %v4055_v32 = vmul.f32 0.01, %v2802_v30  ;;  %v19282_v60 = vld [vmem:[#allocation6_spill] sm:$0xff] }
 0x53a   :  { %v12595_v29 = vsel %vm3900_vm13, %v2991_v45, %v4008_v9  ;;  %v2869_v55 = vpop.f32.mrf.mxu3  ;;  %3475 = vmatpush.msrb.mxu0 %v2373_v8  ;;  %3331 = vmatpush.msrb.mxu2 %v2480_v62 }
 0x53b   :  { %19274 = vst [vmem:[#allocation83_spill] sm:$0xff] %v12595_v29  ;;  %v12607_v45 = vsel %vm3947_vm0, %v2802_v30, %v4055_v32  ;;  %v12610_v9 = vadd.f32 %v12403_v14, %v2869_v55  ;;  %3081 = vmatmul.f32.gmra.mxu2 %v11703_v24  ;;  %v8279_v48 = vpack.i.bf16 %v12595_v29, %v12600_v13  ;;  %v19278_v30 = vld [vmem:[#allocation42_spill] sm:$0xff]  ;;  %v19280_v32 = vld [vmem:[#allocation67_spill] sm:$0xff] }
 0x53c   :  { %19277 = vst [vmem:[#allocation86_spill] sm:$0xff] %v12607_v45  ;;  %v8274_v12 = vpack.i.bf16 %v12607_v45, %v12605_v15  ;;  %3476 = vmatpush.msrb.mxu0 %v2367_v0  ;;  %3332 = vmatpush.msrb.mxu2 %v2474_v27  ;;  %v2734_v8 = vadd.f32 %v19279_v23, %v19278_v30  ;;  %v2462_v55 = vld [vmem:[%s18260_s6 + $0x438] sm:$0xff]  ;;  %v19281_v0 = vld [vmem:[#allocation65_spill] sm:$0xff] }
 0x53d   :  { %v2993_v36 = vpop.f32.mrf.mxu1  ;;  %v2926_v62 = vadd.f32 %v19280_v32, %v12447_v34  ;;  %v2923_v27 = vadd.f32 %v19281_v0, %v12416_v25  ;;  %v2456_v25 = vld [vmem:[%s18260_s6 + $0x408] sm:$0xff]  ;;  %v19285_v32 = vld [vmem:[#allocation74_spill] sm:$0xff] }
 0x53e   :  { %v12613_v33 = vpop.f32.mrf.mxu0  ;;  %v2804_v14 = vpop.f32.mrf.mxu2  ;;  %8275 = vrot.lane.b32.xlu2 %v8274_v12, %s9095_s1  ;;  %8280 = vrot.lane.b32.xlu1 %v8279_v48, %s9095_s1 }
 0x53f   :  { %3149 = vmatmul.f32.gmra.mxu3 %v11958_v16  ;;  %3477 = vmatpush.msrb.mxu0 %v2361_v39  ;;  %v2349_v16 = vld [vmem:[%s18260_s6 + $0xb0] sm:$0xff]  ;;  %v2805_v30 = vadd.f32 %v2804_v14, %v2734_v8  ;;  %v2994_v39 = vadd.f32 %v2993_v36, %v2923_v27  ;;  %v2450_v36 = vld [vmem:[%s18260_s6 + $0x3d8] sm:$0xff] }
 0x540   :  { %3270 = vmatmul.f32.vlgmr.msrb.gmra.mxu1 %v19226_v18  ;;  %3333 = vmatpush.msrb.mxu2 %v2468_v28  ;;  %v19284_v28 = vld [vmem:[#allocation45_spill] sm:$0xff] }
 0x541   :  { %3238 = vmatmul.f32.gmra.mxu0 %v12259_v4  ;;  %v2737_v0 = vadd.f32 %v19285_v32, %v19284_v28  ;;  %vm3953_vm5 = vcmp.ge.f32.partialorder %v2805_v30, 0.0  ;;  %vm3906_vm6 = vcmp.ge.f32.partialorder %v2994_v39, 0.0  ;;  %v2331_v32 = vld [vmem:[%s18260_s6 + $0x20] sm:$0xff] }
 0x542   :  { %v12645_v4 = vpop.f32.mrf.mxu3  ;;  %3478 = vmatpush.msrb.mxu0 %v2355_v52  ;;  %3334 = vmatpush.msrb.mxu2 %v2462_v55  ;;  %v4061_v52 = vmul.f32 0.01, %v2805_v30  ;;  %v2444_v55 = vld [vmem:[%s18260_s6 + $0x3a8] sm:$0xff] }
 0x543   :  { %3084 = vmatmul.f32.gmra.mxu2 %v19282_v60 }
 0x544   :  { %3479 = vmatpush.msrb.mxu0 %v2349_v16  ;;  %3335 = vmatpush.msrb.mxu2 %v2456_v25  ;;  %v4014_v16 = vmul.f32 0.01, %v2994_v39 }
 0x545   :  { %v2996_v49 = vpop.f32.mrf.mxu1 }
 0x546   :  { %v2997_v23 = vadd.f32 %v2996_v49, %v2926_v62  ;;  %v12651_v34 = vpop.f32.mrf.mxu0  ;;  %v2807_v14 = vpop.f32.mrf.mxu2  ;;  %8285 = vrot.lane.b32.xlu2 %v8274_v12, %s9096_s10  ;;  %8290 = vrot.lane.b32.xlu1 %v8279_v48, %s9096_s10  ;;  %v2343_v49 = vld [vmem:[%s18260_s6 + $0x80] sm:$0xff]  ;;  %v19286_v62 = vld [vmem:[#allocation30_spill] sm:$0xff] }
 0x547   :  { %19283 = vst [vmem:[#allocation42_spill] sm:$0xff] %v12651_v34  ;;  %v2808_v8 = vadd.f32 %v2807_v14, %v2737_v0  ;;  %3152 = vmatmul.f32.gmra.mxu3 %v19286_v62  ;;  %v2337_v12 = vld [vmem:[%s18260_s6 + $0x50] sm:$0xff]  ;;  %3480 = vmatpush.msrb.mxu0 %v2343_v49  ;;  %v12682_v0 = vsel %vm3953_vm5, %v2805_v30, %v4061_v52  ;;  %v2438_v52 = vld [vmem:[%s18260_s6 + $0x378] sm:$0xff] }
 0x548   :  { %3273 = vmatmul.f32.gmra.mxu1 %v19229_v20  ;;  %v4020_v38 = vmul.f32 0.01, %v2997_v23  ;;  %vm3912_vm4 = vcmp.ge.f32.partialorder %v2997_v23, 0.0  ;;  %3336 = vmatpush.msrb.mxu2 %v2450_v36  ;;  %19288 = vst [vmem:[#allocation67_spill] sm:$0xff] %v12682_v0  ;;  %v12689_v36 = vsel %vm3906_vm6, %v2994_v39, %v4014_v16  ;;  %v19293_v39 = vld [vmem:[#allocation34_spill] sm:$0xff]  ;;  %v2432_v16 = vld [vmem:[%s18260_s6 + $0x348] sm:$0xff] }
 0x549   :  { %3241 = vmatmul.f32.gmra.mxu0 %v12293_v17  ;;  %vm3959_vm7 = vcmp.ge.f32.partialorder %v2808_v8, 0.0  ;;  %v4067_v48 = vmul.f32 0.01, %v2808_v8  ;;  %v19290_v17 = vld [vmem:[#allocation10_spill] sm:$0xff]  ;;  %19292 = vst [vmem:[#allocation74_spill] sm:$0xff] %v12689_v36 }
 0x54a   :  { %v12675_v27 = vsel %vm3912_vm4, %v2997_v23, %v4020_v38  ;;  %v12677_v25 = vpop.f32.mrf.mxu3  ;;  %3481 = vmatpush.msrb.mxu0 %v2337_v12  ;;  %v8294_v38 = vpack.i.bf16 %v12605_v15, %v12607_v45  ;;  %3337 = vmatpush.msrb.mxu2 %v2444_v55  ;;  %v19294_v12 = vld [vmem:[#allocation69_spill] sm:$0xff]  ;;  %v19295_v55 = vld [vmem:[#allocation48_spill] sm:$0xff] }
 0x54b   :  { %19287 = vst [vmem:[#allocation71_spill] sm:$0xff] %v12675_v27  ;;  %v12684_v14 = vsel %vm3959_vm7, %v2808_v8, %v4067_v48  ;;  %3087 = vmatmul.f32.gmra.mxu2 %v19290_v17  ;;  %v8329_v30 = vpack.i.bf16 %v12689_v36, %v12675_v27  ;;  %v2929_v48 = vadd.f32 %v19294_v12, %v12472_v6  ;;  %v2613_v6 = vld [vmem:[%s18260_s6 + $0x8f0] sm:$0xff] }
 0x54c   :  { %19289 = vst [vmem:[#allocation65_spill] sm:$0xff] %v12684_v14  ;;  %v8304_v23 = vpack.i.bf16 %v12684_v14, %v12682_v0  ;;  %3482 = vmatpush.msrb.mxu0 %v2331_v32  ;;  %3338 = vmatpush.msrb.mxu2 %v2438_v52  ;;  %v2740_v32 = vadd.f32 %v12373_v19, %v19295_v55 }
 0x54d   :  { %v2999_v28 = vpop.f32.mrf.mxu1 }
 0x54e   :  { %v12687_v49 = vpop.f32.mrf.mxu0  ;;  %v2810_v8 = vpop.f32.mrf.mxu2  ;;  %8295 = vrot.lane.b32.xlu2 %v8294_v38, %s9097_s11  ;;  %8305 = vrot.lane.b32.xlu0 %v8304_v23, %s9095_s1  ;;  %v19296_v38 = vld [vmem:[#allocation72_spill] sm:$0xff] }
 0x54f   :  { %19291 = vst [vmem:[#allocation45_spill] sm:$0xff] %v12687_v49  ;;  %8330 = vrot.lane.b32.xlu1 %v8329_v30, %s9097_s11  ;;  %3155 = vmatmul.f32.gmra.mxu3 %v19293_v39  ;;  %v2932_v62 = vadd.f32 %v19296_v38, %v12503_v50  ;;  %v2426_v30 = vld [vmem:[%s18260_s6 + $0x318] sm:$0xff]  ;;  %v3000_v39 = vadd.f32 %v2999_v28, %v2929_v48  ;;  %v2612_v50 = vld [vmem:[%s18260_s6 + $0x8e8] sm:$0xff] }
 0x550   :  { %3276 = vmatmul.f32.gmra.mxu1 %v19233_v10  ;;  %3339 = vmatpush.msrb.mxu2 %v2432_v16  ;;  %v2811_v52 = vadd.f32 %v2810_v8, %v2740_v32  ;;  %v8299_v28 = vpack.i.bf16 %v12600_v13, %v12595_v29  ;;  %v2607_v16 = vld [vmem:[%s18260_s6 + $0x8c0] sm:$0xff]  ;;  %v19298_v48 = vld [vmem:[#allocation51_spill] sm:$0xff]  ;;  %v2601_v32 = vld [vmem:[%s18260_s6 + $0x890] sm:$0xff] }
 0x551   :  { %3244 = vmatmul.f32.gmra.mxu0 %v12321_v58  ;;  %v19297_v58 = vld [vmem:[#allocation8_spill] sm:$0xff]  ;;  %3396 = vmatpush.msra.mxu3 %v2612_v50  ;;  %v4026_v8 = vmul.f32 0.01, %v3000_v39  ;;  %vm3918_vm9 = vcmp.ge.f32.partialorder %v3000_v39, 0.0 }
 0x552   :  { %v12718_v34 = vpop.f32.mrf.mxu3  ;;  %3340 = vmatpush.msrb.mxu2 %v2426_v30  ;;  %v4073_v38 = vmul.f32 0.01, %v2811_v52  ;;  %v19299_v50 = vld [vmem:[#allocation36_spill] sm:$0xff]  ;;  %vm3965_vm10 = vcmp.ge.f32.partialorder %v2811_v52, 0.0 }
 0x553   :  { %3090 = vmatmul.f32.gmra.mxu2 %v19297_v58 }
 0x554   :  { %3609 = vmatpush.msra.mxu2 %v2613_v6 }
 0x555   :  { %v3002_v49 = vpop.f32.mrf.mxu1 }
 0x556   :  { %v3003_v12 = vadd.f32 %v3002_v49, %v2932_v62  ;;  %v12724_v19 = vpop.f32.mrf.mxu0  ;;  %v2743_v62 = vadd.f32 %v12398_v21, %v19298_v48  ;;  %v2813_v55 = vpop.f32.mrf.mxu2  ;;  %8315 = vrot.lane.b32.xlu0 %v8304_v23, %s9096_s10  ;;  %8300 = vrot.lane.b32.xlu2 %v8299_v28, %s9097_s11  ;;  %v2595_v23 = vld [vmem:[%s18260_s6 + $0x860] sm:$0xff]  ;;  %v12749_v28 = vsel %vm3918_vm9, %v3000_v39, %v4026_v8 }
 0x557   :  { %3158 = vmatmul.f32.gmra.mxu3 %v19299_v50  ;;  %3610 = vmatpush.msra.mxu2 %v2607_v16  ;;  %19301 = vst [vmem:[#allocation48_spill] sm:$0xff] %v12749_v28  ;;  %v2606_v16 = vld [vmem:[%s18260_s6 + $0x8b8] sm:$0xff]  ;;  %v8309_v8 = vpack.i.bf16 %v12675_v27, %v12689_v36  ;;  %v2559_v50 = vld [vmem:[%s18260_s6 + $0x740] sm:$0xff] }
 0x558   :  { %v4032_v49 = vmul.f32 0.01, %v3003_v12  ;;  %3279 = vmatmul.f32.gmra.mxu1 %v19237_v44  ;;  %vm3924_vm8 = vcmp.ge.f32.partialorder %v3003_v12, 0.0  ;;  %v2814_v30 = vadd.f32 %v2813_v55, %v2743_v62  ;;  %v12756_v62 = vsel %vm3965_vm10, %v2811_v52, %v4073_v38  ;;  %v19304_v55 = vld [vmem:[#allocation14_spill] sm:$0xff]  ;;  %3397 = vmatpush.msra.mxu3 %v2606_v16  ;;  %v2588_v16 = vld [vmem:[%s18260_s6 + $0x828] sm:$0xff]  ;;  %v2582_v27 = vld [vmem:[%s18260_s6 + $0x7f8] sm:$0xff] }
 0x559   :  { %3247 = vmatmul.f32.gmra.mxu0 %v12343_v57  ;;  %3611 = vmatpush.msra.mxu2 %v2601_v32  ;;  %19302 = vst [vmem:[#allocation72_spill] sm:$0xff] %v12756_v62  ;;  %v2589_v38 = vld [vmem:[%s18260_s6 + $0x830] sm:$0xff] }
 0x55a   :  { %v12744_v21 = vsel %vm3924_vm8, %v3003_v12, %v4032_v49  ;;  %vm3971_vm11 = vcmp.ge.f32.partialorder %v2814_v30, 0.0  ;;  %v4079_v6 = vmul.f32 0.01, %v2814_v30  ;;  %v2881_v48 = vpop.f32.mrf.mxu3  ;;  %v19306_v57 = vld [vmem:[#allocation18_spill] sm:$0xff] }
 0x55b   :  { %19300 = vst [vmem:[#allocation69_spill] sm:$0xff] %v12744_v21  ;;  %v12761_v49 = vadd.f32 %v12506_v22, %v2881_v48  ;;  %3093 = vmatmul.f32.gmra.mxu2 %v19304_v55  ;;  %v8339_v39 = vpack.i.bf16 %v12744_v21, %v12749_v28  ;;  %v2600_v22 = vld [vmem:[%s18260_s6 + $0x888] sm:$0xff]  ;;  %v2583_v48 = vld [vmem:[%s18260_s6 + $0x800] sm:$0xff] }
 0x55c   :  { %v12758_v12 = vsel %vm3971_vm11, %v2814_v30, %v4079_v6  ;;  %3612 = vmatpush.msra.mxu2 %v2595_v23  ;;  %3398 = vmatpush.msra.mxu3 %v2600_v22  ;;  %v2594_v6 = vld [vmem:[%s18260_s6 + $0x858] sm:$0xff]  ;;  %v19305_v23 = vld [vmem:[#allocation38_spill] sm:$0xff] }
 0x55d   :  { %v12751_v13 = vpop.f32.mrf.mxu1  ;;  %19303 = vst [vmem:[#allocation51_spill] sm:$0xff] %v12758_v12  ;;  %v8334_v52 = vpack.i.bf16 %v12758_v12, %v12756_v62  ;;  %v2577_v22 = vld [vmem:[%s18260_s6 + $0x7d0] sm:$0xff] }
 0x55e   :  { %v12764_v32 = vpop.f32.mrf.mxu0  ;;  %v2816_v30 = vpop.f32.mrf.mxu2  ;;  %8340 = vrot.lane.b32.xlu0 %v8339_v39, %s9095_s1  ;;  %8310 = vrot.lane.b32.xlu2 %v8309_v8, %s9095_s1 }
 0x55f   :  { %8335 = vrot.lane.b32.xlu1 %v8334_v52, %s9095_s1  ;;  %3161 = vmatmul.f32.gmra.mxu3 %v19305_v23  ;;  %v19307_v23 = vld [vmem:[#allocation57_spill] sm:$0xff] }
 0x560   :  { %3282 = vmatmul.f32.gmra.mxu1 %v11632_v61  ;;  %3613 = vmatpush.msra.mxu2 %v2589_v38 }
 0x561   :  { %3250 = vmatmul.f32.gmra.mxu0 %v12358_v56  ;;  %3399 = vmatpush.msra.mxu3 %v2594_v6  ;;  %v2571_v6 = vld [vmem:[%s18260_s6 + $0x7a0] sm:$0xff] }
 0x562   :  { %v12796_v29 = vpop.f32.mrf.mxu3  ;;  %3614 = vmatpush.msra.mxu2 %v2583_v48  ;;  %v2576_v48 = vld [vmem:[%s18260_s6 + $0x7c8] sm:$0xff] }
 0x563   :  { %3096 = vmatmul.f32.gmra.mxu2 %v19306_v57  ;;  %3400 = vmatpush.msra.mxu3 %v2588_v16  ;;  %v2749_v16 = vadd.f32 %v12445_v41, %v19307_v23  ;;  %v2517_v41 = vld [vmem:[%s18260_s6 + $0x5f0] sm:$0xff] }
 0x564   :  { %3615 = vmatpush.msra.mxu2 %v2577_v22  ;;  %v19308_v22 = vld [vmem:[#allocation40_spill] sm:$0xff]  ;;  %3538 = vmatpush.msra.mxu1 %v2517_v41 }
 0x565   :  { %v3008_v36 = vpop.f32.mrf.mxu1  ;;  %3401 = vmatpush.msra.mxu3 %v2582_v27  ;;  %v2565_v27 = vld [vmem:[%s18260_s6 + $0x770] sm:$0xff] }
 0x566   :  { %v12802_v38 = vpop.f32.mrf.mxu0  ;;  %v2819_v56 = vpop.f32.mrf.mxu2  ;;  %8350 = vrot.lane.b32.xlu0 %v8339_v39, %s9096_s10  ;;  %8320 = vrot.lane.b32.xlu2 %v8309_v8, %s9096_s10  ;;  %v2938_v39 = vadd.f32 %v12382_v51, %v12563_v54  ;;  %v2570_v8 = vld [vmem:[%s18260_s6 + $0x798] sm:$0xff] }
 0x567   :  { %8345 = vrot.lane.b32.xlu1 %v8334_v52, %s9096_s10  ;;  %3164 = vmatmul.f32.gmra.mxu3 %v19308_v22  ;;  %v19309_v52 = vld [vmem:[#allocation54_spill] sm:$0xff]  ;;  %v2820_v22 = vadd.f32 %v2819_v56, %v2749_v16  ;;  %v19310_v56 = vld [vmem:[#allocation15_spill] sm:$0xff]  ;;  %v8324_v16 = vpack.i.bf16 %v12682_v0, %v12684_v14 }
 0x568   :  { %3285 = vmatmul.f32.gmra.mxu1 %v11656_v59  ;;  %3616 = vmatpush.msra.mxu2 %v2571_v6  ;;  %v2746_v23 = vadd.f32 %v12414_v2, %v19309_v52  ;;  %v3009_v51 = vadd.f32 %v3008_v36, %v2938_v39  ;;  %v3006_v36 = vadd.f32 %v12751_v13, %v12525_v47  ;;  %v2558_v13 = vld [vmem:[%s18260_s6 + $0x738] sm:$0xff]  ;;  %v2552_v52 = vld [vmem:[%s18260_s6 + $0x708] sm:$0xff] }
 0x569   :  { %3483 = vmatmul.f32.vlgmr.msrb.gmra.mxu0 %v19226_v18  ;;  %3402 = vmatpush.msra.mxu3 %v2576_v48  ;;  %v2564_v18 = vld [vmem:[%s18260_s6 + $0x768] sm:$0xff]  ;;  %v8359_v48 = vpack.i.bf16 %v12749_v28, %v12744_v21  ;;  %vm3983_vm12 = vcmp.ge.f32.partialorder %v2820_v22, 0.0  ;;  %v2546_v21 = vld [vmem:[%s18260_s6 + $0x6d8] sm:$0xff] }
 0x56a   :  { %v2887_v54 = vpop.f32.mrf.mxu3  ;;  %3617 = vmatpush.msra.mxu2 %v2565_v27  ;;  %v2817_v57 = vadd.f32 %v2816_v30, %v2746_v23  ;;  %v4091_v27 = vmul.f32 0.01, %v2820_v22  ;;  %v2553_v30 = vld [vmem:[%s18260_s6 + $0x710] sm:$0xff]  ;;  %v4044_v39 = vmul.f32 0.01, %v3009_v51  ;;  %vm3936_vm13 = vcmp.ge.f32.partialorder %v3009_v51, 0.0 }
 0x56b   :  { %v12840_v1 = vadd.f32 %v12569_v40, %v2887_v54  ;;  %3099 = vmatmul.f32.gmra.mxu2 %v19310_v56  ;;  %3403 = vmatpush.msra.mxu3 %v2570_v8  ;;  %v8354_v40 = vpack.i.bf16 %v12756_v62, %v12758_v12  ;;  %v19311_v8 = vld [vmem:[#allocation43_spill] sm:$0xff]  ;;  %v4038_v41 = vmul.f32 0.01, %v3006_v36  ;;  %vm3930_vm15 = vcmp.ge.f32.partialorder %v3006_v36, 0.0 }
 0x56c   :  { %3618 = vmatpush.msra.mxu2 %v2559_v50  ;;  %v4085_v50 = vmul.f32 0.01, %v2817_v57  ;;  %vm3977_vm14 = vcmp.ge.f32.partialorder %v2817_v57, 0.0  ;;  %v19312_v23 = vld [vmem:[#allocation59_spill] sm:$0xff] }
 0x56d   :  { %v12834_v6 = vpop.f32.mrf.mxu1  ;;  %3404 = vmatpush.msra.mxu3 %v2564_v18  ;;  %v2547_v18 = vld [vmem:[%s18260_s6 + $0x6e0] sm:$0xff]  ;;  %v2752_v54 = vadd.f32 %v12470_v35, %v19312_v23 }
 0x56e   :  { %v12843_v2 = vpop.f32.mrf.mxu0  ;;  %v2822_v47 = vpop.f32.mrf.mxu2  ;;  %8360 = vrot.lane.b32.xlu0 %v8359_v48, %s9097_s11  ;;  %8325 = vrot.lane.b32.xlu2 %v8324_v16, %s9097_s11  ;;  %v12874_v48 = vsel %vm3983_vm12, %v2820_v22, %v4091_v27  ;;  %v2541_v16 = vld [vmem:[%s18260_s6 + $0x6b0] sm:$0xff]  ;;  %v2511_v35 = vld [vmem:[%s18260_s6 + $0x5c0] sm:$0xff]  ;;  %v12887_v22 = vsel %vm3977_vm14, %v2817_v57, %v4085_v50  ;;  %v19318_v57 = vld [vmem:[#allocation61_spill] sm:$0xff] }
 0x56f   :  { %8355 = vrot.lane.b32.xlu1 %v8354_v40, %s9097_s11  ;;  %3167 = vmatmul.f32.gmra.mxu3 %v19311_v8  ;;  %19313 = vst [vmem:[#allocation57_spill] sm:$0xff] %v12874_v48  ;;  %v12879_v40 = vsel %vm3936_vm13, %v3009_v51, %v4044_v39  ;;  %v2823_v27 = vadd.f32 %v2822_v47, %v2752_v54  ;;  %v2540_v50 = vld [vmem:[%s18260_s6 + $0x6a8] sm:$0xff]  ;;  %v2529_v54 = vld [vmem:[%s18260_s6 + $0x650] sm:$0xff] }
 0x570   :  { %3288 = vmatmul.f32.gmra.mxu1 %v11671_v7  ;;  %3619 = vmatpush.msra.mxu2 %v2553_v30  ;;  %19314 = vst [vmem:[#allocation54_spill] sm:$0xff] %v12879_v40  ;;  %v12896_v39 = vsel %vm3930_vm15, %v3006_v36, %v4038_v41  ;;  %v2535_v36 = vld [vmem:[%s18260_s6 + $0x680] sm:$0xff] }
 0x571   :  { %3486 = vmatmul.f32.gmra.mxu0 %v19229_v20  ;;  %3405 = vmatpush.msra.mxu3 %v2558_v13  ;;  %19315 = vst [vmem:[#allocation43_spill] sm:$0xff] %v12887_v22  ;;  %v19316_v13 = vld [vmem:[#allocation5_spill] sm:$0xff]  ;;  %v8364_v20 = vpack.i.bf16 %v12874_v48, %v12887_v22  ;;  %vm3989_vm0 = vcmp.ge.f32.partialorder %v2823_v27, 0.0 }
 0x572   :  { %v2890_v28 = vpop.f32.mrf.mxu3  ;;  %3620 = vmatpush.msra.mxu2 %v2547_v18  ;;  %19317 = vst [vmem:[#allocation59_spill] sm:$0xff] %v12896_v39  ;;  %v8384_v18 = vpack.i.bf16 %v12887_v22, %v12874_v48  ;;  %3539 = vmatpush.msra.mxu1 %v2511_v35 }
 0x573   :  { %v12890_v23 = vadd.f32 %v12613_v33, %v2890_v28  ;;  %3102 = vmatmul.f32.gmra.mxu2 %v19316_v13  ;;  %3406 = vmatpush.msra.mxu3 %v2552_v52  ;;  %v2755_v33 = vadd.f32 %v12501_v31, %v19318_v57  ;;  %v8369_v28 = vpack.i.bf16 %v12879_v40, %v12896_v39  ;;  %v4097_v31 = vmul.f32 0.01, %v2823_v27  ;;  %v19319_v52 = vld [vmem:[#allocation46_spill] sm:$0xff] }
 0x574   :  { %3621 = vmatpush.msra.mxu2 %v2541_v16  ;;  %v2534_v16 = vld [vmem:[%s18260_s6 + $0x678] sm:$0xff] }
 0x575   :  { %v3014_v30 = vpop.f32.mrf.mxu1  ;;  %3407 = vmatpush.msra.mxu3 %v2546_v21  ;;  %v2944_v21 = vadd.f32 %v12426_v43, %v12645_v4  ;;  %v2528_v4 = vld [vmem:[%s18260_s6 + $0x648] sm:$0xff]  ;;  %v12934_v43 = vsel %vm3989_vm0, %v2823_v27, %v4097_v31  ;;  %v2522_v27 = vld [vmem:[%s18260_s6 + $0x618] sm:$0xff] }
 0x576   :  { %v12893_v51 = vpop.f32.mrf.mxu0  ;;  %v2825_v47 = vpop.f32.mrf.mxu2  ;;  %8385 = vrot.lane.b32.xlu0 %v8384_v18, %s9097_s11  ;;  %8365 = vrot.lane.b32.xlu2 %v8364_v20, %s9095_s1  ;;  %v2523_v18 = vld [vmem:[%s18260_s6 + $0x620] sm:$0xff]  ;;  %19320 = vst [vmem:[#allocation61_spill] sm:$0xff] %v12934_v43 }
 0x577   :  { %v2826_v41 = vadd.f32 %v2825_v47, %v2755_v33  ;;  %8370 = vrot.lane.b32.xlu1 %v8369_v28, %s9095_s1  ;;  %3170 = vmatmul.f32.gmra.mxu3 %v19319_v52  ;;  %v3015_v57 = vadd.f32 %v3014_v30, %v2944_v21  ;;  %v3012_v30 = vadd.f32 %v12834_v6, %v12610_v9  ;;  %v19322_v9 = vld [vmem:[#allocation49_spill] sm:$0xff] }
 0x578   :  { %3291 = vmatmul.f32.gmra.mxu1 %v11684_v26  ;;  %3622 = vmatpush.msra.mxu2 %v2535_v36  ;;  %v2950_v21 = vadd.f32 %v12482_v53, %v12718_v34 }
 0x579   :  { %3489 = vmatmul.f32.gmra.mxu0 %v19233_v10  ;;  %vm3995_vm4 = vcmp.ge.f32.partialorder %v2826_v41, 0.0  ;;  %v4103_v35 = vmul.f32 0.01, %v2826_v41  ;;  %3408 = vmatpush.msra.mxu3 %v2540_v50  ;;  %v12939_v10 = vpop.permute.xlu2 %8230  ;;  %v4056_v31 = vmul.f32 0.01, %v3015_v57  ;;  %vm3948_vm5 = vcmp.ge.f32.partialorder %v3015_v57, 0.0 }
 0x57a   :  { %v12929_v33 = vpop.f32.mrf.mxu3  ;;  %3623 = vmatpush.msra.mxu2 %v2529_v54  ;;  %v4050_v6 = vmul.f32 0.01, %v3012_v30  ;;  %vm3942_vm6 = vcmp.ge.f32.partialorder %v3012_v30, 0.0 }
 0x57b   :  { %v12936_v36 = vsel %vm3995_vm4, %v2826_v41, %v4103_v35  ;;  %3105 = vmatmul.f32.gmra.mxu2 %v11847_v42  ;;  %3409 = vmatpush.msra.mxu3 %v2534_v16  ;;  %v2505_v16 = vld [vmem:[%s18260_s6 + $0x590] sm:$0xff]  ;;  %v12963_v35 = vsel %vm3948_vm5, %v3015_v57, %v4056_v31 }
 0x57c   :  { %19321 = vst [vmem:[#allocation46_spill] sm:$0xff] %v12936_v36  ;;  %v8394_v54 = vpack.i.bf16 %v12936_v36, %v12934_v43  ;;  %3624 = vmatpush.msra.mxu2 %v2523_v18  ;;  %3540 = vmatpush.msra.mxu1 %v2505_v16 }
 0x57d   :  { %v3017_v47 = vpop.f32.mrf.mxu1  ;;  %3410 = vmatpush.msra.mxu3 %v2528_v4  ;;  %19323 = vst [vmem:[#allocation49_spill] sm:$0xff] %v12963_v35 }
 0x57e   :  { %v12943_v50 = vpop.f32.mrf.mxu0  ;;  %v3058_v41 = vpop.f32.mrf.mxu2  ;;  %8375 = vrot.lane.b32.xlu2 %v8364_v20, %s9096_s10  ;;  %8395 = vrot.lane.b32.xlu0 %v8394_v54, %s9095_s1  ;;  %v2947_v20 = vadd.f32 %v12453_v37, %v12677_v25 }
 0x57f   :  { %8380 = vrot.lane.b32.xlu1 %v8369_v28, %s9096_s10  ;;  %3173 = vmatmul.f32.gmra.mxu3 %v19322_v9 }
 0x580   :  { %3294 = vmatmul.f32.gmra.mxu1 %v11703_v24  ;;  %3411 = vmatpush.msra.mxu3 %v2522_v27  ;;  %v12968_v27 = vsel %vm3942_vm6, %v3012_v30, %v4050_v6  ;;  %v3018_v53 = vadd.f32 %v3017_v47, %v2947_v20  ;;  %v12981_v30 = vpop.permute.xlu1 %8215  ;;  %v19327_v47 = vld [vmem:[#allocation52_spill] sm:$0xff] }
 0x581   :  { %3492 = vmatmul.f32.gmra.mxu0 %v19237_v44  ;;  %19324 = vst [vmem:[#allocation87_spill] sm:$0xff] %v12968_v27  ;;  %v8389_v44 = vpack.i.bf16 %v12896_v39, %v12879_v40  ;;  %v8419_v37 = vpack.i.bf16 %v12968_v27, %v12963_v35  ;;  %v12977_v25 = vpop.permute.xlu2 %8235 }
 0x582   :  { %v12965_v28 = vpop.f32.mrf.mxu3  ;;  %19325 = vst [vmem:[#allocation88_spill] sm:$0xff] %v12977_v25  ;;  %v4062_v6 = vmul.f32 0.01, %v3018_v53  ;;  %vm3954_vm8 = vcmp.ge.f32.partialorder %v3018_v53, 0.0 }
 0x583   :  { %3108 = vmatmul.f32.gmra.mxu2 %v11875_v63  ;;  %19326 = vst [vmem:[#allocation89_spill] sm:$0xff] %v12981_v30 }
 0x584   :  { %v12994_v20 = vsel %vm3954_vm8, %v3018_v53, %v4062_v6 }
 0x585   :  { %v3020_v18 = vpop.f32.mrf.mxu1  ;;  %19329 = vst [vmem:[#allocation90_spill] sm:$0xff] %v12994_v20 }
 0x586   :  { %v3021_v4 = vadd.f32 %v3020_v18, %v2950_v21  ;;  %v12970_v34 = vpop.f32.mrf.mxu0  ;;  %v3061_v31 = vpop.f32.mrf.mxu2  ;;  %8390 = vrot.lane.b32.xlu2 %v8389_v44, %s9097_s11  ;;  %8405 = vrot.lane.b32.xlu0 %v8394_v54, %s9096_s10  ;;  %v2499_v21 = vld [vmem:[%s18260_s6 + $0x560] sm:$0xff] }
 0x587   :  { %8420 = vrot.lane.b32.xlu1 %v8419_v37, %s9097_s11  ;;  %3176 = vmatmul.f32.gmra.mxu3 %v19327_v47  ;;  %v8399_v37 = vpack.i.bf16 %v12963_v35, %v12968_v27  ;;  %v19333_v35 = vld [vmem:[#allocation27_spill] sm:$0xff] }
 0x588   :  { %3297 = vmatmul.f32.gmra.mxu1 %v19282_v60  ;;  %v4068_v57 = vmul.f32 0.01, %v3021_v4  ;;  %vm3960_vm7 = vcmp.ge.f32.partialorder %v3021_v4, 0.0 }
 0x589   :  { %3495 = vmatmul.f32.gmra.mxu0 %v11632_v61  ;;  %3541 = vmatpush.msra.mxu1 %v2499_v21  ;;  %v13010_v6 = vpop.permute.xlu2 %8240  ;;  %v13014_v21 = vpop.permute.xlu1 %8220 }
 0x58a   :  { %v12989_v16 = vsel %vm3960_vm7, %v3021_v4, %v4068_v57  ;;  %v3129_v54 = vpop.f32.mrf.mxu3  ;;  %19330 = vst [vmem:[#allocation91_spill] sm:$0xff] %v13010_v6  ;;  %v2398_v6 = vld [vmem:[%s18260_s6 + $0x238] sm:$0xff] }
 0x58b   :  { %19328 = vst [vmem:[#allocation52_spill] sm:$0xff] %v12989_v16  ;;  %3341 = vmatmul.f32.vlgmr.msrb.gmra.mxu2 %v11783_v5  ;;  %v3130_v39 = vadd.f32 %v3129_v54, %v3058_v41  ;;  %v8434_v4 = vpack.i.bf16 %v12994_v20, %v12989_v16  ;;  %v8424_v57 = vpack.i.bf16 %v12989_v16, %v12994_v20  ;;  %v19331_v41 = vld [vmem:[#allocation55_spill] sm:$0xff] }
 0x58c   :  { %6544 = vmatpush.msrb.mxu2 %v12874_v48  ;;  %19332 = vst [vmem:[#allocation55_spill] sm:$0xff] %v13014_v21 }
 0x58d   :  { %v12991_v44 = vpop.f32.mrf.mxu1  ;;  %v3201_v54 = vadd.f32 %v12724_v19, %v3130_v39 }
 0x58e   :  { %v12997_v18 = vpop.f32.mrf.mxu0  ;;  %6545 = vmatpush.msrb.mxu2 %v12887_v22  ;;  %v3064_v53 = vpop.f32.mrf.mxu2  ;;  %8400 = vrot.lane.b32.xlu2 %v8399_v37, %s9095_s1  ;;  %v2493_v22 = vld [vmem:[%s18260_s6 + $0x530] sm:$0xff] }
 0x58f   :  { %8435 = vrot.lane.b32.xlu1 %v8434_v4, %s9097_s11  ;;  %8425 = vrot.lane.b32.xlu0 %v8424_v57, %s9095_s1  ;;  %v4003_v16 = vmul.f32 0.01, %v3201_v54  ;;  %vm3895_vm9 = vcmp.ge.f32.partialorder %v3201_v54, 0.0 }
 0x590   :  { %3300 = vmatmul.f32.gmra.mxu1 %v19290_v17  ;;  %3179 = vmatmul.f32.gmra.mxu3 %v19331_v41 }
 0x591   :  { %3498 = vmatmul.f32.gmra.mxu0 %v11656_v59  ;;  %6546 = vmatpush.msrb.mxu2 %v12758_v12 }
 0x592   :  { %v3132_v4 = vpop.f32.mrf.mxu3  ;;  %3542 = vmatpush.msra.mxu1 %v2493_v22  ;;  %v2422_v22 = vld [vmem:[%s18260_s6 + $0x2f8] sm:$0xff] }
 0x593   :  { %6547 = vmatpush.msrb.mxu2 %v12756_v62  ;;  %v3133_v27 = vadd.f32 %v3132_v4, %v3061_v31  ;;  %v13043_v4 = vsel %vm3895_vm9, %v3201_v54, %v4003_v16  ;;  %3680 = vmatpush.msrb.mxu3 %v2422_v22  ;;  %v13061_v16 = vpop.permute.xlu0 %8225  ;;  %v3024_v54 = vadd.f32 %v12991_v44, %v12761_v49  ;;  %v2481_v49 = vld [vmem:[%s18260_s6 + $0x4d0] sm:$0xff] }
 0x594   :  { %3344 = vmatmul.f32.gmra.mxu2 %v19333_v35  ;;  %19336 = vst [vmem:[#allocation92_spill] sm:$0xff] %v13043_v4  ;;  %v8414_v22 = vpack.i.bf16 %v12934_v43, %v12936_v36 }
 0x595   :  { %v3026_v48 = vpop.f32.mrf.mxu1  ;;  %v3204_v40 = vadd.f32 %v12764_v32, %v3133_v27  ;;  %6548 = vmatpush.msrb.mxu2 %v12684_v14  ;;  %v2956_v32 = vadd.f32 %v12528_v11, %v12796_v29  ;;  %v19334_v27 = vld [vmem:[#allocation35_spill] sm:$0xff]  ;;  %v13045_v14 = vpop.permute.xlu1 %8255  ;;  %v2487_v11 = vld [vmem:[%s18260_s6 + $0x500] sm:$0xff]  ;;  %19339 = vst [vmem:[#allocation95_spill] sm:$0xff] %v13061_v16  ;;  %v4074_v44 = vmul.f32 0.01, %v3024_v54  ;;  %vm3966_vm12 = vcmp.ge.f32.partialorder %v3024_v54, 0.0 }
 0x596   :  { %v13023_v20 = vpop.f32.mrf.mxu0  ;;  %v3067_v19 = vpop.f32.mrf.mxu2  ;;  %8410 = vrot.lane.b32.xlu2 %v8399_v37, %s9096_s10  ;;  %v2416_v37 = vld [vmem:[%s18260_s6 + $0x2c8] sm:$0xff]  ;;  %19337 = vst [vmem:[#allocation93_spill] sm:$0xff] %v13045_v14  ;;  %3543 = vmatpush.msra.mxu1 %v2487_v11 }
 0x597   :  { %vm3901_vm10 = vcmp.ge.f32.partialorder %v3204_v40, 0.0  ;;  %v4009_v39 = vmul.f32 0.01, %v3204_v40  ;;  %6549 = vmatpush.msrb.mxu2 %v12682_v0  ;;  %8430 = vrot.lane.b32.xlu0 %v8424_v57, %s9096_s10  ;;  %v3027_v29 = vadd.f32 %v3026_v48, %v2956_v32  ;;  %v19340_v48 = vld [vmem:[#allocation12_spill] sm:$0xff] }
 0x598   :  { %3303 = vmatmul.f32.gmra.mxu1 %v19297_v58  ;;  %3412 = vmatmul.f32.vlgmr.msra.gmra.mxu3 %v19334_v27  ;;  %v13038_v31 = vpop.permute.xlu2 %8275 }
 0x599   :  { %3501 = vmatmul.f32.gmra.mxu0 %v11671_v7  ;;  %19335 = vst [vmem:[#allocation27_spill] sm:$0xff] %v13038_v31  ;;  %v13047_v0 = vsel %vm3901_vm10, %v3204_v40, %v4009_v39  ;;  %6550 = vmatpush.msrb.mxu2 %v12607_v45  ;;  %v2410_v40 = vld [vmem:[%s18260_s6 + $0x298] sm:$0xff]  ;;  %v4080_v11 = vmul.f32 0.01, %v3027_v29  ;;  %vm3972_vm11 = vcmp.ge.f32.partialorder %v3027_v29, 0.0 }
 0x59a   :  { %19338 = vst [vmem:[#allocation94_spill] sm:$0xff] %v13047_v0  ;;  %v3135_v62 = vpop.f32.mrf.mxu3  ;;  %v8439_v12 = vpack.i.bf16 %v13047_v0, %v13043_v4  ;;  %3681 = vmatpush.msrb.mxu3 %v2416_v37  ;;  %v8449_v37 = vpack.i.bf16 %v13043_v4, %v13047_v0  ;;  %3544 = vmatpush.msra.mxu1 %v2481_v49  ;;  %v19358_v0 = vld [vmem:[#allocation75_spill] sm:$0xff] }
 0x59b   :  { %6551 = vmatpush.msrb.mxu2 %v12605_v15  ;;  %v3136_v39 = vadd.f32 %v3135_v62, %v3064_v53  ;;  %v2404_v62 = vld [vmem:[%s18260_s6 + $0x268] sm:$0xff] }
 0x59c   :  { %3347 = vmatmul.f32.gmra.mxu2 %v19340_v48  ;;  %8440 = vrot.lane.b32.xlu1 %v8439_v12, %s9095_s1  ;;  %v19341_v53 = vld [vmem:[#allocation37_spill] sm:$0xff] }
 0x59d   :  { %v13053_v57 = vpop.f32.mrf.mxu1  ;;  %6552 = vmatpush.msrb.mxu2 %v12522_v3  ;;  %3682 = vmatpush.msrb.mxu3 %v2410_v40  ;;  %v2475_v40 = vld [vmem:[%s18260_s6 + $0x4a0] sm:$0xff]  ;;  %v3207_v45 = vadd.f32 %v12802_v38, %v3136_v39  ;;  %v13097_v3 = vsel %vm3972_vm11, %v3027_v29, %v4080_v11  ;;  %v2469_v38 = vld [vmem:[%s18260_s6 + $0x470] sm:$0xff]  ;;  %v13108_v39 = vsel %vm3966_vm12, %v3024_v54, %v4074_v44  ;;  %v13110_v29 = vpop.permute.xlu0 %8245  ;;  %v19348_v11 = vld [vmem:[#allocation17_spill] sm:$0xff] }
 0x59e   :  { %v13070_v32 = vpop.f32.mrf.mxu0  ;;  %v13075_v15 = vpop.f32.mrf.mxu2  ;;  %8415 = vrot.lane.b32.xlu2 %v8414_v22, %s9097_s11  ;;  %19344 = vst [vmem:[#allocation96_spill] sm:$0xff] %v13097_v3  ;;  %3545 = vmatpush.msra.mxu1 %v2475_v40  ;;  %v19350_v40 = vld [vmem:[#allocation18_spill] sm:$0xff] }
 0x59f   :  { %6553 = vmatpush.msrb.mxu2 %v12520_v46  ;;  %8450 = vrot.lane.b32.xlu0 %v8449_v37, %s9097_s11  ;;  %v19343_v46 = vld [vmem:[#allocation80_spill] sm:$0xff]  ;;  %19346 = vst [vmem:[#allocation97_spill] sm:$0xff] %v13108_v39  ;;  %v4015_v49 = vmul.f32 0.01, %v3207_v45  ;;  %vm3907_vm13 = vcmp.ge.f32.partialorder %v3207_v45, 0.0 }
 0x5a0   :  { %3306 = vmatmul.f32.gmra.mxu1 %v19304_v55  ;;  %3415 = vmatmul.f32.gmra.mxu3 %v19341_v53  ;;  %v13088_v22 = vpop.permute.xlu2 %8285  ;;  %v13095_v37 = vpop.permute.xlu1 %8260  ;;  %19347 = vst [vmem:[#allocation98_spill] sm:$0xff] %v13110_v29 }
 0x5a1   :  { %3504 = vmatmul.f32.gmra.mxu0 %v11684_v26  ;;  %19342 = vst [vmem:[#allocation12_spill] sm:$0xff] %v13088_v22  ;;  %6554 = vmatpush.msrb.mxu2 %v19343_v46  ;;  %v19345_v26 = vld [vmem:[#allocation79_spill] sm:$0xff]  ;;  %v13136_v46 = vsel %vm3907_vm13, %v3207_v45, %v4015_v49  ;;  %v2457_v45 = vld [vmem:[%s18260_s6 + $0x410] sm:$0xff]  ;;  %v2380_v49 = vld [vmem:[%s18260_s6 + $0x1a8] sm:$0xff] }
 0x5a2   :  { %v3138_v59 = vpop.f32.mrf.mxu3  ;;  %3683 = vmatpush.msrb.mxu3 %v2404_v62  ;;  %3546 = vmatpush.msra.mxu1 %v2469_v38  ;;  %v2386_v38 = vld [vmem:[%s18260_s6 + $0x1d8] sm:$0xff]  ;;  %19354 = vst [vmem:[#allocation99_spill] sm:$0xff] %v13136_v46 }
 0x5a3   :  { %6555 = vmatpush.msrb.mxu2 %v19345_v26  ;;  %v3139_v61 = vadd.f32 %v3138_v59, %v3067_v19  ;;  %v19349_v19 = vld [vmem:[#allocation78_spill] sm:$0xff]  ;;  %v8464_v26 = vpack.i.bf16 %v13108_v39, %v13097_v3 }
 0x5a4   :  { %3350 = vmatmul.f32.gmra.mxu2 %v19348_v11  ;;  %8445 = vrot.lane.b32.xlu1 %v8439_v12, %s9096_s10  ;;  %v2392_v12 = vld [vmem:[%s18260_s6 + $0x208] sm:$0xff] }
 0x5a5   :  { %v13099_v7 = vpop.f32.mrf.mxu1  ;;  %v3210_v59 = vadd.f32 %v12843_v2, %v3139_v61  ;;  %6556 = vmatpush.msrb.mxu2 %v19349_v19  ;;  %3684 = vmatpush.msrb.mxu3 %v2398_v6  ;;  %v19351_v61 = vld [vmem:[#allocation77_spill] sm:$0xff]  ;;  %v2463_v2 = vld [vmem:[%s18260_s6 + $0x440] sm:$0xff]  ;;  %v19352_v19 = vld [vmem:[#allocation39_spill] sm:$0xff] }
 0x5a6   :  { %v13116_v62 = vpop.f32.mrf.mxu0  ;;  %v3073_v54 = vpop.f32.mrf.mxu2  ;;  %3547 = vmatpush.msra.mxu1 %v2463_v2 }
 0x5a7   :  { %vm3913_vm14 = vcmp.ge.f32.partialorder %v3210_v59, 0.0  ;;  %v4021_v44 = vmul.f32 0.01, %v3210_v59  ;;  %6557 = vmatpush.msrb.mxu2 %v19351_v61  ;;  %8465 = vrot.lane.b32.xlu0 %v8464_v26, %s9097_s11  ;;  %v19356_v61 = vld [vmem:[#allocation76_spill] sm:$0xff]  ;;  %v13163_v2 = vpop.permute.xlu0 %8250 }
 0x5a8   :  { %3309 = vmatmul.f32.gmra.mxu1 %v19350_v40  ;;  %3418 = vmatmul.f32.gmra.mxu3 %v19352_v19  ;;  %v13131_v6 = vpop.permute.xlu2 %8295  ;;  %v8454_v19 = vpack.i.bf16 %v13097_v3, %v13108_v39  ;;  %v13147_v4 = vpop.permute.xlu1 %8265  ;;  %v2451_v39 = vld [vmem:[%s18260_s6 + $0x3e0] sm:$0xff] }
 0x5a9   :  { %3507 = vmatmul.f32.gmra.mxu0 %v11703_v24  ;;  %19353 = vst [vmem:[#allocation17_spill] sm:$0xff] %v13131_v6  ;;  %v13138_v14 = vsel %vm3913_vm14, %v3210_v59, %v4021_v44  ;;  %6558 = vmatpush.msrb.mxu2 %v19356_v61  ;;  %v19359_v59 = vld [vmem:[#allocation29_spill] sm:$0xff] }
 0x5aa   :  { %19355 = vst [vmem:[#allocation100_spill] sm:$0xff] %v13138_v14  ;;  %3685 = vmatpush.msrb.mxu3 %v2392_v12  ;;  %v3141_v21 = vpop.f32.mrf.mxu3  ;;  %v8469_v24 = vpack.i.bf16 %v13138_v14, %v13136_v46  ;;  %3548 = vmatpush.msra.mxu1 %v2457_v45  ;;  %v2368_v45 = vld [vmem:[%s18260_s6 + $0x148] sm:$0xff] }
 0x5ab   :  { %19357 = vst [vmem:[#allocation101_spill] sm:$0xff] %v13147_v4  ;;  %6559 = vmatpush.msrb.mxu2 %v19358_v0  ;;  %v3142_v12 = vadd.f32 %v3141_v21, %v13075_v15  ;;  %v2374_v15 = vld [vmem:[%s18260_s6 + $0x178] sm:$0xff]  ;;  %v19361_v21 = vld [vmem:[#allocation41_spill] sm:$0xff]  ;;  %v2445_v0 = vld [vmem:[%s18260_s6 + $0x3b0] sm:$0xff] }
 0x5ac   :  { %3686 = vmatpush.msrb.mxu3 %v2386_v38  ;;  %3353 = vmatmul.f32.gmra.mxu2 %v19359_v59  ;;  %19360 = vst [vmem:[#allocation29_spill] sm:$0xff] %v13163_v2  ;;  %v2439_v4 = vld [vmem:[%s18260_s6 + $0x380] sm:$0xff] }
 0x5ad   :  { %v13141_v26 = vpop.f32.mrf.mxu1  ;;  %8455 = vrot.lane.b32.xlu1 %v8454_v19, %s9095_s1  ;;  %8470 = vrot.lane.b32.xlu2 %v8469_v24, %s9095_s1  ;;  %v3213_v61 = vadd.f32 %v12893_v51, %v3142_v12  ;;  %v2362_v51 = vld [vmem:[%s18260_s6 + $0x118] sm:$0xff] }
 0x5ae   :  { %v13159_v44 = vpop.f32.mrf.mxu0  ;;  %v13165_v38 = vpop.f32.mrf.mxu2  ;;  %3687 = vmatpush.msrb.mxu3 %v2380_v49  ;;  %v18535_v49 = vunpack.i.l.bf16 %v13061_v16  ;;  %3549 = vmatpush.msra.mxu1 %v2451_v39 }
 0x5af   :  { %vm3919_vm15 = vcmp.ge.f32.partialorder %v3213_v61, 0.0 }
 0x5b0   :  { %3312 = vmatmul.f32.gmra.mxu1 %v19310_v56  ;;  %3421 = vmatmul.f32.gmra.mxu3 %v19361_v21  ;;  %v13175_v3 = vpop.permute.xlu2 %8300  ;;  %v13214_v27 = vpop.permute.xlu1 %8280 }
 0x5b1   :  { %3510 = vmatmul.f32.gmra.mxu0 %v19282_v60  ;;  %v18538_v25 = vunpack.i.h.bf16 %v13175_v3  ;;  %v18536_v21 = vunpack.i.l.bf16 %v13175_v3  ;;  %3688 = vmatpush.msrb.mxu3 %v2374_v15  ;;  %v18537_v60 = vunpack.i.h.bf16 %v13061_v16  ;;  %v19364_v15 = vld [vmem:[#allocation19_spill] sm:$0xff] }
 0x5b2   :  { %v3144_v53 = vpop.f32.mrf.mxu3  ;;  %3550 = vmatpush.msra.mxu1 %v2445_v0 }
 0x5b3   :  { %v3145_v2 = vadd.f32 %v3144_v53, %v3073_v54  ;;  %3689 = vmatpush.msrb.mxu3 %v2368_v45  ;;  %v13200_v12 = vsel %vm870_vm3, %v18535_v49, %v18536_v21  ;;  %v13210_v0 = vsel %vm870_vm3, %v18537_v60, %v18538_v25  ;;  %v19366_v53 = vld [vmem:[#allocation45_spill] sm:$0xff]  ;;  %v4027_v45 = vmul.f32 0.01, %v3213_v61  ;;  %v13231_v25 = vpop.permute.xlu0 %8270 }
 0x5b4   :  { %19363 = vst [vmem:[#allocation21_spill] sm:$0xff] %v13200_v12  ;;  %3356 = vmatmul.f32.gmra.mxu2 %v19364_v15  ;;  %v2968_v54 = vadd.f32 %v19366_v53, %v12965_v28  ;;  %3551 = vmatpush.msra.mxu1 %v2439_v4  ;;  %v2433_v28 = vld [vmem:[%s18260_s6 + $0x350] sm:$0xff]  ;;  %v2356_v53 = vld [vmem:[%s18260_s6 + $0xe8] sm:$0xff]  ;;  %v3033_v4 = vadd.f32 %v13099_v7, %v12890_v23  ;;  %v2427_v12 = vld [vmem:[%s18260_s6 + $0x320] sm:$0xff] }
 0x5b5   :  { %v3038_v6 = vpop.f32.mrf.mxu1  ;;  %8460 = vrot.lane.b32.xlu1 %v8454_v19, %s9096_s10  ;;  %19365 = vst [vmem:[#allocation19_spill] sm:$0xff] %v13210_v0  ;;  %v3216_v49 = vadd.f32 %v12943_v50, %v3145_v2  ;;  %8475 = vrot.lane.b32.xlu2 %v8469_v24, %s9096_s10  ;;  %v19368_v50 = vld [vmem:[#allocation42_spill] sm:$0xff]  ;;  %v2518_v23 = vld [vmem:[%s18260_s6 + $0x5f8] sm:$0xff] }
 0x5b6   :  { %19367 = vst [vmem:[#allocation45_spill] sm:$0xff] %v13214_v27  ;;  %v13217_v21 = vpop.f32.mrf.mxu0  ;;  %v13221_v19 = vpop.f32.mrf.mxu2  ;;  %3690 = vmatpush.msrb.mxu3 %v2362_v51  ;;  %v2965_v2 = vadd.f32 %v19368_v50, %v12929_v33  ;;  %v3039_v60 = vadd.f32 %v3038_v6, %v2968_v54  ;;  %v19369_v51 = vld [vmem:[#allocation44_spill] sm:$0xff]  ;;  %v2350_v33 = vld [vmem:[%s18260_s6 + $0xb8] sm:$0xff]  ;;  %v13247_v54 = vsel %vm3919_vm15, %v3213_v61, %v4027_v45  ;;  %vm3984_vm5 = vcmp.ge.f32.partialorder %v3033_v4, 0.0 }
 0x5b7   :  { %vm3925_vm0 = vcmp.ge.f32.partialorder %v3216_v49, 0.0  ;;  %v4033_v24 = vmul.f32 0.01, %v3216_v49  ;;  %19371 = vst [vmem:[#allocation102_spill] sm:$0xff] %v13247_v54  ;;  %3552 = vmatpush.msra.mxu1 %v2433_v28  ;;  %v3030_v50 = vadd.f32 %v13053_v57, %v12840_v1  ;;  %3751 = vmatpush.msra.mxu0 %v2518_v23  ;;  %v8479_v45 = vpack.i.bf16 %v13136_v46, %v13138_v14  ;;  %v2344_v1 = vld [vmem:[%s18260_s6 + $0x88] sm:$0xff]  ;;  %v19373_v28 = vld [vmem:[#allocation4_spill] sm:$0xff] }
 0x5b8   :  { %3315 = vmatmul.f32.gmra.mxu1 %v19316_v13  ;;  %3424 = vmatmul.f32.gmra.mxu3 %v19369_v51  ;;  %v13237_v0 = vpop.permute.xlu2 %8310  ;;  %v3036_v6 = vadd.f32 %v13141_v26, %v2965_v2  ;;  %v4092_v57 = vmul.f32 0.01, %v3033_v4  ;;  %vm3996_vm4 = vcmp.ge.f32.partialorder %v3039_v60, 0.0  ;;  %v19377_v27 = vld [vmem:[#allocation47_spill] sm:$0xff]  ;;  %v2332_v46 = vld [vmem:[%s18260_s6 + $0x28] sm:$0xff] }
 0x5b9   :  { %3513 = vmatmul.f32.gmra.mxu0 %v19290_v17  ;;  %19370 = vst [vmem:[#allocation42_spill] sm:$0xff] %v13237_v0  ;;  %v13249_v7 = vsel %vm3925_vm0, %v3216_v49, %v4033_v24  ;;  %3691 = vmatpush.msrb.mxu3 %v2356_v53  ;;  %v4104_v49 = vmul.f32 0.01, %v3039_v60  ;;  %v2512_v53 = vld [vmem:[%s18260_s6 + $0x5c8] sm:$0xff]  ;;  %vm3978_vm7 = vcmp.ge.f32.partialorder %v3030_v50, 0.0 }
 0x5ba   :  { %19372 = vst [vmem:[#allocation103_spill] sm:$0xff] %v13249_v7  ;;  %v3147_v17 = vpop.f32.mrf.mxu3  ;;  %v8509_v26 = vpack.i.bf16 %v13247_v54, %v13249_v7  ;;  %v8499_v61 = vpack.i.bf16 %v13249_v7, %v13247_v54  ;;  %3553 = vmatpush.msra.mxu1 %v2427_v12  ;;  %v4098_v2 = vmul.f32 0.01, %v3036_v6  ;;  %vm3990_vm6 = vcmp.ge.f32.partialorder %v3036_v6, 0.0  ;;  %3752 = vmatpush.msra.mxu0 %v2512_v53 }
 0x5bb   :  { %3692 = vmatpush.msrb.mxu3 %v2350_v33  ;;  %v3148_v24 = vadd.f32 %v3147_v17, %v13165_v38  ;;  %v4086_v33 = vmul.f32 0.01, %v3030_v50  ;;  %v2506_v17 = vld [vmem:[%s18260_s6 + $0x598] sm:$0xff]  ;;  %v13285_v38 = vsel %vm3996_vm4, %v3039_v60, %v4104_v49  ;;  %v13290_v16 = vsel %vm3984_vm5, %v3033_v4, %v4092_v57  ;;  %v2500_v60 = vld [vmem:[%s18260_s6 + $0x568] sm:$0xff] }
 0x5bc   :  { %3359 = vmatmul.f32.gmra.mxu2 %v19373_v28  ;;  %8500 = vrot.lane.b32.xlu0 %v8499_v61, %s9095_s1  ;;  %19374 = vst [vmem:[#allocation4_spill] sm:$0xff] %v13285_v38  ;;  %v13305_v49 = vsel %vm3990_vm6, %v3036_v6, %v4098_v2  ;;  %v19382_v6 = vld [vmem:[#allocation31_spill] sm:$0xff] }
 0x5bd   :  { %v13256_v51 = vpop.f32.mrf.mxu1  ;;  %8510 = vrot.lane.b32.xlu1 %v8509_v26, %s9097_s11  ;;  %8480 = vrot.lane.b32.xlu2 %v8479_v45, %s9097_s11  ;;  %v2338_v26 = vld [vmem:[%s18260_s6 + $0x58] sm:$0xff]  ;;  %v13287_v45 = vpop.permute.xlu1 %8290  ;;  %19376 = vst [vmem:[#allocation105_spill] sm:$0xff] %v13290_v16  ;;  %v3219_v4 = vadd.f32 %v12970_v34, %v3148_v24  ;;  %v13308_v57 = vsel %vm3978_vm7, %v3030_v50, %v4086_v33  ;;  %v19383_v33 = vld [vmem:[#allocation50_spill] sm:$0xff] }
 0x5be   :  { %v13273_v12 = vpop.f32.mrf.mxu0  ;;  %v3082_v23 = vpop.f32.mrf.mxu2  ;;  %3693 = vmatpush.msrb.mxu3 %v2344_v1  ;;  %19375 = vst [vmem:[#allocation104_spill] sm:$0xff] %v13287_v45  ;;  %3753 = vmatpush.msra.mxu0 %v2506_v17  ;;  %v2494_v34 = vld [vmem:[%s18260_s6 + $0x538] sm:$0xff] }
 0x5bf   :  { %19379 = vst [vmem:[#allocation107_spill] sm:$0xff] %v13305_v49  ;;  %v4039_v50 = vmul.f32 0.01, %v3219_v4  ;;  %vm3931_vm8 = vcmp.ge.f32.partialorder %v3219_v4, 0.0 }
 0x5c0   :  { %3318 = vmatmul.f32.gmra.mxu1 %v11847_v42  ;;  %3427 = vmatmul.f32.gmra.mxu3 %v19377_v27  ;;  %v13294_v1 = vpop.permute.xlu0 %8305  ;;  %v13296_v0 = vpop.permute.xlu2 %8320  ;;  %19380 = vst [vmem:[#allocation108_spill] sm:$0xff] %v13308_v57  ;;  %v8484_v27 = vpack.i.bf16 %v13290_v16, %v13308_v57 }
 0x5c1   :  { %3516 = vmatmul.f32.gmra.mxu0 %v19297_v58  ;;  %19378 = vst [vmem:[#allocation106_spill] sm:$0xff] %v13296_v0  ;;  %3694 = vmatpush.msrb.mxu3 %v2338_v26  ;;  %v8524_v0 = vpack.i.bf16 %v13305_v49, %v13285_v38  ;;  %v13340_v26 = vsel %vm3931_vm8, %v3219_v4, %v4039_v50  ;;  %v2476_v4 = vld [vmem:[%s18260_s6 + $0x4a8] sm:$0xff]  ;;  %v19389_v50 = vld [vmem:[#allocation30_spill] sm:$0xff]  ;;  %v18571_v7 = vunpack.i.h.bf16 %v13294_v1 }
 0x5c2   :  { %v3150_v53 = vpop.f32.mrf.mxu3  ;;  %3754 = vmatpush.msra.mxu0 %v2500_v60  ;;  %19385 = vst [vmem:[#allocation110_spill] sm:$0xff] %v13340_v26 }
 0x5c3   :  { %v3151_v58 = vadd.f32 %v3150_v53, %v13221_v19  ;;  %3695 = vmatpush.msrb.mxu3 %v2332_v46  ;;  %v2488_v19 = vld [vmem:[%s18260_s6 + $0x508] sm:$0xff] }
 0x5c4   :  { %3362 = vmatmul.f32.gmra.mxu2 %v19382_v6  ;;  %8505 = vrot.lane.b32.xlu0 %v8499_v61, %s9096_s10  ;;  %v2482_v61 = vld [vmem:[%s18260_s6 + $0x4d8] sm:$0xff] }
 0x5c5   :  { %v13310_v45 = vpop.f32.mrf.mxu1  ;;  %8525 = vrot.lane.b32.xlu1 %v8524_v0, %s9097_s11  ;;  %v3222_v2 = vadd.f32 %v12997_v18, %v3151_v58  ;;  %8485 = vrot.lane.b32.xlu2 %v8484_v27, %s9095_s1  ;;  %v13342_v17 = vpop.permute.xlu1 %8330 }
 0x5c6   :  { %19381 = vst [vmem:[#allocation109_spill] sm:$0xff] %v13310_v45  ;;  %v13323_v24 = vpop.f32.mrf.mxu0  ;;  %v3085_v46 = vpop.f32.mrf.mxu2  ;;  %3755 = vmatpush.msra.mxu0 %v2494_v34  ;;  %v8494_v45 = vpack.i.bf16 %v13308_v57, %v13290_v16 }
 0x5c7   :  { %vm3937_vm9 = vcmp.ge.f32.partialorder %v3222_v2, 0.0  ;;  %v4045_v0 = vmul.f32 0.01, %v3222_v2  ;;  %19386 = vst [vmem:[#allocation111_spill] sm:$0xff] %v13342_v17 }
 0x5c8   :  { %3321 = vmatmul.f32.gmra.mxu1 %v11875_v63  ;;  %3430 = vmatmul.f32.gmra.mxu3 %v19383_v33  ;;  %v13333_v58 = vpop.permute.xlu0 %8315  ;;  %v13335_v18 = vpop.permute.xlu2 %8325  ;;  %v8514_v33 = vpack.i.bf16 %v13285_v38, %v13305_v49  ;;  %v2470_v49 = vld [vmem:[%s18260_s6 + $0x478] sm:$0xff]  ;;  %v2608_v38 = vld [vmem:[%s18260_s6 + $0x8c8] sm:$0xff] }
 0x5c9   :  { %3519 = vmatmul.f32.gmra.mxu0 %v19304_v55  ;;  %19384 = vst [vmem:[#allocation31_spill] sm:$0xff] %v13333_v58  ;;  %v13344_v60 = vsel %vm3937_vm9, %v3222_v2, %v4045_v0  ;;  %v2614_v2 = vld [vmem:[%s18260_s6 + $0x8f8] sm:$0xff] }
 0x5ca   :  { %19387 = vst [vmem:[#allocation112_spill] sm:$0xff] %v13344_v60  ;;  %3756 = vmatpush.msra.mxu0 %v2488_v19  ;;  %v3153_v53 = vpop.f32.mrf.mxu3  ;;  %v8529_v55 = vpack.i.bf16 %v13344_v60, %v13340_v26  ;;  %3822 = vmatpush.msrb.mxu1 %v2614_v2 }
 0x5cb   :  { %v3154_v19 = vadd.f32 %v3153_v53, %v3082_v23  ;;  %v19390_v23 = vld [vmem:[#allocation53_spill] sm:$0xff] }
 0x5cc   :  { %3757 = vmatpush.msra.mxu0 %v2482_v61  ;;  %3365 = vmatmul.f32.gmra.mxu2 %v19389_v50 }
 0x5cd   :  { %v13346_v34 = vpop.f32.mrf.mxu1  ;;  %8530 = vrot.lane.b32.xlu1 %v8529_v55, %s9095_s1  ;;  %8490 = vrot.lane.b32.xlu2 %v8484_v27, %s9096_s10  ;;  %v3225_v14 = vadd.f32 %v13023_v20, %v3154_v19  ;;  %v19394_v20 = vld [vmem:[#allocation34_spill] sm:$0xff] }
 0x5ce   :  { %19388 = vst [vmem:[#allocation113_spill] sm:$0xff] %v13346_v34  ;;  %v13360_v0 = vpop.f32.mrf.mxu0  ;;  %8515 = vrot.lane.b32.xlu0 %v8514_v33, %s9095_s1  ;;  %v13365_v61 = vpop.f32.mrf.mxu2  ;;  %3758 = vmatpush.msra.mxu0 %v2476_v4  ;;  %v2464_v4 = vld [vmem:[%s18260_s6 + $0x448] sm:$0xff]  ;;  %v2602_v34 = vld [vmem:[%s18260_s6 + $0x898] sm:$0xff] }
 0x5cf   :  { %3823 = vmatpush.msrb.mxu1 %v2608_v38  ;;  %v19395_v38 = vld [vmem:[#allocation22_spill] sm:$0xff]  ;;  %v4051_v19 = vmul.f32 0.01, %v3225_v14  ;;  %vm3943_vm10 = vcmp.ge.f32.partialorder %v3225_v14, 0.0 }
 0x5d0   :  { %3554 = vmatmul.f32.vlgmr.msra.gmra.mxu1 %v11783_v5  ;;  %3433 = vmatmul.f32.gmra.mxu3 %v19390_v23  ;;  %v13375_v27 = vpop.permute.xlu0 %8340  ;;  %v13377_v53 = vpop.permute.xlu2 %8365 }
 0x5d1   :  { %3522 = vmatmul.f32.gmra.mxu0 %v19350_v40  ;;  %19391 = vst [vmem:[#allocation30_spill] sm:$0xff] %v13375_v27  ;;  %v13386_v54 = vpop.permute.xlu1 %8335  ;;  %3824 = vmatpush.msrb.mxu1 %v2602_v34 }
 0x5d2   :  { %19392 = vst [vmem:[#allocation114_spill] sm:$0xff] %v13377_v53  ;;  %3759 = vmatpush.msra.mxu0 %v2470_v49  ;;  %v18563_v2 = vunpack.i.h.bf16 %v13386_v54  ;;  %v18564_v40 = vunpack.i.l.bf16 %v13386_v54  ;;  %v3156_v23 = vpop.f32.mrf.mxu3 }
 0x5d3   :  { %v3157_v27 = vadd.f32 %v3156_v23, %v3085_v46  ;;  %v2458_v46 = vld [vmem:[%s18260_s6 + $0x418] sm:$0xff] }
 0x5d4   :  { %3760 = vmatpush.msra.mxu0 %v2464_v4  ;;  %3368 = vmatmul.f32.gmra.mxu2 %v19394_v20  ;;  %v4680_v49 = vsel %vm544_vm1, %v19395_v38, %v18563_v2  ;;  %v19396_v2 = vld [vmem:[#allocation56_spill] sm:$0xff] }
 0x5d5   :  { %v13390_v53 = vpop.f32.mrf.mxu1  ;;  %8535 = vrot.lane.b32.xlu1 %v8529_v55, %s9096_s10  ;;  %v3228_v23 = vadd.f32 %v13070_v32, %v3157_v27  ;;  %6573 = vmatpush.msra.mxu3 %v4680_v49  ;;  %v4679_v32 = vsel %vm544_vm1, %v19395_v38, %v18564_v40  ;;  %v2452_v27 = vld [vmem:[%s18260_s6 + $0x3e8] sm:$0xff]  ;;  %v13441_v49 = vsel %vm3943_vm10, %v3225_v14, %v4051_v19 }
 0x5d6   :  { %19393 = vst [vmem:[#allocation115_spill] sm:$0xff] %v13390_v53  ;;  %v13406_v34 = vpop.f32.mrf.mxu0  ;;  %8495 = vrot.lane.b32.xlu2 %v8494_v45, %s9097_s11  ;;  %8520 = vrot.lane.b32.xlu0 %v8514_v33, %s9096_s10  ;;  %v13412_v4 = vpop.f32.mrf.mxu2  ;;  %v2596_v33 = vld [vmem:[%s18260_s6 + $0x868] sm:$0xff] }
 0x5d7   :  { %vm3949_vm11 = vcmp.ge.f32.partialorder %v3228_v23, 0.0  ;;  %v4057_v45 = vmul.f32 0.01, %v3228_v23  ;;  %6574 = vmatpush.msra.mxu3 %v4679_v32  ;;  %3761 = vmatpush.msra.mxu0 %v2458_v46  ;;  %v4678_v46 = vsel %vm544_vm1, %v19395_v38, %v18571_v7  ;;  %v2446_v32 = vld [vmem:[%s18260_s6 + $0x3b8] sm:$0xff]  ;;  %19399 = vst [vmem:[#allocation117_spill] sm:$0xff] %v13441_v49  ;;  %v19403_v7 = vunpack.i.l.bf16 %v13294_v1 }
 0x5d8   :  { %3557 = vmatmul.f32.gmra.mxu1 %v19333_v35  ;;  %3436 = vmatmul.f32.gmra.mxu3 %v19396_v2  ;;  %v13428_v55 = vpop.permute.xlu0 %8350  ;;  %v13430_v40 = vpop.permute.xlu2 %8375 }
 0x5d9   :  { %3525 = vmatmul.f32.gmra.mxu0 %v19310_v56  ;;  %19397 = vst [vmem:[#allocation34_spill] sm:$0xff] %v13428_v55  ;;  %v13443_v57 = vsel %vm3949_vm11, %v3228_v23, %v4057_v45  ;;  %v13445_v16 = vpop.permute.xlu1 %8345  ;;  %6575 = vmatpush.msra.mxu3 %v4678_v46  ;;  %v18573_v55 = vunpack.i.l.bf16 %v13038_v31  ;;  %v19404_v23 = vld [vmem:[#allocation36_spill] sm:$0xff] }
 0x5da   :  { %19398 = vst [vmem:[#allocation116_spill] sm:$0xff] %v13430_v40  ;;  %3762 = vmatpush.msra.mxu0 %v2452_v27  ;;  %v3159_v56 = vpop.f32.mrf.mxu3  ;;  %v4677_v40 = vsel %vm544_vm1, %v19395_v38, %v19403_v7  ;;  %v8549_v14 = vpack.i.bf16 %v13443_v57, %v13441_v49  ;;  %3825 = vmatpush.msrb.mxu1 %v2596_v33  ;;  %v19405_v27 = vunpack.i.h.bf16 %v13038_v31 }
 0x5db   :  { %19400 = vst [vmem:[#allocation118_spill] sm:$0xff] %v13443_v57  ;;  %6576 = vmatpush.msra.mxu3 %v4677_v40  ;;  %v8539_v7 = vpack.i.bf16 %v13340_v26, %v13344_v60  ;;  %v2440_v40 = vld [vmem:[%s18260_s6 + $0x388] sm:$0xff]  ;;  %v3160_v33 = vadd.f32 %v3159_v56, %v13365_v61  ;;  %v4675_v19 = vsel %vm544_vm1, %v19395_v38, %v18573_v55  ;;  %v2590_v56 = vld [vmem:[%s18260_s6 + $0x838] sm:$0xff]  ;;  %v19409_v55 = vunpack.i.h.bf16 %v13095_v37 }
 0x5dc   :  { %19401 = vst [vmem:[#allocation119_spill] sm:$0xff] %v13445_v16  ;;  %3763 = vmatpush.msra.mxu0 %v2446_v32  ;;  %3371 = vmatmul.f32.gmra.mxu2 %v19404_v23  ;;  %v4676_v45 = vsel %vm544_vm1, %v19395_v38, %v19405_v27  ;;  %v2434_v61 = vld [vmem:[%s18260_s6 + $0x358] sm:$0xff] }
 0x5dd   :  { %v13448_v2 = vpop.f32.mrf.mxu1  ;;  %8550 = vrot.lane.b32.xlu1 %v8549_v14, %s9096_s10  ;;  %6577 = vmatpush.msra.mxu3 %v4676_v45  ;;  %v19406_v45 = vld [vmem:[#allocation58_spill] sm:$0xff] }
 0x5de   :  { %19402 = vst [vmem:[#allocation120_spill] sm:$0xff] %v13448_v2  ;;  %v13471_v46 = vpop.f32.mrf.mxu0  ;;  %8545 = vrot.lane.b32.xlu2 %v8549_v14, %s9095_s1  ;;  %8540 = vrot.lane.b32.xlu0 %v8539_v7, %s9097_s11  ;;  %v13477_v27 = vpop.f32.mrf.mxu2  ;;  %v2428_v2 = vld [vmem:[%s18260_s6 + $0x328] sm:$0xff] }
 0x5df   :  { %6578 = vmatpush.msra.mxu3 %v4675_v19  ;;  %3764 = vmatpush.msra.mxu0 %v2440_v40  ;;  %v4674_v19 = vsel %vm544_vm1, %v19395_v38, %v19409_v55  ;;  %v2584_v40 = vld [vmem:[%s18260_s6 + $0x808] sm:$0xff]  ;;  %v19412_v55 = vunpack.i.h.bf16 %v13231_v25 }
 0x5e0   :  { %3560 = vmatmul.f32.gmra.mxu1 %v19340_v48  ;;  %3439 = vmatmul.f32.gmra.mxu3 %v19406_v45  ;;  %v13493_v7 = vpop.permute.xlu0 %8360  ;;  %v13495_v32 = vpop.permute.xlu2 %8390  ;;  %v3231_v45 = vadd.f32 %v13116_v62, %v3160_v33  ;;  %v19411_v62 = vunpack.i.l.bf16 %v13095_v37 }
 0x5e1   :  { %3528 = vmatmul.f32.gmra.mxu0 %v19316_v13  ;;  %19407 = vst [vmem:[#allocation36_spill] sm:$0xff] %v13493_v7  ;;  %v18579_v13 = vunpack.i.h.bf16 %v13495_v32  ;;  %v13508_v16 = vpop.permute.xlu1 %8355  ;;  %6579 = vmatpush.msra.mxu3 %v4674_v19  ;;  %v8554_v19 = vpack.i.bf16 %v13441_v49, %v13443_v57  ;;  %v19419_v7 = vunpack.i.l.bf16 %v13110_v29 }
 0x5e2   :  { %19408 = vst [vmem:[#allocation121_spill] sm:$0xff] %v13495_v32  ;;  %3826 = vmatpush.msrb.mxu1 %v2590_v56  ;;  %v3162_v31 = vpop.f32.mrf.mxu3  ;;  %v4673_v33 = vsel %vm544_vm1, %v19395_v38, %v19411_v62  ;;  %3765 = vmatpush.msra.mxu0 %v2434_v61  ;;  %v19415_v61 = vunpack.i.h.bf16 %v13110_v29  ;;  %vm3955_vm12 = vcmp.ge.f32.partialorder %v3231_v45, 0.0 }
 0x5e3   :  { %v3163_v56 = vadd.f32 %v3162_v31, %v13412_v4  ;;  %6580 = vmatpush.msra.mxu3 %v4673_v33  ;;  %v13532_v53 = vsel %vm870_vm3, %v19412_v55, %v18579_v13  ;;  %v2578_v4 = vld [vmem:[%s18260_s6 + $0x7d8] sm:$0xff]  ;;  %v19417_v55 = vunpack.i.l.bf16 %v13231_v25  ;;  %v4063_v33 = vmul.f32 0.01, %v3231_v45 }
 0x5e4   :  { %3827 = vmatpush.msrb.mxu1 %v2584_v40  ;;  %19413 = vst [vmem:[#allocation123_spill] sm:$0xff] %v13532_v53  ;;  %v4672_v31 = vsel %vm544_vm1, %v19395_v38, %v19415_v61  ;;  %3766 = vmatpush.msra.mxu0 %v2428_v2  ;;  %v19416_v40 = vunpack.i.l.bf16 %v13495_v32  ;;  %v4671_v53 = vsel %vm544_vm1, %v19395_v38, %v19419_v7  ;;  %v19424_v7 = vunpack.i.h.bf16 %v12939_v10 }
 0x5e5   :  { %v13516_v14 = vpop.f32.mrf.mxu1  ;;  %v3234_v13 = vadd.f32 %v13159_v44, %v3163_v56  ;;  %6581 = vmatpush.msra.mxu3 %v4672_v31  ;;  %v19421_v31 = vld [vmem:[#allocation60_spill] sm:$0xff] }
 0x5e6   :  { %19410 = vst [vmem:[#allocation122_spill] sm:$0xff] %v13516_v14  ;;  %v19414_v14 = vld [vmem:[#allocation38_spill] sm:$0xff]  ;;  %v13550_v62 = vsel %vm870_vm3, %v19417_v55, %v19416_v40  ;;  %8555 = vrot.lane.b32.xlu2 %v8554_v19, %s9097_s11  ;;  %v3097_v61 = vpop.f32.mrf.mxu2  ;;  %v2572_v40 = vld [vmem:[%s18260_s6 + $0x7a8] sm:$0xff]  ;;  %v13564_v56 = vpop.f32.mrf.mxu0  ;;  %3828 = vmatpush.msrb.mxu1 %v2578_v4  ;;  %v13582_v4 = vsel %vm3955_vm12, %v3231_v45, %v4063_v33  ;;  %v19431_v33 = vunpack.i.h.bf16 %v12981_v30 }
 0x5e7   :  { %3374 = vmatmul.f32.gmra.mxu2 %v19414_v14  ;;  %19418 = vst [vmem:[#allocation38_spill] sm:$0xff] %v13550_v62  ;;  %vm3961_vm13 = vcmp.ge.f32.partialorder %v3234_v13, 0.0  ;;  %v4069_v44 = vmul.f32 0.01, %v3234_v13  ;;  %6582 = vmatpush.msra.mxu3 %v4671_v53  ;;  %v4670_v62 = vsel %vm544_vm1, %v19395_v38, %v19424_v7  ;;  %v2566_v53 = vld [vmem:[%s18260_s6 + $0x778] sm:$0xff]  ;;  %v19429_v7 = vunpack.i.l.bf16 %v12939_v10 }
 0x5e8   :  { %3563 = vmatmul.f32.gmra.mxu1 %v19348_v11  ;;  %19420 = vst [vmem:[#allocation124_spill] sm:$0xff] %v13564_v56  ;;  %3442 = vmatmul.f32.gmra.mxu3 %v19421_v31  ;;  %v13569_v55 = vpop.permute.xlu0 %8385  ;;  %v13571_v2 = vpop.permute.xlu2 %8400  ;;  %v18585_v56 = vunpack.i.l.bf16 %v12981_v30 }
 0x5e9   :  { %3531 = vmatmul.f32.gmra.mxu0 %v11847_v42  ;;  %19422 = vst [vmem:[#allocation125_spill] sm:$0xff] %v13569_v55  ;;  %v13584_v19 = vsel %vm3961_vm13, %v3234_v13, %v4069_v44  ;;  %v13586_v42 = vpop.permute.xlu1 %8370  ;;  %6583 = vmatpush.msra.mxu3 %v4670_v62  ;;  %v4669_v29 = vsel %vm544_vm1, %v19395_v38, %v19429_v7  ;;  %v2560_v13 = vld [vmem:[%s18260_s6 + $0x748] sm:$0xff]  ;;  %v19430_v62 = vld [vmem:[#allocation40_spill] sm:$0xff]  ;;  %v2554_v44 = vld [vmem:[%s18260_s6 + $0x718] sm:$0xff] }
 0x5ea   :  { %19423 = vst [vmem:[#allocation126_spill] sm:$0xff] %v13571_v2  ;;  %3829 = vmatpush.msrb.mxu1 %v2572_v40  ;;  %v3165_v31 = vpop.f32.mrf.mxu3  ;;  %v8559_v45 = vpack.i.bf16 %v13584_v19, %v13582_v4  ;;  %v4668_v40 = vsel %vm544_vm1, %v19395_v38, %v19431_v33  ;;  %v2548_v33 = vld [vmem:[%s18260_s6 + $0x6e8] sm:$0xff] }
 0x5eb   :  { %19425 = vst [vmem:[#allocation127_spill] sm:$0xff] %v13582_v4  ;;  %6584 = vmatpush.msra.mxu3 %v4669_v29  ;;  %v3166_v7 = vadd.f32 %v3165_v31, %v13477_v27 }
 0x5ec   :  { %19426 = vst [vmem:[#allocation128_spill] sm:$0xff] %v13584_v19  ;;  %3830 = vmatpush.msrb.mxu1 %v2566_v53  ;;  %8560 = vrot.lane.b32.xlu0 %v8559_v45, %s9095_s1  ;;  %v4667_v53 = vsel %vm544_vm1, %v19395_v38, %v18585_v56 }
 0x5ed   :  { %19427 = vst [vmem:[#allocation129_spill] sm:$0xff] %v13586_v42  ;;  %v13589_v32 = vpop.f32.mrf.mxu1  ;;  %6585 = vmatpush.msra.mxu3 %v4668_v40  ;;  %v3237_v40 = vadd.f32 %v13217_v21, %v3166_v7  ;;  %v2530_v21 = vld [vmem:[%s18260_s6 + $0x658] sm:$0xff] }
 0x5ee   :  { %19428 = vst [vmem:[#allocation130_spill] sm:$0xff] %v13589_v32  ;;  %3831 = vmatpush.msrb.mxu1 %v2560_v13  ;;  %v3100_v29 = vpop.f32.mrf.mxu2  ;;  %v19432_v32 = vld [vmem:[#allocation62_spill] sm:$0xff]  ;;  %v2542_v13 = vld [vmem:[%s18260_s6 + $0x6b8] sm:$0xff]  ;;  %v13631_v56 = vpop.f32.mrf.mxu0 }
 0x5ef   :  { %3377 = vmatmul.f32.gmra.mxu2 %v19430_v62  ;;  %6586 = vmatpush.msra.mxu3 %v4667_v53  ;;  %19435 = vst [vmem:[#allocation132_spill] sm:$0xff] %v13631_v56  ;;  %v4075_v7 = vmul.f32 0.01, %v3237_v40  ;;  %vm3967_vm14 = vcmp.ge.f32.partialorder %v3237_v40, 0.0  ;;  %v8327_v56 = vunpack.i.l.bf16 %v13335_v18 }
 0x5f0   :  { %3566 = vmatmul.f32.gmra.mxu1 %v19359_v59  ;;  %3445 = vmatmul.f32.gmra.mxu3 %v19432_v32  ;;  %v13623_v27 = vpop.permute.xlu2 %8410  ;;  %v13625_v31 = vpop.permute.xlu0 %8395 }
 0x5f1   :  { %3832 = vmatpush.msrb.mxu1 %v2554_v44  ;;  %3534 = vmatmul.f32.gmra.mxu0 %v11875_v63  ;;  %19433 = vst [vmem:[#allocation40_spill] sm:$0xff] %v13623_v27  ;;  %v13633_v30 = vpop.permute.xlu1 %8380  ;;  %v2536_v63 = vld [vmem:[%s18260_s6 + $0x688] sm:$0xff] }
 0x5f2   :  { %19434 = vst [vmem:[#allocation131_spill] sm:$0xff] %v13625_v31  ;;  %6587 = vmatpush.msra.mxu3 %v12936_v36  ;;  %v3168_v44 = vpop.f32.mrf.mxu3 }
 0x5f3   :  { %19436 = vst [vmem:[#allocation133_spill] sm:$0xff] %v13633_v30  ;;  %3833 = vmatpush.msrb.mxu1 %v2548_v33  ;;  %v3169_v27 = vadd.f32 %v3168_v44, %v3097_v61  ;;  %v2524_v61 = vld [vmem:[%s18260_s6 + $0x628] sm:$0xff] }
 0x5f4   :  { %6588 = vmatpush.msra.mxu3 %v12934_v43  ;;  %8565 = vrot.lane.b32.xlu0 %v8559_v45, %s9096_s10  ;;  %v19438_v45 = vld [vmem:[#allocation63_spill] sm:$0xff] }
 0x5f5   :  { %v13636_v53 = vpop.f32.mrf.mxu1  ;;  %3834 = vmatpush.msrb.mxu1 %v2542_v13  ;;  %v3240_v33 = vadd.f32 %v13273_v12, %v3169_v27 }
 0x5f6   :  { %19437 = vst [vmem:[#allocation134_spill] sm:$0xff] %v13636_v53  ;;  %v3103_v36 = vpop.f32.mrf.mxu2 }
 0x5f7   :  { %3380 = vmatmul.f32.gmra.mxu2 %v19311_v8  ;;  %3835 = vmatpush.msrb.mxu1 %v2536_v63  ;;  %vm3973_vm15 = vcmp.ge.f32.partialorder %v3240_v33, 0.0  ;;  %v4081_v13 = vmul.f32 0.01, %v3240_v33  ;;  %v13658_v63 = vsel %vm3967_vm14, %v3237_v40, %v4075_v7  ;;  %v19445_v7 = vld [vmem:[#allocation26_spill] sm:$0xff] }
 0x5f8   :  { %3569 = vmatmul.f32.gmra.mxu1 %v19364_v15  ;;  %3448 = vmatmul.f32.gmra.mxu3 %v19438_v45  ;;  %v13654_v44 = vpop.permute.xlu2 %8415  ;;  %v13656_v43 = vpop.permute.xlu0 %8405  ;;  %19441 = vst [vmem:[#allocation137_spill] sm:$0xff] %v13658_v63 }
 0x5f9   :  { %3836 = vmatpush.msrb.mxu1 %v2530_v21  ;;  %3767 = vmatmul.f32.vlgmr.msra.gmra.mxu0 %v11783_v5  ;;  %19439 = vst [vmem:[#allocation135_spill] sm:$0xff] %v13654_v44  ;;  %v13660_v12 = vsel %vm3973_vm15, %v3240_v33, %v4081_v13  ;;  %v13662_v27 = vpop.permute.xlu1 %8420  ;;  %v18593_v30 = vunpack.i.l.bf16 %v13654_v44  ;;  %v13678_v13 = vpop.f32.mrf.mxu0 }
 0x5fa   :  { %19440 = vst [vmem:[#allocation136_spill] sm:$0xff] %v13656_v43  ;;  %v3171_v21 = vpop.f32.mrf.mxu3  ;;  %v8574_v5 = vpack.i.bf16 %v13660_v12, %v13658_v63  ;;  %v8579_v40 = vpack.i.bf16 %v13658_v63, %v13660_v12 }
 0x5fb   :  { %19442 = vst [vmem:[#allocation138_spill] sm:$0xff] %v13660_v12  ;;  %3837 = vmatpush.msrb.mxu1 %v2524_v61  ;;  %v3172_v45 = vadd.f32 %v3171_v21, %v3100_v29  ;;  %v5620_v33 = vsel %vm870_vm3, %v19445_v7, %v18593_v30  ;;  %v8569_v29 = vpack.i.bf16 %v13582_v4, %v13584_v19  ;;  %v19447_v61 = vunpack.i.h.bf16 %v13654_v44 }
 0x5fc   :  { %19443 = vst [vmem:[#allocation139_spill] sm:$0xff] %v13662_v27  ;;  %8575 = vrot.lane.b32.xlu1 %v8574_v5, %s9095_s1  ;;  %8580 = vrot.lane.b32.xlu2 %v8579_v40, %s9097_s11  ;;  %v19449_v40 = vunpack.i.l.bf16 %v13569_v55 }
 0x5fd   :  { %v13666_v32 = vpop.f32.mrf.mxu1  ;;  %19446 = vst [vmem:[#allocation141_spill] sm:$0xff] %v13678_v13  ;;  %v3243_v21 = vadd.f32 %v13323_v24, %v3172_v45  ;;  %6668 = vmatpush.msrb.mxu0 %v5620_v33  ;;  %8570 = vrot.lane.b32.xlu0 %v8569_v29, %s9097_s11  ;;  %v5619_v5 = vsel %vm870_vm3, %v19445_v7, %v19447_v61  ;;  %v19448_v45 = vld [vmem:[#allocation64_spill] sm:$0xff]  ;;  %v8328_v29 = vunpack.i.h.bf16 %v13335_v18 }
 0x5fe   :  { %19444 = vst [vmem:[#allocation140_spill] sm:$0xff] %v13666_v32  ;;  %v3106_v30 = vpop.f32.mrf.mxu2  ;;  %v5618_v33 = vsel %vm870_vm3, %v19445_v7, %v19449_v40  ;;  %v19453_v40 = vunpack.i.h.bf16 %v13569_v55  ;;  %v19458_v55 = vunpack.i.h.bf16 %v13508_v16 }
 0x5ff   :  { %3383 = vmatmul.f32.gmra.mxu2 %v19319_v52  ;;  %vm3979_vm0 = vcmp.ge.f32.partialorder %v3243_v21, 0.0  ;;  %v4087_v13 = vmul.f32 0.01, %v3243_v21  ;;  %6669 = vmatpush.msrb.mxu0 %v5619_v5 }
 0x600   :  { %3572 = vmatmul.f32.gmra.mxu1 %v19373_v28  ;;  %3451 = vmatmul.f32.gmra.mxu3 %v19448_v45  ;;  %v5617_v18 = vsel %vm870_vm3, %v19445_v7, %v19453_v40 }
 0x601   :  { %3770 = vmatmul.f32.gmra.mxu0 %v19333_v35  ;;  %v13704_v61 = vsel %vm3979_vm0, %v3243_v21, %v4087_v13  ;;  %v13706_v44 = vpop.permute.xlu1 %8435  ;;  %v13708_v5 = vpop.permute.xlu0 %8425 }
 0x602   :  { %19450 = vst [vmem:[#allocation142_spill] sm:$0xff] %v13704_v61  ;;  %6670 = vmatpush.msrb.mxu0 %v5618_v33  ;;  %v18598_v45 = vunpack.i.l.bf16 %v13706_v44  ;;  %v3174_v32 = vpop.f32.mrf.mxu3  ;;  %v8584_v21 = vpack.i.bf16 %v13660_v12, %v13704_v61  ;;  %v19454_v33 = vunpack.i.l.bf16 %v13508_v16 }
 0x603   :  { %19451 = vst [vmem:[#allocation143_spill] sm:$0xff] %v13706_v44  ;;  %v3175_v13 = vadd.f32 %v3174_v32, %v3103_v36  ;;  %v19456_v36 = vunpack.i.h.bf16 %v13706_v44 }
 0x604   :  { %19452 = vst [vmem:[#allocation144_spill] sm:$0xff] %v13708_v5  ;;  %6671 = vmatpush.msrb.mxu0 %v5617_v18  ;;  %v5616_v24 = vsel %vm870_vm3, %v19445_v7, %v19454_v33  ;;  %v13732_v35 = vsel %vm870_vm3, %v8327_v56, %v18598_v45  ;;  %v13741_v18 = vpop.f32.mrf.mxu0  ;;  %v5615_v45 = vsel %vm870_vm3, %v19445_v7, %v19458_v55 }
 0x605   :  { %v13713_v53 = vpop.f32.mrf.mxu1  ;;  %19455 = vst [vmem:[#allocation145_spill] sm:$0xff] %v13732_v35  ;;  %v13738_v32 = vsel %vm870_vm3, %v8328_v29, %v19456_v36  ;;  %v3246_v40 = vadd.f32 %v13360_v0, %v3175_v13  ;;  %8585 = vrot.lane.b32.xlu0 %v8584_v21, %s9096_s10  ;;  %v19460_v0 = vld [vmem:[#allocation66_spill] sm:$0xff] }
 0x606   :  { %6672 = vmatpush.msrb.mxu0 %v5616_v24  ;;  %19457 = vst [vmem:[#allocation146_spill] sm:$0xff] %v13741_v18  ;;  %v3109_v33 = vpop.f32.mrf.mxu2  ;;  %v5614_v24 = vsel %vm870_vm3, %v19445_v7, %v8327_v56 }
 0x607   :  { %3386 = vmatmul.f32.gmra.mxu2 %v19322_v9  ;;  %v4093_v35 = vmul.f32 0.01, %v3246_v40  ;;  %v13750_v44 = vpop.permute.xlu2 %8470  ;;  %vm3985_vm4 = vcmp.ge.f32.partialorder %v3246_v40, 0.0 }
 0x608   :  { %3575 = vmatmul.f32.gmra.mxu1 %v19382_v6  ;;  %19459 = vst [vmem:[#allocation147_spill] sm:$0xff] %v13750_v44  ;;  %6673 = vmatpush.msrb.mxu0 %v5615_v45  ;;  %v5613_v45 = vsel %vm870_vm3, %v19445_v7, %v8328_v29 }
 0x609   :  { %3454 = vmatmul.f32.gmra.mxu3 %v19460_v0  ;;  %3773 = vmatmul.f32.gmra.mxu0 %v19340_v48  ;;  %v13757_v13 = vpop.permute.xlu0 %8430  ;;  %v13759_v21 = vsel %vm3985_vm4, %v3246_v40, %v4093_v35 }
 0x60a   :  { %6674 = vmatpush.msrb.mxu0 %v5614_v24  ;;  %19461 = vst [vmem:[#allocation66_spill] sm:$0xff] %v13759_v21  ;;  %v3177_v36 = vpop.f32.mrf.mxu3  ;;  %6892 = vmatpush.msra.mxu1 %v13759_v21  ;;  %v8594_v48 = vpack.i.bf16 %v13704_v61, %v13759_v21  ;;  %v8589_v56 = vpack.i.bf16 %v13759_v21, %v13704_v61 }
 0x60b   :  { %v3178_v24 = vadd.f32 %v3177_v36, %v3106_v30 }
 0x60c   :  { %6675 = vmatpush.msrb.mxu0 %v5613_v45  ;;  %6893 = vmatpush.msra.mxu1 %v13704_v61  ;;  %v13782_v36 = vpop.f32.mrf.mxu0  ;;  %v19465_v45 = vld [vmem:[#allocation68_spill] sm:$0xff] }
 0x60d   :  { %v13761_v55 = vpop.f32.mrf.mxu1  ;;  %v3249_v35 = vadd.f32 %v13406_v34, %v3178_v24  ;;  %8595 = vrot.lane.b32.xlu1 %v8594_v48, %s9097_s11  ;;  %8590 = vrot.lane.b32.xlu2 %v8589_v56, %s9095_s1  ;;  %19464 = vst [vmem:[#allocation150_spill] sm:$0xff] %v13782_v36 }
 0x60e   :  { %v3342_v29 = vpop.f32.mrf.mxu2  ;;  %v13777_v40 = vpop.permute.xlu1 %8440  ;;  %6894 = vmatpush.msra.mxu1 %v13660_v12 }
 0x60f   :  { %3389 = vmatmul.f32.gmra.mxu2 %v19327_v47  ;;  %19462 = vst [vmem:[#allocation148_spill] sm:$0xff] %v13777_v40  ;;  %vm3991_vm5 = vcmp.ge.f32.partialorder %v3249_v35, 0.0  ;;  %v4099_v44 = vmul.f32 0.01, %v3249_v35  ;;  %v13780_v30 = vpop.permute.xlu2 %8475 }
 0x610   :  { %3578 = vmatmul.f32.gmra.mxu1 %v19389_v50  ;;  %19463 = vst [vmem:[#allocation149_spill] sm:$0xff] %v13780_v30  ;;  %v19538_v30 = vld [vmem:[#allocation30_spill] sm:$0xff] }
 0x611   :  { %3457 = vmatmul.f32.gmra.mxu3 %v19465_v45  ;;  %3776 = vmatmul.f32.gmra.mxu0 %v19348_v11  ;;  %v13786_v34 = vsel %vm3991_vm5, %v3249_v35, %v4099_v44  ;;  %v13789_v48 = vpop.permute.xlu0 %8450  ;;  %v19468_v11 = vunpack.i.l.bf16 %v13175_v3  ;;  %v19470_v35 = vunpack.i.h.bf16 %v13175_v3 }
 0x612   :  { %19466 = vst [vmem:[#allocation68_spill] sm:$0xff] %v13786_v34  ;;  %6895 = vmatpush.msra.mxu1 %v13658_v63  ;;  %v18607_v56 = vunpack.i.h.bf16 %v13789_v48  ;;  %v18606_v24 = vunpack.i.l.bf16 %v13789_v48  ;;  %v8599_v12 = vpack.i.bf16 %v13759_v21, %v13786_v34 }
 0x613   :  { %19467 = vst [vmem:[#allocation151_spill] sm:$0xff] %v13789_v48  ;;  %v3180_v40 = vpop.f32.mrf.mxu3  ;;  %v19477_v48 = vunpack.i.h.bf16 %v13342_v17 }
 0x614   :  { %6896 = vmatpush.msra.mxu1 %v13584_v19  ;;  %v3181_v36 = vadd.f32 %v3180_v40, %v3109_v33  ;;  %v13805_v44 = vsel %vm870_vm3, %v19468_v11, %v18606_v24  ;;  %v13813_v21 = vsel %vm870_vm3, %v19470_v35, %v18607_v56 }
 0x615   :  { %v13793_v61 = vpop.f32.mrf.mxu1  ;;  %19469 = vst [vmem:[#allocation152_spill] sm:$0xff] %v13805_v44  ;;  %8600 = vrot.lane.b32.xlu1 %v8599_v12, %s9096_s10  ;;  %v19474_v12 = vld [vmem:[#allocation70_spill] sm:$0xff]  ;;  %v19483_v44 = vld [vmem:[#allocation23_spill] sm:$0xff] }
 0x616   :  { %19471 = vst [vmem:[#allocation153_spill] sm:$0xff] %v13813_v21  ;;  %6897 = vmatpush.msra.mxu1 %v13582_v4  ;;  %v3252_v33 = vadd.f32 %v13471_v46, %v3181_v36  ;;  %v13819_v40 = vpop.permute.xlu1 %8445  ;;  %v19482_v21 = vunpack.i.h.bf16 %v13333_v58 }
 0x617   :  { %3392 = vmatmul.f32.gmra.mxu2 %v19331_v41  ;;  %19472 = vst [vmem:[#allocation154_spill] sm:$0xff] %v13819_v40  ;;  %v3345_v24 = vpop.f32.mrf.mxu2  ;;  %v13823_v3 = vpop.permute.xlu2 %8480  ;;  %v19530_v40 = vunpack.i.l.bf16 %v13231_v25 }
 0x618   :  { %3581 = vmatmul.f32.gmra.mxu1 %v19394_v20  ;;  %19473 = vst [vmem:[#allocation155_spill] sm:$0xff] %v13823_v3  ;;  %vm3997_vm6 = vcmp.ge.f32.partialorder %v3252_v33, 0.0  ;;  %v4105_v56 = vmul.f32 0.01, %v3252_v33  ;;  %v18614_v4 = vunpack.i.h.bf16 %v13823_v3  ;;  %v18619_v36 = vunpack.i.l.bf16 %v13823_v3 }
 0x619   :  { %6898 = vmatpush.msra.mxu1 %v13443_v57  ;;  %3460 = vmatmul.f32.gmra.mxu3 %v19474_v12  ;;  %v13833_v57 = vpop.f32.mrf.mxu0 }
 0x61a   :  { %3779 = vmatmul.f32.gmra.mxu0 %v19359_v59  ;;  %19475 = vst [vmem:[#allocation70_spill] sm:$0xff] %v13833_v57  ;;  %v13835_v19 = vsel %vm3997_vm6, %v3252_v33, %v4105_v56  ;;  %v13845_v59 = vsel %vm870_vm3, %v19477_v48, %v18614_v4  ;;  %v19479_v33 = vunpack.i.l.bf16 %v13342_v17  ;;  %v19481_v4 = vld [vmem:[#allocation35_spill] sm:$0xff]  ;;  %v19494_v17 = vunpack.i.l.bf16 %v13088_v22 }
 0x61b   :  { %6899 = vmatpush.msra.mxu1 %v13441_v49  ;;  %19476 = vst [vmem:[#allocation156_spill] sm:$0xff] %v13835_v19  ;;  %v3413_v46 = vpop.f32.mrf.mxu3  ;;  %v8614_v11 = vpack.i.bf16 %v13786_v34, %v13835_v19  ;;  %v8604_v56 = vpack.i.bf16 %v13835_v19, %v13786_v34  ;;  %v3343_v34 = vadd.f32 %v3342_v29, %v13256_v51 }
 0x61c   :  { %19478 = vst [vmem:[#allocation157_spill] sm:$0xff] %v13845_v59  ;;  %v13858_v49 = vsel %vm870_vm3, %v19479_v33, %v18619_v36  ;;  %v5146_v59 = vsel %vm707_vm2, %v19483_v44, %v19482_v21  ;;  %v19484_v33 = vunpack.i.l.bf16 %v13333_v58  ;;  %v19486_v21 = vld [vmem:[#allocation101_spill] sm:$0xff]  ;;  %v19501_v58 = vunpack.i.l.bf16 %v13386_v54 }
 0x61d   :  { %v13837_v35 = vpop.f32.mrf.mxu1  ;;  %6900 = vmatpush.msra.mxu1 %v13344_v60  ;;  %19480 = vst [vmem:[#allocation158_spill] sm:$0xff] %v13858_v49  ;;  %8615 = vrot.lane.b32.xlu2 %v8614_v11, %s9097_s11  ;;  %v3414_v11 = vadd.f32 %v3413_v46, %v3343_v34  ;;  %v19492_v49 = vld [vmem:[#allocation109_spill] sm:$0xff]  ;;  %v19493_v60 = vld [vmem:[#allocation102_spill] sm:$0xff]  ;;  %v8609_v57 = vpack.i.bf16 %v13835_v19, %v13658_v63  ;;  %v19507_v19 = vunpack.i.h.bf16 %v13708_v5  ;;  %v19517_v63 = vld [vmem:[#allocation92_spill] sm:$0xff] }
 0x61e   :  { %8605 = vrot.lane.b32.xlu0 %v8604_v56, %s9095_s1  ;;  %v5145_v36 = vsel %vm707_vm2, %v19483_v44, %v19484_v33  ;;  %v19488_v56 = vld [vmem:[#allocation103_spill] sm:$0xff]  ;;  %v19490_v33 = vunpack.i.h.bf16 %v13088_v22  ;;  %v19499_v22 = vld [vmem:[#allocation37_spill] sm:$0xff] }
 0x61f   :  { %3625 = vmatmul.f32.vlgmr.msra.gmra.mxu2 %v19481_v4  ;;  %6901 = vmatpush.msra.mxu1 %v13340_v26  ;;  %v13877_v48 = vpop.permute.xlu1 %8455  ;;  %v13881_v3 = vpop.f32.mrf.mxu2  ;;  %v19489_v26 = vld [vmem:[#allocation73_spill] sm:$0xff]  ;;  %v4004_v46 = vmul.f32 0.01, %v3414_v11  ;;  %vm3896_vm7 = vcmp.ge.f32.partialorder %v3414_v11, 0.0 }
 0x620   :  { %6602 = vmatpush.msra.mxu2 %v5146_v59  ;;  %19485 = vst [vmem:[#allocation35_spill] sm:$0xff] %v13877_v48  ;;  %3584 = vmatmul.f32.gmra.mxu1 %v19404_v23  ;;  %v18626_v51 = vunpack.i.h.bf16 %v13877_v48  ;;  %v13884_v29 = vpop.permute.xlu2 %8485  ;;  %v5144_v59 = vsel %vm707_vm2, %v19483_v44, %v19490_v33  ;;  %v19495_v33 = vld [vmem:[#allocation29_spill] sm:$0xff] }
 0x621   :  { %19487 = vst [vmem:[#allocation159_spill] sm:$0xff] %v13884_v29  ;;  %6902 = vmatpush.msra.mxu1 %v19488_v56  ;;  %3463 = vmatmul.f32.gmra.mxu3 %v19489_v26  ;;  %v3346_v56 = vadd.f32 %v3345_v24, %v19492_v49  ;;  %v13918_v24 = vpop.f32.mrf.mxu0  ;;  %v19502_v29 = vld [vmem:[#allocation17_spill] sm:$0xff] }
 0x622   :  { %6603 = vmatpush.msra.mxu2 %v5145_v36  ;;  %3782 = vmatmul.f32.gmra.mxu0 %v19364_v15  ;;  %v19491_v36 = vunpack.i.h.bf16 %v13386_v54  ;;  %v5143_v15 = vsel %vm707_vm2, %v19483_v44, %v19494_v17  ;;  %19497 = vst [vmem:[#allocation73_spill] sm:$0xff] %v13918_v24  ;;  %v19498_v17 = vld [vmem:[#allocation100_spill] sm:$0xff]  ;;  %v19504_v54 = vunpack.i.l.bf16 %v19486_v21 }
 0x623   :  { %6903 = vmatpush.msra.mxu1 %v19493_v60 }
 0x624   :  { %6604 = vmatpush.msra.mxu2 %v5144_v59  ;;  %v4662_v34 = vsel %vm544_vm1, %v19491_v36, %v18626_v51  ;;  %v3416_v36 = vpop.f32.mrf.mxu3  ;;  %v19496_v51 = vunpack.i.h.bf16 %v19486_v21  ;;  %v19512_v21 = vunpack.i.h.bf16 %v19495_v33 }
 0x625   :  { %v13909_v59 = vpop.f32.mrf.mxu1  ;;  %6747 = vmatpush.msra.mxu0 %v4662_v34  ;;  %v3417_v60 = vadd.f32 %v3416_v36, %v3346_v56  ;;  %6904 = vmatpush.msra.mxu1 %v19498_v17  ;;  %v19500_v34 = vunpack.i.l.bf16 %v13877_v48  ;;  %v19503_v17 = vld [vmem:[#allocation99_spill] sm:$0xff]  ;;  %v19508_v48 = vunpack.i.h.bf16 %v13294_v1 }
 0x626   :  { %6605 = vmatpush.msra.mxu2 %v5143_v15  ;;  %v5142_v49 = vsel %vm707_vm2, %v19483_v44, %v19496_v51  ;;  %8610 = vrot.lane.b32.xlu0 %v8609_v57, %s9096_s10  ;;  %v19506_v51 = vld [vmem:[#allocation88_spill] sm:$0xff]  ;;  %v5140_v24 = vsel %vm707_vm2, %v19483_v44, %v19512_v21  ;;  %v19515_v21 = vunpack.i.l.bf16 %v13708_v5  ;;  %v19521_v5 = vld [vmem:[#allocation55_spill] sm:$0xff] }
 0x627   :  { %3628 = vmatmul.f32.gmra.mxu2 %v19499_v22  ;;  %v4661_v15 = vsel %vm544_vm1, %v19501_v58, %v19500_v34  ;;  %vm3902_vm8 = vcmp.ge.f32.partialorder %v3417_v60, 0.0  ;;  %v4010_v36 = vmul.f32 0.01, %v3417_v60  ;;  %6905 = vmatpush.msra.mxu1 %v19503_v17  ;;  %v5141_v58 = vsel %vm707_vm2, %v19483_v44, %v19504_v54  ;;  %v13939_v34 = vpop.permute.xlu1 %8460  ;;  %v13945_v56 = vpop.f32.mrf.mxu2 }
 0x628   :  { %6606 = vmatpush.msra.mxu2 %v5142_v49  ;;  %6748 = vmatpush.msra.mxu0 %v4661_v15  ;;  %19505 = vst [vmem:[#allocation109_spill] sm:$0xff] %v13939_v34  ;;  %v13947_v57 = vpop.permute.xlu2 %8490  ;;  %v4660_v54 = vsel %vm544_vm1, %v19508_v48, %v19507_v19  ;;  %v13956_v17 = vpop.permute.xlu0 %8465  ;;  %v13959_v15 = vsel %vm3896_vm7, %v3414_v11, %v4004_v46  ;;  %v19511_v49 = vld [vmem:[#allocation94_spill] sm:$0xff]  ;;  %v19513_v48 = vld [vmem:[#allocation32_spill] sm:$0xff]  ;;  %v19514_v11 = vunpack.i.l.bf16 %v19502_v29  ;;  %v19518_v19 = vunpack.i.l.bf16 %v19495_v33  ;;  %v19529_v33 = vld [vmem:[#allocation39_spill] sm:$0xff] }
 0x629   :  { %3587 = vmatmul.f32.gmra.mxu1 %v19414_v14  ;;  %19509 = vst [vmem:[#allocation37_spill] sm:$0xff] %v13959_v15  ;;  %3696 = vmatmul.f32.vlgmr.msrb.gmra.mxu3 %v19513_v48 }
 0x62a   :  { %6607 = vmatpush.msra.mxu2 %v5141_v58  ;;  %v13962_v58 = vsel %vm3902_vm8, %v3417_v60, %v4010_v36  ;;  %6906 = vmatpush.msra.mxu1 %v19511_v49  ;;  %v5612_v60 = vsel %vm870_vm3, %v19445_v7, %v19514_v11 }
 0x62b   :  { %19510 = vst [vmem:[#allocation160_spill] sm:$0xff] %v13962_v58  ;;  %6749 = vmatpush.msra.mxu0 %v4660_v54  ;;  %v8619_v46 = vpack.i.bf16 %v13962_v58, %v13959_v15  ;;  %v13982_v36 = vpack.i.bf16 %v13959_v15, %v13962_v58  ;;  %6631 = vmatpush.msrb.mxu3 %v5612_v60  ;;  %v19516_v54 = vunpack.i.l.bf16 %v13294_v1  ;;  %v19519_v60 = vunpack.i.h.bf16 %v19502_v29  ;;  %v14029_v29 = vpop.f32.mrf.mxu0 }
 0x62c   :  { %3785 = vmatmul.f32.gmra.mxu0 %v19373_v28  ;;  %6608 = vmatpush.msra.mxu2 %v5140_v24  ;;  %v5139_v24 = vsel %vm707_vm2, %v19483_v44, %v19518_v19  ;;  %v19522_v19 = vld [vmem:[#allocation93_spill] sm:$0xff]  ;;  %v19526_v15 = vunpack.i.l.bf16 %v19506_v51  ;;  %19528 = vst [vmem:[#allocation32_spill] sm:$0xff] %v14029_v29  ;;  %v19532_v58 = vunpack.i.l.bf16 %v13571_v2 }
 0x62d   :  { %v4659_v28 = vsel %vm544_vm1, %v19516_v54, %v19515_v21  ;;  %v13990_v48 = vpop.f32.mrf.mxu1  ;;  %6907 = vmatpush.msra.mxu1 %v19517_v63  ;;  %v5611_v1 = vsel %vm870_vm3, %v19445_v7, %v19519_v60  ;;  %v3419_v21 = vpop.f32.mrf.mxu3  ;;  %8620 = vrot.lane.b32.xlu1 %v8619_v46, %s9095_s1  ;;  %v19523_v60 = vunpack.i.h.bf16 %v13571_v2  ;;  %v19524_v54 = vld [vmem:[#allocation27_spill] sm:$0xff]  ;;  %v19527_v63 = vld [vmem:[#allocation36_spill] sm:$0xff]  ;;  %v19563_v2 = vunpack.i.l.bf16 %v19538_v30 }
 0x62e   :  { %6750 = vmatpush.msra.mxu0 %v4659_v28  ;;  %6609 = vmatpush.msra.mxu2 %v5139_v24  ;;  %v19520_v28 = vunpack.i.h.bf16 %v19506_v51  ;;  %v19525_v24 = vunpack.i.h.bf16 %v19524_v54  ;;  %v19533_v46 = vunpack.i.l.bf16 %v19524_v54 }
 0x62f   :  { %6632 = vmatpush.msrb.mxu3 %v5611_v1  ;;  %8630 = vrot.lane.b32.xlu2 %v13982_v36, %s9097_s11  ;;  %v14047_v51 = vpop.f32.mrf.mxu2 }
 0x630   :  { %v5138_v11 = vsel %vm707_vm2, %v19483_v44, %v19520_v28  ;;  %v4658_v1 = vsel %vm544_vm1, %v19525_v24, %v19523_v60  ;;  %v5137_v28 = vsel %vm707_vm2, %v19483_v44, %v19526_v15  ;;  %3631 = vmatmul.f32.gmra.mxu2 %v19529_v33  ;;  %v5610_v60 = vsel %vm870_vm3, %v19445_v7, %v19530_v40  ;;  %v14037_v24 = vpop.permute.xlu1 %8510  ;;  %v19531_v15 = vld [vmem:[#allocation113_spill] sm:$0xff]  ;;  %v14051_v18 = vpop.permute.xlu2 %8495 }
 0x631   :  { %6751 = vmatpush.msra.mxu0 %v4658_v1  ;;  %v3349_v49 = vadd.f32 %v13881_v3, %v19531_v15  ;;  %6610 = vmatpush.msra.mxu2 %v5138_v11  ;;  %v4657_v1 = vsel %vm544_vm1, %v19533_v46, %v19532_v58  ;;  %v18649_v29 = vunpack.i.h.bf16 %v14037_v24  ;;  %v18648_v40 = vunpack.i.l.bf16 %v14037_v24  ;;  %v14061_v54 = vpop.permute.xlu0 %8500 }
 0x632   :  { %6633 = vmatpush.msrb.mxu3 %v5610_v60  ;;  %3590 = vmatmul.f32.gmra.mxu1 %v19430_v62  ;;  %v19534_v11 = vunpack.i.h.bf16 %v13231_v25  ;;  %19535 = vst [vmem:[#allocation27_spill] sm:$0xff] %v14061_v54  ;;  %v19536_v46 = vunpack.i.h.bf16 %v13586_v42  ;;  %v19537_v60 = vunpack.i.h.bf16 %v13095_v37  ;;  %v19539_v25 = vunpack.i.l.bf16 %v19527_v63 }
 0x633   :  { %6752 = vmatpush.msra.mxu0 %v4657_v1  ;;  %v3420_v1 = vadd.f32 %v3419_v21, %v3349_v49  ;;  %6611 = vmatpush.msra.mxu2 %v5137_v28  ;;  %v19541_v54 = vunpack.i.h.bf16 %v19527_v63  ;;  %v19544_v21 = vld [vmem:[#allocation115_spill] sm:$0xff]  ;;  %v19546_v3 = vunpack.i.h.bf16 %v19521_v5  ;;  %v14147_v49 = vpop.f32.mrf.mxu0 }
 0x634   :  { %v5609_v58 = vsel %vm870_vm3, %v19445_v7, %v19534_v11  ;;  %v4656_v15 = vsel %vm544_vm1, %v19537_v60, %v19536_v46  ;;  %v14076_v11 = vsel %vm870_vm3, %v19539_v25, %v18648_v40  ;;  %v19543_v60 = vld [vmem:[#allocation91_spill] sm:$0xff]  ;;  %v3352_v28 = vadd.f32 %v13945_v56, %v19544_v21  ;;  %3788 = vmatmul.f32.gmra.mxu0 %v19382_v6 }
 0x635   :  { %6634 = vmatpush.msrb.mxu3 %v5609_v58  ;;  %19540 = vst [vmem:[#allocation39_spill] sm:$0xff] %v14076_v11  ;;  %v14084_v46 = vsel %vm870_vm3, %v19541_v54, %v18649_v29  ;;  %6753 = vmatpush.msra.mxu0 %v4656_v15  ;;  %v19545_v58 = vld [vmem:[#allocation33_spill] sm:$0xff]  ;;  %v5136_v25 = vsel %vm707_vm2, %v19483_v44, %v19546_v3  ;;  %v14095_v40 = vpop.f32.mrf.mxu1  ;;  %v19547_v54 = vunpack.i.l.bf16 %v19522_v19  ;;  %v19548_v15 = vunpack.i.l.bf16 %v13586_v42  ;;  %v19556_v11 = vld [vmem:[#allocation114_spill] sm:$0xff] }
 0x636   :  { %19542 = vst [vmem:[#allocation113_spill] sm:$0xff] %v14084_v46  ;;  %3699 = vmatmul.f32.gmra.mxu3 %v19545_v58  ;;  %6612 = vmatpush.msra.mxu2 %v5136_v25  ;;  %v19549_v21 = vunpack.i.l.bf16 %v13095_v37  ;;  %v3422_v58 = vpop.f32.mrf.mxu3  ;;  %v19550_v6 = vunpack.i.l.bf16 %v19521_v5  ;;  %v4016_v37 = vmul.f32 0.01, %v3420_v1  ;;  %vm3908_vm9 = vcmp.ge.f32.partialorder %v3420_v1, 0.0  ;;  %v19630_v5 = vld [vmem:[#allocation54_spill] sm:$0xff] }
 0x637   :  { %v5608_v56 = vsel %vm870_vm3, %v19445_v7, %v19547_v54  ;;  %v3423_v54 = vadd.f32 %v3422_v58, %v3352_v28  ;;  %8625 = vrot.lane.b32.xlu1 %v13982_v36, %s9096_s10  ;;  %v19555_v58 = vld [vmem:[#allocation42_spill] sm:$0xff]  ;;  %v19558_v36 = vunpack.i.h.bf16 %v13625_v31  ;;  %v19559_v42 = vunpack.i.l.bf16 %v19543_v60  ;;  %19561 = vst [vmem:[#allocation33_spill] sm:$0xff] %v14147_v49 }
 0x638   :  { %v4655_v3 = vsel %vm544_vm1, %v19549_v21, %v19548_v15  ;;  %6635 = vmatpush.msrb.mxu3 %v5608_v56  ;;  %v5135_v25 = vsel %vm707_vm2, %v19483_v44, %v19550_v6  ;;  %v19551_v15 = vunpack.i.h.bf16 %v19522_v19  ;;  %v19552_v56 = vunpack.i.h.bf16 %v19538_v30  ;;  %v19637_v49 = vld [vmem:[#allocation58_spill] sm:$0xff] }
 0x639   :  { %6754 = vmatpush.msra.mxu0 %v4655_v3  ;;  %6613 = vmatpush.msra.mxu2 %v5135_v25  ;;  %v19553_v3 = vld [vmem:[#allocation98_spill] sm:$0xff]  ;;  %vm3914_vm10 = vcmp.ge.f32.partialorder %v3423_v54, 0.0  ;;  %v4022_v25 = vmul.f32 0.01, %v3423_v54  ;;  %v4684_v46 = vsel %vm544_vm1, %v19395_v38, %v19558_v36  ;;  %v14157_v63 = vpop.permute.xlu0 %8505 }
 0x63a   :  { %v5607_v21 = vsel %vm870_vm3, %v19445_v7, %v19551_v15  ;;  %v19554_v29 = vunpack.i.h.bf16 %v19553_v3  ;;  %v19557_v15 = vld [vmem:[#allocation41_spill] sm:$0xff]  ;;  %v19564_v36 = vunpack.i.l.bf16 %v19553_v3  ;;  %3593 = vmatmul.f32.gmra.mxu1 %v19311_v8  ;;  %v19568_v3 = vunpack.i.h.bf16 %v19543_v60 }
 0x63b   :  { %6636 = vmatpush.msrb.mxu3 %v5607_v21  ;;  %3634 = vmatmul.f32.gmra.mxu2 %v19557_v15  ;;  %v3357_v21 = vpop.f32.mrf.mxu2  ;;  %v14149_v6 = vsel %vm3914_vm10, %v3423_v54, %v4022_v25  ;;  %19565 = vst [vmem:[#allocation41_spill] sm:$0xff] %v14157_v63  ;;  %v19591_v60 = vunpack.i.l.bf16 %v13656_v43 }
 0x63c   :  { %v4654_v28 = vsel %vm544_vm1, %v19554_v29, %v19552_v56  ;;  %v5606_v29 = vsel %vm870_vm3, %v19445_v7, %v19559_v42  ;;  %v14144_v56 = vpop.permute.xlu2 %8545  ;;  %19562 = vst [vmem:[#allocation98_spill] sm:$0xff] %v14149_v6  ;;  %6614 = vmatpush.msra.mxu2 %v4684_v46  ;;  %v4653_v19 = vsel %vm544_vm1, %v19564_v36, %v19563_v2  ;;  %v19567_v46 = vunpack.i.l.bf16 %v13625_v31 }
 0x63d   :  { %6755 = vmatpush.msra.mxu0 %v4654_v28  ;;  %19560 = vst [vmem:[#allocation115_spill] sm:$0xff] %v14144_v56  ;;  %v18660_v28 = vunpack.i.l.bf16 %v19555_v58  ;;  %6637 = vmatpush.msrb.mxu3 %v5606_v29  ;;  %v14161_v56 = vsel %vm3908_vm9, %v3420_v1, %v4016_v37  ;;  %v5605_v2 = vsel %vm870_vm3, %v19445_v7, %v19568_v3  ;;  %v19569_v1 = vunpack.i.h.bf16 %v19555_v58  ;;  %v19571_v29 = vld [vmem:[#allocation45_spill] sm:$0xff]  ;;  %v14189_v3 = vpop.f32.mrf.mxu1 }
 0x63e   :  { %19566 = vst [vmem:[#allocation161_spill] sm:$0xff] %v14161_v56  ;;  %v4683_v54 = vsel %vm544_vm1, %v19395_v38, %v19567_v46  ;;  %v8634_v25 = vpack.i.bf16 %v14149_v6, %v14161_v56  ;;  %v19572_v46 = vld [vmem:[#allocation28_spill] sm:$0xff]  ;;  %v19573_v42 = vunpack.i.h.bf16 %v19556_v11  ;;  %3791 = vmatmul.f32.gmra.mxu0 %v19389_v50  ;;  %v19577_v50 = vunpack.i.l.bf16 %v19556_v11 }
 0x63f   :  { %6756 = vmatpush.msra.mxu0 %v4653_v19  ;;  %6615 = vmatpush.msra.mxu2 %v4683_v54  ;;  %v19570_v19 = vunpack.i.h.bf16 %v12939_v10  ;;  %v19599_v11 = vld [vmem:[#allocation4_spill] sm:$0xff] }
 0x640   :  { %6638 = vmatpush.msrb.mxu3 %v5605_v2  ;;  %v4682_v54 = vsel %vm544_vm1, %v19395_v38, %v19573_v42  ;;  %v3425_v2 = vpop.f32.mrf.mxu3  ;;  %v19576_v42 = vunpack.i.l.bf16 %v12939_v10  ;;  %8635 = vrot.lane.b32.xlu2 %v8634_v25, %s9095_s1 }
 0x641   :  { %v4652_v37 = vsel %vm544_vm1, %v19570_v19, %v19569_v1  ;;  %3702 = vmatmul.f32.gmra.mxu3 %v19572_v46  ;;  %v8644_v1 = vpack.i.bf16 %v14161_v56, %v14149_v6  ;;  %6616 = vmatpush.msra.mxu2 %v4682_v54  ;;  %v4681_v54 = vsel %vm544_vm1, %v19395_v38, %v19577_v50  ;;  %v19596_v38 = vunpack.i.h.bf16 %v13662_v27  ;;  %v19600_v56 = vld [vmem:[#allocation24_spill] sm:$0xff] }
 0x642   :  { %6757 = vmatpush.msra.mxu0 %v4652_v37  ;;  %v19574_v37 = vld [vmem:[#allocation95_spill] sm:$0xff]  ;;  %v4651_v30 = vsel %vm544_vm1, %v19576_v42, %v18660_v28  ;;  %v19586_v28 = vunpack.i.h.bf16 %v13656_v43  ;;  %3596 = vmatmul.f32.gmra.mxu1 %v19319_v52 }
 0x643   :  { %v19575_v36 = vunpack.i.l.bf16 %v19574_v37  ;;  %6617 = vmatpush.msra.mxu2 %v4681_v54  ;;  %v19579_v10 = vunpack.i.h.bf16 %v19574_v37  ;;  %8645 = vrot.lane.b32.xlu0 %v8644_v1, %s9097_s11  ;;  %v19582_v54 = vld [vmem:[#allocation89_spill] sm:$0xff]  ;;  %v3360_v19 = vpop.f32.mrf.mxu2 }
 0x644   :  { %6758 = vmatpush.msra.mxu0 %v4651_v30  ;;  %v19580_v30 = vld [vmem:[#allocation116_spill] sm:$0xff] }
 0x645   :  { %v5604_v46 = vsel %vm870_vm3, %v19445_v7, %v19575_v36  ;;  %v19578_v36 = vld [vmem:[#allocation120_spill] sm:$0xff]  ;;  %v5603_v42 = vsel %vm870_vm3, %v19445_v7, %v19579_v10  ;;  %v14231_v10 = vpop.permute.xlu2 %8555  ;;  %v14241_v7 = vpop.permute.xlu0 %8515 }
 0x646   :  { %6639 = vmatpush.msrb.mxu3 %v5604_v46  ;;  %v3355_v58 = vadd.f32 %v14047_v51, %v19578_v36  ;;  %v19581_v51 = vunpack.i.h.bf16 %v19571_v29  ;;  %v19583_v36 = vunpack.i.h.bf16 %v19582_v54  ;;  %19584 = vst [vmem:[#allocation28_spill] sm:$0xff] %v14231_v10  ;;  %v19585_v46 = vld [vmem:[#allocation44_spill] sm:$0xff]  ;;  %3794 = vmatmul.f32.gmra.mxu0 %v19394_v20 }
 0x647   :  { %3637 = vmatmul.f32.gmra.mxu2 %v19585_v46 }
 0x648   :  { %6640 = vmatpush.msrb.mxu3 %v5603_v42  ;;  %v4650_v37 = vsel %vm544_vm1, %v19583_v36, %v19581_v51  ;;  %v3426_v25 = vadd.f32 %v3425_v2, %v3355_v58  ;;  %v5152_v42 = vsel %vm707_vm2, %v19483_v44, %v19586_v28  ;;  %v19587_v58 = vunpack.i.l.bf16 %v19571_v29  ;;  %v19590_v28 = vld [vmem:[#allocation122_spill] sm:$0xff]  ;;  %v3428_v29 = vpop.f32.mrf.mxu3  ;;  %8640 = vrot.lane.b32.xlu2 %v8644_v1, %s9096_s10 }
 0x649   :  { %6759 = vmatpush.msra.mxu0 %v4650_v37  ;;  %v19588_v2 = vunpack.i.l.bf16 %v19582_v54  ;;  %v14251_v37 = vpop.f32.mrf.mxu0  ;;  %v3358_v50 = vadd.f32 %v3357_v21, %v19590_v28  ;;  %v19592_v51 = vunpack.i.l.bf16 %v14231_v10  ;;  %v19593_v54 = vunpack.i.l.bf16 %v13662_v27  ;;  %3705 = vmatmul.f32.gmra.mxu3 %v19600_v56 }
 0x64a   :  { %6641 = vmatpush.msrb.mxu3 %v5152_v42  ;;  %19589 = vst [vmem:[#allocation95_spill] sm:$0xff] %v14251_v37  ;;  %v5151_v42 = vsel %vm707_vm2, %v19483_v44, %v19591_v60  ;;  %v14276_v60 = vpop.f32.mrf.mxu1  ;;  %v4028_v43 = vmul.f32 0.01, %v3426_v25  ;;  %vm3920_vm11 = vcmp.ge.f32.partialorder %v3426_v25, 0.0  ;;  %3599 = vmatmul.f32.gmra.mxu1 %v19322_v9 }
 0x64b   :  { %v4649_v36 = vsel %vm544_vm1, %v19588_v2, %v19587_v58  ;;  %v14265_v58 = vsel %vm870_vm3, %v19593_v54, %v19592_v51  ;;  %v19595_v2 = vunpack.i.h.bf16 %v14231_v10  ;;  %v19601_v51 = vunpack.i.h.bf16 %v19580_v30 }
 0x64c   :  { %6760 = vmatpush.msra.mxu0 %v4649_v36  ;;  %19594 = vst [vmem:[#allocation120_spill] sm:$0xff] %v14265_v58  ;;  %v19598_v36 = vld [vmem:[#allocation119_spill] sm:$0xff]  ;;  %6642 = vmatpush.msrb.mxu3 %v5151_v42  ;;  %v3429_v10 = vadd.f32 %v3428_v29, %v3358_v50  ;;  %v3363_v29 = vpop.f32.mrf.mxu2  ;;  %v14294_v50 = vsel %vm3920_vm11, %v3426_v25, %v4028_v43  ;;  %v14325_v58 = vpop.permute.xlu1 %8525 }
 0x64d   :  { %v14273_v21 = vsel %vm870_vm3, %v19596_v38, %v19595_v2  ;;  %v5150_v54 = vsel %vm707_vm2, %v19483_v44, %v19601_v51  ;;  %v19602_v42 = vld [vmem:[#allocation107_spill] sm:$0xff]  ;;  %v19603_v2 = vunpack.i.l.bf16 %v19580_v30  ;;  %19604 = vst [vmem:[#allocation44_spill] sm:$0xff] %v14294_v50 }
 0x64e   :  { %19597 = vst [vmem:[#allocation89_spill] sm:$0xff] %v14273_v21  ;;  %6761 = vmatpush.msra.mxu0 %v19599_v11  ;;  %6643 = vmatpush.msrb.mxu3 %v5150_v54  ;;  %vm3926_vm12 = vcmp.ge.f32.partialorder %v3429_v10, 0.0  ;;  %v4034_v28 = vmul.f32 0.01, %v3429_v10  ;;  %v19606_v51 = vld [vmem:[#allocation47_spill] sm:$0xff]  ;;  %v19607_v54 = vunpack.i.h.bf16 %v19598_v36 }
 0x64f   :  { %v5149_v56 = vsel %vm707_vm2, %v19483_v44, %v19603_v2  ;;  %3640 = vmatmul.f32.gmra.mxu2 %v19606_v51  ;;  %3797 = vmatmul.f32.gmra.mxu0 %v19404_v23 }
 0x650   :  { %6762 = vmatpush.msra.mxu0 %v19602_v42  ;;  %6644 = vmatpush.msrb.mxu3 %v5149_v56  ;;  %v14296_v20 = vsel %vm3926_vm12, %v3429_v10, %v4034_v28  ;;  %v5148_v38 = vsel %vm707_vm2, %v19483_v44, %v19607_v54  ;;  %v14304_v42 = vpop.permute.xlu0 %8520  ;;  %v19608_v10 = vunpack.i.l.bf16 %v19598_v36  ;;  %v3431_v28 = vpop.f32.mrf.mxu3  ;;  %v19610_v56 = vld [vmem:[#allocation20_spill] sm:$0xff]  ;;  %v19611_v54 = vld [vmem:[#allocation130_spill] sm:$0xff] }
 0x651   :  { %19605 = vst [vmem:[#allocation122_spill] sm:$0xff] %v14296_v20  ;;  %v8659_v1 = vpack.i.bf16 %v14294_v50, %v14296_v20  ;;  %v8649_v43 = vpack.i.bf16 %v14296_v20, %v14294_v50  ;;  %3708 = vmatmul.f32.gmra.mxu3 %v19610_v56  ;;  %v3361_v11 = vadd.f32 %v3360_v19, %v19611_v54  ;;  %v19614_v19 = vld [vmem:[#allocation121_spill] sm:$0xff] }
 0x652   :  { %6645 = vmatpush.msrb.mxu3 %v5148_v38  ;;  %v5147_v25 = vsel %vm707_vm2, %v19483_v44, %v19608_v10  ;;  %v14316_v2 = vpop.f32.mrf.mxu1  ;;  %v14319_v38 = vpop.f32.mrf.mxu0  ;;  %3602 = vmatmul.f32.gmra.mxu1 %v19327_v47  ;;  %v19615_v54 = vunpack.i.l.bf16 %v19614_v19 }
 0x653   :  { %8660 = vrot.lane.b32.xlu1 %v8659_v1, %s9097_s11  ;;  %19609 = vst [vmem:[#allocation24_spill] sm:$0xff] %v14319_v38  ;;  %8650 = vrot.lane.b32.xlu0 %v8649_v43, %s9095_s1  ;;  %v3432_v10 = vadd.f32 %v3431_v28, %v3361_v11  ;;  %v19613_v38 = vld [vmem:[#allocation134_spill] sm:$0xff]  ;;  %v19617_v28 = vunpack.i.h.bf16 %v19614_v19 }
 0x654   :  { %6646 = vmatpush.msrb.mxu3 %v5147_v25  ;;  %v3366_v21 = vpop.f32.mrf.mxu2  ;;  %v19612_v25 = vld [vmem:[#allocation50_spill] sm:$0xff]  ;;  %v3364_v43 = vadd.f32 %v3363_v29, %v19613_v38  ;;  %v19619_v38 = vld [vmem:[#allocation7_spill] sm:$0xff] }
 0x655   :  { %v4040_v29 = vmul.f32 0.01, %v3432_v10  ;;  %vm3932_vm13 = vcmp.ge.f32.partialorder %v3432_v10, 0.0 }
 0x657   :  { %3643 = vmatmul.f32.gmra.mxu2 %v19612_v25  ;;  %3800 = vmatmul.f32.gmra.mxu0 %v19414_v14  ;;  %v14367_v14 = vpop.permute.xlu1 %8530 }
 0x658   :  { %v14328_v44 = vpop.permute.xlu0 %8540  ;;  %v3434_v30 = vpop.f32.mrf.mxu3  ;;  %19624 = vst [vmem:[#allocation121_spill] sm:$0xff] %v14367_v14  ;;  %v19629_v14 = vld [vmem:[#allocation56_spill] sm:$0xff] }
 0x659   :  { %v18679_v36 = vunpack.i.h.bf16 %v14328_v44  ;;  %v18678_v56 = vunpack.i.l.bf16 %v14328_v44  ;;  %3711 = vmatmul.f32.gmra.mxu3 %v19619_v38  ;;  %v3435_v6 = vadd.f32 %v3434_v30, %v3364_v43 }
 0x65a   :  { %v14334_v23 = vpop.f32.mrf.mxu1  ;;  %v14355_v37 = vpop.f32.mrf.mxu0  ;;  %3605 = vmatmul.f32.gmra.mxu1 %v19331_v41 }
 0x65b   :  { %v14342_v11 = vsel %vm870_vm3, %v19615_v54, %v18678_v56  ;;  %v14350_v31 = vsel %vm870_vm3, %v19617_v28, %v18679_v36  ;;  %8655 = vrot.lane.b32.xlu0 %v8659_v1, %s9096_s10  ;;  %19620 = vst [vmem:[#allocation130_spill] sm:$0xff] %v14355_v37  ;;  %vm3938_vm14 = vcmp.ge.f32.partialorder %v3435_v6, 0.0  ;;  %v4046_v54 = vmul.f32 0.01, %v3435_v6  ;;  %v19623_v28 = vld [vmem:[#allocation53_spill] sm:$0xff] }
 0x65c   :  { %19616 = vst [vmem:[#allocation47_spill] sm:$0xff] %v14342_v11  ;;  %v3369_v56 = vpop.f32.mrf.mxu2  ;;  %v14357_v11 = vsel %vm3932_vm13, %v3432_v10, %v4040_v29  ;;  %v19626_v10 = vld [vmem:[#allocation140_spill] sm:$0xff] }
 0x65d   :  { %19618 = vst [vmem:[#allocation20_spill] sm:$0xff] %v14350_v31  ;;  %v14359_v19 = vsel %vm3938_vm14, %v3435_v6, %v4046_v54  ;;  %v19625_v6 = vld [vmem:[#allocation25_spill] sm:$0xff]  ;;  %v3367_v29 = vadd.f32 %v3366_v21, %v19626_v10  ;;  %v19631_v21 = vld [vmem:[#allocation11_spill] sm:$0xff] }
 0x65e   :  { %19621 = vst [vmem:[#allocation50_spill] sm:$0xff] %v14357_v11  ;;  %v8664_v30 = vpack.i.bf16 %v14359_v19, %v14357_v11  ;;  %v8674_v1 = vpack.i.bf16 %v14357_v11, %v14359_v19  ;;  %v19632_v10 = vld [vmem:[#allocation59_spill] sm:$0xff] }
 0x65f   :  { %19622 = vst [vmem:[#allocation134_spill] sm:$0xff] %v14359_v19  ;;  %3646 = vmatmul.f32.gmra.mxu2 %v19623_v28  ;;  %3803 = vmatmul.f32.gmra.mxu0 %v19430_v62  ;;  %v19640_v11 = vld [vmem:[#allocation71_spill] sm:$0xff] }
 0x660   :  { %v3437_v43 = vpop.f32.mrf.mxu3  ;;  %8665 = vrot.lane.b32.xlu1 %v8664_v30, %s9095_s1  ;;  %8675 = vrot.lane.b32.xlu2 %v8674_v1, %s9097_s11  ;;  %v14376_v54 = vpop.permute.xlu0 %8560  ;;  %v3370_v30 = vadd.f32 %v3369_v56, %v13713_v53 }
 0x661   :  { %3714 = vmatmul.f32.gmra.mxu3 %v19625_v6  ;;  %19627 = vst [vmem:[#allocation7_spill] sm:$0xff] %v14376_v54  ;;  %v3438_v37 = vadd.f32 %v3437_v43, %v3367_v29  ;;  %v14389_v43 = vpop.permute.xlu1 %8535  ;;  %v14395_v54 = vpop.permute.xlu2 %8580 }
 0x662   :  { %v14369_v38 = vpop.f32.mrf.mxu1  ;;  %v14378_v31 = vpop.f32.mrf.mxu0  ;;  %3838 = vmatmul.f32.vlgmr.msrb.gmra.mxu1 %v19481_v4  ;;  %v19633_v4 = vld [vmem:[#allocation69_spill] sm:$0xff]  ;;  %19634 = vst [vmem:[#allocation25_spill] sm:$0xff] %v14395_v54 }
 0x663   :  { %19628 = vst [vmem:[#allocation53_spill] sm:$0xff] %v14378_v31  ;;  %7008 = vmatpush.msrb.mxu1 %v19630_v5  ;;  %v4052_v62 = vmul.f32 0.01, %v3438_v37  ;;  %vm3944_vm15 = vcmp.ge.f32.partialorder %v3438_v37, 0.0  ;;  %v19661_v5 = vld [vmem:[#allocation10_spill] sm:$0xff] }
 0x664   :  { %v3372_v36 = vpop.f32.mrf.mxu2 }
 0x665   :  { %7009 = vmatpush.msrb.mxu1 %v19632_v10 }
 0x667   :  { %3649 = vmatmul.f32.gmra.mxu2 %v19629_v14  ;;  %3806 = vmatmul.f32.gmra.mxu0 %v19311_v8 }
 0x668   :  { %v3440_v50 = vpop.f32.mrf.mxu3  ;;  %8670 = vrot.lane.b32.xlu1 %v8674_v1, %s9096_s10  ;;  %7010 = vmatpush.msrb.mxu1 %v19633_v4  ;;  %v14393_v56 = vpop.permute.xlu0 %8565  ;;  %v14397_v1 = vsel %vm3944_vm15, %v3438_v37, %v4052_v62 }
 0x669   :  { %3717 = vmatmul.f32.gmra.mxu3 %v19631_v21  ;;  %v3441_v31 = vadd.f32 %v3440_v50, %v3370_v30  ;;  %19635 = vst [vmem:[#allocation140_spill] sm:$0xff] %v14397_v1  ;;  %v19638_v50 = vld [vmem:[#allocation48_spill] sm:$0xff]  ;;  %v14419_v19 = vpop.permute.xlu1 %8550 }
 0x66a   :  { %v14384_v6 = vpop.f32.mrf.mxu1  ;;  %7011 = vmatpush.msrb.mxu1 %v19638_v50  ;;  %v14408_v20 = vpop.f32.mrf.mxu0 }
 0x66b   :  { %vm3950_vm0 = vcmp.ge.f32.partialorder %v3441_v31, 0.0  ;;  %v4058_v53 = vmul.f32 0.01, %v3441_v31  ;;  %3841 = vmatmul.f32.gmra.mxu1 %v19499_v22  ;;  %19639 = vst [vmem:[#allocation11_spill] sm:$0xff] %v14408_v20  ;;  %v19642_v22 = vld [vmem:[#allocation74_spill] sm:$0xff]  ;;  %v3373_v20 = vadd.f32 %v3372_v36, %v13761_v55 }
 0x66c   :  { %v3375_v29 = vpop.f32.mrf.mxu2  ;;  %7012 = vmatpush.msrb.mxu1 %v19640_v11  ;;  %v19648_v36 = vld [vmem:[#allocation6_spill] sm:$0xff] }
 0x66d   :  { %v14399_v21 = vsel %vm3950_vm0, %v3441_v31, %v4058_v53  ;;  %v19641_v31 = vld [vmem:[#allocation16_spill] sm:$0xff]  ;;  %v19643_v53 = vld [vmem:[#allocation83_spill] sm:$0xff] }
 0x66e   :  { %19636 = vst [vmem:[#allocation56_spill] sm:$0xff] %v14399_v21  ;;  %v8679_v8 = vpack.i.bf16 %v14399_v21, %v14397_v1  ;;  %v8689_v30 = vpack.i.bf16 %v14397_v1, %v14399_v21  ;;  %7013 = vmatpush.msrb.mxu1 %v19642_v22  ;;  %v14422_v1 = vpop.permute.xlu2 %8590  ;;  %v19644_v21 = vld [vmem:[#allocation60_spill] sm:$0xff] }
 0x66f   :  { %3652 = vmatmul.f32.gmra.mxu2 %v19637_v49  ;;  %3809 = vmatmul.f32.gmra.mxu0 %v19319_v52  ;;  %v3376_v52 = vadd.f32 %v3375_v29, %v13793_v61 }
 0x670   :  { %v3443_v37 = vpop.f32.mrf.mxu3  ;;  %8680 = vrot.lane.b32.xlu2 %v8679_v8, %s9095_s1  ;;  %8690 = vrot.lane.b32.xlu0 %v8689_v30, %s9097_s11  ;;  %v19645_v8 = vld [vmem:[#allocation84_spill] sm:$0xff]  ;;  %v14426_v11 = vpop.permute.xlu0 %8570 }
 0x671   :  { %3720 = vmatmul.f32.gmra.mxu3 %v19641_v31  ;;  %7014 = vmatpush.msrb.mxu1 %v19643_v53  ;;  %19646 = vst [vmem:[#allocation58_spill] sm:$0xff] %v14426_v11  ;;  %v3444_v31 = vadd.f32 %v3443_v37, %v3373_v20  ;;  %v14437_v37 = vpop.permute.xlu1 %8575 }
 0x672   :  { %v14411_v62 = vpop.f32.mrf.mxu1  ;;  %v14433_v55 = vpop.f32.mrf.mxu0  ;;  %19649 = vst [vmem:[#allocation60_spill] sm:$0xff] %v14437_v37 }
 0x673   :  { %7015 = vmatpush.msrb.mxu1 %v19645_v8  ;;  %19647 = vst [vmem:[#allocation16_spill] sm:$0xff] %v14433_v55  ;;  %v4064_v4 = vmul.f32 0.01, %v3444_v31  ;;  %vm3956_vm4 = vcmp.ge.f32.partialorder %v3444_v31, 0.0  ;;  %v19651_v55 = vld [vmem:[#allocation62_spill] sm:$0xff] }
 0x674   :  { %v3378_v27 = vpop.f32.mrf.mxu2  ;;  %3844 = vmatmul.f32.gmra.mxu1 %v19529_v33 }
 0x677   :  { %3655 = vmatmul.f32.gmra.mxu2 %v19644_v21  ;;  %3812 = vmatmul.f32.gmra.mxu0 %v19322_v9  ;;  %v14449_v9 = vsel %vm3956_vm4, %v3444_v31, %v4064_v4  ;;  %v19657_v31 = vunpack.i.l.bf16 %v13947_v57 }
 0x678   :  { %v3446_v22 = vpop.f32.mrf.mxu3  ;;  %8685 = vrot.lane.b32.xlu2 %v8689_v30, %s9096_s10  ;;  %19654 = vst [vmem:[#allocation163_spill] sm:$0xff] %v14449_v9 }
 0x679   :  { %3723 = vmatmul.f32.gmra.mxu3 %v19648_v36  ;;  %v3447_v50 = vadd.f32 %v3446_v22, %v3376_v52  ;;  %v14445_v22 = vpop.permute.xlu2 %8615  ;;  %v14447_v52 = vpop.permute.xlu0 %8585 }
 0x67a   :  { %v14430_v53 = vpop.f32.mrf.mxu1  ;;  %19652 = vst [vmem:[#allocation62_spill] sm:$0xff] %v14445_v22  ;;  %v18704_v36 = vunpack.i.l.bf16 %v14445_v22  ;;  %v18703_v61 = vunpack.i.h.bf16 %v14447_v52  ;;  %v18702_v29 = vunpack.i.l.bf16 %v14447_v52 }
 0x67b   :  { %vm3962_vm5 = vcmp.ge.f32.partialorder %v3447_v50, 0.0  ;;  %v4070_v20 = vmul.f32 0.01, %v3447_v50  ;;  %19653 = vst [vmem:[#allocation162_spill] sm:$0xff] %v14447_v52 }
 0x67c   :  { %v3381_v33 = vpop.f32.mrf.mxu2  ;;  %3847 = vmatmul.f32.gmra.mxu1 %v19557_v15  ;;  %v19656_v15 = vunpack.i.l.bf16 %v14325_v58  ;;  %v14474_v30 = vsel %vm707_vm2, %v19657_v31, %v18702_v29  ;;  %v3379_v31 = vadd.f32 %v3378_v27, %v13837_v35  ;;  %v19663_v29 = vunpack.i.h.bf16 %v14445_v22 }
 0x67d   :  { %v14442_v8 = vsel %vm3962_vm5, %v3447_v50, %v4070_v20  ;;  %19658 = vst [vmem:[#allocation165_spill] sm:$0xff] %v14474_v30  ;;  %v19684_v30 = vld [vmem:[#allocation14_spill] sm:$0xff] }
 0x67e   :  { %19650 = vst [vmem:[#allocation6_spill] sm:$0xff] %v14442_v8  ;;  %v8699_v50 = vpack.i.bf16 %v14449_v9, %v14442_v8  ;;  %v8694_v20 = vpack.i.bf16 %v14442_v8, %v14449_v9  ;;  %v5584_v4 = vsel %vm870_vm3, %v19656_v15, %v18704_v36  ;;  %v19659_v9 = vunpack.i.h.bf16 %v13939_v34  ;;  %v14488_v15 = vpop.f32.mrf.mxu0  ;;  %v19665_v36 = vld [vmem:[#allocation63_spill] sm:$0xff] }
 0x67f   :  { %3658 = vmatmul.f32.gmra.mxu2 %v19651_v55  ;;  %3815 = vmatmul.f32.gmra.mxu0 %v19327_v47  ;;  %19662 = vst [vmem:[#allocation10_spill] sm:$0xff] %v14488_v15  ;;  %v18711_v47 = vunpack.i.l.bf16 %v14051_v18 }
 0x680   :  { %v3449_v37 = vpop.f32.mrf.mxu3  ;;  %v14482_v8 = vsel %vm707_vm2, %v19659_v9, %v18703_v61  ;;  %8700 = vrot.lane.b32.xlu1 %v8699_v50, %s9096_s10  ;;  %7016 = vmatpush.msrb.mxu1 %v5584_v4  ;;  %v14498_v61 = vpop.permute.xlu1 %8595 }
 0x681   :  { %19660 = vst [vmem:[#allocation166_spill] sm:$0xff] %v14482_v8  ;;  %3726 = vmatmul.f32.gmra.mxu3 %v19661_v5  ;;  %8695 = vrot.lane.b32.xlu0 %v8694_v20, %s9095_s1  ;;  %v3450_v4 = vadd.f32 %v3449_v37, %v3379_v31  ;;  %v18710_v35 = vunpack.i.l.bf16 %v14498_v61  ;;  %v18712_v31 = vunpack.i.l.bf16 %v13956_v17  ;;  %v19666_v20 = vld [vmem:[#allocation8_spill] sm:$0xff] }
 0x682   :  { %v14460_v10 = vpop.f32.mrf.mxu1  ;;  %19664 = vst [vmem:[#allocation167_spill] sm:$0xff] %v14498_v61 }
 0x683   :  { %19655 = vst [vmem:[#allocation164_spill] sm:$0xff] %v14460_v10  ;;  %v18707_v10 = vunpack.i.h.bf16 %v14325_v58  ;;  %v5582_v37 = vsel %vm870_vm3, %v18711_v47, %v18710_v35  ;;  %vm3968_vm6 = vcmp.ge.f32.partialorder %v3450_v4, 0.0 }
 0x684   :  { %v3384_v5 = vpop.f32.mrf.mxu2  ;;  %3850 = vmatmul.f32.gmra.mxu1 %v19585_v46  ;;  %v4076_v46 = vmul.f32 0.01, %v3450_v4 }
 0x685   :  { %v5583_v9 = vsel %vm870_vm3, %v18707_v10, %v19663_v29  ;;  %v3382_v29 = vadd.f32 %v3381_v33, %v13909_v59  ;;  %v19667_v59 = vunpack.i.h.bf16 %v14498_v61  ;;  %v19668_v33 = vunpack.i.h.bf16 %v14051_v18 }
 0x686   :  { %7017 = vmatpush.msrb.mxu1 %v5583_v9  ;;  %v19673_v9 = vld [vmem:[#allocation64_spill] sm:$0xff] }
 0x687   :  { %3661 = vmatmul.f32.gmra.mxu2 %v19665_v36  ;;  %v5581_v22 = vsel %vm870_vm3, %v19668_v33, %v19667_v59  ;;  %3818 = vmatmul.f32.gmra.mxu0 %v19331_v41  ;;  %v18717_v41 = vunpack.i.l.bf16 %v14426_v11  ;;  %v14537_v59 = vpop.f32.mrf.mxu0 }
 0x688   :  { %v3452_v10 = vpop.f32.mrf.mxu3  ;;  %7018 = vmatpush.msrb.mxu1 %v5582_v37  ;;  %19670 = vst [vmem:[#allocation63_spill] sm:$0xff] %v14537_v59 }
 0x689   :  { %3729 = vmatmul.f32.gmra.mxu3 %v19666_v20  ;;  %v3453_v52 = vadd.f32 %v3452_v10, %v3382_v29  ;;  %8705 = vrot.lane.b32.xlu0 %v8699_v50, %s9097_s11  ;;  %v19669_v20 = vunpack.i.l.bf16 %v14395_v54  ;;  %v14541_v50 = vsel %vm3968_vm6, %v3450_v4, %v4076_v46  ;;  %v19676_v29 = vunpack.i.h.bf16 %v13956_v17  ;;  %v14564_v46 = vld [vmem:[%s18261_s7 + $0x20] sm:$0xff] }
 0x68a   :  { %v14516_v27 = vpop.f32.mrf.mxu1  ;;  %7019 = vmatpush.msrb.mxu1 %v5581_v22  ;;  %19671 = vst [vmem:[#allocation8_spill] sm:$0xff] %v14541_v50 }
 0x68b   :  { %vm3974_vm7 = vcmp.ge.f32.partialorder %v3453_v52, 0.0  ;;  %v4082_v47 = vmul.f32 0.01, %v3453_v52  ;;  %v5580_v10 = vsel %vm870_vm3, %v18712_v31, %v19669_v20  ;;  %v14546_v20 = vpop.permute.xlu1 %8600  ;;  %v19675_v31 = vunpack.i.h.bf16 %v14395_v54 }
 0x68c   :  { %v3387_v22 = vpop.f32.mrf.mxu2  ;;  %7020 = vmatpush.msrb.mxu1 %v5580_v10  ;;  %19674 = vst [vmem:[#allocation64_spill] sm:$0xff] %v14546_v20  ;;  %v18718_v4 = vunpack.i.l.bf16 %v14546_v20  ;;  %v19679_v54 = vunpack.i.l.bf16 %v14304_v42  ;;  %v19681_v61 = vunpack.i.h.bf16 %v14546_v20  ;;  %v3385_v20 = vadd.f32 %v3384_v5, %v13990_v48  ;;  %v14614_v48 = vld [vmem:[%s18261_s7 + $0x50] sm:$0xff] }
 0x68d   :  { %v14543_v35 = vsel %vm3974_vm7, %v3453_v52, %v4082_v47  ;;  %v5579_v10 = vsel %vm870_vm3, %v19676_v29, %v19675_v31  ;;  %3853 = vmatmul.f32.gmra.mxu1 %v19606_v51  ;;  %v19677_v51 = vld [vmem:[#allocation143_spill] sm:$0xff] }
 0x68e   :  { %19672 = vst [vmem:[#allocation168_spill] sm:$0xff] %v14543_v35  ;;  %v8709_v52 = vpack.i.bf16 %v14543_v35, %v14541_v50  ;;  %v8714_v47 = vpack.i.bf16 %v14541_v50, %v14543_v35  ;;  %7021 = vmatpush.msrb.mxu1 %v5579_v10  ;;  %v19678_v29 = vunpack.i.l.bf16 %v19677_v51  ;;  %v14582_v10 = vsel %vm707_vm2, %v19679_v54, %v18718_v4  ;;  %v19687_v4 = vld [vmem:[#allocation82_spill] sm:$0xff] }
 0x68f   :  { %3664 = vmatmul.f32.gmra.mxu2 %v19673_v9  ;;  %19680 = vst [vmem:[#allocation143_spill] sm:$0xff] %v14582_v10  ;;  %6676 = vmatmul.f32.vlgmr.msrb.gmra.mxu0 %v14564_v46 }
 0x690   :  { %v3455_v37 = vpop.f32.mrf.mxu3  ;;  %8710 = vrot.lane.b32.xlu1 %v8709_v52, %s9095_s1  ;;  %8715 = vrot.lane.b32.xlu2 %v8714_v47, %s9096_s10  ;;  %v5578_v33 = vsel %vm870_vm3, %v19678_v29, %v18717_v41  ;;  %v19682_v52 = vunpack.i.h.bf16 %v13947_v57  ;;  %v19685_v29 = vunpack.i.h.bf16 %v14426_v11  ;;  %v19686_v41 = vunpack.i.h.bf16 %v19677_v51 }
 0x691   :  { %3732 = vmatmul.f32.gmra.mxu3 %v19684_v30  ;;  %7022 = vmatpush.msrb.mxu1 %v5578_v33  ;;  %v14604_v30 = vpop.permute.xlu0 %8605  ;;  %v3456_v33 = vadd.f32 %v3455_v37, %v3385_v20  ;;  %v3388_v51 = vadd.f32 %v3387_v22, %v14095_v40  ;;  %v19693_v37 = vld [vmem:[#allocation18_spill] sm:$0xff] }
 0x692   :  { %v14566_v31 = vpop.f32.mrf.mxu1  ;;  %v14590_v8 = vsel %vm707_vm2, %v19682_v52, %v19681_v61  ;;  %v5577_v54 = vsel %vm870_vm3, %v19686_v41, %v19685_v29  ;;  %6834 = vmatpush.msrb.mxu0 %v19687_v4  ;;  %v19688_v61 = vld [vmem:[#allocation81_spill] sm:$0xff]  ;;  %19689 = vst [vmem:[#allocation14_spill] sm:$0xff] %v14604_v30  ;;  %v14607_v52 = vpop.f32.mrf.mxu0  ;;  %v19691_v41 = vld [vmem:[#allocation80_spill] sm:$0xff]  ;;  %v19692_v29 = vld [vmem:[#allocation79_spill] sm:$0xff] }
 0x693   :  { %19683 = vst [vmem:[#allocation169_spill] sm:$0xff] %v14590_v8  ;;  %7023 = vmatpush.msrb.mxu1 %v5577_v54  ;;  %v4088_v20 = vmul.f32 0.01, %v3456_v33  ;;  %vm3980_vm8 = vcmp.ge.f32.partialorder %v3456_v33, 0.0  ;;  %v19694_v40 = vld [vmem:[#allocation78_spill] sm:$0xff]  ;;  %v19703_v8 = vld [vmem:[#allocation75_spill] sm:$0xff] }
 0x694   :  { %v3390_v10 = vpop.f32.mrf.mxu2  ;;  %6835 = vmatpush.msrb.mxu0 %v19688_v61  ;;  %19690 = vst [vmem:[#allocation82_spill] sm:$0xff] %v14607_v52  ;;  %v18729_v61 = vunpack.i.l.bf16 %v13939_v34 }
 0x695   :  { %3856 = vmatmul.f32.gmra.mxu1 %v19612_v25 }
 0x696   :  { %6836 = vmatpush.msrb.mxu0 %v19691_v41  ;;  %v19695_v41 = vld [vmem:[#allocation77_spill] sm:$0xff] }
 0x697   :  { %3667 = vmatmul.f32.gmra.mxu2 %v19460_v0  ;;  %6679 = vmatmul.f32.gmra.mxu0 %v14614_v48 }
 0x698   :  { %v3458_v5 = vpop.f32.mrf.mxu3  ;;  %8720 = vrot.lane.b32.xlu2 %v8714_v47, %s9097_s11  ;;  %6837 = vmatpush.msrb.mxu0 %v19692_v29 }
 0x699   :  { %3735 = vmatmul.f32.gmra.mxu3 %v19693_v37  ;;  %v3459_v25 = vadd.f32 %v3458_v5, %v3388_v51  ;;  %v14628_v47 = vpop.permute.xlu0 %8610  ;;  %v18725_v51 = vunpack.i.h.bf16 %v14304_v42  ;;  %v14631_v5 = vsel %vm3980_vm8, %v3456_v33, %v4088_v20  ;;  %v14646_v20 = vpop.permute.xlu2 %8630 }
 0x69a   :  { %v14616_v4 = vpop.f32.mrf.mxu1  ;;  %6838 = vmatpush.msrb.mxu0 %v19694_v40  ;;  %19697 = vst [vmem:[#allocation80_spill] sm:$0xff] %v14628_v47  ;;  %v18724_v29 = vunpack.i.h.bf16 %v14628_v47  ;;  %v18728_v37 = vunpack.i.l.bf16 %v14628_v47  ;;  %v19699_v40 = vld [vmem:[#allocation76_spill] sm:$0xff]  ;;  %v14668_v59 = vpop.f32.mrf.mxu0 }
 0x69b   :  { %vm3986_vm9 = vcmp.ge.f32.partialorder %v3459_v25, 0.0  ;;  %v4094_v22 = vmul.f32 0.01, %v3459_v25  ;;  %19698 = vst [vmem:[#allocation79_spill] sm:$0xff] %v14631_v5 }
 0x69c   :  { %v3393_v54 = vpop.f32.mrf.mxu2  ;;  %6839 = vmatpush.msrb.mxu0 %v19695_v41  ;;  %19700 = vst [vmem:[#allocation18_spill] sm:$0xff] %v14646_v20  ;;  %v14654_v41 = vsel %vm707_vm2, %v18725_v51, %v18724_v29  ;;  %v19704_v20 = vld [vmem:[#allocation15_spill] sm:$0xff]  ;;  %v19705_v29 = vunpack.i.l.bf16 %v14325_v58 }
 0x69d   :  { %v14625_v11 = vsel %vm3986_vm9, %v3459_v25, %v4094_v22  ;;  %3859 = vmatmul.f32.gmra.mxu1 %v19623_v28  ;;  %v14640_v25 = vld [vmem:[%s18261_s7 + $0x80] sm:$0xff]  ;;  %19701 = vst [vmem:[#allocation78_spill] sm:$0xff] %v14654_v41  ;;  %v19706_v51 = vld [vmem:[#allocation135_spill] sm:$0xff] }
 0x69e   :  { %19696 = vst [vmem:[#allocation81_spill] sm:$0xff] %v14625_v11  ;;  %6840 = vmatpush.msrb.mxu0 %v19699_v40  ;;  %v8729_v22 = vpack.i.bf16 %v14631_v5, %v14625_v11  ;;  %v8724_v33 = vpack.i.bf16 %v14625_v11, %v14631_v5  ;;  %v14662_v40 = vsel %vm707_vm2, %v18729_v61, %v18728_v37  ;;  %v19707_v47 = vunpack.i.l.bf16 %v19706_v51 }
 0x69f   :  { %3670 = vmatmul.f32.gmra.mxu2 %v19465_v45  ;;  %19702 = vst [vmem:[#allocation77_spill] sm:$0xff] %v14662_v40  ;;  %6682 = vmatmul.f32.gmra.mxu0 %v14640_v25  ;;  %v3391_v37 = vadd.f32 %v3390_v10, %v14189_v3 }
 0x6a0   :  { %v3461_v28 = vpop.f32.mrf.mxu3  ;;  %6841 = vmatpush.msrb.mxu0 %v19703_v8  ;;  %v5602_v41 = vsel %vm870_vm3, %v19707_v47, %v19705_v29  ;;  %8730 = vrot.lane.b32.xlu1 %v8729_v22, %s9096_s10  ;;  %v19708_v8 = vunpack.i.h.bf16 %v14325_v58  ;;  %v19710_v47 = vunpack.i.l.bf16 %v14051_v18  ;;  %v19711_v29 = vld [vmem:[#allocation125_spill] sm:$0xff]  ;;  %v19713_v58 = vld [vmem:[#allocation124_spill] sm:$0xff] }
 0x6a1   :  { %3738 = vmatmul.f32.gmra.mxu3 %v19704_v20  ;;  %8725 = vrot.lane.b32.xlu2 %v8724_v33, %s9095_s1  ;;  %v19709_v20 = vunpack.i.h.bf16 %v19706_v51  ;;  %v3462_v15 = vadd.f32 %v3461_v28, %v3391_v37  ;;  %v19712_v34 = vunpack.i.l.bf16 %v19711_v29  ;;  %v3556_v10 = vadd.f32 %v14316_v2, %v19713_v58  ;;  %v14702_v37 = vpop.permute.xlu2 %8635 }
 0x6a2   :  { %v14666_v52 = vpop.f32.mrf.mxu1  ;;  %6842 = vmatpush.msrb.mxu0 %v5602_v41  ;;  %v3394_v51 = vadd.f32 %v3393_v54, %v14276_v60  ;;  %19714 = vst [vmem:[#allocation76_spill] sm:$0xff] %v14702_v37  ;;  %v19715_v33 = vunpack.i.h.bf16 %v14051_v18  ;;  %v19716_v28 = vunpack.i.h.bf16 %v19711_v29  ;;  %v19717_v60 = vld [vmem:[#allocation5_spill] sm:$0xff]  ;;  %v19719_v18 = vunpack.i.l.bf16 %v13508_v16  ;;  %v19720_v29 = vld [vmem:[#allocation132_spill] sm:$0xff]  ;;  %v14723_v58 = vpop.f32.mrf.mxu0 }
 0x6a3   :  { %v5601_v61 = vsel %vm870_vm3, %v19709_v20, %v19708_v8  ;;  %v5600_v3 = vsel %vm870_vm3, %v19712_v34, %v19710_v47  ;;  %v4100_v41 = vmul.f32 0.01, %v3462_v15  ;;  %vm3992_vm10 = vcmp.ge.f32.partialorder %v3462_v15, 0.0 }
 0x6a4   :  { %v3626_v40 = vpop.f32.mrf.mxu2  ;;  %6843 = vmatpush.msrb.mxu0 %v5601_v61  ;;  %v14700_v61 = vld [vmem:[%s18261_s7 + $0xb0] sm:$0xf]  ;;  %v5599_v34 = vsel %vm870_vm3, %v19716_v28, %v19715_v33  ;;  %v19718_v20 = vunpack.i.l.bf16 %v13956_v17 }
 0x6a5   :  { %3862 = vmatmul.f32.gmra.mxu1 %v19629_v14  ;;  %v3627_v2 = vadd.f32 %v3626_v40, %v3556_v10  ;;  %v3559_v40 = vadd.f32 %v14334_v23, %v19720_v29  ;;  %v19721_v10 = vunpack.i.h.bf16 %v13956_v17  ;;  %v14740_v17 = vpop.permute.xlu1 %8620  ;;  %v19729_v29 = vld [vmem:[#allocation13_spill] sm:$0xff] }
 0x6a6   :  { %6844 = vmatpush.msrb.mxu0 %v5600_v3  ;;  %v5598_v47 = vsel %vm870_vm3, %v19719_v18, %v19718_v20  ;;  %19725 = vst [vmem:[#allocation135_spill] sm:$0xff] %v14740_v17  ;;  %v19726_v20 = vld [vmem:[#allocation145_spill] sm:$0xff]  ;;  %v18733_v18 = vunpack.i.l.bf16 %v14393_v56 }
 0x6a7   :  { %3673 = vmatmul.f32.gmra.mxu2 %v19474_v12  ;;  %6685 = vmatmul.f32.gmra.mxu0 %v14700_v61  ;;  %vm3897_vm12 = vcmp.ge.f32.partialorder %v3627_v2, 0.0 }
 0x6a8   :  { %v3464_v14 = vpop.f32.mrf.mxu3  ;;  %6845 = vmatpush.msrb.mxu0 %v5599_v34  ;;  %8735 = vrot.lane.b32.xlu1 %v8729_v22, %s9097_s11  ;;  %v14731_v34 = vsel %vm3992_vm10, %v3462_v15, %v4100_v41  ;;  %v14746_v41 = vld [vmem:[%s18261_s7 + $0x8] sm:$0xff] }
 0x6a9   :  { %3741 = vmatmul.f32.gmra.mxu3 %v19717_v60  ;;  %v3465_v54 = vadd.f32 %v3464_v14, %v3394_v51  ;;  %v19722_v51 = vunpack.i.h.bf16 %v13508_v16  ;;  %19723 = vst [vmem:[#allocation75_spill] sm:$0xff] %v14731_v34  ;;  %v4005_v14 = vmul.f32 0.01, %v3627_v2  ;;  %v18732_v60 = vunpack.i.h.bf16 %v14393_v56 }
 0x6aa   :  { %v14711_v8 = vpop.f32.mrf.mxu1  ;;  %6846 = vmatpush.msrb.mxu0 %v5598_v47 }
 0x6ab   :  { %vm3998_vm11 = vcmp.ge.f32.partialorder %v3465_v54, 0.0  ;;  %v4106_v3 = vmul.f32 0.01, %v3465_v54  ;;  %v5597_v33 = vsel %vm870_vm3, %v19722_v51, %v19721_v10  ;;  %v18736_v10 = vunpack.i.h.bf16 %v14419_v19  ;;  %v14761_v51 = vpop.permute.xlu2 %8640 }
 0x6ac   :  { %v3629_v28 = vpop.f32.mrf.mxu2  ;;  %6847 = vmatpush.msrb.mxu0 %v5597_v33  ;;  %19730 = vst [vmem:[#allocation5_spill] sm:$0xff] %v14761_v51  ;;  %v14775_v33 = vld [vmem:[%s18261_s7] sm:$0xff] }
 0x6ad   :  { %v14733_v22 = vsel %vm3998_vm11, %v3465_v54, %v4106_v3  ;;  %v3630_v23 = vadd.f32 %v3629_v28, %v3559_v40  ;;  %3865 = vmatmul.f32.gmra.mxu1 %v19637_v49  ;;  %v18735_v54 = vunpack.i.h.bf16 %v13757_v13  ;;  %v14751_v49 = vsel %vm3897_vm12, %v3627_v2, %v4005_v14  ;;  %v19732_v14 = vld [vmem:[#allocation40_spill] sm:$0xff] }
 0x6ae   :  { %19724 = vst [vmem:[#allocation15_spill] sm:$0xff] %v14733_v22  ;;  %v8739_v16 = vpack.i.bf16 %v14733_v22, %v14731_v34  ;;  %6848 = vmatpush.msrb.mxu0 %v19726_v20  ;;  %v18734_v3 = vunpack.i.l.bf16 %v13757_v13  ;;  %vm6531_vm11 = vcmask 654336  }
 0x6af   :  { %3676 = vmatmul.f32.gmra.mxu2 %v19489_v26  ;;  %vm3903_vm13 = vcmp.ge.f32.partialorder %v3630_v23, 0.0  ;;  %v4011_v15 = vmul.f32 0.01, %v3630_v23  ;;  %19727 = vst [vmem:[#allocation125_spill] sm:$0xff] %v14751_v49  ;;  %6763 = vmatmul.f32.vlgmr.msra.gmra.mxu0 %v14746_v41 }
 0x6b0   :  { %8740 = vrot.lane.b32.xlu0 %v8739_v16, %s9095_s1  ;;  %6849 = vmatpush.msrb.mxu0 %v13738_v32  ;;  %v14757_v40 = vpop.f32.mrf.mxu3  ;;  %v5110_v32 = vsel %vm707_vm2, %v18735_v54, %v18732_v60  ;;  %v18742_v16 = vunpack.i.l.bf16 %v14419_v19  ;;  %v5109_v20 = vsel %vm707_vm2, %v18734_v3, %v18733_v18  ;;  %v14806_v3 = vld [vmem:[%s18261_s7 + $0x38] sm:$0xff]  ;;  %v19734_v54 = vld [vmem:[#allocation133_spill] sm:$0xff] }
 0x6b1   :  { %v14754_v47 = vsel %vm3903_vm13, %v3630_v23, %v4011_v15  ;;  %3744 = vmatmul.f32.gmra.mxu3 %v19729_v29  ;;  %v18737_v23 = vunpack.i.h.bf16 %v19732_v14 }
 0x6b2   :  { %19728 = vst [vmem:[#allocation124_spill] sm:$0xff] %v14754_v47  ;;  %v14770_v2 = vpop.f32.mrf.mxu1  ;;  %v8754_v28 = vpack.i.bf16 %v14754_v47, %v14751_v49  ;;  %6950 = vmatpush.msra.mxu0 %v5110_v32  ;;  %v14791_v32 = vpop.f32.mrf.mxu0  ;;  %v19745_v49 = vunpack.i.l.bf16 %v14389_v43  ;;  %v19746_v47 = vunpack.i.l.bf16 %v19734_v54 }
 0x6b3   :  { %19731 = vst [vmem:[#allocation132_spill] sm:$0xff] %v14770_v2  ;;  %v5108_v60 = vsel %vm707_vm2, %v18737_v23, %v18736_v10  ;;  %v14817_v23 = vpop.permute.xlu1 %8625  ;;  %v19768_v2 = vld [vmem:[#allocation108_spill] sm:$0xff] }
 0x6b4   :  { %8755 = vrot.lane.b32.xlu1 %v8754_v28, %s9095_s1  ;;  %6951 = vmatpush.msra.mxu0 %v5109_v20  ;;  %v3632_v18 = vpop.f32.mrf.mxu2  ;;  %v8744_v28 = vpack.i.bf16 %v14731_v34, %v14733_v22  ;;  %v19733_v20 = vmov 0.0   ;;  %19736 = vst [vmem:[#allocation145_spill] sm:$0xff] %v14817_v23  ;;  %v19738_v34 = vld [vmem:[#allocation141_spill] sm:$0xff]  ;;  %v19739_v22 = vunpack.i.h.bf16 %v14389_v43  ;;  %v5105_v23 = vsel %vm707_vm2, %v19746_v47, %v19745_v49 }
 0x6b5   :  { %3868 = vmatmul.f32.gmra.mxu1 %v19644_v21  ;;  %v19735_v21 = vunpack.i.l.bf16 %v19732_v14  ;;  %v3562_v15 = vadd.f32 %v14369_v38, %v19738_v34  ;;  %v19747_v34 = vunpack.i.l.bf16 %v14328_v44  ;;  %v19752_v47 = vld [vmem:[#allocation149_spill] sm:$0xff] }
 0x6b6   :  { %6952 = vmatpush.msra.mxu0 %v5108_v60  ;;  %v19737_v60 = vld [vmem:[#allocation9_spill] sm:$0xff] }
 0x6b7   :  { %6560 = vmatmul.f32.vlgmr.msrb.gmra.mxu2 %v14775_v33  ;;  %v5107_v10 = vsel %vm707_vm2, %v19735_v21, %v18742_v16  ;;  %6766 = vmatmul.f32.gmra.mxu0 %v14806_v3  ;;  %v19740_v21 = vunpack.i.h.bf16 %v19734_v54 }
 0x6b8   :  { %6704 = vmatpush.msrb.mxu2 %v19733_v20  ;;  %8745 = vrot.lane.b32.xlu0 %v8744_v28, %s9096_s10  ;;  %v19744_v20 = vld [vmem:[#allocation34_spill] sm:$0xff] }
 0x6b9   :  { %6953 = vmatpush.msra.mxu0 %v5107_v10  ;;  %3747 = vmatmul.f32.gmra.mxu3 %v19737_v60  ;;  %v5106_v16 = vsel %vm707_vm2, %v19740_v21, %v19739_v22  ;;  %v14831_v17 = vpop.f32.mrf.mxu3  ;;  %v14836_v10 = vld [vmem:[%s18261_s7 + $0x30] sm:$0xff]  ;;  %v3633_v21 = vadd.f32 %v3632_v18, %v3562_v15  ;;  %v19750_v15 = vunpack.i.h.bf16 %v14328_v44 }
 0x6ba   :  { %19741 = vst [vmem:[#allocation13_spill] sm:$0xff] %v14836_v10  ;;  %v14838_v60 = vpop.permute.xlu2 %8675  ;;  %v14840_v38 = vpop.f32.mrf.mxu1 }
 0x6bb   :  { %19742 = vst [vmem:[#allocation40_spill] sm:$0xff] %v14838_v60  ;;  %6954 = vmatpush.msra.mxu0 %v5106_v16  ;;  %v18752_v29 = vunpack.i.l.bf16 %v14838_v60  ;;  %v19749_v18 = vunpack.i.h.bf16 %v14838_v60  ;;  %v19753_v16 = vld [vmem:[#allocation146_spill] sm:$0xff]  ;;  %vm3909_vm14 = vcmp.ge.f32.partialorder %v3633_v21, 0.0 }
 0x6bc   :  { %19743 = vst [vmem:[#allocation133_spill] sm:$0xff] %v14840_v38  ;;  %v3565_v37 = vadd.f32 %v14384_v6, %v19753_v16  ;;  %v19755_v38 = vunpack.i.h.bf16 %v19744_v20  ;;  %v14887_v16 = vpop.f32.mrf.mxu0  ;;  %v19759_v6 = vld [vmem:[#allocation154_spill] sm:$0xff] }
 0x6bd   :  { %6955 = vmatpush.msra.mxu0 %v5105_v23  ;;  %v14860_v22 = vsel %vm870_vm3, %v19747_v34, %v18752_v29  ;;  %v14868_v49 = vsel %vm870_vm3, %v19750_v15, %v19749_v18  ;;  %3871 = vmatmul.f32.gmra.mxu1 %v19651_v55  ;;  %v19756_v29 = vld [vmem:[#allocation106_spill] sm:$0xff]  ;;  %v14884_v18 = vld [vmem:[%s18261_s7 + $0x68] sm:$0xff]  ;;  %v4017_v15 = vmul.f32 0.01, %v3633_v21  ;;  %v19757_v23 = vunpack.i.l.bf16 %v14157_v63 }
 0x6be   :  { %19748 = vst [vmem:[#allocation9_spill] sm:$0xff] %v14860_v22  ;;  %v3635_v60 = vpop.f32.mrf.mxu2  ;;  %v19760_v22 = vld [vmem:[#allocation105_spill] sm:$0xff] }
 0x6bf   :  { %6563 = vmatmul.f32.gmra.mxu2 %v14836_v10  ;;  %19751 = vst [vmem:[#allocation141_spill] sm:$0xff] %v14868_v49  ;;  %v19754_v10 = vunpack.i.h.bf16 %v14157_v63  ;;  %6769 = vmatmul.f32.gmra.mxu0 %v14884_v18  ;;  %v19761_v63 = vunpack.i.h.bf16 %v19752_v47 }
 0x6c0   :  { %8750 = vrot.lane.b32.xlu0 %v8744_v28, %s9097_s11 }
 0x6c1   :  { %v5104_v34 = vsel %vm707_vm2, %v19755_v38, %v19754_v10  ;;  %v19758_v10 = vunpack.i.l.bf16 %v19744_v20  ;;  %v3636_v38 = vadd.f32 %v3635_v60, %v3565_v37  ;;  %6589 = vmatmul.f32.vlgmr.msra.gmra.mxu3 %v14746_v41  ;;  %v19762_v37 = vunpack.i.h.bf16 %v19756_v29  ;;  %v14910_v60 = vld [vmem:[%s18261_s7 + $0x60] sm:$0xff] }
 0x6c2   :  { %6956 = vmatpush.msra.mxu0 %v5104_v34  ;;  %6718 = vmatpush.msra.mxu3 %v19760_v22  ;;  %v19778_v34 = vunpack.i.h.bf16 %v14037_v24 }
 0x6c3   :  { %v5103_v55 = vsel %vm707_vm2, %v19758_v10, %v19757_v23  ;;  %vm3915_vm15 = vcmp.ge.f32.partialorder %v3636_v38, 0.0  ;;  %v4023_v49 = vmul.f32 0.01, %v3636_v38  ;;  %v5102_v28 = vsel %vm707_vm2, %v19762_v37, %v19761_v63  ;;  %v19764_v23 = vld [vmem:[#allocation104_spill] sm:$0xff] }
 0x6c4   :  { %6957 = vmatpush.msra.mxu0 %v5103_v55  ;;  %v14915_v55 = vpop.f32.mrf.mxu1  ;;  %v14917_v44 = vpop.f32.mrf.mxu3  ;;  %v14923_v37 = vsel %vm3909_vm14, %v3633_v21, %v4017_v15  ;;  %6719 = vmatpush.msra.mxu3 %v19768_v2  ;;  %v19769_v10 = vunpack.i.l.bf16 %v19752_v47  ;;  %v19771_v15 = vld [vmem:[#allocation96_spill] sm:$0xff]  ;;  %v19773_v63 = vunpack.i.h.bf16 %v19764_v23  ;;  %v19789_v2 = vunpack.i.l.bf16 %v14604_v30 }
 0x6c5   :  { %v14912_v41 = vpop.permute.xlu1 %8660  ;;  %19765 = vst [vmem:[#allocation149_spill] sm:$0xff] %v14915_v55  ;;  %v14925_v51 = vsel %vm3915_vm15, %v3636_v38, %v4023_v49  ;;  %v19772_v38 = vunpack.i.h.bf16 %v19759_v6  ;;  %3874 = vmatmul.f32.gmra.mxu1 %v19665_v36  ;;  %v14967_v36 = vld [vmem:[%s18261_s7 + $0x98] sm:$0xf] }
 0x6c6   :  { %19763 = vst [vmem:[#allocation34_spill] sm:$0xff] %v14912_v41  ;;  %6958 = vmatpush.msra.mxu0 %v5102_v28  ;;  %v19770_v28 = vunpack.i.l.bf16 %v19756_v29  ;;  %v8759_v21 = vpack.i.bf16 %v14925_v51, %v14923_v37  ;;  %6720 = vmatpush.msra.mxu3 %v19771_v15  ;;  %v19777_v49 = vunpack.i.h.bf16 %v14912_v41 }
 0x6c7   :  { %19766 = vst [vmem:[#allocation146_spill] sm:$0xff] %v14923_v37  ;;  %6566 = vmatmul.f32.gmra.mxu2 %v14910_v60  ;;  %v5100_v22 = vsel %vm707_vm2, %v19773_v63, %v19772_v38  ;;  %v14981_v63 = vpop.f32.mrf.mxu0  ;;  %v19783_v38 = vld [vmem:[#allocation52_spill] sm:$0xff]  ;;  %6772 = vmatmul.f32.gmra.mxu0 %v14967_v36 }
 0x6c8   :  { %19767 = vst [vmem:[#allocation106_spill] sm:$0xff] %v14925_v51  ;;  %v5101_v55 = vsel %vm707_vm2, %v19770_v28, %v19769_v10  ;;  %v19774_v10 = vunpack.i.l.bf16 %v14912_v41  ;;  %v14961_v15 = vsel %vm870_vm3, %v19778_v34, %v19777_v49  ;;  %8760 = vrot.lane.b32.xlu2 %v8759_v21, %s9095_s1  ;;  %v19784_v41 = vunpack.i.h.bf16 %v14604_v30  ;;  %v19787_v21 = vld [vmem:[#allocation159_spill] sm:$0xff] }
 0x6c9   :  { %6959 = vmatpush.msra.mxu0 %v5101_v55  ;;  %v19775_v55 = vunpack.i.l.bf16 %v14037_v24  ;;  %19779 = vst [vmem:[#allocation104_spill] sm:$0xff] %v14961_v15  ;;  %v19781_v24 = vunpack.i.l.bf16 %v19759_v6  ;;  %6592 = vmatmul.f32.gmra.mxu3 %v14806_v3  ;;  %v19785_v15 = vunpack.i.h.bf16 %v14241_v7  ;;  %v14994_v3 = vld [vmem:[%s18261_s7 + $0x90] sm:$0xf] }
 0x6ca   :  { %v3638_v34 = vpop.f32.mrf.mxu2 }
 0x6cb   :  { %v14953_v28 = vsel %vm870_vm3, %v19775_v55, %v19774_v10  ;;  %6960 = vmatpush.msra.mxu0 %v5100_v22  ;;  %v19780_v10 = vld [vmem:[#allocation97_spill] sm:$0xff]  ;;  %v19782_v55 = vunpack.i.l.bf16 %v19764_v23 }
 0x6cc   :  { %19776 = vst [vmem:[#allocation154_spill] sm:$0xff] %v14953_v28  ;;  %6721 = vmatpush.msra.mxu3 %v19780_v10  ;;  %v14998_v49 = vpop.f32.mrf.mxu1  ;;  %v18767_v28 = vunpack.i.h.bf16 %v19787_v21  ;;  %v19788_v10 = vld [vmem:[#allocation90_spill] sm:$0xff]  ;;  %v15009_v37 = vpop.f32.mrf.mxu3 }
 0x6cd   :  { %v5099_v22 = vsel %vm707_vm2, %v19782_v55, %v19781_v24  ;;  %v4648_v24 = vsel %vm544_vm1, %v19785_v15, %v19784_v41  ;;  %v19786_v55 = vld [vmem:[#allocation150_spill] sm:$0xff]  ;;  %v19790_v41 = vunpack.i.l.bf16 %v14241_v7  ;;  %3877 = vmatmul.f32.gmra.mxu1 %v19673_v9 }
 0x6ce   :  { %6961 = vmatpush.msra.mxu0 %v5099_v22  ;;  %6722 = vmatpush.msra.mxu3 %v19783_v38  ;;  %v3568_v22 = vadd.f32 %v14411_v62, %v19786_v55  ;;  %v18766_v62 = vunpack.i.l.bf16 %v19787_v21  ;;  %v19792_v55 = vunpack.i.h.bf16 %v14422_v1  ;;  %v19796_v9 = vld [vmem:[#allocation54_spill] sm:$0xff] }
 0x6cf   :  { %v4647_v15 = vsel %vm544_vm1, %v19790_v41, %v19789_v2  ;;  %6569 = vmatmul.f32.gmra.mxu2 %v14994_v3  ;;  %v19793_v2 = vld [vmem:[#allocation70_spill] sm:$0xff]  ;;  %6850 = vmatmul.f32.vlgmr.msrb.gmra.mxu0 %v14564_v46 }
 0x6d0   :  { %6962 = vmatpush.msra.mxu0 %v4648_v24  ;;  %6723 = vmatpush.msra.mxu3 %v19788_v10  ;;  %v3639_v51 = vadd.f32 %v3638_v34, %v3568_v22  ;;  %v19791_v24 = vld [vmem:[#allocation49_spill] sm:$0xff]  ;;  %v4646_v38 = vsel %vm544_vm1, %v18767_v28, %v19792_v55  ;;  %v3571_v41 = vadd.f32 %v14430_v53, %v19793_v2  ;;  %v19794_v34 = vld [vmem:[#allocation87_spill] sm:$0xff]  ;;  %v19795_v22 = vunpack.i.l.bf16 %v14422_v1  ;;  %v15036_v53 = vld [vmem:[%s18261_s7 + $0x10] sm:$0xff]  ;;  %v15041_v2 = vpop.f32.mrf.mxu0 }
 0x6d1   :  { %6595 = vmatmul.f32.gmra.mxu3 %v14884_v18  ;;  %v19803_v28 = vld [vmem:[#allocation69_spill] sm:$0xff] }
 0x6d2   :  { %6963 = vmatpush.msra.mxu0 %v4647_v15  ;;  %6724 = vmatpush.msra.mxu3 %v19791_v24  ;;  %v4645_v15 = vsel %vm544_vm1, %v18766_v62, %v19795_v22  ;;  %v3641_v24 = vpop.f32.mrf.mxu2  ;;  %v4029_v10 = vmul.f32 0.01, %v3639_v51  ;;  %vm3921_vm0 = vcmp.ge.f32.partialorder %v3639_v51, 0.0  ;;  %v19800_v22 = vunpack.i.h.bf16 %v13757_v13 }
 0x6d3   :  { %v3642_v30 = vadd.f32 %v3641_v24, %v3571_v41  ;;  %v19797_v24 = vld [vmem:[#allocation59_spill] sm:$0xff] }
 0x6d4   :  { %6964 = vmatpush.msra.mxu0 %v4646_v38  ;;  %6725 = vmatpush.msra.mxu3 %v19794_v34  ;;  %v15039_v55 = vpop.f32.mrf.mxu1  ;;  %v15044_v18 = vpop.f32.mrf.mxu3  ;;  %v15046_v41 = vsel %vm3921_vm0, %v3639_v51, %v4029_v10  ;;  %v19804_v10 = vunpack.i.l.bf16 %v13757_v13  ;;  %v19808_v13 = vld [vmem:[#allocation12_spill] sm:$0xff] }
 0x6d5   :  { %vm3927_vm4 = vcmp.ge.f32.partialorder %v3642_v30, 0.0  ;;  %v4035_v38 = vmul.f32 0.01, %v3642_v30  ;;  %19798 = vst [vmem:[#allocation150_spill] sm:$0xff] %v15046_v41  ;;  %3880 = vmatmul.f32.gmra.mxu1 %v19460_v0  ;;  %v19807_v0 = vunpack.i.h.bf16 %v19732_v14 }
 0x6d6   :  { %6965 = vmatpush.msra.mxu0 %v4645_v15  ;;  %6726 = vmatpush.msra.mxu3 %v19796_v9  ;;  %v19801_v15 = vld [vmem:[#allocation31_spill] sm:$0xff] }
 0x6d7   :  { %v15048_v46 = vsel %vm3927_vm4, %v3642_v30, %v4035_v38  ;;  %6618 = vmatmul.f32.vlgmr.msra.gmra.mxu2 %v15036_v53  ;;  %v19802_v9 = vunpack.i.h.bf16 %v19801_v15  ;;  %v19805_v38 = vunpack.i.l.bf16 %v19801_v15  ;;  %6853 = vmatmul.f32.gmra.mxu0 %v14614_v48 }
 0x6d8   :  { %7066 = vmatpush.msrb.mxu0 %v14625_v11  ;;  %6727 = vmatpush.msra.mxu3 %v19797_v24  ;;  %19799 = vst [vmem:[#allocation159_spill] sm:$0xff] %v15048_v46  ;;  %v15061_v51 = vpack.i.bf16 %v15046_v41, %v15048_v46  ;;  %v8764_v30 = vpack.i.bf16 %v15048_v46, %v15046_v41  ;;  %v19822_v11 = vld [vmem:[#allocation83_spill] sm:$0xff]  ;;  %v19837_v41 = vunpack.i.l.bf16 %v19744_v20 }
 0x6d9   :  { %v5128_v62 = vsel %vm707_vm2, %v19802_v9, %v19800_v22  ;;  %v5127_v24 = vsel %vm707_vm2, %v19805_v38, %v19804_v10  ;;  %6598 = vmatmul.f32.gmra.mxu3 %v14967_v36  ;;  %v19809_v22 = vunpack.i.h.bf16 %v19808_v13  ;;  %v19810_v9 = vld [vmem:[#allocation71_spill] sm:$0xff]  ;;  %v19811_v38 = vld [vmem:[#allocation73_spill] sm:$0xff]  ;;  %v15096_v36 = vld [vmem:[%s18261_s7 + $0x40] sm:$0xff] }
 0x6da   :  { %7067 = vmatpush.msrb.mxu0 %v14631_v5  ;;  %6728 = vmatpush.msra.mxu3 %v19803_v28  ;;  %v19806_v28 = vld [vmem:[#allocation48_spill] sm:$0xff]  ;;  %v19818_v5 = vld [vmem:[#allocation163_spill] sm:$0xff] }
 0x6db   :  { %6776 = vmatpush.msra.mxu2 %v5128_v62  ;;  %v3644_v62 = vpop.f32.mrf.mxu2  ;;  %8770 = vrot.lane.b32.xlu2 %v15061_v51, %s9097_s11  ;;  %v5126_v15 = vsel %vm707_vm2, %v19809_v22, %v19807_v0  ;;  %v19814_v0 = vld [vmem:[#allocation74_spill] sm:$0xff]  ;;  %v19815_v22 = vunpack.i.l.bf16 %v19732_v14 }
 0x6dc   :  { %7068 = vmatpush.msrb.mxu0 %v14543_v35  ;;  %6729 = vmatpush.msra.mxu3 %v19806_v28  ;;  %v15086_v10 = vpop.f32.mrf.mxu1 }
 0x6dd   :  { %6777 = vmatpush.msra.mxu2 %v5127_v24  ;;  %8765 = vrot.lane.b32.xlu0 %v8764_v30, %s9095_s1  ;;  %v19812_v24 = vld [vmem:[#allocation164_spill] sm:$0xff]  ;;  %v15091_v30 = vpop.f32.mrf.mxu3 }
 0x6de   :  { %7069 = vmatpush.msrb.mxu0 %v14541_v50  ;;  %6730 = vmatpush.msra.mxu3 %v19810_v9  ;;  %v3574_v28 = vadd.f32 %v19812_v24, %v19811_v38  ;;  %v19813_v50 = vld [vmem:[#allocation6_spill] sm:$0xff]  ;;  %v15106_v38 = vpop.f32.mrf.mxu0  ;;  %v19817_v24 = vld [vmem:[#allocation32_spill] sm:$0xff] }
 0x6df   :  { %6778 = vmatpush.msra.mxu2 %v5126_v15  ;;  %v19816_v15 = vunpack.i.l.bf16 %v19808_v13  ;;  %v3577_v35 = vadd.f32 %v14516_v27, %v19817_v24  ;;  %v19823_v27 = vld [vmem:[#allocation56_spill] sm:$0xff]  ;;  %3883 = vmatmul.f32.gmra.mxu1 %v19465_v45 }
 0x6e0   :  { %7070 = vmatpush.msrb.mxu0 %v19813_v50  ;;  %6731 = vmatpush.msra.mxu3 %v19814_v0  ;;  %v3645_v48 = vadd.f32 %v3644_v62, %v3574_v28  ;;  %v19819_v0 = vunpack.i.h.bf16 %v19734_v54  ;;  %v19820_v50 = vld [vmem:[#allocation101_spill] sm:$0xff]  ;;  %v15122_v62 = vld [vmem:[%s18261_s7 + $0x18] sm:$0xff]  ;;  %v19824_v28 = vunpack.i.l.bf16 %v19734_v54  ;;  %v19830_v45 = vld [vmem:[#allocation140_spill] sm:$0xff] }
 0x6e1   :  { %v5125_v9 = vsel %vm707_vm2, %v19816_v15, %v19815_v22  ;;  %6621 = vmatmul.f32.gmra.mxu2 %v15096_v36  ;;  %v19821_v14 = vunpack.i.h.bf16 %v19820_v50  ;;  %v19825_v15 = vunpack.i.l.bf16 %v19820_v50  ;;  %6647 = vmatmul.f32.vlgmr.msrb.gmra.mxu3 %v15122_v62  ;;  %v19831_v54 = vld [vmem:[#allocation139_spill] sm:$0xff] }
 0x6e2   :  { %6779 = vmatpush.msra.mxu2 %v5125_v9  ;;  %7071 = vmatpush.msrb.mxu0 %v19818_v5  ;;  %vm3933_vm5 = vcmp.ge.f32.partialorder %v3645_v48, 0.0  ;;  %v19841_v46 = vunpack.i.h.bf16 %v19831_v54 }
 0x6e3   :  { %v5124_v13 = vsel %vm707_vm2, %v19821_v14, %v19819_v0  ;;  %6732 = vmatpush.msra.mxu3 %v19822_v11  ;;  %v3647_v22 = vpop.f32.mrf.mxu2  ;;  %v5123_v9 = vsel %vm707_vm2, %v19825_v15, %v19824_v28  ;;  %v4041_v11 = vmul.f32 0.01, %v3645_v48  ;;  %v19826_v0 = vld [vmem:[#allocation84_spill] sm:$0xff]  ;;  %v19827_v14 = vunpack.i.h.bf16 %v19744_v20  ;;  %6856 = vmatmul.f32.gmra.mxu0 %v14640_v25 }
 0x6e4   :  { %6780 = vmatpush.msra.mxu2 %v5124_v13  ;;  %7072 = vmatpush.msrb.mxu0 %v19823_v27  ;;  %v3648_v24 = vadd.f32 %v3647_v22, %v3577_v35  ;;  %v19828_v13 = vld [vmem:[#allocation29_spill] sm:$0xff]  ;;  %v19832_v35 = vunpack.i.l.bf16 %v19831_v54  ;;  %v19843_v25 = vunpack.i.h.bf16 %v19756_v29  ;;  %v19844_v20 = vld [vmem:[#allocation88_spill] sm:$0xff]  ;;  %v19846_v54 = vld [vmem:[#allocation50_spill] sm:$0xff] }
 0x6e5   :  { %6733 = vmatpush.msra.mxu3 %v19826_v0  ;;  %v19829_v5 = vunpack.i.h.bf16 %v19828_v13  ;;  %v19833_v22 = vld [vmem:[#allocation17_spill] sm:$0xff]  ;;  %v15147_v0 = vpop.permute.xlu1 %8665 }
 0x6e6   :  { %6781 = vmatpush.msra.mxu2 %v5123_v9  ;;  %7073 = vmatpush.msrb.mxu0 %v19830_v45  ;;  %vm3939_vm6 = vcmp.ge.f32.partialorder %v3648_v24, 0.0  ;;  %v4047_v50 = vmul.f32 0.01, %v3648_v24  ;;  %v19834_v28 = vunpack.i.l.bf16 %v19833_v22  ;;  %v3839_v9 = vpop.f32.mrf.mxu1  ;;  %19835 = vst [vmem:[#allocation70_spill] sm:$0xff] %v15147_v0  ;;  %v19842_v0 = vunpack.i.h.bf16 %v19833_v22 }
 0x6e7   :  { %v5122_v27 = vsel %vm707_vm2, %v19829_v5, %v19827_v14  ;;  %v15149_v5 = vpop.f32.mrf.mxu3  ;;  %v15154_v14 = vld [vmem:[%s18261_s7 + $0x70] sm:$0xff]  ;;  %3886 = vmatmul.f32.gmra.mxu1 %v19474_v12  ;;  %v19851_v12 = vld [vmem:[#allocation123_spill] sm:$0xff] }
 0x6e8   :  { %v5594_v15 = vsel %vm870_vm3, %v19834_v28, %v19832_v35  ;;  %6782 = vmatpush.msra.mxu2 %v5122_v27  ;;  %v15156_v45 = vsel %vm3939_vm6, %v3648_v24, %v4047_v50  ;;  %v19838_v35 = vunpack.i.l.bf16 %v19828_v13  ;;  %v15165_v27 = vsel %vm3933_vm5, %v3645_v48, %v4041_v11  ;;  %v15185_v50 = vpop.f32.mrf.mxu0 }
 0x6e9   :  { %6805 = vmatpush.msrb.mxu3 %v5594_v15  ;;  %19836 = vst [vmem:[#allocation87_spill] sm:$0xff] %v15156_v45  ;;  %v19840_v15 = vld [vmem:[#allocation134_spill] sm:$0xff]  ;;  %v5593_v24 = vsel %vm870_vm3, %v19842_v0, %v19841_v46  ;;  %6624 = vmatmul.f32.gmra.mxu2 %v15154_v14  ;;  %v19845_v13 = vunpack.i.h.bf16 %v19844_v20  ;;  %v8774_v48 = vpack.i.bf16 %v15156_v45, %v15165_v27 }
 0x6ea   :  { %v5121_v28 = vsel %vm707_vm2, %v19838_v35, %v19837_v41  ;;  %19839 = vst [vmem:[#allocation54_spill] sm:$0xff] %v15165_v27  ;;  %7074 = vmatpush.msrb.mxu0 %v19840_v15  ;;  %v3769_v11 = vadd.f32 %v14668_v59, %v14757_v40  ;;  %v8779_v22 = vpack.i.bf16 %v15165_v27, %v15156_v45  ;;  %v19847_v0 = vld [vmem:[#allocation38_spill] sm:$0xff]  ;;  %v19848_v35 = vunpack.i.l.bf16 %v19756_v29 }
 0x6eb   :  { %6783 = vmatpush.msra.mxu2 %v5121_v28  ;;  %6806 = vmatpush.msrb.mxu3 %v5593_v24  ;;  %v5120_v41 = vsel %vm707_vm2, %v19845_v13, %v19843_v25  ;;  %v3650_v46 = vpop.f32.mrf.mxu2  ;;  %v19849_v28 = vunpack.i.l.bf16 %v19844_v20  ;;  %v3772_v40 = vadd.f32 %v14723_v58, %v14831_v17  ;;  %v19850_v25 = vld [vmem:[#allocation122_spill] sm:$0xff]  ;;  %v15204_v13 = vld [vmem:[%s18261_s7 + $0x48] sm:$0xff]  ;;  %v19854_v58 = vunpack.i.h.bf16 %v19764_v23  ;;  %v19855_v17 = vld [vmem:[#allocation55_spill] sm:$0xff] }
 0x6ec   :  { %7075 = vmatpush.msrb.mxu0 %v19846_v54  ;;  %v3840_v24 = vadd.f32 %v3839_v9, %v3769_v11  ;;  %8775 = vrot.lane.b32.xlu1 %v8774_v48, %s9095_s1  ;;  %v19852_v20 = vld [vmem:[#allocation33_spill] sm:$0xff]  ;;  %v19856_v9 = vunpack.i.h.bf16 %v19855_v17  ;;  %v19857_v48 = vld [vmem:[#allocation36_spill] sm:$0xff]  ;;  %v19915_v27 = vld [vmem:[#allocation130_spill] sm:$0xff] }
 0x6ed   :  { %6784 = vmatpush.msra.mxu2 %v5120_v41  ;;  %6807 = vmatpush.msrb.mxu3 %v19847_v0  ;;  %v5119_v59 = vsel %vm707_vm2, %v19849_v28, %v19848_v35  ;;  %v3580_v41 = vadd.f32 %v14566_v31, %v19852_v20  ;;  %v19853_v0 = vld [vmem:[#allocation44_spill] sm:$0xff]  ;;  %v19859_v31 = vld [vmem:[#allocation93_spill] sm:$0xff] }
 0x6ee   :  { %7076 = vmatpush.msrb.mxu0 %v19850_v25  ;;  %v3842_v29 = vpop.f32.mrf.mxu1  ;;  %8780 = vrot.lane.b32.xlu0 %v8779_v22, %s9097_s11  ;;  %v5118_v11 = vsel %vm707_vm2, %v19856_v9, %v19854_v58  ;;  %v19862_v25 = vunpack.i.l.bf16 %v19855_v17  ;;  %v15240_v9 = vpop.permute.xlu1 %8670  ;;  %v19865_v17 = vld [vmem:[#allocation95_spill] sm:$0xff]  ;;  %vm3898_vm8 = vcmp.ge.f32.partialorder %v3840_v24, 0.0 }
 0x6ef   :  { %6785 = vmatpush.msra.mxu2 %v5119_v59  ;;  %6808 = vmatpush.msrb.mxu3 %v19851_v12  ;;  %v15218_v35 = vpop.f32.mrf.mxu3  ;;  %v3843_v28 = vadd.f32 %v3842_v29, %v3772_v40  ;;  %v19858_v59 = vunpack.i.l.bf16 %v19857_v48  ;;  %v19860_v12 = vunpack.i.l.bf16 %v19859_v31  ;;  %v15236_v40 = vld [vmem:[%s18261_s7 + $0xa0] sm:$0xf]  ;;  %v15238_v29 = vpop.permute.xlu0 %8645  ;;  %19864 = vst [vmem:[#allocation31_spill] sm:$0xff] %v15240_v9  ;;  %v3651_v54 = vadd.f32 %v3650_v46, %v3580_v41  ;;  %v19871_v41 = vld [vmem:[#allocation131_spill] sm:$0xff] }
 0x6f0   :  { %7077 = vmatpush.msrb.mxu0 %v19853_v0  ;;  %6650 = vmatmul.f32.gmra.mxu3 %v15204_v13  ;;  %v19861_v0 = vunpack.i.l.bf16 %v19764_v23  ;;  %19863 = vst [vmem:[#allocation59_spill] sm:$0xff] %v15238_v29 }
 0x6f1   :  { %6786 = vmatpush.msra.mxu2 %v5118_v11  ;;  %v5590_v20 = vsel %vm870_vm3, %v19860_v12, %v19858_v59  ;;  %v4006_v11 = vmul.f32 0.01, %v3840_v24  ;;  %6859 = vmatmul.f32.gmra.mxu0 %v14700_v61  ;;  %vm3904_vm7 = vcmp.ge.f32.partialorder %v3843_v28, 0.0  ;;  %v4012_v23 = vmul.f32 0.01, %v3843_v28 }
 0x6f2   :  { %v5117_v58 = vsel %vm707_vm2, %v19862_v25, %v19861_v0  ;;  %6809 = vmatpush.msrb.mxu3 %v5590_v20  ;;  %v3583_v59 = vadd.f32 %v14616_v4, %v19865_v17  ;;  %v19866_v25 = vld [vmem:[#allocation98_spill] sm:$0xff]  ;;  %v19867_v0 = vunpack.i.h.bf16 %v19857_v48  ;;  %v19868_v12 = vunpack.i.h.bf16 %v19859_v31  ;;  %6627 = vmatmul.f32.gmra.mxu2 %v15236_v40  ;;  %v19873_v17 = vld [vmem:[#allocation161_spill] sm:$0xff]  ;;  %v19874_v48 = vld [vmem:[#allocation111_spill] sm:$0xff] }
 0x6f3   :  { %7078 = vmatpush.msrb.mxu0 %v19866_v25  ;;  %6787 = vmatpush.msra.mxu2 %v5117_v58  ;;  %v15252_v46 = vsel %vm3904_vm7, %v3843_v28, %v4012_v23  ;;  %v19870_v61 = vunpack.i.h.bf16 %v14241_v7  ;;  %v19872_v4 = vunpack.i.h.bf16 %v19871_v41  ;;  %v3653_v58 = vpop.f32.mrf.mxu2  ;;  %v19875_v31 = vunpack.i.l.bf16 %v19874_v48  ;;  %v19876_v25 = vld [vmem:[#allocation91_spill] sm:$0xff] }
 0x6f4   :  { %v5589_v15 = vsel %vm870_vm3, %v19868_v12, %v19867_v0  ;;  %19869 = vst [vmem:[#allocation69_spill] sm:$0xff] %v15252_v46  ;;  %v19877_v0 = vunpack.i.l.bf16 %v19876_v25  ;;  %v19878_v28 = vunpack.i.h.bf16 %v19874_v48  ;;  %v19879_v23 = vunpack.i.h.bf16 %v19876_v25  ;;  %3889 = vmatmul.f32.gmra.mxu1 %v19489_v26  ;;  %v15288_v25 = vld [vmem:[%s18261_s7 + $0x78] sm:$0xff] }
 0x6f5   :  { %6810 = vmatpush.msrb.mxu3 %v5589_v15  ;;  %v4666_v20 = vsel %vm544_vm1, %v19872_v4, %v19870_v61  ;;  %7079 = vmatpush.msrb.mxu0 %v19873_v17  ;;  %v3654_v29 = vadd.f32 %v3653_v58, %v3583_v59  ;;  %v15274_v61 = vpop.f32.mrf.mxu0  ;;  %v15276_v4 = vsel %vm3898_vm8, %v3840_v24, %v4006_v11  ;;  %v19881_v17 = vunpack.i.l.bf16 %v14241_v7  ;;  %v15290_v59 = vpop.permute.xlu2 %8680  ;;  %v19883_v24 = vld [vmem:[#allocation160_spill] sm:$0xff]  ;;  %v19884_v58 = vld [vmem:[#allocation37_spill] sm:$0xff] }
 0x6f6   :  { %6788 = vmatpush.msra.mxu2 %v4666_v20  ;;  %v5588_v15 = vsel %vm870_vm3, %v19877_v0, %v19875_v31  ;;  %v5587_v12 = vsel %vm870_vm3, %v19879_v23, %v19878_v28  ;;  %19880 = vst [vmem:[#allocation48_spill] sm:$0xff] %v15276_v4  ;;  %v4053_v20 = vmul.f32 0.01, %v3651_v54  ;;  %v19882_v31 = vunpack.i.l.bf16 %v19871_v41  ;;  %v3845_v11 = vpop.f32.mrf.mxu1  ;;  %8785 = vrot.lane.b32.xlu0 %v8779_v22, %s9096_s10  ;;  %v19891_v22 = vld [vmem:[#allocation21_spill] sm:$0xff] }
 0x6f7   :  { %6811 = vmatpush.msrb.mxu3 %v5588_v15  ;;  %vm3945_vm9 = vcmp.ge.f32.partialorder %v3651_v54, 0.0  ;;  %7080 = vmatpush.msrb.mxu0 %v19883_v24  ;;  %vm3951_vm10 = vcmp.ge.f32.partialorder %v3654_v29, 0.0  ;;  %v4059_v26 = vmul.f32 0.01, %v3654_v29  ;;  %v8794_v7 = vpack.i.bf16 %v15252_v46, %v15276_v4  ;;  %v15296_v41 = vpop.f32.mrf.mxu3  ;;  %v19887_v15 = vld [vmem:[#allocation114_spill] sm:$0xff] }
 0x6f8   :  { %v4665_v48 = vsel %vm544_vm1, %v19882_v31, %v19881_v17  ;;  %6653 = vmatmul.f32.gmra.mxu3 %v15288_v25  ;;  %v19886_v0 = vunpack.i.h.bf16 %v19787_v21  ;;  %v19888_v28 = vunpack.i.h.bf16 %v19887_v15  ;;  %v15308_v31 = vpop.permute.xlu0 %8650 }
 0x6f9   :  { %6789 = vmatpush.msra.mxu2 %v4665_v48  ;;  %6812 = vmatpush.msrb.mxu3 %v5587_v12  ;;  %v15299_v17 = vsel %vm3951_vm10, %v3654_v29, %v4059_v26  ;;  %19889 = vst [vmem:[#allocation71_spill] sm:$0xff] %v15308_v31  ;;  %v15310_v12 = vsel %vm3945_vm9, %v3651_v54, %v4053_v20  ;;  %v15316_v29 = vld [vmem:[%s18261_s7 + $0x28] sm:$0xff]  ;;  %v15318_v48 = vpop.permute.xlu1 %8700  ;;  %v19893_v26 = vunpack.i.l.bf16 %v19787_v21  ;;  %v19904_v21 = vunpack.i.l.bf16 %v14304_v42 }
 0x6fa   :  { %7081 = vmatpush.msrb.mxu0 %v19884_v58  ;;  %19885 = vst [vmem:[#allocation12_spill] sm:$0xff] %v15299_v17  ;;  %v4664_v23 = vsel %vm544_vm1, %v19888_v28, %v19886_v0  ;;  %v19894_v0 = vunpack.i.l.bf16 %v19887_v15  ;;  %8795 = vrot.lane.b32.xlu1 %v8794_v7, %s9095_s1  ;;  %v8789_v20 = vpack.i.bf16 %v15299_v17, %v15310_v12  ;;  %v19895_v28 = vld [vmem:[#allocation112_spill] sm:$0xff]  ;;  %v19898_v7 = vunpack.i.h.bf16 %v14304_v42 }
 0x6fb   :  { %19890 = vst [vmem:[#allocation73_spill] sm:$0xff] %v15310_v12  ;;  %6790 = vmatpush.msra.mxu2 %v4664_v23  ;;  %6813 = vmatpush.msrb.mxu3 %v19891_v22  ;;  %v3656_v23 = vpop.f32.mrf.mxu2  ;;  %v19896_v22 = vld [vmem:[#allocation19_spill] sm:$0xff]  ;;  %v3778_v15 = vadd.f32 %v14887_v16, %v15009_v37  ;;  %v3775_v37 = vadd.f32 %v14791_v32, %v14917_v44  ;;  %v19908_v32 = vunpack.i.l.bf16 %v15318_v48  ;;  %v19909_v42 = vunpack.i.h.bf16 %v14393_v56 }
 0x6fc   :  { %19892 = vst [vmem:[#allocation164_spill] sm:$0xff] %v15318_v48  ;;  %6966 = vmatmul.f32.vlgmr.msra.gmra.mxu0 %v15036_v53  ;;  %v4663_v54 = vsel %vm544_vm1, %v19894_v0, %v19893_v26  ;;  %7912 = vmatmul.msk.f32.vlgmr.msrb.gmra.mxu2 %vm6531_vm11, %v15316_v29  ;;  %v19897_v26 = vld [vmem:[#allocation110_spill] sm:$0xff]  ;;  %v19899_v0 = vld [vmem:[#allocation136_spill] sm:$0xff] }
 0x6fd   :  { %7182 = vmatpush.msra.mxu0 %v19895_v28  ;;  %6791 = vmatpush.msra.mxu2 %v4663_v54  ;;  %v19900_v4 = vunpack.i.h.bf16 %v19899_v0  ;;  %v19901_v28 = vld [vmem:[#allocation46_spill] sm:$0xff]  ;;  %v15363_v46 = vpop.f32.mrf.mxu0  ;;  %v15365_v58 = vpop.permute.xlu2 %8685  ;;  %v5092_v44 = vsel %vm707_vm2, %v19909_v42, %v19908_v32  ;;  %v3589_v32 = vadd.f32 %v14711_v8, %v19915_v27  ;;  %v8799_v8 = vpack.i.bf16 %v15310_v12, %v15299_v17  ;;  %v15403_v27 = vld [vmem:[%s18261_s7 + $0x58] sm:$0xff] }
 0x6fe   :  { %6814 = vmatpush.msrb.mxu3 %v19896_v22  ;;  %8790 = vrot.lane.b32.xlu2 %v8789_v20, %s9095_s1  ;;  %v15349_v22 = vld [vmem:[%s18261_s7 + $0xa8] sm:$0xf]  ;;  %v3848_v16 = vpop.f32.mrf.mxu1  ;;  %19907 = vst [vmem:[#allocation32_spill] sm:$0xff] %v15365_v58  ;;  %v19973_v12 = vld [vmem:[#allocation11_spill] sm:$0xff] }
 0x6ff   :  { %7183 = vmatpush.msra.mxu0 %v19897_v26  ;;  %v5134_v54 = vsel %vm707_vm2, %v19900_v4, %v19898_v7  ;;  %6869 = vmatpush.msrb.mxu2 %v19901_v28  ;;  %19902 = vst [vmem:[#allocation74_spill] sm:$0xff] %v15349_v22  ;;  %v19903_v26 = vld [vmem:[#allocation103_spill] sm:$0xff]  ;;  %v19905_v4 = vunpack.i.l.bf16 %v19899_v0  ;;  %v15361_v20 = vpop.f32.mrf.mxu3  ;;  %v3849_v28 = vadd.f32 %v3848_v16, %v3778_v15  ;;  %v19911_v15 = vunpack.i.h.bf16 %v13947_v57  ;;  %v19912_v16 = vld [vmem:[#allocation116_spill] sm:$0xff] }
 0x700   :  { %6815 = vmatpush.msrb.mxu3 %v5134_v54  ;;  %v19906_v54 = vld [vmem:[#allocation61_spill] sm:$0xff]  ;;  %6908 = vmatmul.f32.vlgmr.msra.gmra.mxu1 %v14775_v33  ;;  %v19919_v0 = vunpack.i.l.bf16 %v13947_v57  ;;  %19921 = vst [vmem:[#allocation83_spill] sm:$0xff] %v15403_v27 }
 0x701   :  { %7184 = vmatpush.msra.mxu0 %v19903_v26  ;;  %v5133_v7 = vsel %vm707_vm2, %v19905_v4, %v19904_v21  ;;  %6870 = vmatpush.msrb.mxu2 %v19906_v54  ;;  %v3846_v21 = vadd.f32 %v3845_v11, %v3775_v37  ;;  %v19910_v26 = vld [vmem:[#allocation102_spill] sm:$0xff]  ;;  %v19913_v4 = vunpack.i.h.bf16 %v19912_v16  ;;  %v19914_v54 = vld [vmem:[#allocation24_spill] sm:$0xff]  ;;  %v19916_v11 = vld [vmem:[#allocation57_spill] sm:$0xff]  ;;  %v15388_v37 = vpop.permute.xlu0 %8655  ;;  %vm3916_vm12 = vcmp.ge.f32.partialorder %v3849_v28, 0.0 }
 0x702   :  { %6816 = vmatpush.msrb.mxu3 %v5133_v7  ;;  %v3586_v24 = vadd.f32 %v14666_v52, %v19914_v54  ;;  %19917 = vst [vmem:[#allocation101_spill] sm:$0xff] %v15388_v37  ;;  %7124 = vmatpush.msra.mxu1 %v5092_v44  ;;  %v19922_v44 = vld [vmem:[#allocation43_spill] sm:$0xff] }
 0x703   :  { %7185 = vmatpush.msra.mxu0 %v19910_v26  ;;  %6656 = vmatmul.f32.gmra.mxu3 %v15349_v22  ;;  %v5132_v7 = vsel %vm707_vm2, %v19913_v4, %v19911_v15  ;;  %v19918_v26 = vld [vmem:[#allocation100_spill] sm:$0xff]  ;;  %v19920_v15 = vunpack.i.l.bf16 %v19912_v16  ;;  %v4024_v4 = vmul.f32 0.01, %v3849_v28  ;;  %vm3910_vm13 = vcmp.ge.f32.partialorder %v3846_v21, 0.0 }
 0x704   :  { %6817 = vmatpush.msrb.mxu3 %v5132_v7  ;;  %6871 = vmatpush.msrb.mxu2 %v19916_v11  ;;  %v3659_v7 = vpop.f32.mrf.mxu2  ;;  %v3657_v54 = vadd.f32 %v3656_v23, %v3586_v24  ;;  %v4018_v11 = vmul.f32 0.01, %v3846_v21  ;;  %v19926_v24 = vld [vmem:[#allocation60_spill] sm:$0xff]  ;;  %v19934_v23 = vunpack.i.h.bf16 %v14419_v19 }
 0x705   :  { %7186 = vmatpush.msra.mxu0 %v19918_v26  ;;  %v5131_v52 = vsel %vm707_vm2, %v19920_v15, %v19919_v0  ;;  %v3660_v57 = vadd.f32 %v3659_v7, %v3589_v32  ;;  %v19923_v0 = vld [vmem:[#allocation99_spill] sm:$0xff]  ;;  %8800 = vrot.lane.b32.xlu1 %v8799_v8, %s9097_s11  ;;  %v19924_v26 = vunpack.i.h.bf16 %v15318_v48  ;;  %v19925_v15 = vunpack.i.l.bf16 %v14393_v56  ;;  %v19927_v32 = vld [vmem:[#allocation109_spill] sm:$0xff] }
 0x706   :  { %6818 = vmatpush.msrb.mxu3 %v5131_v52  ;;  %6872 = vmatpush.msrb.mxu2 %v19922_v44  ;;  %v19928_v52 = vunpack.i.h.bf16 %v19927_v32  ;;  %v19929_v7 = vld [vmem:[#allocation119_spill] sm:$0xff]  ;;  %v15424_v48 = vpop.f32.mrf.mxu1  ;;  %v15447_v56 = vsel %vm3910_vm13, %v3846_v21, %v4018_v11  ;;  %vm3957_vm15 = vcmp.ge.f32.partialorder %v3657_v54, 0.0 }
 0x707   :  { %7187 = vmatpush.msra.mxu0 %v19923_v0  ;;  %v5091_v42 = vsel %vm707_vm2, %v19925_v15, %v19924_v26  ;;  %7913 = vmatmul.msk.f32.gmra.mxu2 %vm6531_vm11, %v15403_v27  ;;  %v19930_v44 = vunpack.i.h.bf16 %v19929_v7  ;;  %v4071_v16 = vmul.f32 0.01, %v3660_v57  ;;  %v15427_v26 = vsel %vm3916_vm12, %v3849_v28, %v4024_v4  ;;  %v19932_v15 = vld [vmem:[#allocation51_spill] sm:$0xff]  ;;  %v15436_v45 = vpop.f32.mrf.mxu3  ;;  %19938 = vst [vmem:[#allocation29_spill] sm:$0xff] %v15447_v56  ;;  %v19974_v27 = vld [vmem:[#allocation133_spill] sm:$0xff] }
 0x708   :  { %7125 = vmatpush.msra.mxu1 %v5091_v42  ;;  %19931 = vst [vmem:[#allocation84_spill] sm:$0xff] %v15427_v26  ;;  %6873 = vmatpush.msrb.mxu2 %v19932_v15  ;;  %v19933_v42 = vunpack.i.l.bf16 %v15365_v58  ;;  %vm3963_vm14 = vcmp.ge.f32.partialorder %v3660_v57, 0.0  ;;  %v19936_v28 = vunpack.i.l.bf16 %v19927_v32  ;;  %v19937_v4 = vunpack.i.l.bf16 %v19929_v7  ;;  %v15456_v7 = vpop.f32.mrf.mxu0  ;;  %v19944_v11 = vld [vmem:[#allocation7_spill] sm:$0xff] }
 0x709   :  { %v5130_v0 = vsel %vm707_vm2, %v19930_v44, %v19928_v52  ;;  %v4065_v52 = vmul.f32 0.01, %v3657_v54  ;;  %v19935_v44 = vld [vmem:[#allocation94_spill] sm:$0xff]  ;;  %v8814_v21 = vpack.i.bf16 %v15427_v26, %v15447_v56  ;;  %v19962_v56 = vld [vmem:[#allocation5_spill] sm:$0xff]  ;;  %6969 = vmatmul.f32.gmra.mxu0 %v15096_v36 }
 0x70a   :  { %6819 = vmatpush.msrb.mxu3 %v5130_v0  ;;  %v5090_v31 = vsel %vm707_vm2, %v19934_v23, %v19933_v42  ;;  %7188 = vmatpush.msra.mxu0 %v19935_v44  ;;  %v5129_v0 = vsel %vm707_vm2, %v19937_v4, %v19936_v28  ;;  %v19939_v23 = vld [vmem:[#allocation72_spill] sm:$0xff]  ;;  %v19940_v42 = vunpack.i.h.bf16 %v15365_v58  ;;  %v15460_v4 = vsel %vm3963_vm14, %v3660_v57, %v4071_v16 }
 0x70b   :  { %7126 = vmatpush.msra.mxu1 %v5090_v31  ;;  %6874 = vmatpush.msrb.mxu2 %v19939_v23  ;;  %v19941_v31 = vunpack.i.l.bf16 %v14419_v19  ;;  %v19942_v28 = vld [vmem:[#allocation92_spill] sm:$0xff]  ;;  %19943 = vst [vmem:[#allocation139_spill] sm:$0xff] %v15460_v4  ;;  %v15465_v23 = vpop.permute.xlu0 %8690  ;;  %v19946_v19 = vld [vmem:[#allocation65_spill] sm:$0xff]  ;;  %v19950_v16 = vunpack.i.l.bf16 %v15240_v9  ;;  %v19955_v58 = vunpack.i.l.bf16 %v19926_v24 }
 0x70c   :  { %6820 = vmatpush.msrb.mxu3 %v5129_v0  ;;  %7189 = vmatpush.msra.mxu0 %v19942_v28  ;;  %19945 = vst [vmem:[#allocation17_spill] sm:$0xff] %v15465_v23  ;;  %v3662_v0 = vpop.f32.mrf.mxu2  ;;  %v19993_v23 = vld [vmem:[#allocation129_spill] sm:$0xff] }
 0x70d   :  { %v5089_v32 = vsel %vm707_vm2, %v19941_v31, %v19940_v42  ;;  %6734 = vmatmul.f32.vlgmr.msra.gmra.mxu3 %v14775_v33  ;;  %6875 = vmatpush.msrb.mxu2 %v19946_v19  ;;  %v19947_v42 = vunpack.i.h.bf16 %v19926_v24  ;;  %v19948_v31 = vld [vmem:[#allocation35_spill] sm:$0xff]  ;;  %v15483_v33 = vsel %vm3957_vm15, %v3657_v54, %v4065_v52  ;;  %v15488_v19 = vld [vmem:[%s18261_s7 + $0x88] sm:$0xff] }
 0x70e   :  { %7127 = vmatpush.msra.mxu1 %v5089_v32  ;;  %v19949_v44 = vunpack.i.h.bf16 %v19948_v31  ;;  %v19951_v32 = vunpack.i.h.bf16 %v14389_v43  ;;  %19952 = vst [vmem:[#allocation88_spill] sm:$0xff] %v15483_v33  ;;  %8805 = vrot.lane.b32.xlu1 %v8799_v8, %s9096_s10  ;;  %v8809_v54 = vpack.i.bf16 %v15460_v4, %v15483_v33  ;;  %v19957_v52 = vld [vmem:[#allocation53_spill] sm:$0xff]  ;;  %v19961_v8 = vld [vmem:[#allocation115_spill] sm:$0xff] }
 0x70f   :  { %19953 = vst [vmem:[#allocation38_spill] sm:$0xff] %v15488_v19  ;;  %8815 = vrot.lane.b32.xlu2 %v8814_v21, %s9095_s1  ;;  %7914 = vmatmul.msk.f32.gmra.mxu2 %vm6531_vm11, %v15488_v19  ;;  %v19964_v21 = vld [vmem:[#allocation144_spill] sm:$0xff]  ;;  %v15533_v19 = vpop.permute.xlu2 %8715 }
 0x710   :  { %v4644_v57 = vsel %vm544_vm1, %v19949_v44, %v19947_v42  ;;  %v5088_v28 = vsel %vm707_vm2, %v19951_v32, %v19950_v16  ;;  %v19954_v42 = vld [vmem:[#allocation67_spill] sm:$0xff]  ;;  %v19956_v16 = vunpack.i.l.bf16 %v19948_v31  ;;  %v19960_v31 = vunpack.i.l.bf16 %v14389_v43  ;;  %v19968_v44 = vld [vmem:[#allocation41_spill] sm:$0xff]  ;;  %19970 = vst [vmem:[#allocation123_spill] sm:$0xff] %v15533_v19  ;;  %8810 = vrot.lane.b32.xlu0 %v8809_v54, %s9095_s1 }
 0x711   :  { %6921 = vmatpush.msra.mxu3 %v4644_v57  ;;  %7128 = vmatpush.msra.mxu1 %v5088_v28  ;;  %v19958_v57 = vld [vmem:[#allocation132_spill] sm:$0xff]  ;;  %v19969_v26 = vunpack.i.h.bf16 %v19968_v44  ;;  %v19979_v54 = vld [vmem:[#allocation13_spill] sm:$0xff]  ;;  %v15573_v19 = vpack.i.bf16 %v15483_v33, %v15460_v4 }
 0x712   :  { %6876 = vmatpush.msrb.mxu2 %v19954_v42  ;;  %v4643_v32 = vsel %vm544_vm1, %v19956_v16, %v19955_v58  ;;  %v3592_v28 = vadd.f32 %v19958_v57, %v19957_v52  ;;  %v19959_v42 = vunpack.i.h.bf16 %v15240_v9  ;;  %v15511_v16 = vpop.f32.mrf.mxu1  ;;  %v19965_v52 = vunpack.i.h.bf16 %v19964_v21  ;;  %v15523_v57 = vpop.f32.mrf.mxu3  ;;  %v19985_v9 = vld [vmem:[#allocation145_spill] sm:$0xff]  ;;  %6911 = vmatmul.f32.gmra.mxu1 %v19979_v54 }
 0x713   :  { %6922 = vmatpush.msra.mxu3 %v4643_v32  ;;  %v19963_v32 = vunpack.i.h.bf16 %v19944_v11  ;;  %6972 = vmatmul.f32.gmra.mxu0 %v15154_v14 }
 0x714   :  { %v5087_v58 = vsel %vm707_vm2, %v19960_v31, %v19959_v42  ;;  %v19966_v42 = vld [vmem:[#allocation86_spill] sm:$0xff]  ;;  %v19967_v31 = vunpack.i.l.bf16 %v15388_v37  ;;  %v3663_v15 = vadd.f32 %v3662_v0, %v3592_v28  ;;  %v19975_v0 = vld [vmem:[#allocation85_spill] sm:$0xff]  ;;  %v19976_v28 = vunpack.i.h.bf16 %v15388_v37 }
 0x715   :  { %7129 = vmatpush.msra.mxu1 %v5087_v58  ;;  %v4642_v43 = vsel %vm544_vm1, %v19965_v52, %v19963_v32  ;;  %6877 = vmatpush.msrb.mxu2 %v19966_v42  ;;  %v19971_v32 = vunpack.i.l.bf16 %v19944_v11  ;;  %v19972_v52 = vunpack.i.l.bf16 %v19964_v21 }
 0x716   :  { %6923 = vmatpush.msra.mxu3 %v4642_v43  ;;  %v5086_v58 = vsel %vm707_vm2, %v19969_v26, %v19967_v31  ;;  %v3595_v26 = vadd.f32 %v19974_v27, %v19973_v12  ;;  %v19977_v31 = vunpack.i.l.bf16 %v19968_v44  ;;  %v19981_v12 = vld [vmem:[#allocation126_spill] sm:$0xff]  ;;  %v19984_v44 = vunpack.i.h.bf16 %v19752_v47 }
 0x717   :  { %7130 = vmatpush.msra.mxu1 %v5086_v58  ;;  %v4641_v43 = vsel %vm544_vm1, %v19972_v52, %v19971_v32  ;;  %6878 = vmatpush.msrb.mxu2 %v19975_v0  ;;  %v19978_v58 = vld [vmem:[#allocation121_spill] sm:$0xff]  ;;  %v15553_v32 = vpop.permute.xlu0 %8695  ;;  %v19980_v52 = vunpack.i.h.bf16 %v19961_v8  ;;  %v19982_v27 = vunpack.i.h.bf16 %v19981_v12  ;;  %v19983_v0 = vunpack.i.l.bf16 %v19962_v56 }
 0x718   :  { %6924 = vmatpush.msra.mxu3 %v4641_v43  ;;  %v5085_v21 = vsel %vm707_vm2, %v19977_v31, %v19976_v28  ;;  %v3665_v31 = vpop.f32.mrf.mxu2  ;;  %v4077_v37 = vmul.f32 0.01, %v3663_v15  ;;  %vm3969_vm0 = vcmp.ge.f32.partialorder %v3663_v15, 0.0  ;;  %8820 = vrot.lane.b32.xlu2 %v15573_v19, %s9096_s10 }
 0x719   :  { %7131 = vmatpush.msra.mxu1 %v5085_v21  ;;  %6737 = vmatmul.f32.gmra.mxu3 %v19979_v54  ;;  %v4640_v43 = vsel %vm544_vm1, %v19982_v27, %v19980_v52  ;;  %v5084_v28 = vsel %vm707_vm2, %v19984_v44, %v19983_v0  ;;  %v15569_v21 = vpop.f32.mrf.mxu0  ;;  %v15578_v52 = vld [vmem:[%s18261_s7 + $0xb8] sm:$0xf]  ;;  %v3666_v27 = vadd.f32 %v3665_v31, %v3595_v26  ;;  %v19987_v44 = vunpack.i.l.bf16 %v19961_v8  ;;  %v19996_v8 = vld [vmem:[#allocation125_spill] sm:$0xff] }
 0x71a   :  { %6925 = vmatpush.msra.mxu3 %v4640_v43  ;;  %19986 = vst [vmem:[#allocation33_spill] sm:$0xff] %v15578_v52  ;;  %v19988_v43 = vunpack.i.l.bf16 %v19981_v12  ;;  %v19989_v26 = vunpack.i.h.bf16 %v19962_v56  ;;  %v19990_v54 = vunpack.i.l.bf16 %v19752_v47  ;;  %v15598_v31 = vpop.f32.mrf.mxu1  ;;  %7915 = vmatmul.msk.f32.gmra.mxu2 %vm6531_vm11, %v15578_v52  ;;  %v19994_v0 = vunpack.i.h.bf16 %v19993_v23  ;;  %v19995_v56 = vld [vmem:[#allocation124_spill] sm:$0xff] }
 0x71b   :  { %7132 = vmatpush.msra.mxu1 %v5084_v28  ;;  %vm3975_vm4 = vcmp.ge.f32.partialorder %v3666_v27, 0.0  ;;  %v4083_v12 = vmul.f32 0.01, %v3666_v27  ;;  %v15614_v17 = vsel %vm3969_vm0, %v3663_v15, %v4077_v37 }
 0x71c   :  { %v4639_v42 = vsel %vm544_vm1, %v19988_v43, %v19987_v44  ;;  %v5083_v28 = vsel %vm707_vm2, %v19990_v54, %v19989_v26  ;;  %v19991_v44 = vld [vmem:[#allocation27_spill] sm:$0xff]  ;;  %v8839_v26 = vpack.i.bf16 %v19996_v8, %v19995_v56  ;;  %v15611_v54 = vpop.f32.mrf.mxu3  ;;  %19998 = vst [vmem:[#allocation36_spill] sm:$0xff] %v15614_v17  ;;  %v20000_v43 = vunpack.i.h.bf16 %v19759_v6  ;;  %6914 = vmatmul.f32.gmra.mxu1 %v14910_v60 }
 0x71d   :  { %6926 = vmatpush.msra.mxu3 %v4639_v42  ;;  %7133 = vmatpush.msra.mxu1 %v5083_v28  ;;  %v19992_v42 = vunpack.i.h.bf16 %v19978_v58  ;;  %19997 = vst [vmem:[#allocation55_spill] sm:$0xff] %v15611_v54  ;;  %v19999_v28 = vunpack.i.l.bf16 %v19985_v9  ;;  %v15622_v22 = vsel %vm3975_vm4, %v3666_v27, %v4083_v12  ;;  %v20003_v54 = vunpack.i.l.bf16 %v19993_v23  ;;  %v20006_v23 = vld [vmem:[#allocation147_spill] sm:$0xff] }
 0x71e   :  { %20001 = vst [vmem:[#allocation93_spill] sm:$0xff] %v15622_v22  ;;  %8840 = vrot.lane.b32.xlu0 %v8839_v26, %s9097_s11  ;;  %v8824_v15 = vpack.i.bf16 %v15622_v22, %v15614_v17  ;;  %v20004_v27 = vunpack.i.h.bf16 %v19985_v9  ;;  %v15645_v26 = vpop.permute.xlu2 %8720 }
 0x71f   :  { %v4638_v47 = vsel %vm544_vm1, %v19994_v0, %v19992_v42  ;;  %v5082_v52 = vsel %vm707_vm2, %v20000_v43, %v19999_v28  ;;  %v18811_v0 = vunpack.i.l.bf16 %v19991_v44  ;;  %v20002_v42 = vunpack.i.l.bf16 %v19978_v58  ;;  %20007 = vst [vmem:[#allocation95_spill] sm:$0xff] %v15645_v26 }
 0x720   :  { %6927 = vmatpush.msra.mxu3 %v4638_v47  ;;  %7134 = vmatpush.msra.mxu1 %v5082_v52  ;;  %v3784_v43 = vadd.f32 %v15041_v2, %v15091_v30  ;;  %v20005_v52 = vunpack.i.l.bf16 %v19759_v6  ;;  %v18812_v47 = vunpack.i.h.bf16 %v20006_v23  ;;  %v20008_v2 = vunpack.i.h.bf16 %v19991_v44  ;;  %v20009_v30 = vld [vmem:[#allocation30_spill] sm:$0xff] }
 0x721   :  { %v4637_v37 = vsel %vm544_vm1, %v20003_v54, %v20002_v42  ;;  %v3781_v54 = vadd.f32 %v14981_v63, %v15044_v18  ;;  %6740 = vmatmul.f32.gmra.mxu3 %v14910_v60  ;;  %v20010_v28 = vunpack.i.h.bf16 %v20009_v30  ;;  %v3668_v42 = vpop.f32.mrf.mxu2  ;;  %8825 = vrot.lane.b32.xlu1 %v8824_v15, %s9095_s1  ;;  %v18813_v63 = vunpack.i.l.bf16 %v20006_v23  ;;  %v15657_v18 = vpop.permute.xlu0 %8705 }
 0x722   :  { %6928 = vmatpush.msra.mxu3 %v4637_v37  ;;  %v5081_v12 = vsel %vm707_vm2, %v20005_v52, %v20004_v27  ;;  %v3855_v37 = vadd.f32 %v15511_v16, %v3784_v43  ;;  %20011 = vst [vmem:[#allocation131_spill] sm:$0xff] %v15657_v18  ;;  %v20012_v52 = vunpack.i.l.bf16 %v20009_v30  ;;  %v15668_v16 = vpop.f32.mrf.mxu0  ;;  %8835 = vrot.lane.b32.xlu2 %v15061_v51, %s9096_s10  ;;  %v3860_v15 = vpop.f32.mrf.mxu1  ;;  %v20013_v43 = vld [vmem:[#allocation148_spill] sm:$0xff]  ;;  %v20016_v30 = vld [vmem:[#allocation42_spill] sm:$0xff] }
 0x723   :  { %7135 = vmatpush.msra.mxu1 %v5081_v12  ;;  %v4636_v6 = vsel %vm544_vm1, %v20010_v28, %v20008_v2  ;;  %v3852_v27 = vadd.f32 %v15424_v48, %v3781_v54  ;;  %v20014_v54 = vld [vmem:[#allocation16_spill] sm:$0xff]  ;;  %v20015_v2 = vld [vmem:[#allocation149_spill] sm:$0xff]  ;;  %6792 = vmatmul.f32.vlgmr.msra.gmra.mxu2 %v15036_v53  ;;  %v20017_v60 = vunpack.i.h.bf16 %v20016_v30  ;;  %v20019_v53 = vunpack.i.l.bf16 %v20016_v30 }
 0x724   :  { %6929 = vmatpush.msra.mxu3 %v4636_v6  ;;  %v4635_v12 = vsel %vm544_vm1, %v20012_v52, %v18811_v0  ;;  %v3598_v28 = vadd.f32 %v20015_v2, %v20014_v54  ;;  %v15682_v52 = vpop.f32.mrf.mxu3  ;;  %v4036_v51 = vmul.f32 0.01, %v3855_v37  ;;  %v20018_v0 = vld [vmem:[#allocation120_spill] sm:$0xff]  ;;  %vm3928_vm5 = vcmp.ge.f32.partialorder %v3855_v37, 0.0  ;;  %6917 = vmatmul.f32.gmra.mxu1 %v14994_v3 }
 0x725   :  { %v4634_v6 = vsel %vm544_vm1, %v20017_v60, %v18812_v47  ;;  %6979 = vmatpush.msra.mxu2 %v20018_v0  ;;  %v4030_v48 = vmul.f32 0.01, %v3852_v27  ;;  %v4633_v54 = vsel %vm544_vm1, %v20019_v53, %v18813_v63  ;;  %v20020_v60 = vld [vmem:[#allocation10_spill] sm:$0xff]  ;;  %vm3922_vm6 = vcmp.ge.f32.partialorder %v3852_v27, 0.0 }
 0x726   :  { %6930 = vmatpush.msra.mxu3 %v4635_v12  ;;  %v3669_v2 = vadd.f32 %v3668_v42, %v3598_v28  ;;  %8850 = vrot.lane.b32.xlu0 %v15573_v19, %s9097_s11  ;;  %v3601_v47 = vadd.f32 %v14998_v49, %v20020_v60  ;;  %v20022_v0 = vunpack.i.h.bf16 %v20013_v43  ;;  %v20023_v12 = vld [vmem:[#allocation45_spill] sm:$0xff]  ;;  %v20025_v28 = vld [vmem:[#allocation106_spill] sm:$0xff]  ;;  %v15706_v9 = vsel %vm3928_vm5, %v3855_v37, %v4036_v51  ;;  %v20028_v49 = vld [vmem:[#allocation47_spill] sm:$0xff] }
 0x727   :  { %v20024_v30 = vunpack.i.h.bf16 %v20023_v12  ;;  %v20026_v63 = vld [vmem:[#allocation146_spill] sm:$0xff]  ;;  %20027 = vst [vmem:[#allocation111_spill] sm:$0xff] %v15706_v9  ;;  %v20030_v60 = vunpack.i.l.bf16 %v20023_v12  ;;  %v15719_v44 = vsel %vm3922_vm6, %v3852_v27, %v4030_v48  ;;  %v15723_v51 = vpack.i.bf16 %v15614_v17, %v15622_v22 }
 0x728   :  { %6931 = vmatpush.msra.mxu3 %v4634_v6  ;;  %v20021_v6 = vld [vmem:[#allocation89_spill] sm:$0xff]  ;;  %v8829_v19 = vpack.i.bf16 %v20026_v63, %v20025_v28  ;;  %20032 = vst [vmem:[#allocation114_spill] sm:$0xff] %v15719_v44  ;;  %v4089_v37 = vmul.f32 0.01, %v3669_v2  ;;  %v3787_v12 = vadd.f32 %v15106_v38, %v15149_v5  ;;  %vm3981_vm8 = vcmp.ge.f32.partialorder %v3669_v2, 0.0 }
 0x729   :  { %6980 = vmatpush.msra.mxu2 %v20021_v6  ;;  %6743 = vmatmul.f32.gmra.mxu3 %v14994_v3  ;;  %v4632_v53 = vsel %vm544_vm1, %v20024_v30, %v20022_v0  ;;  %v3671_v42 = vpop.f32.mrf.mxu2  ;;  %v3790_v0 = vadd.f32 %v15185_v50, %v15218_v35  ;;  %v15717_v30 = vpop.permute.xlu2 %8725  ;;  %v8854_v3 = vpack.i.bf16 %v15706_v9, %v15719_v44 }
 0x72a   :  { %6932 = vmatpush.msra.mxu3 %v4633_v54  ;;  %v20029_v54 = vunpack.i.l.bf16 %v20013_v43  ;;  %v3672_v23 = vadd.f32 %v3671_v42, %v3601_v47  ;;  %20031 = vst [vmem:[#allocation91_spill] sm:$0xff] %v15717_v30  ;;  %8830 = vrot.lane.b32.xlu1 %v8829_v19, %s9097_s11  ;;  %v20033_v47 = vld [vmem:[#allocation20_spill] sm:$0xff]  ;;  %v3863_v35 = vpop.f32.mrf.mxu1 }
 0x72b   :  { %6981 = vmatpush.msra.mxu2 %v20028_v49  ;;  %8865 = vrot.lane.b32.xlu2 %v15723_v51, %s9097_s11  ;;  %v15741_v49 = vpop.f32.mrf.mxu0 }
 0x72c   :  { %6933 = vmatpush.msra.mxu3 %v4632_v53  ;;  %v4631_v6 = vsel %vm544_vm1, %v20030_v60, %v20029_v54  ;;  %v15726_v53 = vpop.permute.xlu0 %8740  ;;  %vm3987_vm7 = vcmp.ge.f32.partialorder %v3672_v23, 0.0  ;;  %v4095_v50 = vmul.f32 0.01, %v3672_v23  ;;  %6795 = vmatmul.f32.gmra.mxu2 %v15096_v36  ;;  %v15739_v42 = vpop.f32.mrf.mxu3  ;;  %v18821_v54 = vunpack.i.h.bf16 %v15717_v30  ;;  %v20038_v36 = vld [vmem:[#allocation14_spill] sm:$0xff] }
 0x72d   :  { %6982 = vmatpush.msra.mxu2 %v20033_v47  ;;  %v18819_v27 = vunpack.i.h.bf16 %v15726_v53  ;;  %20034 = vst [vmem:[#allocation21_spill] sm:$0xff] %v15739_v42  ;;  %v3861_v60 = vadd.f32 %v3860_v15, %v3790_v0  ;;  %v20036_v47 = vld [vmem:[#allocation39_spill] sm:$0xff]  ;;  %v20039_v5 = vunpack.i.h.bf16 %v20038_v36  ;;  %v3793_v15 = vadd.f32 %v15274_v61, %v15296_v41  ;;  %v15772_v61 = vpop.permute.xlu1 %8710 }
 0x72e   :  { %6934 = vmatpush.msra.mxu3 %v4631_v6  ;;  %v20035_v6 = vld [vmem:[#allocation156_spill] sm:$0xff]  ;;  %v15747_v38 = vsel %vm3987_vm7, %v3672_v23, %v4095_v50  ;;  %v20040_v42 = vld [vmem:[#allocation63_spill] sm:$0xff]  ;;  %8855 = vrot.lane.b32.xlu0 %v8854_v3, %s9095_s1  ;;  %v3858_v0 = vadd.f32 %v15598_v31, %v3787_v12  ;;  %v15762_v23 = vsel %vm3981_vm8, %v3669_v2, %v4089_v37  ;;  %v20046_v37 = vld [vmem:[#allocation158_spill] sm:$0xff] }
 0x72f   :  { %6983 = vmatpush.msra.mxu2 %v20036_v47  ;;  %20037 = vst [vmem:[#allocation112_spill] sm:$0xff] %v15747_v38  ;;  %v4630_v48 = vsel %vm544_vm1, %v20039_v5, %v18819_v27  ;;  %v3604_v44 = vadd.f32 %v15039_v55, %v20040_v42  ;;  %v20042_v50 = vld [vmem:[#allocation68_spill] sm:$0xff]  ;;  %v20043_v47 = vld [vmem:[#allocation113_spill] sm:$0xff]  ;;  %v20044_v5 = vunpack.i.l.bf16 %v15726_v53  ;;  %v20045_v27 = vunpack.i.l.bf16 %v20038_v36 }
 0x730   :  { %6935 = vmatpush.msra.mxu3 %v20035_v6  ;;  %7136 = vmatpush.msra.mxu1 %v4630_v48  ;;  %20041 = vst [vmem:[#allocation19_spill] sm:$0xff] %v15762_v23  ;;  %v8869_v31 = vpack.i.bf16 %v15747_v38, %v15762_v23  ;;  %v4048_v2 = vmul.f32 0.01, %v3861_v60  ;;  %v20047_v48 = vld [vmem:[#allocation4_spill] sm:$0xff]  ;;  %v3864_v12 = vadd.f32 %v3863_v35, %v3793_v15  ;;  %vm3940_vm9 = vcmp.ge.f32.partialorder %v3861_v60, 0.0  ;;  %v20050_v15 = vld [vmem:[#allocation107_spill] sm:$0xff] }
 0x731   :  { %6984 = vmatpush.msra.mxu2 %v20043_v47  ;;  %v4629_v55 = vsel %vm544_vm1, %v20045_v27, %v20044_v5  ;;  %6821 = vmatmul.f32.vlgmr.msrb.gmra.mxu3 %v15122_v62  ;;  %v3674_v41 = vpop.f32.mrf.mxu2  ;;  %v20048_v27 = vunpack.i.h.bf16 %v14422_v1  ;;  %v3796_v62 = vadd.f32 %v15363_v46, %v15361_v20  ;;  %v18820_v47 = vunpack.i.l.bf16 %v15717_v30 }
 0x732   :  { %6936 = vmatpush.msra.mxu3 %v20042_v50  ;;  %7137 = vmatpush.msra.mxu1 %v4629_v55  ;;  %v3675_v3 = vadd.f32 %v3674_v41, %v3604_v44  ;;  %v4042_v35 = vmul.f32 0.01, %v3858_v0  ;;  %v20049_v44 = vld [vmem:[#allocation157_spill] sm:$0xff]  ;;  %v3866_v55 = vpop.f32.mrf.mxu1  ;;  %vm3934_vm10 = vcmp.ge.f32.partialorder %v3858_v0, 0.0  ;;  %v4054_v41 = vmul.f32 0.01, %v3864_v12 }
 0x733   :  { %6985 = vmatpush.msra.mxu2 %v20046_v37  ;;  %v4628_v42 = vsel %vm544_vm1, %v20048_v27, %v18821_v54  ;;  %8845 = vrot.lane.b32.xlu1 %v8829_v19, %s9096_s10  ;;  %v3867_v20 = vadd.f32 %v3866_v55, %v3796_v62  ;;  %v15798_v19 = vsel %vm3940_vm9, %v3861_v60, %v4048_v2  ;;  %v20052_v37 = vld [vmem:[#allocation152_spill] sm:$0xff]  ;;  %v20054_v27 = vld [vmem:[#allocation82_spill] sm:$0xff]  ;;  %vm3946_vm13 = vcmp.ge.f32.partialorder %v3864_v12, 0.0  ;;  %v15812_v60 = vpop.f32.mrf.mxu0  ;;  %v20056_v62 = vld [vmem:[#allocation153_spill] sm:$0xff] }
 0x734   :  { %7043 = vmatpush.msrb.mxu3 %v20047_v48  ;;  %v15788_v36 = vpop.permute.xlu0 %8745  ;;  %7138 = vmatpush.msra.mxu1 %v4628_v42  ;;  %v4101_v5 = vmul.f32 0.01, %v3675_v3  ;;  %vm3993_vm12 = vcmp.ge.f32.partialorder %v3675_v3, 0.0  ;;  %v15795_v46 = vpop.f32.mrf.mxu3  ;;  %20051 = vst [vmem:[#allocation110_spill] sm:$0xff] %v15798_v19  ;;  %v20053_v48 = vld [vmem:[#allocation105_spill] sm:$0xff]  ;;  %v3607_v42 = vadd.f32 %v15086_v10, %v20054_v27  ;;  %v15815_v2 = vsel %vm3934_vm10, %v3858_v0, %v4042_v35  ;;  %v20057_v10 = vld [vmem:[#allocation108_spill] sm:$0xff] }
 0x735   :  { %6986 = vmatpush.msra.mxu2 %v20049_v44  ;;  %8870 = vrot.lane.b32.xlu2 %v8869_v31, %s9095_s1  ;;  %vm3952_vm14 = vcmp.ge.f32.partialorder %v3867_v20, 0.0  ;;  %v15809_v31 = vld [vmem:[%s18261_s7 + $0x20] sm:$0xff]  ;;  %20055 = vst [vmem:[#allocation136_spill] sm:$0xff] %v15815_v2  ;;  %v20058_v44 = vunpack.i.l.bf16 %v14422_v1  ;;  %v15828_v55 = vpop.permute.xlu1 %8730  ;;  %v20063_v27 = vld [vmem:[#allocation143_spill] sm:$0xff] }
 0x736   :  { %7044 = vmatpush.msrb.mxu3 %v20050_v15  ;;  %6798 = vmatmul.f32.gmra.mxu2 %v15154_v14  ;;  %v4060_v14 = vmul.f32 0.01, %v3867_v20  ;;  %v20062_v1 = vld [vmem:[#allocation96_spill] sm:$0xff] }
 0x737   :  { %6987 = vmatpush.msra.mxu2 %v20052_v37  ;;  %8860 = vrot.lane.b32.xlu0 %v15723_v51, %s9096_s10  ;;  %v15820_v51 = vsel %vm3993_vm12, %v3675_v3, %v4101_v5  ;;  %v4627_v15 = vsel %vm544_vm1, %v20058_v44, %v18820_v47  ;;  %v8874_v37 = vpack.i.bf16 %v15798_v19, %v15815_v2  ;;  %v20061_v5 = vld [vmem:[#allocation78_spill] sm:$0xff]  ;;  %v20066_v44 = vld [vmem:[#allocation52_spill] sm:$0xff] }
 0x738   :  { %7045 = vmatpush.msrb.mxu3 %v20053_v48  ;;  %7024 = vmatmul.f32.vlgmr.msrb.gmra.mxu1 %v15809_v31  ;;  %v15831_v0 = vsel %vm3952_vm14, %v3867_v20, %v4060_v14  ;;  %v15836_v3 = vsel %vm3946_vm13, %v3864_v12, %v4054_v41  ;;  %v20064_v14 = vld [vmem:[#allocation97_spill] sm:$0xff] }
 0x739   :  { %6988 = vmatpush.msra.mxu2 %v20056_v62  ;;  %6824 = vmatmul.f32.gmra.mxu3 %v15204_v13  ;;  %20059 = vst [vmem:[#allocation46_spill] sm:$0xff] %v15831_v0  ;;  %v3677_v35 = vpop.f32.mrf.mxu2  ;;  %v8889_v13 = vpack.i.bf16 %v19996_v8, %v15820_v51  ;;  %v8899_v20 = vpack.i.bf16 %v15831_v0, %v15836_v3 }
 0x73a   :  { %7046 = vmatpush.msrb.mxu3 %v20057_v10  ;;  %7139 = vmatpush.msra.mxu1 %v4627_v15  ;;  %20060 = vst [vmem:[#allocation103_spill] sm:$0xff] %v15836_v3  ;;  %v3678_v48 = vadd.f32 %v3677_v35, %v3607_v42  ;;  %v3869_v41 = vpop.f32.mrf.mxu1  ;;  %v20065_v10 = vld [vmem:[#allocation169_spill] sm:$0xff]  ;;  %v20068_v35 = vld [vmem:[#allocation90_spill] sm:$0xff] }
 0x73b   :  { %6989 = vmatpush.msra.mxu2 %v20061_v5  ;;  %8875 = vrot.lane.b32.xlu1 %v8874_v37, %s9095_s1  ;;  %v20067_v15 = vld [vmem:[#allocation165_spill] sm:$0xff]  ;;  %v3799_v5 = vadd.f32 %v15456_v7, %v15436_v45  ;;  %v3802_v45 = vadd.f32 %v15569_v21, %v15523_v57 }
 0x73c   :  { %7047 = vmatpush.msrb.mxu3 %v20062_v1  ;;  %7240 = vmatpush.msrb.mxu1 %v15747_v38  ;;  %v4107_v12 = vmul.f32 0.01, %v3678_v48  ;;  %vm3999_vm15 = vcmp.ge.f32.partialorder %v3678_v48, 0.0  ;;  %v15850_v42 = vpop.f32.mrf.mxu3  ;;  %v15852_v62 = vpop.permute.xlu0 %8750  ;;  %v18824_v1 = vunpack.i.h.bf16 %v15772_v61 }
 0x73d   :  { %6990 = vmatpush.msra.mxu2 %v20063_v27  ;;  %8900 = vrot.lane.b32.xlu2 %v8899_v20, %s9095_s1  ;;  %v18822_v37 = vunpack.i.l.bf16 %v15852_v62  ;;  %v8879_v20 = vpack.i.bf16 %v15762_v23, %v15747_v38  ;;  %v15872_v27 = vpop.f32.mrf.mxu0  ;;  %v15879_v7 = vpop.permute.xlu1 %8735 }
 0x73e   :  { %7048 = vmatpush.msrb.mxu3 %v20064_v14  ;;  %6801 = vmatmul.f32.gmra.mxu2 %v15236_v40  ;;  %v15860_v40 = vsel %vm3999_vm15, %v3678_v48, %v4107_v12  ;;  %v18823_v48 = vunpack.i.l.bf16 %v15772_v61  ;;  %v20070_v14 = vld [vmem:[#allocation166_spill] sm:$0xff]  ;;  %v20071_v12 = vld [vmem:[#allocation49_spill] sm:$0xff]  ;;  %20072 = vst [vmem:[#allocation102_spill] sm:$0xff] %v15879_v7  ;;  %v18828_v47 = vunpack.i.l.bf16 %v15879_v7 }
 0x73f   :  { %7241 = vmatpush.msrb.mxu1 %v15762_v23  ;;  %6991 = vmatpush.msra.mxu2 %v20065_v10  ;;  %v8894_v10 = vpack.i.bf16 %v15860_v40, %v15820_v51  ;;  %v20110_v23 = vld [vmem:[#allocation55_spill] sm:$0xff] }
 0x740   :  { %7049 = vmatpush.msrb.mxu3 %v20066_v44  ;;  %8890 = vrot.lane.b32.xlu0 %v8889_v13, %s9096_s10  ;;  %v18825_v44 = vunpack.i.h.bf16 %v15553_v32  ;;  %v3805_v38 = vadd.f32 %v15668_v16, %v20110_v23  ;;  %v20115_v23 = vld [vmem:[#allocation54_spill] sm:$0xff] }
 0x741   :  { %6992 = vmatpush.msra.mxu2 %v20067_v15  ;;  %6827 = vmatmul.f32.gmra.mxu3 %v15288_v25  ;;  %v15868_v13 = vpop.f32.mrf.mxu2  ;;  %v3870_v25 = vadd.f32 %v3869_v41, %v3799_v5  ;;  %v20073_v15 = vld [vmem:[#allocation77_spill] sm:$0xff]  ;;  %v20076_v5 = vunpack.i.h.bf16 %v19926_v24 }
 0x742   :  { %7050 = vmatpush.msrb.mxu3 %v20068_v35  ;;  %7242 = vmatpush.msrb.mxu1 %v15622_v22  ;;  %20069 = vst [vmem:[#allocation61_spill] sm:$0xff] %v15868_v13  ;;  %v20074_v35 = vld [vmem:[#allocation62_spill] sm:$0xff]  ;;  %v3872_v41 = vpop.f32.mrf.mxu1 }
 0x743   :  { %6993 = vmatpush.msra.mxu2 %v20070_v14  ;;  %8880 = vrot.lane.b32.xlu1 %v8879_v20, %s9096_s10  ;;  %v20075_v57 = vunpack.i.l.bf16 %v20074_v35  ;;  %v4626_v14 = vsel %vm544_vm1, %v20076_v5, %v18824_v1  ;;  %v20077_v5 = vunpack.i.l.bf16 %v19926_v24  ;;  %vm3958_vm4 = vcmp.ge.f32.partialorder %v3870_v25, 0.0 }
 0x744   :  { %7051 = vmatpush.msrb.mxu3 %v20071_v12  ;;  %7243 = vmatpush.msrb.mxu1 %v15614_v17  ;;  %v15906_v12 = vld [vmem:[%s18261_s7 + $0x50] sm:$0xff]  ;;  %v20078_v24 = vunpack.i.h.bf16 %v19944_v11 }
 0x745   :  { %6994 = vmatpush.msra.mxu2 %v20073_v15  ;;  %v5566_v21 = vsel %vm870_vm3, %v20075_v57, %v18822_v37  ;;  %7027 = vmatmul.f32.gmra.mxu1 %v15906_v12  ;;  %v15909_v15 = vpop.f32.mrf.mxu3  ;;  %v3873_v57 = vadd.f32 %v3872_v41, %v3802_v45  ;;  %v4625_v54 = vsel %vm544_vm1, %v20077_v5, %v18823_v48  ;;  %v4066_v37 = vmul.f32 0.01, %v3870_v25 }
 0x746   :  { %7052 = vmatpush.msrb.mxu3 %v19794_v34  ;;  %7916 = vmatmul.msk.f32.vlgmr.msrb.gmra.mxu2 %vm6531_vm11, %v15316_v29  ;;  %v18826_v34 = vunpack.i.h.bf16 %v15852_v62  ;;  %v18827_v29 = vunpack.i.l.bf16 %v15553_v32  ;;  %v8904_v41 = vpack.i.bf16 %v19995_v56, %v15860_v40  ;;  %v18829_v5 = vunpack.i.h.bf16 %v15290_v59 }
 0x747   :  { %7095 = vmatpush.msrb.mxu2 %v4626_v14  ;;  %7244 = vmatpush.msrb.mxu1 %v15460_v4  ;;  %vm3964_vm0 = vcmp.ge.f32.partialorder %v3873_v57, 0.0  ;;  %v4072_v45 = vmul.f32 0.01, %v3873_v57  ;;  %v4624_v14 = vsel %vm544_vm1, %v20078_v24, %v18825_v44  ;;  %v20090_v24 = vld [vmem:[#allocation83_spill] sm:$0xff]  ;;  %v8909_v4 = vpack.i.bf16 %v15820_v51, %v15860_v40 }
 0x748   :  { %8895 = vrot.lane.b32.xlu0 %v8894_v10, %s9095_s1  ;;  %7190 = vmatpush.msra.mxu0 %v5566_v21  ;;  %v20079_v10 = vld [vmem:[#allocation74_spill] sm:$0xff] }
 0x749   :  { %7096 = vmatpush.msrb.mxu2 %v4625_v54  ;;  %7245 = vmatpush.msrb.mxu1 %v15483_v33  ;;  %v15932_v21 = vsel %vm3964_vm0, %v3873_v57, %v4072_v45  ;;  %v20081_v54 = vunpack.i.h.bf16 %v20074_v35  ;;  %v15941_v1 = vpop.f32.mrf.mxu2  ;;  %v20084_v57 = vunpack.i.l.bf16 %v19944_v11  ;;  %v20085_v45 = vld [vmem:[#allocation12_spill] sm:$0xff]  ;;  %v20099_v33 = vld [vmem:[#allocation87_spill] sm:$0xff] }
 0x74a   :  { %6830 = vmatmul.f32.gmra.mxu3 %v20079_v10  ;;  %20080 = vst [vmem:[#allocation116_spill] sm:$0xff] %v15932_v21  ;;  %8905 = vrot.lane.b32.xlu2 %v8904_v41, %s9096_s10  ;;  %v15945_v10 = vsel %vm3958_vm4, %v3870_v25, %v4066_v37  ;;  %v20086_v41 = vld [vmem:[#allocation167_spill] sm:$0xff]  ;;  %v15962_v25 = vpop.f32.mrf.mxu0  ;;  %v3875_v11 = vpop.f32.mrf.mxu1 }
 0x74b   :  { %v5565_v48 = vsel %vm870_vm3, %v20081_v54, %v18826_v34  ;;  %20082 = vst [vmem:[#allocation24_spill] sm:$0xff] %v15941_v1  ;;  %7097 = vmatpush.msrb.mxu2 %v4624_v14  ;;  %v4623_v35 = vsel %vm544_vm1, %v20084_v57, %v18827_v29  ;;  %7246 = vmatpush.msrb.mxu1 %v20085_v45  ;;  %v20087_v54 = vunpack.i.l.bf16 %v20086_v41  ;;  %v20088_v57 = vld [vmem:[#allocation70_spill] sm:$0xff]  ;;  %v20089_v29 = vld [vmem:[#allocation17_spill] sm:$0xff]  ;;  %v15982_v34 = vld [vmem:[%s18261_s7 + $0x80] sm:$0xff]  ;;  %v20096_v44 = vunpack.i.h.bf16 %v20086_v41 }
 0x74c   :  { %7191 = vmatpush.msra.mxu0 %v5565_v48  ;;  %20083 = vst [vmem:[#allocation130_spill] sm:$0xff] %v15945_v10  ;;  %8885 = vrot.lane.b32.xlu1 %v8879_v20, %s9097_s11  ;;  %v8914_v14 = vpack.i.bf16 %v15932_v21, %v15945_v10  ;;  %v20091_v20 = vld [vmem:[#allocation115_spill] sm:$0xff]  ;;  %v20100_v41 = vunpack.i.l.bf16 %v15645_v26  ;;  %v20160_v1 = vunpack.i.l.bf16 %v20013_v43 }
 0x74d   :  { %v5564_v48 = vsel %vm870_vm3, %v20087_v54, %v18828_v47  ;;  %7098 = vmatpush.msrb.mxu2 %v4623_v35  ;;  %v20092_v54 = vunpack.i.h.bf16 %v20091_v20  ;;  %v20093_v35 = vld [vmem:[#allocation73_spill] sm:$0xff]  ;;  %7030 = vmatmul.f32.gmra.mxu1 %v15982_v34 }
 0x74e   :  { %7192 = vmatpush.msra.mxu0 %v5564_v48  ;;  %7917 = vmatmul.msk.f32.gmra.mxu2 %vm6531_vm11, %v20090_v24  ;;  %v15977_v48 = vpop.f32.mrf.mxu3  ;;  %v20095_v24 = vunpack.i.h.bf16 %v15879_v7 }
 0x74f   :  { %v4622_v47 = vsel %vm544_vm1, %v20092_v54, %v18829_v5  ;;  %7247 = vmatpush.msrb.mxu1 %v20093_v35  ;;  %20094 = vst [vmem:[#allocation57_spill] sm:$0xff] %v15977_v48  ;;  %v20098_v35 = vunpack.i.l.bf16 %v20091_v20  ;;  %v20103_v54 = vld [vmem:[#allocation71_spill] sm:$0xff]  ;;  %v20131_v48 = vld [vmem:[#allocation141_spill] sm:$0xff] }
 0x750   :  { %7099 = vmatpush.msrb.mxu2 %v4622_v47  ;;  %v5563_v37 = vsel %vm870_vm3, %v20096_v44, %v20095_v24  ;;  %v20097_v47 = vunpack.i.l.bf16 %v15290_v59  ;;  %v20101_v44 = vld [vmem:[#allocation25_spill] sm:$0xff]  ;;  %8915 = vrot.lane.b32.xlu0 %v8914_v14, %s9095_s1 }
 0x751   :  { %7193 = vmatpush.msra.mxu0 %v5563_v37  ;;  %7248 = vmatpush.msrb.mxu1 %v20099_v33  ;;  %v20102_v24 = vunpack.i.l.bf16 %v20101_v44  ;;  %v16012_v37 = vld [vmem:[%s18261_s7 + $0x8] sm:$0xff]  ;;  %v16029_v17 = vpop.f32.mrf.mxu2 }
 0x752   :  { %v4621_v45 = vsel %vm544_vm1, %v20098_v35, %v20097_v47  ;;  %6937 = vmatmul.f32.vlgmr.msra.gmra.mxu3 %v16012_v37  ;;  %v20105_v35 = vunpack.i.h.bf16 %v19978_v58  ;;  %20109 = vst [vmem:[#allocation100_spill] sm:$0xff] %v16029_v17  ;;  %v20113_v17 = vunpack.i.h.bf16 %v20089_v29  ;;  %8910 = vrot.lane.b32.xlu2 %v8909_v4, %s9097_s11 }
 0x753   :  { %7100 = vmatpush.msrb.mxu2 %v4621_v45  ;;  %v5562_v5 = vsel %vm870_vm3, %v20102_v24, %v20100_v41  ;;  %v20104_v45 = vunpack.i.h.bf16 %v20088_v57  ;;  %v20106_v41 = vunpack.i.l.bf16 %v20089_v29  ;;  %v20107_v24 = vld [vmem:[#allocation28_spill] sm:$0xff]  ;;  %7249 = vmatpush.msrb.mxu1 %v20115_v23 }
 0x754   :  { %v20108_v14 = vunpack.i.l.bf16 %v20107_v24  ;;  %7194 = vmatpush.msra.mxu0 %v5562_v5  ;;  %v20112_v5 = vunpack.i.l.bf16 %v19978_v58  ;;  %v20114_v22 = vunpack.i.h.bf16 %v20107_v24  ;;  %v20116_v58 = vunpack.i.h.bf16 %v15645_v26  ;;  %v3878_v24 = vpop.f32.mrf.mxu1 }
 0x755   :  { %v4620_v47 = vsel %vm544_vm1, %v20105_v35, %v20104_v45  ;;  %v3808_v35 = vadd.f32 %v15741_v49, %v15682_v52  ;;  %v3876_v49 = vadd.f32 %v3875_v11, %v3805_v38  ;;  %v20191_v26 = vunpack.i.h.bf16 %v15828_v55 }
 0x756   :  { %v5558_v20 = vsel %vm870_vm3, %v20108_v14, %v20106_v41  ;;  %7101 = vmatpush.msrb.mxu2 %v4620_v47  ;;  %v20111_v41 = vunpack.i.l.bf16 %v20088_v57  ;;  %v5557_v16 = vsel %vm870_vm3, %v20114_v22, %v20113_v17  ;;  %v20119_v17 = vunpack.i.h.bf16 %v20103_v54  ;;  %v20120_v22 = vld [vmem:[#allocation27_spill] sm:$0xff]  ;;  %v16066_v11 = vpop.f32.mrf.mxu3 }
 0x757   :  { %7153 = vmatpush.msra.mxu3 %v5558_v20  ;;  %v20117_v20 = vunpack.i.h.bf16 %v20101_v44  ;;  %v20121_v4 = vunpack.i.h.bf16 %v20120_v22  ;;  %v3879_v38 = vadd.f32 %v3878_v24, %v3808_v35  ;;  %20122 = vst [vmem:[#allocation43_spill] sm:$0xff] %v16066_v11  ;;  %v20129_v35 = vunpack.i.l.bf16 %v20103_v54 }
 0x758   :  { %v4619_v14 = vsel %vm544_vm1, %v20112_v5, %v20111_v41  ;;  %v20118_v41 = vld [vmem:[#allocation38_spill] sm:$0xff]  ;;  %v20130_v24 = vunpack.i.l.bf16 %v20120_v22  ;;  %v4078_v44 = vmul.f32 0.01, %v3876_v49  ;;  %vm3970_vm6 = vcmp.ge.f32.partialorder %v3876_v49, 0.0 }
 0x759   :  { %7102 = vmatpush.msrb.mxu2 %v4619_v14  ;;  %7154 = vmatpush.msra.mxu3 %v5557_v16  ;;  %v5561_v47 = vsel %vm870_vm3, %v20117_v20, %v20116_v58  ;;  %v4618_v5 = vsel %vm544_vm1, %v20121_v4, %v20119_v17  ;;  %v20123_v14 = vld [vmem:[#allocation76_spill] sm:$0xff]  ;;  %v16069_v16 = vpop.f32.mrf.mxu0  ;;  %v16071_v58 = vpop.permute.xlu2 %8760  ;;  %v20124_v20 = vld [vmem:[#allocation9_spill] sm:$0xff]  ;;  %v20128_v17 = vld [vmem:[#allocation159_spill] sm:$0xff]  ;;  %vm3976_vm5 = vcmp.ge.f32.partialorder %v3879_v38, 0.0 }
 0x75a   :  { %7195 = vmatpush.msra.mxu0 %v5561_v47  ;;  %7918 = vmatmul.msk.f32.gmra.mxu2 %vm6531_vm11, %v20118_v41  ;;  %v20125_v47 = vunpack.i.l.bf16 %v15657_v18  ;;  %v20126_v41 = vld [vmem:[#allocation58_spill] sm:$0xff]  ;;  %v4617_v4 = vsel %vm544_vm1, %v20130_v24, %v20129_v35  ;;  %v16096_v35 = vpop.f32.mrf.mxu2  ;;  %v20136_v24 = vld [vmem:[#allocation59_spill] sm:$0xff]  ;;  %v16126_v11 = vsel %vm3970_vm6, %v3876_v49, %v4078_v44 }
 0x75b   :  { %7103 = vmatpush.msrb.mxu2 %v4618_v5  ;;  %7155 = vmatpush.msra.mxu3 %v20124_v20  ;;  %v20127_v52 = vunpack.i.l.bf16 %v20126_v41  ;;  %v4084_v5 = vmul.f32 0.01, %v3879_v38  ;;  %v20134_v22 = vld [vmem:[#allocation150_spill] sm:$0xff]  ;;  %20135 = vst [vmem:[#allocation99_spill] sm:$0xff] %v16096_v35  ;;  %v8929_v20 = vpack.i.bf16 %v15836_v3, %v15831_v0  ;;  %v20142_v35 = vld [vmem:[#allocation135_spill] sm:$0xff]  ;;  %v20180_v3 = vld [vmem:[#allocation64_spill] sm:$0xff] }
 0x75c   :  { %7250 = vmatpush.msrb.mxu1 %v20128_v17  ;;  %v20143_v17 = vld [vmem:[#allocation154_spill] sm:$0xff]  ;;  %20144 = vst [vmem:[#allocation119_spill] sm:$0xff] %v16126_v11  ;;  %v20181_v0 = vunpack.i.l.bf16 %v20180_v3 }
 0x75d   :  { %v5560_v45 = vsel %vm870_vm3, %v20127_v52, %v20125_v47  ;;  %7104 = vmatpush.msrb.mxu2 %v4617_v4  ;;  %7156 = vmatpush.msra.mxu3 %v20131_v48  ;;  %v20132_v52 = vunpack.i.h.bf16 %v15657_v18  ;;  %v20133_v47 = vunpack.i.h.bf16 %v20126_v41  ;;  %v16102_v4 = vld [vmem:[%s18261_s7 + $0xb0] sm:$0xf]  ;;  %v16108_v48 = vld [vmem:[%s18261_s7 + $0x38] sm:$0xff]  ;;  %v20138_v41 = vunpack.i.h.bf16 %v20123_v14  ;;  %v20190_v18 = vld [vmem:[#allocation161_spill] sm:$0xff] }
 0x75e   :  { %7196 = vmatpush.msra.mxu0 %v5560_v45  ;;  %7251 = vmatpush.msrb.mxu1 %v20134_v22  ;;  %20137 = vst [vmem:[#allocation60_spill] sm:$0xff] %v16102_v4  ;;  %v16118_v13 = vsel %vm3976_vm5, %v3879_v38, %v4084_v5  ;;  %v18838_v22 = vunpack.i.h.bf16 %v20142_v35  ;;  %v16142_v44 = vpop.f32.mrf.mxu3 }
 0x75f   :  { %v5559_v45 = vsel %vm870_vm3, %v20133_v47, %v20132_v52  ;;  %7033 = vmatmul.f32.gmra.mxu1 %v16102_v4  ;;  %6940 = vmatmul.f32.gmra.mxu3 %v16108_v48  ;;  %v20139_v52 = vld [vmem:[#allocation147_spill] sm:$0xff]  ;;  %20141 = vst [vmem:[#allocation109_spill] sm:$0xff] %v16118_v13  ;;  %v8919_v49 = vpack.i.bf16 %v16118_v13, %v16126_v11 }
 0x760   :  { %7197 = vmatpush.msra.mxu0 %v5559_v45  ;;  %v20140_v47 = vunpack.i.h.bf16 %v20139_v52  ;;  %7157 = vmatpush.msra.mxu3 %v20143_v17  ;;  %v20146_v38 = vunpack.i.l.bf16 %v20139_v52  ;;  %v20147_v17 = vld [vmem:[#allocation104_spill] sm:$0xff]  ;;  %20148 = vst [vmem:[#allocation51_spill] sm:$0xff] %v16142_v44  ;;  %v20150_v52 = vunpack.i.l.bf16 %v20136_v24  ;;  %v20155_v44 = vunpack.i.h.bf16 %v20013_v43  ;;  %v16194_v43 = vld [vmem:[%s18261_s7 + $0x68] sm:$0xff] }
 0x761   :  { %7252 = vmatpush.msrb.mxu1 %v20025_v28  ;;  %8930 = vrot.lane.b32.xlu2 %v8929_v20, %s9096_s10  ;;  %v16144_v23 = vpop.permute.xlu2 %8770 }
 0x762   :  { %v4616_v45 = vsel %vm544_vm1, %v20140_v47, %v20138_v41  ;;  %v20145_v41 = vunpack.i.l.bf16 %v20123_v14  ;;  %7158 = vmatpush.msra.mxu3 %v20147_v17  ;;  %20149 = vst [vmem:[#allocation94_spill] sm:$0xff] %v16144_v23  ;;  %8935 = vrot.lane.b32.xlu0 %v8929_v20, %s9097_s11  ;;  %v16154_v17 = vpop.f32.mrf.mxu0  ;;  %v20154_v47 = vld [vmem:[#allocation33_spill] sm:$0xff]  ;;  %v20156_v20 = vld [vmem:[#allocation18_spill] sm:$0xff] }
 0x763   :  { %7105 = vmatpush.msrb.mxu2 %v4616_v45  ;;  %v16138_v45 = vpop.f32.mrf.mxu1  ;;  %7253 = vmatpush.msrb.mxu1 %v20026_v63  ;;  %20153 = vst [vmem:[#allocation72_spill] sm:$0xff] %v16154_v17  ;;  %v4614_v63 = vsel %vm544_vm1, %v20155_v44, %v18838_v22  ;;  %v18841_v28 = vunpack.i.l.bf16 %v20156_v20  ;;  %v20159_v17 = vunpack.i.l.bf16 %v20142_v35  ;;  %v16182_v22 = vpop.permute.xlu1 %8755  ;;  %v20170_v33 = vunpack.i.h.bf16 %v20156_v20 }
 0x764   :  { %v4615_v5 = vsel %vm544_vm1, %v20146_v38, %v20145_v41  ;;  %v20151_v41 = vld [vmem:[#allocation155_spill] sm:$0xff]  ;;  %7919 = vmatmul.msk.f32.gmra.mxu2 %vm6531_vm11, %v20154_v47  ;;  %8920 = vrot.lane.b32.xlu1 %v8919_v49, %s9095_s1 }
 0x765   :  { %7106 = vmatpush.msrb.mxu2 %v4615_v5  ;;  %v20152_v38 = vunpack.i.l.bf16 %v20151_v41  ;;  %7254 = vmatpush.msrb.mxu1 %v19995_v56  ;;  %v4613_v44 = vsel %vm544_vm1, %v20160_v1, %v20159_v17  ;;  %v16199_v1 = vpack.i.bf16 %v15815_v2, %v15798_v19  ;;  %v20163_v17 = vld [vmem:[#allocation134_spill] sm:$0xff]  ;;  %v20169_v56 = vld [vmem:[#allocation75_spill] sm:$0xff]  ;;  %v20178_v2 = vld [vmem:[#allocation44_spill] sm:$0xff]  ;;  %v20179_v19 = vunpack.i.h.bf16 %v15788_v36 }
 0x767   :  { %v5552_v5 = vsel %vm870_vm3, %v20152_v38, %v20150_v52  ;;  %7107 = vmatpush.msrb.mxu2 %v4614_v63  ;;  %v20157_v52 = vunpack.i.h.bf16 %v20136_v24  ;;  %v20158_v38 = vunpack.i.h.bf16 %v20151_v41  ;;  %v16179_v63 = vpop.f32.mrf.mxu2  ;;  %7255 = vmatpush.msrb.mxu1 %v19996_v8  ;;  %v16188_v41 = vld [vmem:[%s18261_s7 + $0x10] sm:$0xff] }
 0x768   :  { %7159 = vmatpush.msra.mxu3 %v5552_v5  ;;  %20161 = vst [vmem:[#allocation92_spill] sm:$0xff] %v16179_v63  ;;  %7140 = vmatmul.f32.vlgmr.msra.gmra.mxu1 %v16188_v41  ;;  %v20167_v5 = vld [vmem:[#allocation114_spill] sm:$0xff] }
 0x769   :  { %v5551_v47 = vsel %vm870_vm3, %v20158_v38, %v20157_v52  ;;  %7108 = vmatpush.msrb.mxu2 %v4613_v44  ;;  %20162 = vst [vmem:[#allocation7_spill] sm:$0xff] %v16188_v41  ;;  %6943 = vmatmul.f32.gmra.mxu3 %v16194_v43  ;;  %v20164_v52 = vld [vmem:[#allocation15_spill] sm:$0xff]  ;;  %v16214_v63 = vpack.i.bf16 %v20167_v5, %v15706_v9  ;;  %v20168_v8 = vld [vmem:[#allocation50_spill] sm:$0xff] }
 0x76a   :  { %7160 = vmatpush.msra.mxu3 %v5551_v47  ;;  %7356 = vmatpush.msra.mxu1 %v20163_v17  ;;  %v20165_v38 = vld [vmem:[#allocation151_spill] sm:$0xff]  ;;  %v16217_v17 = vpop.permute.xlu2 %8790  ;;  %v20173_v9 = vld [vmem:[#allocation122_spill] sm:$0xff]  ;;  %v16249_v5 = vpop.f32.mrf.mxu0 }
 0x76b   :  { %7109 = vmatpush.msrb.mxu2 %v20164_v52  ;;  %v20166_v47 = vunpack.i.l.bf16 %v20165_v38  ;;  %8945 = vrot.lane.b32.xlu2 %v16199_v1, %s9097_s11  ;;  %v3884_v49 = vpop.f32.mrf.mxu1  ;;  %20177 = vst [vmem:[#allocation35_spill] sm:$0xff] %v16249_v5  ;;  %v16272_v5 = vld [vmem:[%s18261_s7 + $0x98] sm:$0xf]  ;;  %v20192_v41 = vld [vmem:[#allocation162_spill] sm:$0xff] }
 0x76c   :  { %7357 = vmatpush.msra.mxu1 %v20168_v8  ;;  %8950 = vrot.lane.b32.xlu0 %v16214_v63, %s9096_s10  ;;  %v16236_v8 = vld [vmem:[%s18261_s7 + $0x18] sm:$0xff]  ;;  %v20193_v7 = vunpack.i.l.bf16 %v20192_v41 }
 0x76d   :  { %v5550_v44 = vsel %vm870_vm3, %v20166_v47, %v18841_v28  ;;  %7110 = vmatpush.msrb.mxu2 %v20169_v56  ;;  %v20171_v47 = vunpack.i.h.bf16 %v20165_v38  ;;  %v16227_v28 = vpop.f32.mrf.mxu3  ;;  %v20175_v38 = vld [vmem:[#allocation80_spill] sm:$0xff] }
 0x76e   :  { %7161 = vmatpush.msra.mxu3 %v5550_v44  ;;  %20172 = vst [vmem:[#allocation65_spill] sm:$0xff] %v16227_v28  ;;  %7358 = vmatpush.msra.mxu1 %v20173_v9  ;;  %v16247_v28 = vpack.i.bf16 %v15945_v10, %v15932_v21  ;;  %v20189_v9 = vld [vmem:[#allocation66_spill] sm:$0xff]  ;;  %v16319_v21 = vld [vmem:[%s18261_s7 + $0x48] sm:$0xff] }
 0x76f   :  { %v5549_v44 = vsel %vm870_vm3, %v20171_v47, %v20170_v33  ;;  %6995 = vmatmul.f32.vlgmr.msra.gmra.mxu2 %v16236_v8  ;;  %v20174_v33 = vunpack.i.l.bf16 %v15788_v36  ;;  %v20176_v47 = vunpack.i.h.bf16 %v20175_v38 }
 0x770   :  { %7162 = vmatpush.msra.mxu3 %v5549_v44  ;;  %7217 = vmatpush.msra.mxu2 %v20035_v6  ;;  %v16265_v6 = vpop.f32.mrf.mxu2 }
 0x771   :  { %v5098_v44 = vsel %vm707_vm2, %v20176_v47, %v20174_v33  ;;  %7359 = vmatpush.msra.mxu1 %v20178_v2  ;;  %v5097_v33 = vsel %vm707_vm2, %v20181_v0, %v20179_v19  ;;  %v16260_v47 = vpop.permute.xlu1 %8775  ;;  %8925 = vrot.lane.b32.xlu1 %v16247_v28, %s9096_s10  ;;  %20182 = vst [vmem:[#allocation67_spill] sm:$0xff] %v16265_v6  ;;  %v20184_v2 = vld [vmem:[#allocation98_spill] sm:$0xff]  ;;  %v20185_v19 = vunpack.i.l.bf16 %v15828_v55  ;;  %v20186_v0 = vunpack.i.h.bf16 %v20180_v3  ;;  %v20188_v6 = vld [vmem:[#allocation29_spill] sm:$0xff] }
 0x772   :  { %7163 = vmatpush.msra.mxu3 %v5098_v44  ;;  %7218 = vmatpush.msra.mxu2 %v20042_v50  ;;  %v20183_v44 = vld [vmem:[#allocation123_spill] sm:$0xff]  ;;  %v5095_v3 = vsel %vm707_vm2, %v20193_v7, %v20191_v26  ;;  %v20196_v26 = vld [vmem:[#allocation21_spill] sm:$0xff] }
 0x773   :  { %7360 = vmatpush.msra.mxu1 %v20184_v2  ;;  %6946 = vmatmul.f32.gmra.mxu3 %v16272_v5  ;;  %v5096_v50 = vsel %vm707_vm2, %v20186_v0, %v20185_v19  ;;  %v16294_v19 = vpop.permute.xlu2 %8815  ;;  %v3811_v7 = vadd.f32 %v15812_v60, %v20196_v26  ;;  %v20198_v0 = vunpack.i.l.bf16 %v20183_v44  ;;  %v20201_v60 = vunpack.i.h.bf16 %v16071_v58  ;;  %v20206_v26 = vld [vmem:[#allocation138_spill] sm:$0xff] }
 0x774   :  { %7164 = vmatpush.msra.mxu3 %v5097_v33  ;;  %v20187_v33 = vld [vmem:[#allocation84_spill] sm:$0xff]  ;;  %7219 = vmatpush.msra.mxu2 %v20189_v9  ;;  %20194 = vst [vmem:[#allocation53_spill] sm:$0xff] %v16294_v19  ;;  %v3814_v9 = vadd.f32 %v15872_v27, %v15795_v46  ;;  %v18863_v2 = vunpack.i.h.bf16 %v16294_v19  ;;  %v20199_v46 = vunpack.i.h.bf16 %v20192_v41  ;;  %v20203_v41 = vunpack.i.l.bf16 %v16294_v19 }
 0x775   :  { %v8959_v10 = vpack.i.bf16 %v20188_v6, %v20187_v33  ;;  %7361 = vmatpush.msra.mxu1 %v20190_v18  ;;  %v20195_v18 = vld [vmem:[#allocation142_spill] sm:$0xff]  ;;  %v3887_v6 = vpop.f32.mrf.mxu1  ;;  %v20197_v33 = vld [vmem:[#allocation160_spill] sm:$0xff] }
 0x776   :  { %7165 = vmatpush.msra.mxu3 %v5096_v50  ;;  %v16299_v50 = vpop.permute.xlu0 %8765  ;;  %7220 = vmatpush.msra.mxu2 %v20195_v18  ;;  %v5094_v27 = vsel %vm707_vm2, %v20199_v46, %v20198_v0  ;;  %v3885_v18 = vadd.f32 %v3884_v49, %v3814_v9  ;;  %v20204_v49 = vunpack.i.l.bf16 %v16071_v58  ;;  %v18867_v0 = vunpack.i.h.bf16 %v16182_v22  ;;  %v20207_v46 = vld [vmem:[#allocation37_spill] sm:$0xff] }
 0x777   :  { %8960 = vrot.lane.b32.xlu2 %v8959_v10, %s9096_s10  ;;  %8965 = vrot.lane.b32.xlu0 %v8959_v10, %s9097_s11  ;;  %v16328_v10 = vsel %vm544_vm1, %v20201_v60, %v18863_v2  ;;  %v20209_v60 = vunpack.i.l.bf16 %v20175_v38 }
 0x778   :  { %7166 = vmatpush.msra.mxu3 %v5095_v3  ;;  %7362 = vmatpush.msra.mxu1 %v20197_v33  ;;  %v16314_v3 = vpop.f32.mrf.mxu3  ;;  %20202 = vst [vmem:[#allocation144_spill] sm:$0xff] %v16328_v10  ;;  %v16336_v33 = vsel %vm544_vm1, %v20204_v49, %v20203_v41  ;;  %v3817_v41 = vadd.f32 %v15962_v25, %v15850_v42  ;;  %v16369_v42 = vld [vmem:[%s18261_s7 + $0x28] sm:$0xff]  ;;  %vm3988_vm7 = vcmp.ge.f32.partialorder %v3885_v18, 0.0  ;;  %v20227_v10 = vld [vmem:[#allocation118_spill] sm:$0xff] }
 0x779   :  { %20200 = vst [vmem:[#allocation132_spill] sm:$0xff] %v16314_v3  ;;  %6998 = vmatmul.f32.gmra.mxu2 %v16319_v21  ;;  %v16348_v19 = vpop.permute.xlu1 %8795  ;;  %v16350_v3 = vpop.f32.mrf.mxu0  ;;  %v3882_v49 = vadd.f32 %v16138_v45, %v3811_v7  ;;  %v20215_v25 = vld [vmem:[#allocation69_spill] sm:$0xff]  ;;  %v20216_v45 = vld [vmem:[#allocation48_spill] sm:$0xff]  ;;  %v4096_v7 = vmul.f32 0.01, %v3885_v18  ;;  %8940 = vrot.lane.b32.xlu1 %v16199_v1, %s9096_s10 }
 0x77a   :  { %7167 = vmatpush.msra.mxu3 %v5094_v27  ;;  %20205 = vst [vmem:[#allocation86_spill] sm:$0xff] %v16336_v33  ;;  %7221 = vmatpush.msra.mxu2 %v20206_v26  ;;  %v20208_v27 = vunpack.i.h.bf16 %v20183_v44  ;;  %v16358_v26 = vld [vmem:[%s18261_s7 + $0xa0] sm:$0xf]  ;;  %v18866_v38 = vunpack.i.h.bf16 %v16348_v19  ;;  %v3888_v9 = vadd.f32 %v3887_v6, %v3817_v41  ;;  %v20219_v6 = vunpack.i.l.bf16 %v16348_v19 }
 0x77b   :  { %7363 = vmatpush.msra.mxu1 %v20207_v46  ;;  %20210 = vst [vmem:[#allocation41_spill] sm:$0xff] %v16348_v19  ;;  %6975 = vmatmul.f32.gmra.mxu0 %v16358_v26  ;;  %v20220_v41 = vunpack.i.l.bf16 %v16182_v22  ;;  %v3820_v33 = vadd.f32 %v16069_v16, %v15909_v15  ;;  %vm3982_vm8 = vcmp.ge.f32.partialorder %v3882_v49, 0.0  ;;  %v16439_v19 = vld [vmem:[%s18261_s7 + $0x58] sm:$0xff] }
 0x77c   :  { %v5093_v2 = vsel %vm707_vm2, %v20209_v60, %v20208_v27  ;;  %20211 = vst [vmem:[#allocation11_spill] sm:$0xff] %v16350_v3  ;;  %v16363_v27 = vpop.f32.mrf.mxu2  ;;  %v20214_v60 = vld [vmem:[#allocation137_spill] sm:$0xff]  ;;  %7920 = vmatmul.msk.f32.vlgmr.msrb.gmra.mxu3 %vm6531_vm11, %v16369_v42  ;;  %v16389_v46 = vsel %vm544_vm1, %v18867_v0, %v18866_v38  ;;  %v20222_v3 = vld [vmem:[#allocation128_spill] sm:$0xff]  ;;  %v4090_v38 = vmul.f32 0.01, %v3882_v49  ;;  %vm3994_vm9 = vcmp.ge.f32.partialorder %v3888_v9, 0.0 }
 0x77d   :  { %7168 = vmatpush.msra.mxu3 %v5093_v2  ;;  %20212 = vst [vmem:[#allocation133_spill] sm:$0xff] %v16358_v26  ;;  %7222 = vmatpush.msra.mxu2 %v20214_v60  ;;  %v8974_v2 = vpack.i.bf16 %v20216_v45, %v20215_v25  ;;  %v16380_v60 = vld [vmem:[%s18261_s7 + $0x40] sm:$0xff]  ;;  %v16397_v1 = vsel %vm544_vm1, %v20220_v41, %v20219_v6  ;;  %v3890_v6 = vpop.f32.mrf.mxu1 }
 0x77e   :  { %20213 = vst [vmem:[#allocation85_spill] sm:$0xff] %v16363_v27  ;;  %7143 = vmatmul.f32.gmra.mxu1 %v16380_v60  ;;  %v16401_v27 = vpop.permute.xlu2 %8820  ;;  %v16405_v0 = vpop.permute.xlu0 %8780  ;;  %v16409_v41 = vsel %vm3988_vm7, %v3885_v18, %v4096_v7  ;;  %v3891_v15 = vadd.f32 %v3890_v6, %v3820_v33  ;;  %v20229_v18 = vld [vmem:[#allocation164_spill] sm:$0xff]  ;;  %v16427_v25 = vsel %vm3982_vm8, %v3882_v49, %v4090_v38  ;;  %v20233_v6 = vld [vmem:[#allocation117_spill] sm:$0xff] }
 0x77f   :  { %20217 = vst [vmem:[#allocation121_spill] sm:$0xff] %v16380_v60  ;;  %7223 = vmatpush.msra.mxu2 %v20222_v3  ;;  %8975 = vrot.lane.b32.xlu2 %v8974_v2, %s9097_s11  ;;  %v16414_v3 = vld [vmem:[%s18261_s7 + $0x78] sm:$0xff]  ;;  %v20230_v7 = vunpack.i.l.bf16 %v20229_v18  ;;  %v16432_v33 = vld [vmem:[%s18261_s7] sm:$0xff]  ;;  %v8979_v49 = vpack.i.bf16 %v16409_v41, %v16427_v25  ;;  %v20239_v60 = vunpack.i.h.bf16 %v16401_v27  ;;  %v20240_v30 = vunpack.i.h.bf16 %v20229_v18 }
 0x780   :  { %20218 = vst [vmem:[#allocation13_spill] sm:$0xff] %v16389_v46  ;;  %v20224_v46 = vld [vmem:[#allocation127_spill] sm:$0xff]  ;;  %v16417_v16 = vpop.f32.mrf.mxu3  ;;  %vm4000_vm10 = vcmp.ge.f32.partialorder %v3891_v15, 0.0  ;;  %v8999_v18 = vpack.i.bf16 %v16126_v11, %v16118_v13 }
 0x781   :  { %20221 = vst [vmem:[#allocation126_spill] sm:$0xff] %v16397_v1  ;;  %7224 = vmatpush.msra.mxu2 %v20224_v46  ;;  %v4102_v1 = vmul.f32 0.01, %v3888_v9  ;;  %v20228_v46 = vunpack.i.l.bf16 %v16401_v27  ;;  %8955 = vrot.lane.b32.xlu1 %v16214_v63, %s9097_s11 }
 0x782   :  { %20223 = vst [vmem:[#allocation129_spill] sm:$0xff] %v16401_v27  ;;  %7001 = vmatmul.f32.gmra.mxu2 %v16414_v3 }
 0x783   :  { %20225 = vst [vmem:[#allocation30_spill] sm:$0xff] %v16409_v41  ;;  %7225 = vmatpush.msra.mxu2 %v20227_v10  ;;  %v5074_v45 = vsel %vm707_vm2, %v20230_v7, %v20228_v46  ;;  %7082 = vmatmul.f32.vlgmr.msrb.gmra.mxu0 %v16432_v33  ;;  %v4108_v10 = vmul.f32 0.01, %v3891_v15  ;;  %v16447_v46 = vpop.f32.mrf.mxu0  ;;  %v16449_v7 = vsel %vm3994_vm9, %v3888_v9, %v4102_v1 }
 0x784   :  { %20226 = vst [vmem:[#allocation148_spill] sm:$0xff] %v16417_v16  ;;  %7921 = vmatmul.msk.f32.gmra.mxu3 %vm6531_vm11, %v16439_v19  ;;  %v16445_v38 = vpop.f32.mrf.mxu2  ;;  %7298 = vmatpush.msrb.mxu0 %v5074_v45  ;;  %v16469_v45 = vld [vmem:[%s18261_s7 + $0x70] sm:$0xff] }
 0x785   :  { %20231 = vst [vmem:[#allocation16_spill] sm:$0xff] %v16427_v25  ;;  %7226 = vmatpush.msra.mxu2 %v20233_v6  ;;  %v16451_v16 = vsel %vm4000_vm10, %v3891_v15, %v4108_v10  ;;  %v16455_v6 = vpop.permute.xlu1 %8800  ;;  %v16488_v15 = vld [vmem:[%s18261_s7 + $0x30] sm:$0xff]  ;;  %v16496_v10 = vld [vmem:[%s18261_s7 + $0x88] sm:$0xff] }
 0x786   :  { %20232 = vst [vmem:[#allocation149_spill] sm:$0xff] %v16432_v33  ;;  %v8984_v9 = vpack.i.bf16 %v16451_v16, %v16449_v7  ;;  %7146 = vmatmul.f32.gmra.mxu1 %v16469_v45  ;;  %v16472_v63 = vpop.permute.xlu2 %8835  ;;  %v16475_v1 = vpop.permute.xlu0 %8785  ;;  %v8989_v27 = vpack.i.bf16 %v16449_v7, %v16451_v16 }
 0x787   :  { %20234 = vst [vmem:[#allocation42_spill] sm:$0xff] %v16445_v38  ;;  %8980 = vrot.lane.b32.xlu2 %v8979_v49, %s9095_s1  ;;  %v5073_v38 = vsel %vm707_vm2, %v20240_v30, %v20239_v60  ;;  %v16480_v30 = vld [vmem:[%s18261_s7 + $0xa8] sm:$0xf] }
 0x788   :  { %20235 = vst [vmem:[#allocation120_spill] sm:$0xff] %v16447_v46  ;;  %7299 = vmatpush.msrb.mxu0 %v5073_v38  ;;  %8985 = vrot.lane.b32.xlu0 %v8984_v9, %s9095_s1  ;;  %v16483_v60 = vpop.f32.mrf.mxu3 }
 0x789   :  { %20236 = vst [vmem:[#allocation10_spill] sm:$0xff] %v16449_v7  ;;  %8970 = vrot.lane.b32.xlu1 %v8974_v2, %s9096_s10  ;;  %v20252_v7 = vunpack.i.l.bf16 %v20089_v29 }
 0x78a   :  { %20237 = vst [vmem:[#allocation89_spill] sm:$0xff] %v16451_v16  ;;  %7004 = vmatmul.f32.gmra.mxu2 %v16480_v30 }
 0x78b   :  { %20238 = vst [vmem:[#allocation45_spill] sm:$0xff] %v16455_v6  ;;  %7085 = vmatmul.f32.gmra.mxu0 %v16488_v15 }
 0x78c   :  { %20241 = vst [vmem:[#allocation47_spill] sm:$0xff] %v16469_v45  ;;  %7922 = vmatmul.msk.f32.gmra.mxu3 %vm6531_vm11, %v16496_v10  ;;  %v16504_v9 = vpop.f32.mrf.mxu2  ;;  %v16511_v45 = vpop.f32.mrf.mxu0 }
 0x78d   :  { %20242 = vst [vmem:[#allocation20_spill] sm:$0xff] %v16472_v63  ;;  %v16502_v38 = vpop.permute.xlu1 %8805 }
 0x78e   :  { %20243 = vst [vmem:[#allocation156_spill] sm:$0xff] %v16475_v1  ;;  %7149 = vmatmul.f32.gmra.mxu1 %v16358_v26  ;;  %v16531_v49 = vpop.permute.xlu2 %8865  ;;  %v16533_v16 = vpop.permute.xlu0 %8810  ;;  %v20255_v13 = vunpack.i.h.bf16 %v16502_v38 }
 0x78f   :  { %20244 = vst [vmem:[#allocation39_spill] sm:$0xff] %v16483_v60  ;;  %9000 = vrot.lane.b32.xlu2 %v8999_v18, %s9096_s10  ;;  %v18884_v60 = vunpack.i.l.bf16 %v16502_v38 }
 0x790   :  { %20245 = vst [vmem:[#allocation14_spill] sm:$0xff] %v16488_v15  ;;  %8990 = vrot.lane.b32.xlu0 %v8989_v27, %s9096_s10 }
 0x791   :  { %20246 = vst [vmem:[#allocation63_spill] sm:$0xff] %v16502_v38 }
 0x792   :  { %20247 = vst [vmem:[#allocation68_spill] sm:$0xff] %v16504_v9  ;;  %v20249_v9 = vld [vmem:[#allocation32_spill] sm:$0xff]  ;;  %7111 = vmatmul.f32.vlgmr.msrb.gmra.mxu2 %v16012_v37 }
 0x793   :  { %20248 = vst [vmem:[#allocation113_spill] sm:$0xff] %v16511_v45  ;;  %v20250_v11 = vunpack.i.l.bf16 %v20249_v9  ;;  %v20251_v45 = vunpack.i.l.bf16 %v16455_v6  ;;  %v20256_v26 = vunpack.i.h.bf16 %v20249_v9  ;;  %v20259_v9 = vunpack.i.l.bf16 %v16475_v1 }
 0x794   :  { %20253 = vst [vmem:[#allocation158_spill] sm:$0xff] %v16531_v49 }
 0x795   :  { %v5072_v46 = vsel %vm707_vm2, %v20250_v11, %v18884_v60  ;;  %v5540_v2 = vsel %vm870_vm3, %v20252_v7, %v20251_v45  ;;  %v16536_v60 = vpop.f32.mrf.mxu3  ;;  %v5071_v44 = vsel %vm707_vm2, %v20256_v26, %v20255_v13  ;;  %v20257_v7 = vunpack.i.h.bf16 %v16455_v6 }
 0x796   :  { %7300 = vmatpush.msrb.mxu0 %v5072_v46  ;;  %7327 = vmatpush.msrb.mxu2 %v5540_v2  ;;  %20254 = vst [vmem:[#allocation4_spill] sm:$0xff] %v16536_v60  ;;  %v20258_v45 = vunpack.i.h.bf16 %v20089_v29  ;;  %v8994_v2 = vpack.i.bf16 %v16427_v25, %v16409_v41  ;;  %v20260_v60 = vld [vmem:[#allocation31_spill] sm:$0xff]  ;;  %v20267_v6 = vunpack.i.h.bf16 %v16405_v0  ;;  %v16611_v38 = vpop.permute.xlu0 %8840 }
 0x797   :  { %v20261_v13 = vunpack.i.l.bf16 %v20260_v60  ;;  %v16563_v29 = vld [vmem:[%s18261_s7 + $0xb8] sm:$0xf]  ;;  %9015 = vrot.lane.b32.xlu2 %v8999_v18, %s9097_s11  ;;  %v20266_v4 = vunpack.i.h.bf16 %v20260_v60  ;;  %7256 = vmatmul.f32.vlgmr.msrb.gmra.mxu1 %v16432_v33  ;;  %v20270_v60 = vunpack.i.l.bf16 %v16472_v63  ;;  %v20271_v18 = vld [vmem:[#allocation101_spill] sm:$0xff] }
 0x798   :  { %v5539_v46 = vsel %vm870_vm3, %v20258_v45, %v20257_v7  ;;  %7301 = vmatpush.msrb.mxu0 %v5071_v44  ;;  %7923 = vmatmul.msk.f32.gmra.mxu3 %vm6531_vm11, %v16563_v29  ;;  %v20262_v7 = vunpack.i.l.bf16 %v16405_v0  ;;  %v20263_v45 = vld [vmem:[#allocation40_spill] sm:$0xff] }
 0x799   :  { %7328 = vmatpush.msrb.mxu2 %v5539_v46  ;;  %v5070_v26 = vsel %vm707_vm2, %v20261_v13, %v20259_v9  ;;  %v20264_v46 = vunpack.i.l.bf16 %v20263_v45  ;;  %8995 = vrot.lane.b32.xlu1 %v8994_v2, %s9096_s10  ;;  %v18892_v9 = vunpack.i.h.bf16 %v16472_v63  ;;  %v20265_v13 = vunpack.i.h.bf16 %v16475_v1 }
 0x79a   :  { %7302 = vmatpush.msrb.mxu0 %v5070_v26  ;;  %9005 = vrot.lane.b32.xlu0 %v8989_v27, %s9097_s11  ;;  %v20276_v27 = vunpack.i.h.bf16 %v20271_v18  ;;  %v20290_v63 = vunpack.i.h.bf16 %v16217_v17  ;;  %v20291_v1 = vunpack.i.h.bf16 %v15290_v59 }
 0x79b   :  { %v5538_v11 = vsel %vm870_vm3, %v20264_v46, %v20262_v7  ;;  %v5069_v44 = vsel %vm707_vm2, %v20266_v4, %v20265_v13  ;;  %v20268_v7 = vunpack.i.h.bf16 %v20263_v45  ;;  %v16590_v46 = vpop.f32.mrf.mxu2  ;;  %v16600_v13 = vpop.f32.mrf.mxu0  ;;  %7114 = vmatmul.f32.gmra.mxu2 %v16108_v48  ;;  %v20274_v45 = vld [vmem:[#allocation34_spill] sm:$0xff] }
 0x79c   :  { %7329 = vmatpush.msrb.mxu2 %v5538_v11  ;;  %20269 = vst [vmem:[#allocation157_spill] sm:$0xff] %v16590_v46  ;;  %7303 = vmatpush.msrb.mxu0 %v5069_v44  ;;  %v20272_v11 = vunpack.i.l.bf16 %v20271_v18  ;;  %v20275_v44 = vunpack.i.l.bf16 %v20274_v45  ;;  %v5874_v18 = vld [vmem:[%s18262_s8 + $0x8] sm:$0xff]  ;;  %v4604_v33 = vsel %vm544_vm1, %v20291_v1, %v20290_v63  ;;  %v20295_v1 = vunpack.i.l.bf16 %v15290_v59 }
 0x79d   :  { %v5537_v26 = vsel %vm870_vm3, %v20268_v7, %v20267_v6  ;;  %v20273_v6 = vunpack.i.l.bf16 %v16144_v23 }
 0x79e   :  { %7330 = vmatpush.msrb.mxu2 %v5537_v26  ;;  %v5068_v4 = vsel %vm707_vm2, %v20272_v11, %v20270_v60  ;;  %v16609_v26 = vpop.permute.xlu2 %8870  ;;  %v5067_v60 = vsel %vm707_vm2, %v20276_v27, %v18892_v9  ;;  %v16622_v11 = vld [vmem:[%s18261_s7 + $0x60] sm:$0xff]  ;;  %v16636_v27 = vpop.permute.xlu1 %8825 }
 0x79f   :  { %v5536_v7 = vsel %vm870_vm3, %v20275_v44, %v20273_v6  ;;  %7304 = vmatpush.msrb.mxu0 %v5068_v4  ;;  %v20277_v6 = vunpack.i.h.bf16 %v16144_v23  ;;  %v20278_v44 = vunpack.i.h.bf16 %v20274_v45  ;;  %v18893_v9 = vunpack.i.h.bf16 %v16636_v27  ;;  %7769 = vperm.xlu2 %8213, %v5874_v18   ;;  %v16656_v18 = vpop.permute.xlu0 %8850 }
 0x7a0   :  { %7331 = vmatpush.msrb.mxu2 %v5536_v7  ;;  %7088 = vmatmul.f32.gmra.mxu0 %v16622_v11  ;;  %v16634_v7 = vpop.f32.mrf.mxu3  ;;  %v18894_v45 = vunpack.i.l.bf16 %v16636_v27  ;;  %20282 = vst [vmem:[#allocation105_spill] sm:$0xff] %v16656_v18 }
 0x7a1   :  { %v5535_v4 = vsel %vm870_vm3, %v20278_v44, %v20277_v6  ;;  %7305 = vmatpush.msrb.mxu0 %v5067_v60  ;;  %20279 = vst [vmem:[#allocation107_spill] sm:$0xff] %v16634_v7  ;;  %7169 = vmatmul.f32.vlgmr.msra.gmra.mxu3 %v16236_v8  ;;  %v20280_v60 = vunpack.i.h.bf16 %v15772_v61  ;;  %v20286_v7 = vunpack.i.h.bf16 %v15553_v32 }
 0x7a2   :  { %7332 = vmatpush.msrb.mxu2 %v5535_v4  ;;  %9010 = vrot.lane.b32.xlu1 %v8994_v2, %s9097_s11  ;;  %v16674_v2 = vld [vmem:[%s18261_s7 + $0x90] sm:$0xf] }
 0x7a3   :  { %v4608_v44 = vsel %vm544_vm1, %v20280_v60, %v18893_v9  ;;  %7259 = vmatmul.f32.gmra.mxu1 %v16488_v15  ;;  %v16650_v4 = vpop.f32.mrf.mxu2  ;;  %9020 = vrot.lane.b32.xlu0 %v16247_v28, %s9097_s11  ;;  %v20283_v60 = vunpack.i.l.bf16 %v15772_v61  ;;  %v5873_v28 = vld [vmem:[%s18262_s8] sm:$0xff]  ;;  %v16677_v61 = vpop.f32.mrf.mxu0  ;;  %v20288_v15 = vunpack.i.l.bf16 %v16533_v16 }
 0x7a4   :  { %20281 = vst [vmem:[#allocation152_spill] sm:$0xff] %v16650_v4  ;;  %7269 = vmatpush.msrb.mxu3 %v4608_v44  ;;  %7117 = vmatmul.f32.gmra.mxu2 %v16194_v43  ;;  %v8792_v4 = vunpack.i.l.bf16 %v16217_v17 }
 0x7a5   :  { %v4607_v9 = vsel %vm544_vm1, %v20283_v60, %v18894_v45  ;;  %20284 = vst [vmem:[#allocation82_spill] sm:$0xff] %v16677_v61  ;;  %v20285_v45 = vunpack.i.h.bf16 %v16533_v16  ;;  %v5875_v60 = vld [vmem:[%s18262_s8 + $0x10] sm:$0xff] }
 0x7a6   :  { %v16658_v6 = vpop.permute.xlu2 %8900  ;;  %7270 = vmatpush.msrb.mxu3 %v4607_v9  ;;  %v16694_v61 = vpop.permute.xlu1 %8830 }
 0x7a7   :  { %v4606_v23 = vsel %vm544_vm1, %v20286_v7, %v20285_v45  ;;  %v20287_v9 = vunpack.i.l.bf16 %v16658_v6  ;;  %v20289_v7 = vunpack.i.l.bf16 %v15553_v32  ;;  %v18903_v45 = vunpack.i.l.bf16 %v16694_v61  ;;  %v16727_v63 = vpop.permute.xlu0 %8855 }
 0x7a8   :  { %7091 = vmatmul.f32.gmra.mxu0 %v16674_v2  ;;  %v16686_v44 = vpop.f32.mrf.mxu3  ;;  %7271 = vmatpush.msrb.mxu3 %v4606_v23  ;;  %20294 = vst [vmem:[#allocation108_spill] sm:$0xff] %v16727_v63 }
 0x7a9   :  { %v16692_v46 = vsel %vm544_vm1, %v8792_v4, %v20287_v9  ;;  %v4605_v23 = vsel %vm544_vm1, %v20289_v7, %v20288_v15  ;;  %7172 = vmatmul.f32.gmra.mxu3 %v16319_v21  ;;  %v20293_v15 = vunpack.i.l.bf16 %v20136_v24  ;;  %v8767_v9 = vunpack.i.l.bf16 %v16299_v50 }
 0x7aa   :  { %7764 = vperm.xlu1 %8212, %v5873_v28   ;;  %7272 = vmatpush.msrb.mxu3 %v4605_v23  ;;  %v20298_v28 = vunpack.i.h.bf16 %v16260_v47 }
 0x7ab   :  { %7262 = vmatmul.f32.gmra.mxu1 %v16622_v11  ;;  %v16716_v32 = vpop.f32.mrf.mxu2  ;;  %7774 = vperm.xlu0 %8211, %v5875_v60   ;;  %v5534_v7 = vsel %vm870_vm3, %v20293_v15, %v18903_v45  ;;  %v8768_v60 = vunpack.i.h.bf16 %v16299_v50  ;;  %v5876_v45 = vld [vmem:[%s18262_s8 + $0x18] sm:$0xf]  ;;  %v20299_v15 = vunpack.i.h.bf16 %v20088_v57  ;;  %v16758_v23 = vpop.f32.mrf.mxu0 }
 0x7ac   :  { %20292 = vst [vmem:[#allocation153_spill] sm:$0xff] %v16716_v32  ;;  %7273 = vmatpush.msrb.mxu3 %v4604_v33  ;;  %7120 = vmatmul.f32.gmra.mxu2 %v16272_v5  ;;  %v4603_v33 = vsel %vm544_vm1, %v20295_v1, %v8792_v4  ;;  %v18904_v32 = vunpack.i.h.bf16 %v16727_v63  ;;  %v20296_v4 = vunpack.i.h.bf16 %v16694_v61  ;;  %v20297_v1 = vunpack.i.h.bf16 %v20136_v24 }
 0x7ad   :  { %7333 = vmatpush.msrb.mxu2 %v5534_v7  ;;  %v4602_v7 = vsel %vm544_vm1, %v20299_v15, %v20298_v28  ;;  %20301 = vst [vmem:[#allocation96_spill] sm:$0xff] %v16758_v23  ;;  %v20307_v23 = vunpack.i.h.bf16 %v16611_v38 }
 0x7ae   :  { %7274 = vmatpush.msrb.mxu3 %v4603_v33  ;;  %v16741_v59 = vpop.permute.xlu2 %8905  ;;  %v5533_v50 = vsel %vm870_vm3, %v20297_v1, %v20296_v4  ;;  %v16764_v24 = vsel %vm544_vm1, %v8768_v60, %v18904_v32  ;;  %v16773_v15 = vpop.permute.xlu1 %8845  ;;  %v20303_v1 = vunpack.i.l.bf16 %v16611_v38  ;;  %v20305_v32 = vunpack.i.l.bf16 %v16260_v47 }
 0x7af   :  { %7334 = vmatpush.msrb.mxu2 %v5533_v50  ;;  %v20304_v50 = vunpack.i.l.bf16 %v20156_v20  ;;  %v18907_v28 = vunpack.i.l.bf16 %v16773_v15 }
 0x7b0   :  { %7198 = vmatmul.f32.vlgmr.msra.gmra.mxu0 %v15809_v31  ;;  %v16756_v33 = vpop.f32.mrf.mxu3  ;;  %7275 = vmatpush.msrb.mxu3 %v4602_v7  ;;  %v20302_v31 = vunpack.i.l.bf16 %v16727_v63  ;;  %v20306_v63 = vunpack.i.l.bf16 %v20088_v57  ;;  %v20309_v57 = vunpack.i.h.bf16 %v20103_v54 }
 0x7b1   :  { %20300 = vst [vmem:[#allocation78_spill] sm:$0xff] %v16756_v33  ;;  %v5532_v7 = vsel %vm870_vm3, %v20304_v50, %v20303_v1  ;;  %7175 = vmatmul.f32.gmra.mxu3 %v16414_v3  ;;  %v20308_v33 = vunpack.i.h.bf16 %v20156_v20 }
 0x7b2   :  { %v16770_v4 = vsel %vm544_vm1, %v8767_v9, %v20302_v31  ;;  %7779 = vperm.xlu1 %8212, %v5876_v45   ;;  %v4601_v31 = vsel %vm544_vm1, %v20306_v63, %v20305_v32  ;;  %v18908_v45 = vunpack.i.h.bf16 %v16773_v15  ;;  %7335 = vmatpush.msrb.mxu2 %v5532_v7  ;;  %v4600_v32 = vsel %vm544_vm1, %v20309_v57, %v8768_v60  ;;  %v20310_v7 = vld [vmem:[#allocation5_spill] sm:$0xff] }
 0x7b3   :  { %7276 = vmatpush.msrb.mxu3 %v4601_v31  ;;  %v5531_v1 = vsel %vm870_vm3, %v20308_v33, %v20307_v23  ;;  %7265 = vmatmul.f32.gmra.mxu1 %v16674_v2  ;;  %v16802_v50 = vpop.f32.mrf.mxu2  ;;  %v20311_v20 = vunpack.i.l.bf16 %v20310_v7  ;;  %v16812_v33 = vpop.permute.xlu0 %8860  ;;  %v20312_v60 = vunpack.i.l.bf16 %v16741_v59  ;;  %v20313_v31 = vunpack.i.l.bf16 %v15788_v36 }
 0x7b4   :  { %7336 = vmatpush.msrb.mxu2 %v5531_v1  ;;  %v20314_v57 = vunpack.i.l.bf16 %v20103_v54  ;;  %v20317_v63 = vunpack.i.h.bf16 %v20123_v14 }
 0x7b5   :  { %7277 = vmatpush.msrb.mxu3 %v4600_v32  ;;  %v5066_v23 = vsel %vm707_vm2, %v20311_v20, %v18907_v28  ;;  %7924 = vmatmul.msk.f32.vlgmr.msra.gmra.mxu2 %vm6531_vm11, %v16369_v42  ;;  %v5080_v1 = vsel %vm707_vm2, %v20313_v31, %v20312_v60  ;;  %v20315_v20 = vunpack.i.h.bf16 %v20310_v7  ;;  %v20316_v28 = vunpack.i.h.bf16 %v16071_v58  ;;  %v20320_v31 = vld [vmem:[#allocation145_spill] sm:$0xff] }
 0x7b6   :  { %7306 = vmatpush.msrb.mxu0 %v5066_v23  ;;  %v4599_v32 = vsel %vm544_vm1, %v20314_v57, %v8767_v9  ;;  %7337 = vmatpush.msrb.mxu2 %v5080_v1  ;;  %v20319_v9 = vunpack.i.h.bf16 %v16741_v59  ;;  %v20321_v7 = vunpack.i.l.bf16 %v20320_v31  ;;  %v16845_v57 = vpop.permute.xlu2 %8910 }
 0x7b7   :  { %7278 = vmatpush.msrb.mxu3 %v4599_v32  ;;  %v5065_v23 = vsel %vm707_vm2, %v20315_v20, %v18908_v45  ;;  %v4598_v54 = vsel %vm544_vm1, %v20317_v63, %v20316_v28  ;;  %20322 = vst [vmem:[#allocation97_spill] sm:$0xff] %v16845_v57  ;;  %v16847_v32 = vpop.permute.xlu1 %8875  ;;  %v20324_v20 = vunpack.i.l.bf16 %v16071_v58  ;;  %v20325_v28 = vunpack.i.l.bf16 %v20123_v14 }
 0x7b8   :  { %7307 = vmatpush.msrb.mxu0 %v5065_v23  ;;  %v16836_v60 = vpop.f32.mrf.mxu3  ;;  %v5064_v1 = vsel %vm707_vm2, %v20321_v7, %v20319_v9  ;;  %20323 = vst [vmem:[#allocation169_spill] sm:$0xff] %v16847_v32  ;;  %v18909_v23 = vunpack.i.l.bf16 %v16845_v57  ;;  %v20327_v9 = vunpack.i.h.bf16 %v16182_v22  ;;  %v20328_v7 = vunpack.i.h.bf16 %v20142_v35 }
 0x7b9   :  { %20318 = vst [vmem:[#allocation143_spill] sm:$0xff] %v16836_v60  ;;  %7201 = vmatmul.f32.gmra.mxu0 %v15906_v12  ;;  %7279 = vmatpush.msrb.mxu3 %v4598_v54  ;;  %v4597_v12 = vsel %vm544_vm1, %v20325_v28, %v20324_v20  ;;  %v16858_v54 = vpop.f32.mrf.mxu0 }
 0x7ba   :  { %7308 = vmatpush.msrb.mxu0 %v5064_v1  ;;  %7178 = vmatmul.f32.gmra.mxu3 %v16480_v30  ;;  %20326 = vst [vmem:[#allocation52_spill] sm:$0xff] %v16858_v54  ;;  %v4596_v58 = vsel %vm544_vm1, %v20328_v7, %v20327_v9  ;;  %v20329_v1 = vunpack.i.l.bf16 %v15852_v62  ;;  %v20331_v9 = vunpack.i.l.bf16 %v20142_v35  ;;  %v20334_v35 = vunpack.i.h.bf16 %v20320_v31 }
 0x7bb   :  { %7280 = vmatpush.msrb.mxu3 %v4597_v12  ;;  %v16866_v14 = vpop.f32.mrf.mxu2  ;;  %v16876_v28 = vpop.permute.xlu0 %8890  ;;  %v20330_v12 = vunpack.i.l.bf16 %v16182_v22 }
 0x7bc   :  { %v5548_v20 = vsel %vm870_vm3, %v20329_v1, %v18909_v23  ;;  %v18912_v45 = vunpack.i.h.bf16 %v16876_v28  ;;  %v18911_v63 = vunpack.i.l.bf16 %v16876_v28  ;;  %v20332_v1 = vunpack.i.h.bf16 %v16845_v57 }
 0x7bd   :  { %7281 = vmatpush.msrb.mxu3 %v4596_v58  ;;  %7925 = vmatmul.msk.f32.gmra.mxu2 %vm6531_vm11, %v16439_v19  ;;  %v4595_v7 = vsel %vm544_vm1, %v20331_v9, %v20330_v12  ;;  %v20333_v58 = vunpack.i.h.bf16 %v15852_v62  ;;  %v20335_v62 = vunpack.i.h.bf16 %v15788_v36 }
 0x7be   :  { %7364 = vmatpush.msra.mxu1 %v5548_v20  ;;  %v16892_v20 = vpop.f32.mrf.mxu1  ;;  %v5063_v12 = vsel %vm707_vm2, %v20334_v35, %v18912_v45 }
 0x7bf   :  { %v5547_v23 = vsel %vm870_vm3, %v20333_v58, %v20332_v1  ;;  %7282 = vmatpush.msrb.mxu3 %v4595_v7  ;;  %v5079_v9 = vsel %vm707_vm2, %v20335_v62, %v18911_v63  ;;  %7309 = vmatpush.msrb.mxu0 %v5063_v12  ;;  %v16912_v7 = vpop.permute.xlu2 %8930  ;;  %v18917_v12 = vunpack.i.l.bf16 %v16812_v33 }
 0x7c0   :  { %7365 = vmatpush.msra.mxu1 %v5547_v23  ;;  %v16894_v22 = vpop.f32.mrf.mxu3  ;;  %7338 = vmatpush.msrb.mxu2 %v5079_v9  ;;  %v16910_v23 = vpop.permute.xlu1 %8880  ;;  %20336 = vst [vmem:[#allocation165_spill] sm:$0xff] %v16912_v7  ;;  %v20341_v9 = vld [vmem:[#allocation81_spill] sm:$0xff] }
 0x7c1   :  { %7204 = vmatmul.f32.gmra.mxu0 %v15982_v34  ;;  %7283 = vmatpush.msrb.mxu3 %v15860_v40  ;;  %v18910_v31 = vunpack.i.l.bf16 %v16910_v23  ;;  %v18913_v1 = vunpack.i.h.bf16 %v16910_v23  ;;  %v20337_v34 = vunpack.i.l.bf16 %v15828_v55  ;;  %v16927_v35 = vpop.f32.mrf.mxu0 }
 0x7c3   :  { %7284 = vmatpush.msrb.mxu3 %v15820_v51  ;;  %v16918_v36 = vpop.f32.mrf.mxu2  ;;  %v5078_v58 = vsel %vm707_vm2, %v20337_v34, %v18910_v31  ;;  %v16932_v62 = vpop.permute.xlu0 %8895  ;;  %v20338_v34 = vunpack.i.h.bf16 %v15828_v55 }
 0x7c4   :  { %7285 = vmatmul.f32.vlgmr.msrb.gmra.mxu3 %v16012_v37  ;;  %v18916_v37 = vunpack.i.h.bf16 %v16932_v62  ;;  %7339 = vmatpush.msrb.mxu2 %v5078_v58  ;;  %v20340_v58 = vld [vmem:[#allocation60_spill] sm:$0xff] }
 0x7c5   :  { %7391 = vmatpush.msra.mxu3 %v20164_v52  ;;  %7926 = vmatmul.msk.f32.gmra.mxu2 %vm6531_vm11, %v16496_v10  ;;  %v5077_v31 = vsel %vm707_vm2, %v20338_v34, %v18913_v1  ;;  %v20339_v52 = vunpack.i.h.bf16 %v15726_v53  ;;  %v20343_v34 = vld [vmem:[#allocation123_spill] sm:$0xff] }
 0x7c6   :  { %7340 = vmatpush.msrb.mxu2 %v5077_v31  ;;  %v20344_v1 = vunpack.i.l.bf16 %v20343_v34  ;;  %v16963_v54 = vpop.f32.mrf.mxu1  ;;  %v20345_v31 = vunpack.i.l.bf16 %v16932_v62 }
 0x7c7   :  { %7392 = vmatpush.msra.mxu3 %v20169_v56  ;;  %v4612_v56 = vsel %vm544_vm1, %v20339_v52, %v18916_v37  ;;  %v20346_v52 = vunpack.i.l.bf16 %v15726_v53  ;;  %v20347_v37 = vld [vmem:[#allocation79_spill] sm:$0xff]  ;;  %v20356_v53 = vunpack.i.l.bf16 %v16609_v26 }
 0x7c8   :  { %v16945_v45 = vpop.f32.mrf.mxu3  ;;  %7310 = vmatpush.msrb.mxu0 %v4612_v56  ;;  %v16955_v55 = vpop.permute.xlu1 %8885  ;;  %v5076_v63 = vsel %vm707_vm2, %v20344_v1, %v18917_v12  ;;  %v20348_v1 = vunpack.i.h.bf16 %v16812_v33  ;;  %v20349_v12 = vunpack.i.h.bf16 %v20343_v34 }
 0x7c9   :  { %7207 = vmatmul.f32.gmra.mxu0 %v20340_v58  ;;  %7393 = vmatpush.msra.mxu3 %v20341_v9  ;;  %20342 = vst [vmem:[#allocation90_spill] sm:$0xff] %v16955_v55  ;;  %v4611_v9 = vsel %vm544_vm1, %v20346_v52, %v20345_v31  ;;  %v18918_v56 = vunpack.i.l.bf16 %v16955_v55  ;;  %v16973_v58 = vpop.permute.xlu2 %8945  ;;  %v20351_v31 = vunpack.i.h.bf16 %v16609_v26  ;;  %v20352_v52 = vld [vmem:[#allocation91_spill] sm:$0xff] }
 0x7ca   :  { %7341 = vmatpush.msrb.mxu2 %v5076_v63  ;;  %7311 = vmatpush.msrb.mxu0 %v4611_v9  ;;  %v5075_v57 = vsel %vm707_vm2, %v20349_v12, %v20348_v1  ;;  %v20353_v63 = vunpack.i.h.bf16 %v20352_v52  ;;  %v20361_v1 = vunpack.i.h.bf16 %v16955_v55 }
 0x7cb   :  { %7394 = vmatpush.msra.mxu3 %v20347_v37  ;;  %v16982_v60 = vpop.f32.mrf.mxu2  ;;  %v20354_v37 = vld [vmem:[#allocation102_spill] sm:$0xff] }
 0x7cc   :  { %20350 = vst [vmem:[#allocation166_spill] sm:$0xff] %v16982_v60  ;;  %v4610_v9 = vsel %vm544_vm1, %v20353_v63, %v20351_v31  ;;  %7342 = vmatpush.msrb.mxu2 %v5075_v57  ;;  %7288 = vmatmul.f32.gmra.mxu3 %v16108_v48  ;;  %v20355_v34 = vunpack.i.l.bf16 %v20354_v37  ;;  %v20357_v31 = vunpack.i.l.bf16 %v20352_v52  ;;  %v20358_v57 = vld [vmem:[#allocation168_spill] sm:$0xff]  ;;  %v17008_v63 = vpop.f32.mrf.mxu0  ;;  %v20362_v52 = vunpack.i.h.bf16 %v20354_v37 }
 0x7cd   :  { %7927 = vmatmul.msk.f32.gmra.mxu2 %vm6531_vm11, %v16563_v29  ;;  %7312 = vmatpush.msrb.mxu0 %v4610_v9  ;;  %20359 = vst [vmem:[#allocation49_spill] sm:$0xff] %v17008_v63  ;;  %v20360_v9 = vld [vmem:[#allocation8_spill] sm:$0xff] }
 0x7ce   :  { %v5546_v12 = vsel %vm870_vm3, %v20355_v34, %v18918_v56  ;;  %v4609_v48 = vsel %vm544_vm1, %v20357_v31, %v20356_v53  ;;  %7395 = vmatpush.msra.mxu3 %v20358_v57  ;;  %v5545_v53 = vsel %vm870_vm3, %v20362_v52, %v20361_v1  ;;  %v20365_v57 = vld [vmem:[#allocation6_spill] sm:$0xff]  ;;  %v20367_v34 = vld [vmem:[#allocation95_spill] sm:$0xff]  ;;  %v17033_v1 = vpop.f32.mrf.mxu1  ;;  %v20371_v31 = vld [vmem:[#allocation109_spill] sm:$0xff]  ;;  %v20377_v52 = vunpack.i.l.bf16 %v16656_v18 }
 0x7cf   :  { %7366 = vmatpush.msra.mxu1 %v5546_v12  ;;  %7313 = vmatpush.msrb.mxu0 %v4609_v48  ;;  %v20363_v12 = vld [vmem:[#allocation7_spill] sm:$0xff]  ;;  %v17023_v48 = vpop.permute.xlu0 %8915  ;;  %v20374_v55 = vunpack.i.h.bf16 %v20367_v34  ;;  %v20398_v60 = vld [vmem:[#allocation136_spill] sm:$0xff] }
 0x7d0   :  { %v17011_v56 = vpop.f32.mrf.mxu3  ;;  %7396 = vmatpush.msra.mxu3 %v20360_v9  ;;  %20364 = vst [vmem:[#allocation77_spill] sm:$0xff] %v17023_v48  ;;  %v20366_v9 = vunpack.i.l.bf16 %v16531_v49 }
 0x7d1   :  { %7414 = vmatpush.msra.mxu0 %v16409_v41  ;;  %7367 = vmatpush.msra.mxu1 %v5545_v53  ;;  %v20368_v41 = vunpack.i.l.bf16 %v20367_v34  ;;  %v17036_v53 = vpop.permute.xlu2 %8960 }
 0x7d2   :  { %7314 = vmatmul.f32.vlgmr.msrb.gmra.mxu0 %v20363_v12  ;;  %7397 = vmatpush.msra.mxu3 %v20365_v57  ;;  %20369 = vst [vmem:[#allocation62_spill] sm:$0xff] %v17036_v53  ;;  %v20373_v57 = vunpack.i.h.bf16 %v16531_v49 }
 0x7d3   :  { %7415 = vmatpush.msra.mxu0 %v16427_v25  ;;  %v5544_v37 = vsel %vm870_vm3, %v20368_v41, %v20366_v9  ;;  %v17038_v12 = vpop.f32.mrf.mxu2  ;;  %v20372_v25 = vld [vmem:[#allocation163_spill] sm:$0xff] }
 0x7d4   :  { %7368 = vmatpush.msra.mxu1 %v5544_v37  ;;  %20370 = vst [vmem:[#allocation74_spill] sm:$0xff] %v17038_v12  ;;  %7398 = vmatpush.msra.mxu3 %v20372_v25  ;;  %v5543_v41 = vsel %vm870_vm3, %v20374_v55, %v20373_v57  ;;  %v20375_v9 = vld [vmem:[#allocation119_spill] sm:$0xff]  ;;  %v20376_v37 = vld [vmem:[#allocation56_spill] sm:$0xff] }
 0x7d5   :  { %7416 = vmatpush.msra.mxu0 %v20371_v31  ;;  %7291 = vmatmul.f32.gmra.mxu3 %v16194_v43  ;;  %v20378_v12 = vld [vmem:[#allocation131_spill] sm:$0xff]  ;;  %v20381_v55 = vld [vmem:[#allocation116_spill] sm:$0xff]  ;;  %v20383_v43 = vunpack.i.h.bf16 %v16656_v18 }
 0x7d6   :  { %7369 = vmatpush.msra.mxu1 %v5543_v41  ;;  %7399 = vmatpush.msra.mxu3 %v20376_v37  ;;  %v20379_v31 = vunpack.i.l.bf16 %v20378_v12  ;;  %v20382_v57 = vld [vmem:[#allocation140_spill] sm:$0xff]  ;;  %v20384_v41 = vunpack.i.h.bf16 %v20378_v12 }
 0x7d7   :  { %7417 = vmatpush.msra.mxu0 %v20375_v9  ;;  %7343 = vmatmul.f32.vlgmr.msrb.gmra.mxu2 %v16236_v8  ;;  %v17068_v9 = vpop.f32.mrf.mxu0  ;;  %v17075_v8 = vld [vmem:[%s18261_s7 + $0x20] sm:$0xff]  ;;  %v17080_v12 = vpop.permute.xlu0 %8935 }
 0x7d8   :  { %v5542_v25 = vsel %vm870_vm3, %v20379_v31, %v20377_v52  ;;  %v17058_v34 = vpop.f32.mrf.mxu3  ;;  %7400 = vmatpush.msra.mxu3 %v20382_v57  ;;  %v5541_v37 = vsel %vm870_vm3, %v20384_v41, %v20383_v43  ;;  %20385 = vst [vmem:[#allocation70_spill] sm:$0xff] %v17068_v9  ;;  %v20386_v31 = vld [vmem:[#allocation121_spill] sm:$0xff]  ;;  %v20387_v52 = vld [vmem:[#allocation130_spill] sm:$0xff]  ;;  %v18930_v41 = vunpack.i.l.bf16 %v17080_v12  ;;  %v17098_v43 = vpop.permute.xlu1 %8920  ;;  %v20395_v63 = vunpack.i.h.bf16 %v17080_v12 }
 0x7d9   :  { %7370 = vmatpush.msra.mxu1 %v5542_v25  ;;  %20380 = vst [vmem:[#allocation167_spill] sm:$0xff] %v17058_v34  ;;  %7418 = vmatpush.msra.mxu0 %v20381_v55  ;;  %v17078_v25 = vpop.permute.xlu2 %8975  ;;  %v20390_v57 = vld [vmem:[#allocation46_spill] sm:$0xff]  ;;  %v20399_v55 = vunpack.i.h.bf16 %v16636_v27 }
 0x7da   :  { %7317 = vmatmul.f32.gmra.mxu0 %v20386_v31  ;;  %20388 = vst [vmem:[#allocation17_spill] sm:$0xff] %v17075_v8  ;;  %v20391_v31 = vld [vmem:[#allocation103_spill] sm:$0xff] }
 0x7db   :  { %7371 = vmatpush.msra.mxu1 %v5541_v37  ;;  %7419 = vmatpush.msra.mxu0 %v20387_v52  ;;  %20389 = vst [vmem:[#allocation83_spill] sm:$0xff] %v17080_v12  ;;  %v17085_v37 = vpop.f32.mrf.mxu2  ;;  %v17089_v52 = vpop.f32.mrf.mxu1  ;;  %v20400_v12 = vunpack.i.l.bf16 %v16973_v58 }
 0x7dc   :  { %7372 = vmatmul.f32.vlgmr.msra.gmra.mxu1 %v17075_v8  ;;  %v20392_v8 = vld [vmem:[#allocation45_spill] sm:$0xff] }
 0x7dd   :  { %7420 = vmatpush.msra.mxu0 %v20390_v57  ;;  %7294 = vmatmul.f32.gmra.mxu3 %v16272_v5  ;;  %v20393_v18 = vunpack.i.l.bf16 %v20392_v8  ;;  %v20394_v5 = vld [vmem:[#allocation110_spill] sm:$0xff] }
 0x7df   :  { %7421 = vmatpush.msra.mxu0 %v20391_v31  ;;  %v5522_v57 = vsel %vm870_vm3, %v20393_v18, %v18930_v41  ;;  %7346 = vmatmul.f32.gmra.mxu2 %v16319_v21  ;;  %v18933_v31 = vunpack.i.h.bf16 %v17098_v43  ;;  %v17106_v49 = vpop.f32.mrf.mxu0  ;;  %v20396_v18 = vunpack.i.h.bf16 %v20392_v8  ;;  %v20401_v8 = vunpack.i.l.bf16 %v16405_v0 }
 0x7e0   :  { %7501 = vmatpush.msrb.mxu3 %v5522_v57  ;;  %v17101_v9 = vpop.f32.mrf.mxu3  ;;  %v20397_v57 = vld [vmem:[#allocation47_spill] sm:$0xff]  ;;  %v20405_v41 = vunpack.i.l.bf16 %v16636_v27  ;;  %v20409_v27 = vld [vmem:[#allocation114_spill] sm:$0xff] }
 0x7e1   :  { %7422 = vmatpush.msra.mxu0 %v20394_v5  ;;  %v5521_v21 = vsel %vm870_vm3, %v20396_v18, %v20395_v63  ;;  %v4590_v34 = vsel %vm544_vm1, %v20399_v55, %v18933_v31  ;;  %v5520_v63 = vsel %vm870_vm3, %v20401_v8, %v20400_v12  ;;  %v17133_v18 = vld [vmem:[%s18261_s7 + $0x50] sm:$0xff]  ;;  %v20403_v55 = vld [vmem:[#allocation111_spill] sm:$0xff]  ;;  %v20404_v31 = vunpack.i.l.bf16 %v17098_v43 }
 0x7e2   :  { %7320 = vmatmul.f32.gmra.mxu0 %v20397_v57  ;;  %7502 = vmatpush.msrb.mxu3 %v5521_v21  ;;  %20402 = vst [vmem:[#allocation115_spill] sm:$0xff] %v17133_v18  ;;  %v17137_v57 = vpop.permute.xlu2 %8980  ;;  %v20407_v8 = vunpack.i.h.bf16 %v16973_v58 }
 0x7e3   :  { %7423 = vmatpush.msra.mxu0 %v20398_v60  ;;  %7443 = vmatpush.msra.mxu2 %v4590_v34  ;;  %v4589_v34 = vsel %vm544_vm1, %v20405_v41, %v20404_v31  ;;  %v17146_v12 = vpop.f32.mrf.mxu2  ;;  %v20410_v41 = vunpack.i.h.bf16 %v17023_v48  ;;  %v20411_v31 = vunpack.i.h.bf16 %v16533_v16 }
 0x7e4   :  { %7375 = vmatmul.f32.gmra.mxu1 %v17133_v18  ;;  %7503 = vmatpush.msrb.mxu3 %v5520_v63  ;;  %20406 = vst [vmem:[#allocation25_spill] sm:$0xff] %v17146_v12  ;;  %v20408_v18 = vunpack.i.h.bf16 %v16405_v0  ;;  %v20412_v0 = vld [vmem:[#allocation84_spill] sm:$0xff] }
 0x7e5   :  { %7424 = vmatpush.msra.mxu0 %v20403_v55  ;;  %7444 = vmatpush.msra.mxu2 %v4589_v34  ;;  %v4588_v12 = vsel %vm544_vm1, %v20411_v31, %v20410_v41  ;;  %v20414_v34 = vunpack.i.l.bf16 %v17023_v48  ;;  %v20416_v31 = vld [vmem:[#allocation133_spill] sm:$0xff]  ;;  %v6768_v41 = vadd.f32 %v16600_v13, %v16686_v44  ;;  %v20429_v13 = vunpack.i.h.bf16 %v16847_v32 }
 0x7e6   :  { %v5519_v21 = vsel %vm870_vm3, %v20408_v18, %v20407_v8  ;;  %7928 = vmatmul.msk.f32.vlgmr.msra.gmra.mxu3 %vm6531_vm11, %v16369_v42  ;;  %v17165_v18 = vpop.permute.xlu1 %8925  ;;  %v20415_v42 = vunpack.i.l.bf16 %v16533_v16  ;;  %v17174_v8 = vpop.f32.mrf.mxu1  ;;  %v20418_v16 = vunpack.i.h.bf16 %v16658_v6  ;;  %v20430_v44 = vunpack.i.h.bf16 %v16260_v47 }
 0x7e7   :  { %7504 = vmatpush.msrb.mxu3 %v5519_v21  ;;  %7425 = vmatpush.msra.mxu0 %v20409_v27  ;;  %20413 = vst [vmem:[#allocation71_spill] sm:$0xff] %v17165_v18 }
 0x7e8   :  { %7445 = vmatpush.msra.mxu2 %v4588_v12  ;;  %v4587_v21 = vsel %vm544_vm1, %v20415_v42, %v20414_v34  ;;  %v17176_v63 = vpop.f32.mrf.mxu3  ;;  %v18937_v12 = vunpack.i.l.bf16 %v17165_v18  ;;  %v20419_v34 = vunpack.i.h.bf16 %v16217_v17  ;;  %v17189_v42 = vpop.f32.mrf.mxu0 }
 0x7e9   :  { %7426 = vmatpush.msra.mxu0 %v20412_v0  ;;  %7349 = vmatmul.f32.gmra.mxu2 %v16414_v3  ;;  %v20417_v0 = vld [vmem:[#allocation29_spill] sm:$0xff] }
 0x7ea   :  { %7446 = vmatpush.msra.mxu2 %v4587_v21  ;;  %7323 = vmatmul.f32.gmra.mxu0 %v20416_v31  ;;  %v4586_v3 = vsel %vm544_vm1, %v20419_v34, %v20418_v16  ;;  %v20420_v21 = vld [vmem:[#allocation129_spill] sm:$0xff]  ;;  %v17205_v16 = vpop.permute.xlu0 %8950  ;;  %v17207_v34 = vpop.permute.xlu2 %9000 }
 0x7eb   :  { %7427 = vmatpush.msra.mxu0 %v20417_v0  ;;  %v20421_v31 = vunpack.i.l.bf16 %v20420_v21  ;;  %v17201_v0 = vld [vmem:[%s18261_s7 + $0x80] sm:$0xff]  ;;  %20423 = vst [vmem:[#allocation55_spill] sm:$0xff] %v17205_v16  ;;  %v17222_v27 = vpop.f32.mrf.mxu2 }
 0x7ec   :  { %7447 = vmatpush.msra.mxu2 %v4586_v3  ;;  %20422 = vst [vmem:[#allocation28_spill] sm:$0xff] %v17201_v0  ;;  %7378 = vmatmul.f32.gmra.mxu1 %v17201_v0  ;;  %v20424_v3 = vld [vmem:[#allocation69_spill] sm:$0xff]  ;;  %v20426_v0 = vunpack.i.h.bf16 %v20420_v21 }
 0x7ed   :  { %v5056_v48 = vsel %vm707_vm2, %v20421_v31, %v18937_v12  ;;  %7428 = vmatpush.msra.mxu0 %v20424_v3  ;;  %v20425_v12 = vunpack.i.h.bf16 %v17165_v18  ;;  %20427 = vst [vmem:[#allocation38_spill] sm:$0xff] %v17222_v27  ;;  %v20431_v31 = vld [vmem:[#allocation87_spill] sm:$0xff]  ;;  %v20436_v18 = vunpack.i.l.bf16 %v16260_v47  ;;  %v20439_v27 = vld [vmem:[#allocation54_spill] sm:$0xff] }
 0x7ee   :  { %7472 = vmatpush.msrb.mxu1 %v5056_v48  ;;  %7448 = vmatpush.msra.mxu2 %v16692_v46  ;;  %v20428_v48 = vld [vmem:[#allocation48_spill] sm:$0xff]  ;;  %v4584_v46 = vsel %vm544_vm1, %v20430_v44, %v20429_v13 }
 0x7ef   :  { %v5055_v17 = vsel %vm707_vm2, %v20426_v0, %v20425_v12  ;;  %7929 = vmatmul.msk.f32.gmra.mxu3 %vm6531_vm11, %v16439_v19  ;;  %7429 = vmatpush.msra.mxu0 %v20428_v48  ;;  %v20432_v0 = vunpack.i.l.bf16 %v16912_v7  ;;  %v20433_v12 = vld [vmem:[#allocation63_spill] sm:$0xff]  ;;  %v20437_v13 = vld [vmem:[#allocation24_spill] sm:$0xff] }
 0x7f0   :  { %7473 = vmatpush.msrb.mxu1 %v5055_v17  ;;  %7449 = vmatpush.msra.mxu2 %v4584_v46  ;;  %v20434_v21 = vunpack.i.l.bf16 %v20433_v12  ;;  %v20435_v17 = vunpack.i.l.bf16 %v16847_v32  ;;  %v6797_v46 = vadd.f32 %v16866_v14, %v6768_v41  ;;  %v17261_v14 = vpop.permute.xlu1 %8940  ;;  %v20460_v32 = vld [vmem:[#allocation86_spill] sm:$0xff] }
 0x7f1   :  { %7530 = vmatpush.msrb.mxu0 %v20431_v31  ;;  %7352 = vmatmul.f32.gmra.mxu2 %v16480_v30  ;;  %v20438_v31 = vld [vmem:[#allocation43_spill] sm:$0xff]  ;;  %v17258_v30 = vpop.f32.mrf.mxu1  ;;  %20444 = vst [vmem:[#allocation27_spill] sm:$0xff] %v17261_v14 }
 0x7f2   :  { %v5054_v19 = vsel %vm707_vm2, %v20434_v21, %v20432_v0  ;;  %v4583_v48 = vsel %vm544_vm1, %v20436_v18, %v20435_v17  ;;  %v6594_v44 = vadd.f32 %v20438_v31, %v20437_v13  ;;  %v20440_v0 = vunpack.i.h.bf16 %v16912_v7  ;;  %v20442_v18 = vld [vmem:[#allocation149_spill] sm:$0xff]  ;;  %v20443_v17 = vld [vmem:[#allocation67_spill] sm:$0xff]  ;;  %v17269_v31 = vpop.f32.mrf.mxu0 }
 0x7f3   :  { %7474 = vmatpush.msrb.mxu1 %v5054_v19  ;;  %7531 = vmatpush.msrb.mxu0 %v20439_v27  ;;  %v20441_v21 = vunpack.i.h.bf16 %v20433_v12  ;;  %v17255_v19 = vpop.f32.mrf.mxu3  ;;  %v20445_v27 = vld [vmem:[#allocation159_spill] sm:$0xff]  ;;  %v17267_v12 = vpop.permute.xlu2 %9015 }
 0x7f4   :  { %7450 = vmatpush.msra.mxu2 %v4583_v48  ;;  %7430 = vmatmul.f32.vlgmr.msra.gmra.mxu0 %v20442_v18  ;;  %v6623_v13 = vadd.f32 %v20443_v17, %v6594_v44  ;;  %v18943_v48 = vunpack.i.l.bf16 %v17261_v14  ;;  %v20447_v44 = vld [vmem:[#allocation148_spill] sm:$0xff]  ;;  %v17282_v17 = vpop.permute.xlu0 %8965 }
 0x7f5   :  { %v5053_v47 = vsel %vm707_vm2, %v20441_v21, %v20440_v0  ;;  %7532 = vmatpush.msrb.mxu0 %v20445_v27  ;;  %v17274_v0 = vld [vmem:[%s18261_s7 + $0xb0] sm:$0xf]  ;;  %v20449_v27 = vld [vmem:[#allocation156_spill] sm:$0xff] }
 0x7f6   :  { %7475 = vmatpush.msrb.mxu1 %v5053_v47  ;;  %7451 = vmatpush.msra.mxu2 %v16764_v24  ;;  %20446 = vst [vmem:[#allocation76_spill] sm:$0xff] %v17274_v0  ;;  %v6652_v21 = vadd.f32 %v20447_v44, %v6623_v13  ;;  %v6826_v47 = vadd.f32 %v16945_v45, %v6797_v46  ;;  %v20448_v24 = vld [vmem:[#allocation150_spill] sm:$0xff]  ;;  %v20450_v41 = vunpack.i.l.bf16 %v20449_v27  ;;  %v17292_v13 = vpop.f32.mrf.mxu2  ;;  %v20452_v46 = vunpack.i.h.bf16 %v17261_v14  ;;  %v20454_v18 = vld [vmem:[#allocation144_spill] sm:$0xff] }
 0x7f7   :  { %7381 = vmatmul.f32.gmra.mxu1 %v17274_v0  ;;  %7533 = vmatpush.msrb.mxu0 %v20448_v24  ;;  %v20451_v45 = vld [vmem:[#allocation106_spill] sm:$0xff]  ;;  %v20453_v44 = vunpack.i.h.bf16 %v20449_v27 }
 0x7f8   :  { %7452 = vmatpush.msra.mxu2 %v16770_v4  ;;  %v5052_v7 = vsel %vm707_vm2, %v20450_v41, %v18943_v48  ;;  %7930 = vmatmul.msk.f32.gmra.mxu3 %vm6531_vm11, %v16496_v10  ;;  %v20455_v41 = vld [vmem:[#allocation35_spill] sm:$0xff]  ;;  %v6855_v10 = vadd.f32 %v16927_v35, %v6826_v47  ;;  %v20456_v0 = vld [vmem:[#allocation146_spill] sm:$0xff]  ;;  %v20458_v4 = vld [vmem:[#allocation20_spill] sm:$0xff] }
 0x7f9   :  { %7476 = vmatpush.msrb.mxu1 %v5052_v7  ;;  %7534 = vmatpush.msrb.mxu0 %v20451_v45  ;;  %v5051_v24 = vsel %vm707_vm2, %v20453_v44, %v20452_v46  ;;  %v6681_v48 = vadd.f32 %v20455_v41, %v6652_v21  ;;  %v18950_v7 = vunpack.i.l.bf16 %v17036_v53  ;;  %v20457_v45 = vunpack.i.l.bf16 %v17205_v16  ;;  %v20461_v46 = vld [vmem:[#allocation14_spill] sm:$0xff]  ;;  %v20463_v44 = vld [vmem:[#allocation124_spill] sm:$0xff] }
 0x7fa   :  { %7453 = vmatpush.msra.mxu2 %v20454_v18  ;;  %v20459_v14 = vunpack.i.l.bf16 %v20458_v4  ;;  %v20462_v18 = vld [vmem:[#allocation157_spill] sm:$0xff]  ;;  %v6884_v35 = vadd.f32 %v17085_v37, %v6855_v10  ;;  %v6942_v41 = vadd.f32 %v17176_v63, %v16963_v54  ;;  %v17359_v63 = vpop.f32.mrf.mxu0 }
 0x7fb   :  { %7477 = vmatpush.msrb.mxu1 %v5051_v24  ;;  %7535 = vmatpush.msrb.mxu0 %v20456_v0  ;;  %v6710_v21 = vadd.f32 %v20462_v18, %v6681_v48  ;;  %v17317_v47 = vpop.f32.mrf.mxu3  ;;  %v17319_v0 = vpop.permute.xlu1 %8955  ;;  %v20465_v48 = vunpack.i.h.bf16 %v20458_v4  ;;  %v20466_v10 = vld [vmem:[#allocation13_spill] sm:$0xff]  ;;  %v18951_v24 = vunpack.i.l.bf16 %v17282_v17  ;;  %v20468_v4 = vunpack.i.l.bf16 %v16773_v15 }
 0x7fc   :  { %v5050_v27 = vsel %vm707_vm2, %v20459_v14, %v20457_v45  ;;  %7454 = vmatpush.msra.mxu2 %v20460_v32  ;;  %7433 = vmatmul.f32.gmra.mxu0 %v20461_v46  ;;  %v18952_v14 = vunpack.i.l.bf16 %v17319_v0  ;;  %v17325_v32 = vpop.permute.xlu2 %7769  ;;  %v20464_v45 = vunpack.i.h.bf16 %v17205_v16  ;;  %v17357_v54 = vpop.permute.xlu0 %8985 }
 0x7fd   :  { %7478 = vmatpush.msrb.mxu1 %v5050_v27  ;;  %7536 = vmatpush.msrb.mxu0 %v20463_v44  ;;  %v17334_v27 = vpop.f32.mrf.mxu1  ;;  %v7789_v46 = vadd.f32 %v17325_v32, %v6710_v21  ;;  %v7790_v18 = vadd.f32 %v17325_v32, %v6884_v35  ;;  %v20467_v44 = vld [vmem:[#allocation125_spill] sm:$0xff]  ;;  %v20469_v21 = vld [vmem:[#allocation94_spill] sm:$0xff] }
 0x7fe   :  { %v5049_v37 = vsel %vm707_vm2, %v20465_v48, %v20464_v45  ;;  %7455 = vmatpush.msra.mxu2 %v20466_v10  ;;  %v5048_v45 = vsel %vm707_vm2, %v20468_v4, %v18950_v7  ;;  %v20470_v48 = vunpack.i.l.bf16 %v20469_v21  ;;  %v18953_v10 = vunpack.i.h.bf16 %v17282_v17 }
 0x7ff   :  { %7479 = vmatpush.msrb.mxu1 %v5049_v37  ;;  %7537 = vmatpush.msrb.mxu0 %v20467_v44  ;;  %v20471_v37 = vld [vmem:[#allocation126_spill] sm:$0xff]  ;;  %7817 = vst [vmem:[%s18263_s9 + $0x38] sm:$0xff] %v7789_v46  ;;  %v6999_v44 = vpop.f32.mrf.mxu2  ;;  %v20472_v4 = vunpack.i.h.bf16 %v17036_v53  ;;  %v20475_v46 = vunpack.i.h.bf16 %v20469_v21  ;;  %v6971_v7 = vadd.f32 %v17189_v42, %v6942_v41  ;;  %v17398_v42 = vld [vmem:[%s18261_s7 + $0x8] sm:$0xff] }
 0x800   :  { %v5518_v35 = vsel %vm870_vm3, %v20470_v48, %v18952_v14  ;;  %7456 = vmatpush.msra.mxu2 %v20471_v37  ;;  %7931 = vmatmul.msk.f32.gmra.mxu3 %vm6531_vm11, %v16563_v29  ;;  %7818 = vst [vmem:[%s18263_s9 + $0x40] sm:$0xff] %v7790_v18  ;;  %v20473_v29 = vunpack.i.h.bf16 %v16773_v15  ;;  %v20474_v37 = vunpack.i.h.bf16 %v17319_v0  ;;  %v20477_v15 = vunpack.i.l.bf16 %v16694_v61 }
 0x801   :  { %7480 = vmatpush.msrb.mxu1 %v5048_v45  ;;  %7505 = vmatpush.msrb.mxu3 %v5518_v35  ;;  %v20476_v35 = vld [vmem:[#allocation89_spill] sm:$0xff]  ;;  %20480 = vst [vmem:[#allocation58_spill] sm:$0xff] %v17398_v42  ;;  %v7000_v14 = vadd.f32 %v6999_v44, %v6971_v7  ;;  %v20487_v44 = vld [vmem:[#allocation100_spill] sm:$0xff] }
 0x802   :  { %v5047_v48 = vsel %vm707_vm2, %v20473_v29, %v20472_v4  ;;  %v5517_v45 = vsel %vm870_vm3, %v20475_v46, %v20474_v37  ;;  %7457 = vmatpush.msra.mxu2 %v20476_v35  ;;  %v5516_v4 = vsel %vm870_vm3, %v20477_v15, %v18951_v24  ;;  %v20478_v29 = vld [vmem:[#allocation10_spill] sm:$0xff]  ;;  %v20482_v15 = vld [vmem:[#allocation61_spill] sm:$0xff]  ;;  %v20493_v35 = vunpack.i.h.bf16 %v16876_v28 }
 0x803   :  { %7481 = vmatpush.msrb.mxu1 %v5047_v48  ;;  %7506 = vmatpush.msrb.mxu3 %v5517_v45  ;;  %v17391_v21 = vpop.f32.mrf.mxu3  ;;  %v17393_v37 = vpop.permute.xlu1 %8970  ;;  %v20484_v48 = vunpack.i.h.bf16 %v16741_v59 }
 0x804   :  { %7458 = vmatpush.msra.mxu2 %v20478_v29  ;;  %7436 = vmatmul.f32.gmra.mxu0 %v16622_v11  ;;  %20479 = vst [vmem:[#allocation9_spill] sm:$0xff] %v17393_v37  ;;  %v18954_v46 = vunpack.i.l.bf16 %v17393_v37  ;;  %v20481_v11 = vunpack.i.h.bf16 %v16694_v61  ;;  %v20485_v61 = vunpack.i.l.bf16 %v17078_v25  ;;  %v20491_v29 = vld [vmem:[#allocation65_spill] sm:$0xff] }
 0x805   :  { %7507 = vmatpush.msrb.mxu3 %v5516_v4  ;;  %7459 = vmatmul.f32.vlgmr.msra.gmra.mxu2 %v17398_v42  ;;  %v20483_v4 = vld [vmem:[#allocation57_spill] sm:$0xff]  ;;  %v17429_v7 = vpop.f32.mrf.mxu1 }
 0x806   :  { %v5515_v45 = vsel %vm870_vm3, %v20481_v11, %v18953_v10  ;;  %7565 = vmatpush.msrb.mxu2 %v15860_v40  ;;  %v6591_v24 = vadd.f32 %v20483_v4, %v20482_v15  ;;  %v5046_v18 = vsel %vm707_vm2, %v20484_v48, %v18954_v46  ;;  %v20486_v11 = vunpack.i.l.bf16 %v16611_v38  ;;  %v20488_v15 = vld [vmem:[#allocation51_spill] sm:$0xff]  ;;  %v20489_v10 = vld [vmem:[#allocation92_spill] sm:$0xff]  ;;  %v20499_v48 = vld [vmem:[#allocation113_spill] sm:$0xff] }
 0x807   :  { %7508 = vmatpush.msrb.mxu3 %v5515_v45  ;;  %v17427_v45 = vpop.permute.xlu0 %8990  ;;  %v6597_v4 = vadd.f32 %v20488_v15, %v20487_v44  ;;  %7482 = vmatpush.msrb.mxu1 %v5046_v18  ;;  %v20490_v46 = vld [vmem:[#allocation99_spill] sm:$0xff] }
 0x808   :  { %v5514_v40 = vsel %vm870_vm3, %v20486_v11, %v20485_v61  ;;  %7566 = vmatpush.msrb.mxu2 %v15820_v51  ;;  %v6620_v41 = vadd.f32 %v20489_v10, %v6591_v24  ;;  %v6600_v42 = vadd.f32 %v20491_v29, %v20490_v46  ;;  %v17438_v11 = vpop.f32.mrf.mxu2  ;;  %v20492_v51 = vunpack.i.h.bf16 %v17393_v37  ;;  %v17453_v29 = vpop.f32.mrf.mxu0  ;;  %v20497_v46 = vld [vmem:[#allocation132_spill] sm:$0xff]  ;;  %v20498_v61 = vld [vmem:[#allocation107_spill] sm:$0xff] }
 0x809   :  { %7509 = vmatpush.msrb.mxu3 %v5514_v40  ;;  %v20494_v24 = vunpack.i.h.bf16 %v17078_v25  ;;  %v20495_v10 = vunpack.i.h.bf16 %v16611_v38  ;;  %v20496_v40 = vld [vmem:[#allocation112_spill] sm:$0xff]  ;;  %v6765_v37 = vadd.f32 %v20499_v48, %v20498_v61  ;;  %v20501_v38 = vunpack.i.l.bf16 %v16741_v59  ;;  %v20507_v59 = vld [vmem:[#allocation85_spill] sm:$0xff] }
 0x80a   :  { %v5045_v44 = vsel %vm707_vm2, %v20493_v35, %v20492_v51  ;;  %7567 = vmatpush.msrb.mxu2 %v20496_v40  ;;  %v6649_v15 = vadd.f32 %v20497_v46, %v6620_v41  ;;  %v8993_v35 = vunpack.i.h.bf16 %v17427_v45  ;;  %v20500_v51 = vunpack.i.l.bf16 %v17427_v45  ;;  %v20503_v40 = vld [vmem:[#allocation82_spill] sm:$0xff] }
 0x80b   :  { %v5513_v18 = vsel %vm870_vm3, %v20495_v10, %v20494_v24  ;;  %7483 = vmatpush.msrb.mxu1 %v5045_v44  ;;  %v20502_v10 = vld [vmem:[#allocation78_spill] sm:$0xff]  ;;  %v7029_v41 = vadd.f32 %v17258_v30, %v7000_v14  ;;  %v20504_v48 = vunpack.i.h.bf16 %v17357_v54  ;;  %v20505_v61 = vunpack.i.h.bf16 %v16932_v62  ;;  %v17481_v30 = vpop.permute.xlu1 %8995  ;;  %v17486_v14 = vld [vmem:[%s18261_s7 + $0x38] sm:$0xff] }
 0x80c   :  { %7510 = vmatpush.msrb.mxu3 %v5513_v18  ;;  %v5062_v24 = vsel %vm707_vm2, %v20501_v38, %v20500_v51  ;;  %v6771_v53 = vadd.f32 %v20503_v40, %v20502_v10  ;;  %v20506_v18 = vld [vmem:[#allocation19_spill] sm:$0xff]  ;;  %7439 = vmatmul.f32.gmra.mxu0 %v16674_v2  ;;  %v6626_v46 = vadd.f32 %v20507_v59, %v6597_v4  ;;  %v20508_v51 = vld [vmem:[#allocation42_spill] sm:$0xff]  ;;  %v7057_v40 = vpop.f32.mrf.mxu3  ;;  %v18963_v2 = vunpack.i.l.bf16 %v17137_v57  ;;  %v20513_v59 = vld [vmem:[#allocation4_spill] sm:$0xff] }
 0x80d   :  { %v4594_v44 = vsel %vm544_vm1, %v20505_v61, %v20504_v48  ;;  %7568 = vmatpush.msrb.mxu2 %v20506_v18  ;;  %v6629_v38 = vadd.f32 %v20508_v51, %v6600_v42  ;;  %v6939_v10 = vadd.f32 %v17101_v9, %v16892_v20  ;;  %v7058_v48 = vadd.f32 %v7057_v40, %v7029_v41  ;;  %v20511_v61 = vld [vmem:[#allocation93_spill] sm:$0xff] }
 0x80e   :  { %7484 = vmatpush.msrb.mxu1 %v4594_v44  ;;  %7462 = vmatmul.f32.gmra.mxu2 %v17486_v14  ;;  %v18962_v4 = vunpack.i.l.bf16 %v17481_v30  ;;  %v20509_v42 = vunpack.i.l.bf16 %v17357_v54  ;;  %v20510_v20 = vunpack.i.l.bf16 %v16932_v62  ;;  %v20512_v44 = vld [vmem:[#allocation39_spill] sm:$0xff]  ;;  %v6794_v16 = vadd.f32 %v16802_v50, %v6765_v37  ;;  %v20517_v37 = vld [vmem:[#allocation36_spill] sm:$0xff] }
 0x80f   :  { %7569 = vmatpush.msrb.mxu2 %v20511_v61  ;;  %7511 = vmatpush.msrb.mxu3 %v5062_v24  ;;  %v6655_v18 = vadd.f32 %v20512_v44, %v6626_v46  ;;  %v6658_v51 = vadd.f32 %v20513_v59, %v6629_v38  ;;  %v20514_v41 = vunpack.i.l.bf16 %v16876_v28  ;;  %v6800_v40 = vadd.f32 %v16918_v36, %v6771_v53  ;;  %v17517_v28 = vpop.permute.xlu0 %9005 }
 0x810   :  { %v4593_v9 = vsel %vm544_vm1, %v20510_v20, %v20509_v42  ;;  %v7791_v42 = vadd.f32 %v17325_v32, %v7058_v48  ;;  %v18964_v24 = vunpack.i.h.bf16 %v17481_v30  ;;  %v20515_v46 = vunpack.i.h.bf16 %v17137_v57  ;;  %v17519_v20 = vpop.f32.mrf.mxu1 }
 0x811   :  { %7485 = vmatpush.msrb.mxu1 %v4593_v9  ;;  %v5061_v62 = vsel %vm707_vm2, %v20514_v41, %v8993_v35  ;;  %v20516_v38 = vunpack.i.h.bf16 %v16609_v26  ;;  %7570 = vmatpush.msrb.mxu2 %v20517_v37  ;;  %v20518_v9 = vld [vmem:[#allocation72_spill] sm:$0xff]  ;;  %v6945_v53 = vadd.f32 %v17255_v19, %v17033_v1  ;;  %v9007_v48 = vunpack.i.l.bf16 %v17517_v28 }
 0x812   :  { %7512 = vmatpush.msrb.mxu3 %v5061_v62  ;;  %v6678_v36 = vadd.f32 %v20518_v9, %v6649_v15  ;;  %v20519_v61 = vunpack.i.l.bf16 %v16910_v23  ;;  %v9002_v59 = vunpack.i.l.bf16 %v17207_v34  ;;  %v6968_v41 = vadd.f32 %v17106_v49, %v6939_v10  ;;  %7819 = vst [vmem:[%s18263_s9 + $0x48] sm:$0xff] %v7791_v42  ;;  %v17536_v15 = vpop.f32.mrf.mxu2  ;;  %v20521_v62 = vld [vmem:[#allocation139_spill] sm:$0xff]  ;;  %v20525_v37 = vld [vmem:[#allocation96_spill] sm:$0xff] }
 0x813   :  { %v4592_v50 = vsel %vm544_vm1, %v20516_v38, %v20515_v46  ;;  %v20520_v1 = vunpack.i.l.bf16 %v16609_v26  ;;  %7571 = vmatpush.msrb.mxu2 %v20521_v62  ;;  %v20522_v46 = vld [vmem:[#allocation68_spill] sm:$0xff]  ;;  %v20523_v49 = vld [vmem:[#allocation11_spill] sm:$0xff]  ;;  %v6829_v26 = vadd.f32 %v17011_v56, %v6800_v40  ;;  %v20527_v62 = vmov 0.0  }
 0x814   :  { %7486 = vmatpush.msrb.mxu1 %v4592_v50  ;;  %v5060_v44 = vsel %vm707_vm2, %v20519_v61, %v18962_v4  ;;  %v17546_v38 = vadd.f32 %v20522_v46, %v6678_v36  ;;  %v6684_v10 = vadd.f32 %v20523_v49, %v6655_v18  ;;  %v6823_v50 = vadd.f32 %v16894_v22, %v6794_v16  ;;  %v20524_v42 = vld [vmem:[#allocation143_spill] sm:$0xff]  ;;  %v20526_v61 = vld [vmem:[#allocation120_spill] sm:$0xff]  ;;  %v17565_v16 = vpop.f32.mrf.mxu0  ;;  %v17570_v40 = vpop.permute.xlu1 %9010 }
 0x815   :  { %v4591_v19 = vsel %vm544_vm1, %v20520_v1, %v18963_v2  ;;  %7513 = vmatpush.msrb.mxu3 %v5060_v44  ;;  %v6774_v9 = vadd.f32 %v20525_v37, %v20524_v42  ;;  %v17553_v4 = vadd.f32 %v20526_v61, %v6658_v51  ;;  %v18965_v1 = vunpack.i.h.bf16 %v17207_v34  ;;  %v20528_v44 = vld [vmem:[#allocation88_spill] sm:$0xff]  ;;  %v17593_v42 = vld [vmem:[%s18261_s7 + $0x68] sm:$0xff] }
 0x816   :  { %7487 = vmatpush.msrb.mxu1 %v4591_v19  ;;  %7572 = vmatpush.msrb.mxu2 %v20528_v44  ;;  %v20529_v18 = vunpack.i.h.bf16 %v16910_v23  ;;  %v6948_v51 = vadd.f32 %v17317_v47, %v17089_v52  ;;  %v6974_v56 = vadd.f32 %v17269_v31, %v6945_v53  ;;  %v9008_v36 = vunpack.i.h.bf16 %v17517_v28  ;;  %v17576_v19 = vld [vmem:[%s18261_s7 + $0x10] sm:$0xff]  ;;  %v20530_v23 = vld [vmem:[#allocation97_spill] sm:$0xff]  ;;  %v7060_v31 = vpop.f32.mrf.mxu3  ;;  %v20532_v47 = vld [vmem:[#allocation152_spill] sm:$0xff] }
 0x817   :  { %7488 = vmatmul.f32.vlgmr.msrb.gmra.mxu1 %v17576_v19  ;;  %v20531_v46 = vunpack.i.l.bf16 %v20530_v23  ;;  %v17586_v53 = vadd.f32 %v20532_v47, %v6684_v10  ;;  %v6997_v49 = vadd.f32 %v17292_v13, %v6968_v41  ;;  %7465 = vmatmul.f32.gmra.mxu2 %v17593_v42  ;;  %v20533_v37 = vunpack.i.l.bf16 %v16812_v33  ;;  %v20534_v10 = vld [vmem:[#allocation166_spill] sm:$0xff]  ;;  %v20536_v41 = vld [vmem:[#allocation12_spill] sm:$0xff]  ;;  %v20539_v47 = vld [vmem:[#allocation49_spill] sm:$0xff] }
 0x818   :  { %7603 = vmatpush.msra.mxu1 %v20527_v62  ;;  %v5059_v22 = vsel %vm707_vm2, %v20529_v18, %v18964_v24  ;;  %v6803_v44 = vadd.f32 %v20534_v10, %v6774_v9  ;;  %v20535_v18 = vld [vmem:[#allocation52_spill] sm:$0xff]  ;;  %7573 = vmatpush.msrb.mxu2 %v20536_v41  ;;  %v6858_v2 = vadd.f32 %v20539_v47, %v6829_v26  ;;  %v9012_v24 = vunpack.i.l.bf16 %v17570_v40  ;;  %v20543_v41 = vld [vmem:[#allocation73_spill] sm:$0xff]  ;;  %v20545_v47 = vld [vmem:[#allocation74_spill] sm:$0xff] }
 0x819   :  { %7514 = vmatpush.msrb.mxu3 %v5059_v22  ;;  %v5530_v52 = vsel %vm870_vm3, %v20531_v46, %v9007_v48  ;;  %v5058_v61 = vsel %vm707_vm2, %v20533_v37, %v9002_v59  ;;  %v6852_v13 = vadd.f32 %v20535_v18, %v6823_v50  ;;  %v20538_v22 = vunpack.i.h.bf16 %v16658_v6  ;;  %v17621_v37 = vpop.permute.xlu0 %9020  ;;  %v20577_v28 = vld [vmem:[#allocation17_spill] sm:$0xff] }
 0x81a   :  { %7704 = vmatpush.msrb.mxu1 %v20394_v5  ;;  %v20537_v5 = vld [vmem:[#allocation22_spill] sm:$0xff]  ;;  %7538 = vmatpush.msrb.mxu0 %v5530_v52  ;;  %v20540_v50 = vunpack.i.h.bf16 %v16812_v33  ;;  %v20542_v10 = vunpack.i.l.bf16 %v16973_v58  ;;  %v7003_v18 = vadd.f32 %v17438_v11, %v6974_v56  ;;  %v9013_v52 = vunpack.i.h.bf16 %v17570_v40  ;;  %v17648_v56 = vpop.f32.mrf.mxu1 }
 0x81b   :  { %7515 = vmatpush.msrb.mxu3 %v5058_v61  ;;  %v17610_v46 = vsel %vm544_vm1, %v20538_v22, %v20537_v5  ;;  %v20541_v61 = vld [vmem:[#allocation26_spill] sm:$0xff]  ;;  %7574 = vmatpush.msrb.mxu2 %v20543_v41  ;;  %v20544_v33 = vunpack.i.h.bf16 %v20530_v23  ;;  %v20548_v23 = vld [vmem:[#allocation167_spill] sm:$0xff]  ;;  %v9017_v41 = vunpack.i.l.bf16 %v17267_v12 }
 0x81c   :  { %7705 = vmatpush.msrb.mxu1 %v20398_v60  ;;  %v5057_v9 = vsel %vm707_vm2, %v20540_v50, %v18965_v1  ;;  %v5502_v26 = vsel %vm870_vm3, %v20542_v10, %v20541_v61  ;;  %v6977_v60 = vadd.f32 %v17359_v63, %v6948_v51  ;;  %v6881_v50 = vadd.f32 %v20545_v47, %v6852_v13  ;;  %v17640_v1 = vpop.f32.mrf.mxu2  ;;  %v20546_v63 = vld [vmem:[#allocation83_spill] sm:$0xff]  ;;  %v20552_v47 = vld [vmem:[#allocation90_spill] sm:$0xff] }
 0x81d   :  { %7516 = vmatpush.msrb.mxu3 %v5057_v9  ;;  %v5529_v22 = vsel %vm870_vm3, %v20544_v33, %v9008_v36  ;;  %v7026_v10 = vadd.f32 %v17174_v8, %v6997_v49  ;;  %v20547_v11 = vunpack.i.l.bf16 %v20546_v63  ;;  %v6832_v9 = vadd.f32 %v20548_v23, %v6803_v44  ;;  %v17654_v8 = vld [vmem:[%s18261_s7 + $0x18] sm:$0xff] }
 0x81e   :  { %7706 = vmatpush.msrb.mxu1 %v20403_v55  ;;  %7539 = vmatpush.msrb.mxu0 %v5529_v22  ;;  %v20549_v55 = vunpack.i.h.bf16 %v17098_v43  ;;  %v20550_v13 = vunpack.i.h.bf16 %v20546_v63  ;;  %v20551_v22 = vld [vmem:[#allocation114_spill] sm:$0xff]  ;;  %v20554_v63 = vunpack.i.l.bf16 %v17098_v43 }
 0x81f   :  { %v5504_v51 = vsel %vm870_vm3, %v20547_v11, %v20541_v61  ;;  %7517 = vmatmul.f32.vlgmr.msrb.gmra.mxu3 %v17654_v8  ;;  %v7055_v33 = vadd.f32 %v17391_v21, %v7026_v10  ;;  %v20553_v11 = vunpack.i.l.bf16 %v20552_v47  ;;  %v7032_v21 = vadd.f32 %v17334_v27, %v7003_v18  ;;  %v17683_v10 = vpop.permute.xlu1 %7764  ;;  %v20556_v27 = vld [vmem:[#allocation84_spill] sm:$0xff]  ;;  %v17696_v18 = vpop.f32.mrf.mxu0 }
 0x820   :  { %7675 = vmatpush.msra.mxu2 %v5504_v51  ;;  %v4572_v49 = vsel %vm544_vm1, %v20549_v55, %v20537_v5  ;;  %v5503_v44 = vsel %vm870_vm3, %v20550_v13, %v20541_v61  ;;  %7707 = vmatpush.msrb.mxu1 %v20551_v22  ;;  %v4571_v23 = vsel %vm544_vm1, %v20554_v63, %v20537_v5  ;;  %v7063_v22 = vpop.f32.mrf.mxu3  ;;  %v20558_v63 = vunpack.i.h.bf16 %v16973_v58  ;;  %v20560_v58 = vld [vmem:[#allocation77_spill] sm:$0xff] }
 0x821   :  { %7617 = vmatpush.msra.mxu3 %v4572_v49  ;;  %v5528_v51 = vsel %vm870_vm3, %v20553_v11, %v9012_v24  ;;  %v7006_v55 = vadd.f32 %v17536_v15, %v6977_v60  ;;  %v20555_v49 = vunpack.i.h.bf16 %v20552_v47  ;;  %v7782_v43 = vadd.f32 %v17683_v10, %v17546_v38  ;;  %v20557_v60 = vld [vmem:[#allocation25_spill] sm:$0xff] }
 0x822   :  { %7540 = vmatpush.msrb.mxu0 %v5528_v51  ;;  %7676 = vmatpush.msra.mxu2 %v5503_v44  ;;  %v7783_v11 = vadd.f32 %v17683_v10, %v6881_v50  ;;  %v7784_v15 = vadd.f32 %v17683_v10, %v7055_v33  ;;  %v6887_v44 = vadd.f32 %v20557_v60, %v6858_v2  ;;  %v9018_v47 = vunpack.i.h.bf16 %v17267_v12  ;;  %v20559_v33 = vld [vmem:[#allocation29_spill] sm:$0xff]  ;;  %v17713_v2 = vld [vmem:[%s18261_s7 + $0x98] sm:$0xf] }
 0x823   :  { %v5527_v13 = vsel %vm870_vm3, %v20555_v49, %v9013_v52  ;;  %7708 = vmatpush.msrb.mxu1 %v20556_v27  ;;  %7618 = vmatpush.msra.mxu3 %v4571_v23  ;;  %v7061_v51 = vadd.f32 %v7060_v31, %v7032_v21  ;;  %v5501_v38 = vsel %vm870_vm3, %v20558_v63, %v20541_v61  ;;  %v9022_v50 = vunpack.i.l.bf16 %v17621_v37  ;;  %v20562_v23 = vld [vmem:[#allocation158_spill] sm:$0xff]  ;;  %v20596_v12 = vld [vmem:[#allocation53_spill] sm:$0xff] }
 0x824   :  { %7541 = vmatpush.msrb.mxu0 %v5527_v13  ;;  %7677 = vmatpush.msra.mxu2 %v5502_v26  ;;  %7810 = vst [vmem:[%s18263_s9] sm:$0xff] %v7782_v43  ;;  %v20561_v31 = vunpack.i.h.bf16 %v20560_v58  ;;  %v20563_v21 = vunpack.i.l.bf16 %v20562_v23  ;;  %v17727_v13 = vpop.permute.xlu0 %7774  ;;  %v17735_v43 = vld [vmem:[%s18261_s7 + $0x40] sm:$0xff] }
 0x825   :  { %7709 = vmatpush.msrb.mxu1 %v20559_v33  ;;  %7468 = vmatmul.f32.gmra.mxu2 %v17713_v2  ;;  %7811 = vst [vmem:[%s18263_s9 + $0x8] sm:$0xff] %v7783_v11  ;;  %v7796_v27 = vadd.f32 %v17727_v13, %v17586_v53  ;;  %v7797_v60 = vadd.f32 %v17727_v13, %v6887_v44  ;;  %v20564_v33 = vld [vmem:[#allocation70_spill] sm:$0xff]  ;;  %v17746_v11 = vpop.f32.mrf.mxu2  ;;  %v9023_v44 = vunpack.i.h.bf16 %v17621_v37  ;;  %v20605_v37 = vld [vmem:[#allocation55_spill] sm:$0xff] }
 0x826   :  { %v4570_v26 = vsel %vm544_vm1, %v20561_v31, %v20537_v5  ;;  %v5526_v49 = vsel %vm870_vm3, %v20563_v21, %v9017_v41  ;;  %7491 = vmatmul.f32.gmra.mxu1 %v17735_v43  ;;  %v7798_v63 = vadd.f32 %v17727_v13, %v7061_v51  ;;  %v6861_v31 = vadd.f32 %v20564_v33, %v6832_v9  ;;  %v20570_v33 = vld [vmem:[#allocation48_spill] sm:$0xff] }
 0x827   :  { %7619 = vmatpush.msra.mxu3 %v4570_v26  ;;  %7812 = vst [vmem:[%s18263_s9 + $0x10] sm:$0xff] %v7784_v15  ;;  %v7035_v21 = vadd.f32 %v17429_v7, %v7006_v55  ;;  %7542 = vmatpush.msrb.mxu0 %v5526_v49  ;;  %v20565_v26 = vunpack.i.l.bf16 %v20560_v58  ;;  %v20566_v9 = vunpack.i.h.bf16 %v20562_v23  ;;  %v20567_v55 = vunpack.i.l.bf16 %v17319_v0  ;;  %v17776_v23 = vpop.f32.mrf.mxu1 }
 0x828   :  { %7678 = vmatpush.msra.mxu2 %v5501_v38  ;;  %7710 = vmatpush.msrb.mxu1 %v20424_v3  ;;  %7824 = vst [vmem:[%s18263_s9 + $0x70] sm:$0xff] %v7796_v27  ;;  %v20568_v3 = vld [vmem:[#allocation153_spill] sm:$0xff]  ;;  %v20569_v38 = vld [vmem:[#allocation38_spill] sm:$0xff] }
 0x829   :  { %v4569_v53 = vsel %vm544_vm1, %v20565_v26, %v20537_v5  ;;  %v5525_v7 = vsel %vm870_vm3, %v20566_v9, %v9018_v47  ;;  %v5500_v15 = vsel %vm870_vm3, %v20567_v55, %v20541_v61  ;;  %v6716_v51 = vadd.f32 %v20568_v3, %v17553_v4  ;;  %7825 = vst [vmem:[%s18263_s9 + $0x78] sm:$0xff] %v7797_v60  ;;  %v17782_v27 = vld [vmem:[%s18261_s7 + $0x48] sm:$0xff]  ;;  %v17785_v4 = vpop.permute.xlu1 %7779 }
 0x82a   :  { %7620 = vmatpush.msra.mxu3 %v4569_v53  ;;  %v6890_v58 = vadd.f32 %v20569_v38, %v6861_v31  ;;  %v7064_v49 = vadd.f32 %v7063_v22, %v7035_v21  ;;  %7543 = vmatpush.msrb.mxu0 %v5525_v7  ;;  %7826 = vst [vmem:[%s18263_s9 + $0x80] sm:$0xff] %v7798_v63  ;;  %v20571_v22 = vld [vmem:[#allocation105_spill] sm:$0xff]  ;;  %v20573_v21 = vunpack.i.h.bf16 %v17319_v0  ;;  %v17806_v63 = vpop.f32.mrf.mxu3  ;;  %v17812_v0 = vpop.f32.mrf.mxu0 }
 0x82b   :  { %7679 = vmatpush.msra.mxu2 %v5500_v15  ;;  %7711 = vmatpush.msrb.mxu1 %v20570_v33  ;;  %v20572_v60 = vunpack.i.l.bf16 %v20571_v22  ;;  %v5512_v53 = vsel %vm870_vm3, %v9007_v48, %v20541_v61  ;;  %v7803_v9 = vadd.f32 %v17785_v4, %v6716_v51  ;;  %v20574_v15 = vunpack.i.l.bf16 %v16658_v6 }
 0x82c   :  { %7520 = vmatmul.f32.gmra.mxu3 %v17782_v27  ;;  %v5499_v26 = vsel %vm870_vm3, %v20573_v21, %v20541_v61  ;;  %v7804_v7 = vadd.f32 %v17785_v4, %v6890_v58  ;;  %v7805_v55 = vadd.f32 %v17785_v4, %v7064_v49  ;;  %v20576_v51 = vunpack.i.l.bf16 %v17282_v17  ;;  %v17849_v49 = vld [vmem:[%s18261_s7 + $0x70] sm:$0xff]  ;;  %v20580_v21 = vld [vmem:[#allocation23_spill] sm:$0xff] }
 0x82d   :  { %v5524_v31 = vsel %vm870_vm3, %v20572_v60, %v9022_v50  ;;  %7621 = vmatpush.msra.mxu3 %v17610_v46  ;;  %7680 = vmatpush.msra.mxu2 %v5499_v26  ;;  %v4567_v48 = vsel %vm544_vm1, %v20574_v15, %v20537_v5  ;;  %v20575_v46 = vunpack.i.h.bf16 %v20571_v22  ;;  %7831 = vst [vmem:[%s18263_s9 + $0xa8] sm:$0xf] %v7803_v9  ;;  %v17844_v58 = vpop.f32.mrf.mxu2  ;;  %v20581_v26 = vld [vmem:[#allocation71_spill] sm:$0xff] }
 0x82e   :  { %7544 = vmatpush.msrb.mxu0 %v5524_v31  ;;  %7712 = vmatpush.msrb.mxu1 %v5512_v53  ;;  %v5498_v6 = vsel %vm870_vm3, %v20576_v51, %v20541_v61  ;;  %v5511_v38 = vsel %vm870_vm3, %v9008_v36, %v20541_v61  ;;  %7832 = vst [vmem:[%s18263_s9 + $0xb0] sm:$0xf] %v7804_v7  ;;  %v20578_v36 = vld [vmem:[#allocation169_spill] sm:$0xff]  ;;  %v20582_v53 = vunpack.i.l.bf16 %v20581_v26  ;;  %v20583_v7 = vunpack.i.h.bf16 %v17282_v17 }
 0x82f   :  { %v5523_v3 = vsel %vm870_vm3, %v20575_v46, %v9023_v44  ;;  %7622 = vmatpush.msra.mxu3 %v4567_v48  ;;  %7681 = vmatpush.msra.mxu2 %v5498_v6  ;;  %7833 = vst [vmem:[%s18263_s9 + $0xb8] sm:$0xf] %v7805_v55  ;;  %v20579_v33 = vunpack.i.h.bf16 %v20578_v36  ;;  %v7113_v60 = vadd.f32 %v17640_v1, %v17453_v29  ;;  %v17863_v31 = vld [vmem:[%s18261_s7 + $0x28] sm:$0xff]  ;;  %v20584_v55 = vunpack.i.l.bf16 %v20578_v36 }
 0x830   :  { %7545 = vmatpush.msrb.mxu0 %v5523_v3  ;;  %7713 = vmatpush.msrb.mxu1 %v5511_v38  ;;  %v5038_v9 = vsel %vm707_vm2, %v20582_v53, %v20580_v21  ;;  %v5497_v29 = vsel %vm870_vm3, %v20583_v7, %v20541_v61  ;;  %v5510_v1 = vsel %vm870_vm3, %v9012_v24, %v20541_v61  ;;  %v20585_v17 = vunpack.i.h.bf16 %v20581_v26  ;;  %v17907_v38 = vld [vmem:[%s18261_s7 + $0x78] sm:$0xff]  ;;  %v17921_v53 = vpop.f32.mrf.mxu1 }
 0x831   :  { %7494 = vmatmul.f32.gmra.mxu1 %v17849_v49  ;;  %7546 = vmatmul.f32.vlgmr.msrb.gmra.mxu0 %v20577_v28  ;;  %v4566_v22 = vsel %vm544_vm1, %v20579_v33, %v20537_v5  ;;  %v4565_v15 = vsel %vm544_vm1, %v20584_v55, %v20537_v5  ;;  %v20586_v46 = vunpack.i.l.bf16 %v17078_v25  ;;  %v5509_v3 = vsel %vm870_vm3, %v9013_v52, %v20541_v61  ;;  %v20587_v28 = vld [vmem:[#allocation108_spill] sm:$0xff]  ;;  %v20589_v33 = vld [vmem:[#allocation165_spill] sm:$0xff] }
 0x832   :  { %7932 = vmatmul.msk.f32.vlgmr.msrb.gmra.mxu2 %vm6531_vm11, %v17863_v31  ;;  %7623 = vmatpush.msra.mxu3 %v4566_v22  ;;  %v5037_v48 = vsel %vm707_vm2, %v20585_v17, %v20580_v21  ;;  %v7199_v51 = vpop.f32.mrf.mxu0  ;;  %v17902_v6 = vpop.f32.mrf.mxu3  ;;  %v20588_v36 = vunpack.i.h.bf16 %v20587_v28  ;;  %v20590_v52 = vunpack.i.l.bf16 %v20589_v33  ;;  %v7142_v26 = vadd.f32 %v17519_v20, %v7113_v60 }
 0x833   :  { %7646 = vmatpush.msra.mxu0 %v5038_v9  ;;  %7682 = vmatpush.msra.mxu2 %v5497_v29  ;;  %v5496_v24 = vsel %vm870_vm3, %v20586_v46, %v20541_v61  ;;  %v20591_v9 = vunpack.i.h.bf16 %v17078_v25  ;;  %v5508_v29 = vsel %vm870_vm3, %v9017_v41, %v20541_v61  ;;  %v20592_v20 = vunpack.i.l.bf16 %v20587_v28 }
 0x834   :  { %7714 = vmatpush.msrb.mxu1 %v5510_v1  ;;  %7624 = vmatpush.msra.mxu3 %v4565_v15  ;;  %v4564_v40 = vsel %vm544_vm1, %v20588_v36, %v20537_v5  ;;  %v5036_v22 = vsel %vm707_vm2, %v20590_v52, %v20580_v21  ;;  %v20593_v25 = vunpack.i.h.bf16 %v20589_v33  ;;  %v20594_v41 = vunpack.i.l.bf16 %v17427_v45 }
 0x835   :  { %7647 = vmatpush.msra.mxu0 %v5037_v48  ;;  %7683 = vmatpush.msra.mxu2 %v5496_v24  ;;  %v5495_v7 = vsel %vm870_vm3, %v20591_v9, %v20541_v61  ;;  %v4563_v60 = vsel %vm544_vm1, %v20592_v20, %v20537_v5  ;;  %v17943_v55 = vpop.f32.mrf.mxu2  ;;  %v5507_v17 = vsel %vm870_vm3, %v9018_v47, %v20541_v61  ;;  %v17961_v24 = vld [vmem:[%s18261_s7 + $0xa0] sm:$0xf]  ;;  %v20597_v28 = vunpack.i.h.bf16 %v20596_v12 }
 0x836   :  { %7715 = vmatpush.msrb.mxu1 %v5509_v3  ;;  %7523 = vmatmul.f32.gmra.mxu3 %v17907_v38  ;;  %v5035_v1 = vsel %vm707_vm2, %v20593_v25, %v20580_v21  ;;  %v5044_v15 = vsel %vm707_vm2, %v20594_v41, %v20580_v21  ;;  %v7116_v48 = vadd.f32 %v17746_v11, %v17565_v16  ;;  %v20595_v3 = vld [vmem:[#allocation115_spill] sm:$0xff]  ;;  %v20600_v52 = vunpack.i.l.bf16 %v20596_v12  ;;  %v18016_v25 = vld [vmem:[%s18261_s7 + $0xa8] sm:$0xf] }
 0x837   :  { %7625 = vmatpush.msra.mxu3 %v4564_v40  ;;  %7648 = vmatpush.msra.mxu0 %v5036_v22  ;;  %v7171_v46 = vadd.f32 %v17806_v63, %v7142_v26  ;;  %v4562_v47 = vsel %vm544_vm1, %v20597_v28, %v20537_v5  ;;  %v17973_v16 = vld [vmem:[%s18261_s7 + $0x58] sm:$0xff]  ;;  %v5043_v40 = vsel %vm707_vm2, %v8993_v35, %v20580_v21  ;;  %v20602_v9 = vunpack.i.l.bf16 %v17481_v30 }
 0x838   :  { %7684 = vmatpush.msra.mxu2 %v5495_v7  ;;  %7716 = vmatpush.msrb.mxu1 %v5508_v29  ;;  %v20598_v11 = vld [vmem:[#allocation27_spill] sm:$0xff]  ;;  %v5506_v33 = vsel %vm870_vm3, %v9022_v50, %v20541_v61  ;;  %v4561_v22 = vsel %vm544_vm1, %v20600_v52, %v20537_v5  ;;  %v7145_v7 = vadd.f32 %v17648_v56, %v7116_v48  ;;  %v20603_v56 = vld [vmem:[#allocation41_spill] sm:$0xff]  ;;  %v20606_v41 = vunpack.i.l.bf16 %v20605_v37 }
 0x839   :  { %7626 = vmatpush.msra.mxu3 %v4563_v60  ;;  %7649 = vmatpush.msra.mxu0 %v5035_v1  ;;  %v20599_v63 = vunpack.i.l.bf16 %v20598_v11  ;;  %v20601_v45 = vunpack.i.h.bf16 %v20598_v11  ;;  %v5042_v50 = vsel %vm707_vm2, %v20602_v9, %v20580_v21  ;;  %v7200_v29 = vadd.f32 %v7199_v51, %v7171_v46 }
 0x83a   :  { %7685 = vmatpush.msra.mxu2 %v5044_v15  ;;  %7717 = vmatpush.msrb.mxu1 %v5507_v17  ;;  %v7176_v26 = vpop.f32.mrf.mxu3  ;;  %v5505_v20 = vsel %vm870_vm3, %v9023_v44, %v20541_v61  ;;  %v7202_v60 = vpop.f32.mrf.mxu0  ;;  %v20604_v51 = vunpack.i.h.bf16 %v20603_v56  ;;  %v5032_v61 = vsel %vm707_vm2, %v20606_v41, %v20580_v21  ;;  %v20607_v15 = vunpack.i.h.bf16 %v17481_v30 }
 0x83b   :  { %7497 = vmatmul.f32.gmra.mxu1 %v17961_v24  ;;  %7549 = vmatmul.f32.gmra.mxu0 %v20595_v3  ;;  %v5034_v36 = vsel %vm707_vm2, %v20599_v63, %v20580_v21  ;;  %v5033_v35 = vsel %vm707_vm2, %v20601_v45, %v20580_v21  ;;  %v18029_v44 = vpop.f32.mrf.mxu1  ;;  %v20608_v48 = vunpack.i.l.bf16 %v20603_v56  ;;  %v7119_v12 = vadd.f32 %v17844_v58, %v17696_v18  ;;  %v20610_v58 = vld [vmem:[#allocation28_spill] sm:$0xff] }
 0x83c   :  { %7933 = vmatmul.msk.f32.gmra.mxu2 %vm6531_vm11, %v17973_v16  ;;  %7627 = vmatpush.msra.mxu3 %v4562_v47  ;;  %v4560_v1 = vsel %vm544_vm1, %v20604_v51, %v20537_v5  ;;  %v5041_v17 = vsel %vm707_vm2, %v20607_v15, %v20580_v21  ;;  %v20609_v28 = vunpack.i.h.bf16 %v20605_v37  ;;  %v7174_v47 = vadd.f32 %v17902_v6, %v7145_v7  ;;  %v9086_v6 = vld [vmem:[%s18261_s7] sm:$0xff] }
 0x83d   :  { %7650 = vmatpush.msra.mxu0 %v5034_v36  ;;  %7686 = vmatpush.msra.mxu2 %v5043_v40  ;;  %v4559_v46 = vsel %vm544_vm1, %v20608_v48, %v20537_v5  ;;  %v7228_v3 = vpop.f32.mrf.mxu2  ;;  %v5040_v63 = vsel %vm707_vm2, %v9002_v59, %v20580_v21  ;;  %v18059_v36 = vld [vmem:[%s18261_s7 + $0x88] sm:$0xff]  ;;  %v20611_v59 = vld [vmem:[#allocation62_spill] sm:$0xff]  ;;  %v7122_v51 = vadd.f32 %v17943_v55, %v17812_v0  ;;  %v20622_v0 = vld [vmem:[#allocation76_spill] sm:$0xff] }
 0x83e   :  { %7718 = vmatpush.msrb.mxu1 %v5506_v33  ;;  %7628 = vmatpush.msra.mxu3 %v4561_v22  ;;  %v5031_v30 = vsel %vm707_vm2, %v20609_v28, %v20580_v21  ;;  %v7229_v11 = vadd.f32 %v7228_v3, %v7200_v29  ;;  %v20612_v40 = vunpack.i.l.bf16 %v20611_v59  ;;  %v20613_v22 = vunpack.i.h.bf16 %v17207_v34  ;;  %v20615_v29 = vld [vmem:[#allocation89_spill] sm:$0xff]  ;;  %v18113_v55 = vld [vmem:[%s18261_s7 + $0xb8] sm:$0xf] }
 0x83f   :  { %7651 = vmatpush.msra.mxu0 %v5033_v35  ;;  %7687 = vmatpush.msra.mxu2 %v5042_v50  ;;  %v7148_v35 = vadd.f32 %v17776_v23, %v7119_v12  ;;  %v7203_v9 = vadd.f32 %v7202_v60, %v7174_v47  ;;  %v20614_v50 = vunpack.i.h.bf16 %v20611_v59  ;;  %v20616_v34 = vld [vmem:[#allocation9_spill] sm:$0xff]  ;;  %v7151_v12 = vadd.f32 %v17921_v53, %v7122_v51 }
 0x840   :  { %7719 = vmatpush.msrb.mxu1 %v5505_v20  ;;  %7526 = vmatmul.f32.gmra.mxu3 %v18016_v25  ;;  %v7785_v18 = vadd.f32 %v17683_v10, %v7229_v11  ;;  %v5030_v33 = vsel %vm707_vm2, %v20612_v40, %v20580_v21  ;;  %v5039_v45 = vsel %vm707_vm2, %v20613_v22, %v20580_v21  ;;  %v20617_v20 = vunpack.i.l.bf16 %v20616_v34 }
 0x841   :  { %7629 = vmatpush.msra.mxu3 %v4560_v1  ;;  %7652 = vmatpush.msra.mxu0 %v5032_v61  ;;  %v5029_v7 = vsel %vm707_vm2, %v20614_v50, %v20580_v21  ;;  %v20618_v1 = vld [vmem:[#allocation58_spill] sm:$0xff]  ;;  %v7177_v37 = vadd.f32 %v7176_v26, %v7148_v35  ;;  %v20620_v15 = vunpack.i.h.bf16 %v20616_v34  ;;  %v20623_v26 = vunpack.i.h.bf16 %v17357_v54  ;;  %v20633_v34 = vld [vmem:[#allocation103_spill] sm:$0xff] }
 0x842   :  { %7688 = vmatpush.msra.mxu2 %v5041_v17  ;;  %v7179_v52 = vpop.f32.mrf.mxu3  ;;  %7813 = vst [vmem:[%s18263_s9 + $0x18] sm:$0xff] %v7785_v18  ;;  %v5028_v56 = vsel %vm707_vm2, %v20617_v20, %v20580_v21  ;;  %v7205_v60 = vpop.f32.mrf.mxu0  ;;  %v20619_v61 = vld [vmem:[#allocation10_spill] sm:$0xff]  ;;  %v20625_v11 = vunpack.i.l.bf16 %v17357_v54  ;;  %v20626_v18 = vld [vmem:[#allocation109_spill] sm:$0xff]  ;;  %v20627_v53 = vunpack.i.h.bf16 %v17137_v57  ;;  %v20629_v22 = vunpack.i.l.bf16 %v17137_v57  ;;  %v9089_v57 = vld [vmem:[%s18261_s7 + $0x60] sm:$0xff] }
 0x843   :  { %7630 = vmatpush.msra.mxu3 %v4559_v46  ;;  %7653 = vmatpush.msra.mxu0 %v5031_v30  ;;  %v5027_v17 = vsel %vm707_vm2, %v20620_v15, %v20580_v21  ;;  %v20621_v46 = vld [vmem:[#allocation30_spill] sm:$0xff]  ;;  %v4576_v3 = vsel %vm544_vm1, %v20623_v26, %v20537_v5  ;;  %v7206_v28 = vadd.f32 %v7205_v60, %v7177_v37  ;;  %v20624_v30 = vld [vmem:[#allocation16_spill] sm:$0xff] }
 0x844   :  { %7689 = vmatpush.msra.mxu2 %v5040_v63  ;;  %7552 = vmatmul.f32.gmra.mxu0 %v20610_v58  ;;  %v9088_v21 = vld [vmem:[%s18261_s7 + $0x30] sm:$0xff]  ;;  %v4575_v63 = vsel %vm544_vm1, %v20625_v11, %v20537_v5  ;;  %v7180_v59 = vadd.f32 %v7179_v52, %v7151_v12 }
 0x845   :  { %7934 = vmatmul.msk.f32.gmra.mxu2 %vm6531_vm11, %v18059_v36  ;;  %7604 = vmatmul.f32.vlgmr.msra.gmra.mxu1 %v9086_v6  ;;  %v7231_v23 = vpop.f32.mrf.mxu2  ;;  %v4574_v6 = vsel %vm544_vm1, %v20627_v53, %v20537_v5  ;;  %v20632_v50 = vld [vmem:[#allocation46_spill] sm:$0xff] }
 0x846   :  { %7631 = vmatpush.msra.mxu3 %v20527_v62  ;;  %7654 = vmatpush.msra.mxu0 %v5030_v33  ;;  %v7232_v41 = vadd.f32 %v7231_v23, %v7203_v9  ;;  %v20628_v33 = vld [vmem:[#allocation119_spill] sm:$0xff]  ;;  %v20630_v9 = vld [vmem:[#allocation116_spill] sm:$0xff]  ;;  %v9092_v37 = vld [vmem:[%s18261_s7 + $0x50] sm:$0xff] }
 0x847   :  { %7690 = vmatpush.msra.mxu2 %v5039_v45  ;;  %v4573_v45 = vsel %vm544_vm1, %v20629_v22, %v20537_v5  ;;  %v20631_v5 = vld [vmem:[#allocation130_spill] sm:$0xff] }
 0x848   :  { %7632 = vmatpush.msra.mxu3 %v20527_v62  ;;  %7655 = vmatpush.msra.mxu0 %v5029_v7  ;;  %v18096_v62 = vpop.f32.mrf.mxu1  ;;  %v7792_v48 = vadd.f32 %v17325_v32, %v7232_v41 }
 0x849   :  { %7633 = vmatmul.f32.vlgmr.msra.gmra.mxu3 %v20618_v1 }
 0x84a   :  { %7956 = vmatpush.msrb.mxu3 %v20615_v29  ;;  %7656 = vmatpush.msra.mxu0 %v5028_v56  ;;  %7820 = vst [vmem:[%s18263_s9 + $0x50] sm:$0xff] %v7792_v48  ;;  %v7286_v47 = vpop.f32.mrf.mxu3  ;;  %v7208_v54 = vpop.f32.mrf.mxu0 }
 0x84b   :  { %v7209_v39 = vadd.f32 %v7208_v54, %v7180_v59  ;;  %v7287_v23 = vadd.f32 %v7286_v47, %v18029_v44 }
 0x84c   :  { %7957 = vmatpush.msrb.mxu3 %v20619_v61  ;;  %7657 = vmatpush.msra.mxu0 %v5027_v17 }
 0x84d   :  { %7555 = vmatmul.f32.gmra.mxu0 %v20622_v0  ;;  %7935 = vmatmul.msk.f32.gmra.mxu2 %vm6531_vm11, %v18113_v55  ;;  %v7234_v58 = vpop.f32.mrf.mxu2 }
 0x84e   :  { %7958 = vmatpush.msrb.mxu3 %v20621_v46  ;;  %7607 = vmatmul.f32.gmra.mxu1 %v9088_v21  ;;  %v7235_v40 = vadd.f32 %v7234_v58, %v7206_v28 }
 0x84f   :  { %7658 = vmatpush.msra.mxu0 %v4576_v3 }
 0x850   :  { %7959 = vmatpush.msrb.mxu3 %v20624_v30  ;;  %v18146_v35 = vpop.f32.mrf.mxu1 }
 0x851   :  { %7659 = vmatpush.msra.mxu0 %v4575_v63  ;;  %7636 = vmatmul.f32.gmra.mxu3 %v17486_v14  ;;  %v7799_v14 = vadd.f32 %v17727_v13, %v7235_v40 }
 0x852   :  { %7960 = vmatpush.msrb.mxu3 %v20626_v18  ;;  %v7289_v52 = vpop.f32.mrf.mxu3 }
 0x853   :  { %7660 = vmatpush.msra.mxu0 %v4574_v6  ;;  %7827 = vst [vmem:[%s18263_s9 + $0x88] sm:$0xff] %v7799_v14  ;;  %v7290_v1 = vadd.f32 %v7289_v52, %v18096_v62 }
 0x854   :  { %7961 = vmatpush.msrb.mxu3 %v20628_v33 }
 0x855   :  { %7661 = vmatpush.msra.mxu0 %v4573_v45  ;;  %7691 = vmatmul.f32.vlgmr.msra.gmra.mxu2 %v17654_v8  ;;  %v7237_v7 = vpop.f32.mrf.mxu2  ;;  %v9090_v8 = vld [vmem:[%s18261_s7 + $0x90] sm:$0xf] }
 0x856   :  { %7962 = vmatpush.msrb.mxu3 %v20630_v9  ;;  %7610 = vmatmul.f32.gmra.mxu1 %v9089_v57 }
 0x857   :  { %7739 = vmatpush.msrb.mxu0 %v20615_v29  ;;  %v7238_v29 = vadd.f32 %v7237_v7, %v7209_v39 }
 0x858   :  { %7662 = vmatmul.f32.vlgmr.msra.gmra.mxu0 %v17576_v19  ;;  %7963 = vmatpush.msrb.mxu3 %v20631_v5  ;;  %v7266_v20 = vpop.f32.mrf.mxu1 }
 0x859   :  { %7740 = vmatpush.msrb.mxu0 %v20619_v61  ;;  %7639 = vmatmul.f32.gmra.mxu3 %v17593_v42  ;;  %v7806_v19 = vadd.f32 %v17785_v4, %v7238_v29  ;;  %v7315_v42 = vpop.f32.mrf.mxu0 }
 0x85a   :  { %7964 = vmatpush.msrb.mxu3 %v20632_v50  ;;  %v7292_v56 = vpop.f32.mrf.mxu3  ;;  %v7316_v44 = vadd.f32 %v7315_v42, %v7287_v23 }
 0x85b   :  { %7741 = vmatpush.msrb.mxu0 %v20621_v46  ;;  %7834 = vst [vmem:[%s18263_s9 + $0xc0] sm:$0xf] %v7806_v19  ;;  %v9093_v46 = vld [vmem:[%s18261_s7 + $0x80] sm:$0xff] }
 0x85c   :  { %7965 = vmatpush.msrb.mxu3 %v20633_v34 }
 0x85d   :  { %7742 = vmatpush.msrb.mxu0 %v20624_v30  ;;  %7694 = vmatmul.f32.gmra.mxu2 %v17782_v27  ;;  %v7344_v60 = vpop.f32.mrf.mxu2 }
 0x85e   :  { %7613 = vmatmul.f32.gmra.mxu1 %v9090_v8  ;;  %v7345_v41 = vadd.f32 %v7344_v60, %v7316_v44 }
 0x85f   :  { %7743 = vmatpush.msrb.mxu0 %v20626_v18 }
 0x860   :  { %7665 = vmatmul.f32.gmra.mxu0 %v17735_v43  ;;  %v9091_v43 = vld [vmem:[%s18261_s7 + $0x20] sm:$0xff]  ;;  %v7373_v27 = vpop.f32.mrf.mxu1 }
 0x861   :  { %7744 = vmatpush.msrb.mxu0 %v20628_v33  ;;  %7642 = vmatmul.f32.gmra.mxu3 %v17713_v2  ;;  %v7318_v51 = vpop.f32.mrf.mxu0 }
 0x862   :  { %v7295_v2 = vpop.f32.mrf.mxu3 }
 0x863   :  { %7745 = vmatpush.msrb.mxu0 %v20630_v9  ;;  %v7296_v11 = vadd.f32 %v7295_v2, %v7266_v20 }
 0x865   :  { %7746 = vmatpush.msrb.mxu0 %v20631_v5  ;;  %7697 = vmatmul.f32.gmra.mxu2 %v17907_v38  ;;  %v7347_v38 = vpop.f32.mrf.mxu2 }
 0x866   :  { %7720 = vmatmul.f32.vlgmr.msrb.gmra.mxu1 %v9091_v43 }
 0x867   :  { %7747 = vmatpush.msrb.mxu0 %v20632_v50 }
 0x868   :  { %7668 = vmatmul.f32.gmra.mxu0 %v17849_v49  ;;  %v7374_v49 = vadd.f32 %v7373_v27, %v7345_v41  ;;  %v7376_v17 = vpop.f32.mrf.mxu1 }
 0x869   :  { %7748 = vmatpush.msrb.mxu0 %v20633_v34  ;;  %7937 = vmatmul.msk.f32.vlgmr.msrb.gmra.mxu3 %vm6531_vm11, %v17973_v16  ;;  %v7319_v16 = vadd.f32 %v7318_v51, %v7290_v1  ;;  %v7321_v48 = vpop.f32.mrf.mxu0 }
 0x86a   :  { %v7402_v61 = vpop.f32.mrf.mxu3 }
 0x86b   :  { %v7403_v15 = vadd.f32 %v7402_v61, %v7374_v49 }
 0x86d   :  { %7700 = vmatmul.f32.gmra.mxu2 %v18016_v25  ;;  %v7786_v62 = vadd.f32 %v17683_v10, %v7403_v15  ;;  %v7293_v25 = vadd.f32 %v7292_v56, %v18146_v35  ;;  %v7350_v3 = vpop.f32.mrf.mxu2 }
 0x86e   :  { %7723 = vmatmul.f32.gmra.mxu1 %v9092_v37 }
 0x86f   :  { %7814 = vst [vmem:[%s18263_s9 + $0x20] sm:$0xff] %v7786_v62  ;;  %v7322_v12 = vadd.f32 %v7321_v48, %v7293_v25 }
 0x870   :  { %7671 = vmatmul.f32.gmra.mxu0 %v17961_v24  ;;  %v7348_v24 = vadd.f32 %v7347_v38, %v7319_v16  ;;  %v7379_v30 = vpop.f32.mrf.mxu1 }
 0x871   :  { %7938 = vmatmul.msk.f32.gmra.mxu3 %vm6531_vm11, %v18059_v36  ;;  %v7324_v47 = vpop.f32.mrf.mxu0 }
 0x872   :  { %v7377_v36 = vadd.f32 %v7376_v17, %v7348_v24  ;;  %v7405_v21 = vpop.f32.mrf.mxu3  ;;  %v7325_v58 = vadd.f32 %v7324_v47, %v7296_v11 }
 0x874   :  { %v7406_v26 = vadd.f32 %v7405_v21, %v7377_v36 }
 0x876   :  { %7726 = vmatmul.f32.gmra.mxu1 %v9093_v46  ;;  %v7793_v28 = vadd.f32 %v17325_v32, %v7406_v26 }
 0x878   :  { %7936 = vmatmul.msk.f32.vlgmr.msrb.gmra.mxu0 %vm6531_vm11, %v17863_v31  ;;  %7821 = vst [vmem:[%s18263_s9 + $0x58] sm:$0xff] %v7793_v28  ;;  %v7351_v31 = vadd.f32 %v7350_v3, %v7322_v12  ;;  %v7382_v59 = vpop.f32.mrf.mxu1 }
 0x879   :  { %7939 = vmatmul.msk.f32.gmra.mxu3 %vm6531_vm11, %v18113_v55  ;;  %v7353_v55 = vpop.f32.mrf.mxu2  ;;  %v7431_v40 = vpop.f32.mrf.mxu0 }
 0x87a   :  { %v7380_v63 = vadd.f32 %v7379_v30, %v7351_v31 }
 0x87b   :  { %v7408_v18 = vpop.f32.mrf.mxu3 }
 0x87c   :  { %v7409_v53 = vadd.f32 %v7408_v18, %v7380_v63 }
 0x87e   :  { %7729 = vmatmul.f32.gmra.mxu1 %v20622_v0  ;;  %v7800_v6 = vadd.f32 %v17727_v13, %v7409_v53  ;;  %v7354_v0 = vadd.f32 %v7353_v55, %v7325_v58 }
 0x880   :  { %7828 = vst [vmem:[%s18263_s9 + $0x90] sm:$0xff] %v7800_v6  ;;  %v7383_v33 = vadd.f32 %v7382_v59, %v7354_v0 }
 0x881   :  { %v7434_v35 = vpop.f32.mrf.mxu0 }
 0x883   :  { %v7411_v54 = vpop.f32.mrf.mxu3 }
 0x884   :  { %v7412_v22 = vadd.f32 %v7411_v54, %v7383_v33 }
 0x886   :  { %v7807_v45 = vadd.f32 %v17785_v4, %v7412_v22 }
 0x888   :  { %7835 = vst [vmem:[%s18263_s9 + $0xc8] sm:$0xf] %v7807_v45  ;;  %v7460_v14 = vpop.f32.mrf.mxu2 }
 0x889   :  { %v7437_v57 = vpop.f32.mrf.mxu0  ;;  %v7461_v34 = vadd.f32 %v7460_v14, %v7431_v40 }
 0x891   :  { %v7463_v9 = vpop.f32.mrf.mxu2  ;;  %v7440_v52 = vpop.f32.mrf.mxu0 }
 0x892   :  { %v7464_v60 = vadd.f32 %v7463_v9, %v7434_v35 }
 0x894   :  { %v7489_v39 = vpop.f32.mrf.mxu1 }
 0x895   :  { %v7490_v42 = vadd.f32 %v7489_v39, %v7461_v34 }
 0x89a   :  { %v7466_v5 = vpop.f32.mrf.mxu2 }
 0x89b   :  { %v7467_v38 = vadd.f32 %v7466_v5, %v7437_v57 }
 0x8a2   :  { %v7518_v7 = vpop.f32.mrf.mxu3 }
 0x8a3   :  { %v7492_v50 = vpop.f32.mrf.mxu1  ;;  %v7519_v56 = vadd.f32 %v7518_v7, %v7490_v42 }
 0x8a4   :  { %v7493_v37 = vadd.f32 %v7492_v50, %v7464_v60 }
 0x8a8   :  { %v7469_v29 = vpop.f32.mrf.mxu2 }
 0x8a9   :  { %v7470_v36 = vadd.f32 %v7469_v29, %v7440_v52 }
 0x8ae   :  { %v7495_v19 = vpop.f32.mrf.mxu1  ;;  %v7547_v8 = vpop.f32.mrf.mxu0 }
 0x8af   :  { %v7521_v20 = vpop.f32.mrf.mxu3  ;;  %v7548_v23 = vadd.f32 %v7547_v8, %v7519_v56  ;;  %v7496_v48 = vadd.f32 %v7495_v19, %v7467_v38 }
 0x8b0   :  { %v7522_v41 = vadd.f32 %v7521_v20, %v7493_v37 }
 0x8b5   :  { %v7576_v43 = vpop.f32.mrf.mxu2 }
 0x8b6   :  { %v7577_v27 = vadd.f32 %v7576_v43, %v7548_v23 }
 0x8b8   :  { %v7787_v2 = vadd.f32 %v17683_v10, %v7577_v27  ;;  %v7498_v44 = vpop.f32.mrf.mxu1  ;;  %v7550_v51 = vpop.f32.mrf.mxu0 }
 0x8b9   :  { %v7524_v1 = vpop.f32.mrf.mxu3  ;;  %v7551_v49 = vadd.f32 %v7550_v51, %v7522_v41  ;;  %v7499_v30 = vadd.f32 %v7498_v44, %v7470_v36 }
 0x8ba   :  { %7815 = vst [vmem:[%s18263_s9 + $0x28] sm:$0xff] %v7787_v2  ;;  %v7525_v24 = vadd.f32 %v7524_v1, %v7496_v48 }
 0x8bf   :  { %v7579_v61 = vpop.f32.mrf.mxu2 }
 0x8c0   :  { %v7580_v16 = vadd.f32 %v7579_v61, %v7551_v49 }
 0x8c1   :  { %v7553_v15 = vpop.f32.mrf.mxu0 }
 0x8c2   :  { %v7794_v17 = vadd.f32 %v17325_v32, %v7580_v16  ;;  %v7605_v62 = vpop.f32.mrf.mxu1  ;;  %v7554_v25 = vadd.f32 %v7553_v15, %v7525_v24 }
 0x8c3   :  { %v7527_v46 = vpop.f32.mrf.mxu3 }
 0x8c4   :  { %7822 = vst [vmem:[%s18263_s9 + $0x60] sm:$0xff] %v7794_v17  ;;  %v7528_v11 = vadd.f32 %v7527_v46, %v7499_v30 }
 0x8c8   :  { %v7582_v21 = vpop.f32.mrf.mxu2 }
 0x8c9   :  { %v7583_v26 = vadd.f32 %v7582_v21, %v7554_v25 }
 0x8ca   :  { %v7556_v3 = vpop.f32.mrf.mxu0 }
 0x8cb   :  { %v7801_v12 = vadd.f32 %v17727_v13, %v7583_v26  ;;  %v7608_v28 = vpop.f32.mrf.mxu1  ;;  %v7557_v31 = vadd.f32 %v7556_v3, %v7528_v11 }
 0x8cc   :  { %v7634_v47 = vpop.f32.mrf.mxu3 }
 0x8cd   :  { %7829 = vst [vmem:[%s18263_s9 + $0x98] sm:$0xff] %v7801_v12  ;;  %v7635_v50 = vadd.f32 %v7634_v47, %v7605_v62 }
 0x8d0   :  { %v7585_v63 = vpop.f32.mrf.mxu2 }
 0x8d1   :  { %v7586_v18 = vadd.f32 %v7585_v63, %v7557_v31 }
 0x8d3   :  { %v7611_v58 = vpop.f32.mrf.mxu1  ;;  %v7808_v53 = vadd.f32 %v17785_v4, %v7586_v18 }
 0x8d4   :  { %v7637_v6 = vpop.f32.mrf.mxu3 }
 0x8d5   :  { %v7663_v55 = vpop.f32.mrf.mxu0  ;;  %7836 = vst [vmem:[%s18263_s9 + $0xd0] sm:$0xf] %v7808_v53  ;;  %v7638_v35 = vadd.f32 %v7637_v6, %v7608_v28 }
 0x8d6   :  { %v7664_v8 = vadd.f32 %v7663_v55, %v7635_v50 }
 0x8d8   :  { %v7692_v40 = vpop.f32.mrf.mxu2 }
 0x8d9   :  { %v7693_v56 = vadd.f32 %v7692_v40, %v7664_v8 }
 0x8db   :  { %v7614_v59 = vpop.f32.mrf.mxu1 }
 0x8dc   :  { %v7640_v33 = vpop.f32.mrf.mxu3 }
 0x8dd   :  { %v7666_v0 = vpop.f32.mrf.mxu0  ;;  %v7641_v34 = vadd.f32 %v7640_v33, %v7611_v58 }
 0x8de   :  { %v7667_v9 = vadd.f32 %v7666_v0, %v7638_v35 }
 0x8e0   :  { %v7695_v22 = vpop.f32.mrf.mxu2 }
 0x8e1   :  { %v7696_v57 = vadd.f32 %v7695_v22, %v7667_v9 }
 0x8e3   :  { %v7721_v54 = vpop.f32.mrf.mxu1 }
 0x8e4   :  { %v7643_v14 = vpop.f32.mrf.mxu3  ;;  %v7722_v43 = vadd.f32 %v7721_v54, %v7693_v56 }
 0x8e5   :  { %v7669_v45 = vpop.f32.mrf.mxu0  ;;  %v7644_v1 = vadd.f32 %v7643_v14, %v7614_v59 }
 0x8e6   :  { %v7670_v20 = vadd.f32 %v7669_v45, %v7641_v34 }
 0x8e8   :  { %v7698_v29 = vpop.f32.mrf.mxu2 }
 0x8e9   :  { %v7699_v23 = vadd.f32 %v7698_v29, %v7670_v20 }
 0x8eb   :  { %v7724_v39 = vpop.f32.mrf.mxu1 }
 0x8ec   :  { %v7725_v52 = vadd.f32 %v7724_v39, %v7696_v57  ;;  %v7753_v7 = vpop.f32.mrf.mxu3 }
 0x8ed   :  { %v7672_v5 = vpop.f32.mrf.mxu0 }
 0x8ee   :  { %v7754_v19 = vadd.f32 %v7753_v7, %v7725_v52  ;;  %v7673_v38 = vadd.f32 %v7672_v5, %v7644_v1 }
 0x8f0   :  { %v7795_v42 = vadd.f32 %v17325_v32, %v7754_v19  ;;  %v7701_v49 = vpop.f32.mrf.mxu2 }
 0x8f1   :  { %v7702_v61 = vadd.f32 %v7701_v49, %v7673_v38 }
 0x8f2   :  { %7823 = vst [vmem:[%s18263_s9 + $0x68] sm:$0xff] %v7795_v42 }
 0x8f3   :  { %v7727_v60 = vpop.f32.mrf.mxu1 }
 0x8f4   :  { %v7728_v27 = vadd.f32 %v7727_v60, %v7699_v23  ;;  %v7756_v51 = vpop.f32.mrf.mxu3 }
 0x8f5   :  { %v7750_v2 = vpop.f32.mrf.mxu0 }
 0x8f6   :  { %v7751_v44 = vadd.f32 %v7750_v2, %v7722_v43  ;;  %v7757_v37 = vadd.f32 %v7756_v51, %v7728_v27 }
 0x8f8   :  { %v7788_v41 = vadd.f32 %v17683_v10, %v7751_v44  ;;  %v7802_v32 = vadd.f32 %v17727_v13, %v7757_v37 }
 0x8fa   :  { %7816 = vst [vmem:[%s18263_s9 + $0x30] sm:$0xff] %v7788_v41 }
 0x8fb   :  { %7830 = vst [vmem:[%s18263_s9 + $0xa0] sm:$0xff] %v7802_v32  ;;  %v7730_v16 = vpop.f32.mrf.mxu1 }
 0x8fc   :  { %v7731_v15 = vadd.f32 %v7730_v16, %v7702_v61  ;;  %v7759_v17 = vpop.f32.mrf.mxu3 }
 0x8fe   :  { %v7760_v62 = vadd.f32 %v7759_v17, %v7731_v15 }
 0x900   :  { %v7809_v48 = vadd.f32 %v17785_v4, %v7760_v62 }
 0x902   :  { %7837 = vst [vmem:[%s18263_s9 + $0xd8] sm:$0xf] %v7809_v48 }

</bundles_post_ra>
